<compile_context>
chip_gen: v7x
topology: tpu7x:2x2x1
jax: 0.10.0
libtpu: 0.0.40
codegen_flags: <defaults>
</compile_context>

<pallas_src>
import functools

import jax
import jax.numpy as jnp
from jax.experimental import pallas as pl
from jax.experimental.pallas import tpu as pltpu


def _siren_kernel(xT_ref, wf_ref, wh_ref, b_ref, o_ref, *, num_hidden, in_features):
    """One batch tile, feature-major layout.

    xT_ref: [in, T]   (batch in the lane dim)
    wf_ref: [H, in]   first-layer weight (PyTorch (out, in) layout, w0-folded)
    wh_ref: [L, H, H] hidden weights     (PyTorch (out, in) layout, w0-folded)
    b_ref:  [L+1, H, 1] biases (w0-folded)
    o_ref:  [H, T]
    """
    x = xT_ref[...]                                           # [in, T]

    if in_features <= 8:
        # Tiny K: first layer as broadcast FMAs on the VPU (outer-product
        # style), avoiding a K=in_features MXU pass + result-FIFO drain.
        h = wf_ref[:, 0:1] * x[0:1, :]                        # [H,1]*[1,T] -> [H,T]
        for k in range(1, in_features):
            h = h + wf_ref[:, k:k + 1] * x[k:k + 1, :]
        h = h + b_ref[0]                                      # [H,1] lane-broadcast
    else:
        h = jnp.dot(wf_ref[...], x,
                    preferred_element_type=jnp.float32,
                    precision=jax.lax.Precision.HIGHEST) + b_ref[0]
    h = jnp.sin(h)                                            # frequency already folded

    # Hidden layers (static unroll; num_hidden is small). Weights are stored in
    # PyTorch (out, in) layout so each layer is W_l @ h on the MXU.
    for l in range(num_hidden):
        h = jnp.dot(wh_ref[l], h,
                    preferred_element_type=jnp.float32,
                    precision=jax.lax.Precision.HIGHEST) + b_ref[l + 1]
        h = jnp.sin(h)

    o_ref[...] = h.astype(o_ref.dtype)                        # lane-dense, unmasked store


def siren_forward(x, w_first, w_hidden, biases, *, tile_m=512):
    """Fused SIREN forward.

    x:        [N, in_features] float32
    w_first:  [H, in_features] (PyTorch (out, in) layout, first_w0 pre-folded)
    w_hidden: [L, H, H]        (PyTorch (out, in) layout, w0 pre-folded)
    biases:   [L+1, H, 1]      (frequencies pre-folded)
    returns:  [N, H] float32
    """
    N, in_features = x.shape
    H = w_first.shape[0]
    L = w_hidden.shape[0]
    assert w_hidden.shape == (L, H, H) and biases.shape == (L + 1, H, 1)

    # Batch lives in the lane dim -> tile must be a multiple of 128. Clamp the
    # tile to the (rounded-up) batch so tiny batches don't over-pad, then pad N
    # up to a whole number of tiles (padded rows are computed and discarded).
    tile_m = max(128, min(int(tile_m), pl.cdiv(N, 128) * 128))
    n_pad = pl.cdiv(N, tile_m) * tile_m

    xT = jnp.pad(x, ((0, n_pad - N), (0, 0))).T               # [in, n_pad]

    kernel = functools.partial(
        _siren_kernel, num_hidden=L, in_features=in_features)

    grid_spec = pltpu.PrefetchScalarGridSpec(
        num_scalar_prefetch=0,
        grid=(n_pad // tile_m,),
        in_specs=[
            pl.BlockSpec((in_features, tile_m), lambda i: (0, i)),  # x tile
            # Constant-across-grid weights/biases: fully resident in VMEM.
            pl.BlockSpec((H, in_features), lambda i: (0, 0)),
            pl.BlockSpec((L, H, H), lambda i: (0, 0, 0)),
            pl.BlockSpec((L + 1, H, 1), lambda i: (0, 0, 0)),
        ],
        out_specs=pl.BlockSpec((H, tile_m), lambda i: (0, i)),
    )

    cost = pl.CostEstimate(
        flops=2 * n_pad * (in_features * H + L * H * H),
        transcendentals=n_pad * H * (L + 1),
        bytes_accessed=4 * (in_features * n_pad + H * in_features
                            + L * H * H + (L + 1) * H + H * n_pad),
    )

    out_fm = pl.pallas_call(
        kernel,
        out_shape=jax.ShapeDtypeStruct((H, n_pad), jnp.float32),
        grid_spec=grid_spec,
        compiler_params=pltpu.CompilerParams(
            dimension_semantics=("parallel",)),
        cost_estimate=cost,
    )(xT, w_first, w_hidden, biases)

    # Back to the PyTorch [N, H] layout (pure layout plumbing in the wrapper).
    return out_fm.T[:N]


def init_siren_params(key, in_features, hidden_features, num_hidden, w0):
    """PyTorch-layout params matching SIREN.init_weights() distributions."""
    kf_w, kf_b, kh = jax.random.split(key, 3)
    H = hidden_features

    # First layer: W ~ U(-1/in, 1/in); bias keeps nn.Linear default U(+-1/sqrt(in)).
    w_first = jax.random.uniform(kf_w, (H, in_features), jnp.float32,
                                 minval=-1.0 / in_features, maxval=1.0 / in_features)
    b_bound = 1.0 / float(in_features) ** 0.5
    b_first = jax.random.uniform(kf_b, (H,), jnp.float32,
                                 minval=-b_bound, maxval=b_bound)

    # Hidden layers: W ~ U(-sqrt(6/in)/w0, +sqrt(6/in)/w0); bias = 0.
    w_std = (6.0 / H) ** 0.5 / w0
    w_hidden = jax.random.uniform(kh, (num_hidden, H, H), jnp.float32,
                                  minval=-w_std, maxval=w_std)
    b_hidden = jnp.zeros((num_hidden, H), jnp.float32)
    return w_first, b_first, w_hidden, b_hidden


def prepare_siren_params(w_first, b_first, w_hidden, b_hidden, first_w0, w0):
    """One-time parameter transform: fold the sine frequencies into the
    weights/biases so the kernel computes sin(h) directly."""
    wf = (first_w0 * w_first).astype(jnp.float32)                       # [H, in]
    wh = (w0 * w_hidden).astype(jnp.float32)                            # [L, H, H]
    b = jnp.concatenate([first_w0 * b_first[None, :], w0 * b_hidden], 0)
    return wf, wh, b[..., None].astype(jnp.float32)                     # [L+1, H, 1]


def siren_reference(x, w_first, b_first, w_hidden, b_hidden, first_w0, w0):
    """Plain-JAX reference of the PyTorch forward (unfolded parameters)."""
    hp = jax.lax.Precision.HIGHEST
    h = jnp.sin(first_w0 * (jnp.dot(x, w_first.T, precision=hp) + b_first))
    for l in range(w_hidden.shape[0]):
        h = jnp.sin(w0 * (jnp.dot(h, w_hidden[l].T, precision=hp) + b_hidden[l]))
    return h


if __name__ == "__main__":
    # Small INR-style problem: 2-D coordinates, hidden=32, 2 hidden layers.
    in_features = 2
    hidden_features = 32
    num_hidden = 2
    first_w0 = 10.0
    w0 = 10.0
    N = 2048            # batch of coordinate samples -> 4 grid steps at tile_m=512

    key = jax.random.PRNGKey(0)
    kx, kp = jax.random.split(key)
    x = jax.random.uniform(kx, (N, in_features), jnp.float32, minval=-1.0, maxval=1.0)

    w_first, b_first, w_hidden, b_hidden = init_siren_params(
        kp, in_features, hidden_features, num_hidden, w0)
    wf, wh, b = prepare_siren_params(w_first, b_first, w_hidden, b_hidden, first_w0, w0)

    out = siren_forward(x, wf, wh, b, tile_m=512)
    out = jax.block_until_ready(out)

    ref = siren_reference(x, w_first, b_first, w_hidden, b_hidden, first_w0, w0)
    assert out.shape == (N, hidden_features)
    max_err = float(jnp.max(jnp.abs(out - ref)))
    assert max_err < 2e-4, f"mismatch vs reference: max abs err {max_err}"

    # Exercise the padded / non-multiple-of-tile batch path too.
    N2 = 300
    x2 = jax.random.uniform(jax.random.PRNGKey(1), (N2, in_features), jnp.float32,
                            minval=-1.0, maxval=1.0)
    out2 = jax.block_until_ready(siren_forward(x2, wf, wh, b, tile_m=512))
    ref2 = siren_reference(x2, w_first, b_first, w_hidden, b_hidden, first_w0, w0)
    assert out2.shape == (N2, hidden_features)
    assert float(jnp.max(jnp.abs(out2 - ref2))) < 2e-4, "padded-batch mismatch"

    print("KERNEL_OK")
</pallas_src>

<mosaic_0001>
module attributes {stable_mosaic.version = 11 : i64} {
  func.func @_siren_kernel(%arg0: i32, %arg1: memref<2x512xf32, #tpu.memory_space<vmem>>, %arg2: memref<32x2xf32, #tpu.memory_space<vmem>>, %arg3: memref<2x32x32xf32, #tpu.memory_space<vmem>>, %arg4: memref<3x32x1xf32, #tpu.memory_space<vmem>>, %arg5: memref<32x512xf32, #tpu.memory_space<vmem>>) attributes {dimension_semantics = [#tpu.dimension_semantics<parallel>], iteration_bounds = array<i64: 4>, scalar_prefetch = 0 : i64, scratch_operands = 0 : i64, tpu.core_type = #tpu.core_type<tc>, window_params = [{transform_indices = @transform_0, window_bounds = array<i64: 2, 512>}, {pipeline_mode = #tpu.pipeline_mode<synchronous>, transform_indices = @transform_1, window_bounds = array<i64: 32, 2>}, {pipeline_mode = #tpu.pipeline_mode<synchronous>, transform_indices = @transform_2, window_bounds = array<i64: 2, 32, 32>}, {pipeline_mode = #tpu.pipeline_mode<synchronous>, transform_indices = @transform_3, window_bounds = array<i64: 3, 32, 1>}, {transform_indices = @transform_4, window_bounds = array<i64: 32, 512>}]} {
    %c0 = arith.constant 0 : index
    %c0_0 = arith.constant 0 : index
    %0 = vector.load %arg1[%c0, %c0_0] : memref<2x512xf32, #tpu.memory_space<vmem>>, vector<2x512xf32>
    %c0_1 = arith.constant 0 : index
    %c0_2 = arith.constant 0 : index
    %1 = vector.load %arg2[%c0_1, %c0_2] : memref<32x2xf32, #tpu.memory_space<vmem>>, vector<32x1xf32>
    %2 = vector.extract_strided_slice %0 {offsets = [0, 0], sizes = [1, 512], strides = [1, 1]} : vector<2x512xf32> to vector<1x512xf32>
    %3 = vector.broadcast %1 : vector<32x1xf32> to vector<32x512xf32>
    %4 = vector.broadcast %2 : vector<1x512xf32> to vector<32x512xf32>
    %5 = arith.mulf %3, %4 : vector<32x512xf32>
    %c0_3 = arith.constant 0 : index
    %c1 = arith.constant 1 : index
    %6 = vector.load %arg2[%c0_3, %c1] : memref<32x2xf32, #tpu.memory_space<vmem>>, vector<32x1xf32>
    %7 = vector.extract_strided_slice %0 {offsets = [1, 0], sizes = [1, 512], strides = [1, 1]} : vector<2x512xf32> to vector<1x512xf32>
    %8 = vector.broadcast %6 : vector<32x1xf32> to vector<32x512xf32>
    %9 = vector.broadcast %7 : vector<1x512xf32> to vector<32x512xf32>
    %10 = arith.mulf %8, %9 : vector<32x512xf32>
    %11 = arith.addf %5, %10 : vector<32x512xf32>
    %c0_4 = arith.constant 0 : index
    %c0_5 = arith.constant 0 : index
    %c0_6 = arith.constant 0 : index
    %12 = vector.load %arg4[%c0_4, %c0_5, %c0_6] : memref<3x32x1xf32, #tpu.memory_space<vmem>>, vector<1x32x1xf32>
    %13 = vector.shape_cast %12 : vector<1x32x1xf32> to vector<32x1xf32>
    %14 = vector.broadcast %13 : vector<32x1xf32> to vector<32x512xf32>
    %15 = arith.addf %11, %14 : vector<32x512xf32>
    %16 = math.sin %15 : vector<32x512xf32>
    %c0_7 = arith.constant 0 : index
    %c0_8 = arith.constant 0 : index
    %c0_9 = arith.constant 0 : index
    %17 = vector.load %arg3[%c0_7, %c0_8, %c0_9] : memref<2x32x32xf32, #tpu.memory_space<vmem>>, vector<1x32x32xf32>
    %18 = vector.shape_cast %17 : vector<1x32x32xf32> to vector<32x32xf32>
    %cst = arith.constant dense<0.000000e+00> : vector<32x512xf32>
    %19 = tpu.matmul %18, %16, %cst {dimension_numbers = #tpu.dot_dimension_numbers<[1], [0], [0], [1], [0, 0, 1, 1], [], []>, precision = #tpu.contract_precision<fp32>} : vector<32x32xf32>, vector<32x512xf32>, vector<32x512xf32> -> vector<32x512xf32>
    %c1_10 = arith.constant 1 : index
    %c0_11 = arith.constant 0 : index
    %c0_12 = arith.constant 0 : index
    %20 = vector.load %arg4[%c1_10, %c0_11, %c0_12] : memref<3x32x1xf32, #tpu.memory_space<vmem>>, vector<1x32x1xf32>
    %21 = vector.shape_cast %20 : vector<1x32x1xf32> to vector<32x1xf32>
    %22 = vector.broadcast %21 : vector<32x1xf32> to vector<32x512xf32>
    %23 = arith.addf %19, %22 : vector<32x512xf32>
    %24 = math.sin %23 : vector<32x512xf32>
    %c1_13 = arith.constant 1 : index
    %c0_14 = arith.constant 0 : index
    %c0_15 = arith.constant 0 : index
    %25 = vector.load %arg3[%c1_13, %c0_14, %c0_15] : memref<2x32x32xf32, #tpu.memory_space<vmem>>, vector<1x32x32xf32>
    %26 = vector.shape_cast %25 : vector<1x32x32xf32> to vector<32x32xf32>
    %cst_16 = arith.constant dense<0.000000e+00> : vector<32x512xf32>
    %27 = tpu.matmul %26, %24, %cst_16 {dimension_numbers = #tpu.dot_dimension_numbers<[1], [0], [0], [1], [0, 0, 1, 1], [], []>, precision = #tpu.contract_precision<fp32>} : vector<32x32xf32>, vector<32x512xf32>, vector<32x512xf32> -> vector<32x512xf32>
    %c2 = arith.constant 2 : index
    %c0_17 = arith.constant 0 : index
    %c0_18 = arith.constant 0 : index
    %28 = vector.load %arg4[%c2, %c0_17, %c0_18] : memref<3x32x1xf32, #tpu.memory_space<vmem>>, vector<1x32x1xf32>
    %29 = vector.shape_cast %28 : vector<1x32x1xf32> to vector<32x1xf32>
    %30 = vector.broadcast %29 : vector<32x1xf32> to vector<32x512xf32>
    %31 = arith.addf %27, %30 : vector<32x512xf32>
    %32 = math.sin %31 : vector<32x512xf32>
    %c0_19 = arith.constant 0 : index
    %c0_20 = arith.constant 0 : index
    %33 = vector.load %arg5[%c0_19, %c0_20] : memref<32x512xf32, #tpu.memory_space<vmem>>, vector<32x512xf32>
    tpu.vector_store %arg5[%c0_19, %c0_20], %32 {strides = array<i32>} : memref<32x512xf32, #tpu.memory_space<vmem>>, vector<32x512xf32>,
    return
  }
  func.func @transform_0(%arg0: i32) -> (i32, i32) {
    %c0_i32 = arith.constant 0 : i32
    %c0_i32_0 = arith.constant 0 : i32
    return %c0_i32, %arg0 : i32, i32
  }
  func.func @transform_1(%arg0: i32) -> (i32, i32) {
    %c0_i32 = arith.constant 0 : i32
    %c0_i32_0 = arith.constant 0 : i32
    %c0_i32_1 = arith.constant 0 : i32
    return %c0_i32, %c0_i32_0 : i32, i32
  }
  func.func @transform_2(%arg0: i32) -> (i32, i32, i32) {
    %c0_i32 = arith.constant 0 : i32
    %c0_i32_0 = arith.constant 0 : i32
    %c0_i32_1 = arith.constant 0 : i32
    %c0_i32_2 = arith.constant 0 : i32
    return %c0_i32, %c0_i32_0, %c0_i32_1 : i32, i32, i32
  }
  func.func @transform_3(%arg0: i32) -> (i32, i32, i32) {
    %c0_i32 = arith.constant 0 : i32
    %c0_i32_0 = arith.constant 0 : i32
    %c0_i32_1 = arith.constant 0 : i32
    %c0_i32_2 = arith.constant 0 : i32
    return %c0_i32, %c0_i32_0, %c0_i32_1 : i32, i32, i32
  }
  func.func @transform_4(%arg0: i32) -> (i32, i32) {
    %c0_i32 = arith.constant 0 : i32
    %c0_i32_0 = arith.constant 0 : i32
    return %c0_i32, %arg0 : i32, i32
  }
}

</mosaic_0001>

<bundles_post_ra>
// kernel: tpu_custom_call.1
= control target key start
LH: loop header
LB: loop body
LE: loop exit
PB: predicated region body
PF: predicated region fallthrough
CT: control target
= control target key end

     0   :  { %9 = vsyncpa [#allocation3], 0  ;;  %s14641_s0 = inlined_call_operand.vmem [shape: f32[2,2048], index: 0, kind: input, shape index: {}]   ;;  %s14642_s1 = inlined_call_operand.vmem [shape: f32[32,2], index: 1, kind: input, shape index: {}]   ;;  %s14643_s2 = inlined_call_operand.vmem [shape: f32[2,32,32], index: 2, kind: input, shape index: {}]   ;;  %s14644_s3 = inlined_call_operand.vmem [shape: f32[3,32,1], index: 3, kind: input, shape index: {}]   ;;  %s14645_s4 = inlined_call_operand.hbm [shape: f32[32,2048], index: 4, kind: output, shape index: {}]  }
   0x1   :  { %11 = vsyncpa [#allocation3 + $0x1], 0  ;;  %s9473_s15 = smov 0   ;;  %s9475_s16 = smov 0  }
   0x2   :  { %s9477_s17 = smov 0   ;;  %s9479_s18 = smov 0  }
   0x3 LB: > { %s9494_s19 = sadd.s32 4294967295, %s9433_s18   ;;  %s8329_s20 = sadd.s32 4294967294, %s9433_s18   ;;  %s9433_s18 = sphi %s9479_s18, %s15054_s18   ;;  %s9429_s17 = sphi %s9477_s17, %s15053_s17   ;;  %s9425_s16 = sphi %s9475_s16, %s15052_s16   ;;  %s9421_s15 = sphi %s9473_s15, %s15051_s15  }
   0x4   : > { %s9498_s21 = sadd.s32 1, %s9433_s18   ;;  %s113_s22 = sadd.s32 1, %s9429_s17 }
   0x5   : > { %s110_s23 = ssub.s32 %s9433_s18, %s9498_s21  ;;  %p123_p0 = scmp.ne.s32.totalorder %s9429_s17, %s9425_s16 }
   0x6   : > { %p111_p1 = scmp.eq.s32.totalorder %s110_s23, 0  ;;  %p124_p2 = scmp.eq.s32.totalorder %s9494_s19, 3 }
   0x7   : > { %p129_p3 = scmp.ne.s32.totalorder %s9425_s16, %s9421_s15  ;;  %p130_p4 = scmp.eq.s32.totalorder %s8329_s20, 3 }
   0x8   : > { %s9509_s24 = scalar_select %p111_p1, %s9429_s17, %s113_s22  }
   0x9   : > { %p9511_p5 = por %p124_p2, %p123_p0  ;;  %p9515_p6 = por %p130_p4, %p129_p3 }
   0xa   : > { %p8332_p7 = scmp.ge.s32.totalorder %s9433_s18, 1  ;;  %p166_p8 = scmp.lt.s32.totalorder %s9433_s18, 5 }
   0xc   : > { %p167_p9 = pnand %p8332_p7, %p166_p8 }
   0xe   : > { %170 = sbr.rel (%p167_p9) target bundleno = 2076 (0x81c), region = 36 }
  0x15   : > { %v202_v0 = vld [vmem:[%s14642_s1 + $0x10] sm:$0xff]  ;;  %v200_v1 = vld [vmem:[%s14642_s1] sm:$0xff]  ;;  %v9435_v2 = vmov 1   ;;  %v201_v3 = vld [vmem:[%s14642_s1 + $0x8] sm:$0xff]  ;;  %v9436_v4 = vmov 0   ;;  %s8334_s22 = sshll.u32 %s9494_s19, 2  ;;  %v225_v18 = vlaneseq }
  0x16   : > { %9175 = vset.pattern.permute.xlu0 %v9435_v2  ;;  %9173 = vset.pattern.permute.xlu1 %v9435_v2  ;;  %v203_v5 = vld [vmem:[%s14642_s1 + $0x18] sm:$0xff]  ;;  %v362_v6 = vld [vmem:[%s14644_s3 + $0x8] sm:$0xff]  ;;  %v361_v7 = vld [vmem:[%s14644_s3] sm:$0xff]  ;;  %p193_p10 = scmp.lt.s32.totalorder %s8334_s22, 15  ;;  %s8545_s6 = sshll.u32 %s9494_s19, 9 }
  0x17   : > { %286 = vperm.xlu0 %9175, %v202_v0   ;;  %278 = vperm.xlu1 %9173, %v200_v1   ;;  %v8400_v8 = vld [vmem:[%s14644_s3 + $0x20] sm:$0xff]  ;;  %v363_v9 = vld [vmem:[%s14644_s3 + $0x10] sm:$0xff]  ;;  %v364_v11 = vld [vmem:[%s14644_s3 + $0x18] sm:$0xff]  ;;  %v226_v19 = vshrl.u32 %v225_v18, 7  ;;  %s14592_s10 = scalar_lea.hbm %s14645_s4, %s8545_s6  ;;  %s9444_s12 = smov [#allocation2]  }
  0x18   : > { %v8402_v10 = vld [vmem:[%s14644_s3 + $0x30] sm:$0xff]  ;;  %v8472_v12 = vld [vmem:[%s14644_s3 + $0x40] sm:$0xff]  ;;  %v8401_v13 = vld [vmem:[%s14644_s3 + $0x28] sm:$0xff]  ;;  %s15056_s22 = smov (!%p193_p10, %s8334_s22), 15  ;;  %s9375_s13 = sshll.u32 %s9444_s12, 4  ;;  %s9376_s13 = int_to_ptr.vmem [resolvable:$false] %s9375_s13 }
  0x19   : > { %v8474_v14 = vld [vmem:[%s14644_s3 + $0x50] sm:$0xff]  ;;  %v8403_v15 = vld [vmem:[%s14644_s3 + $0x38] sm:$0xff]  ;;  %v8473_v16 = vld [vmem:[%s14644_s3 + $0x48] sm:$0xff]  ;;  %s8335_s23 = sshll.u32 %s15056_s22, 1  ;;  %v227_v21 = vsub.s32 0, %v226_v19  ;;  %v231_v22 = vsub.s32 2, %v226_v19 }
  0x1a   : > { %v8475_v17 = vld [vmem:[%s14644_s3 + $0x58] sm:$0xff]  ;;  %s196_s29 = scalar_lea.vmem %s14641_s0, %s8335_s23  ;;  %v235_v23 = vsub.s32 4, %v226_v19  ;;  %v295_v24 = vsub.s32 1, %v226_v19  ;;  %v299_v25 = vsub.s32 3, %v226_v19  ;;  %v303_v26 = vsub.s32 5, %v226_v19  ;;  %s9377_s14 = scalar_lea.vmem %s9376_s13, 4096 }
  0x1b   : > { %9176 = vset.pattern.permute.xlu0 %v9436_v4  ;;  %282 = vperm.xlu1 %9173, %v201_v3   ;;  %v199_v27 = vld [vmem:[%s196_s29] sm:$0xff]  ;;  %v307_v28 = vsub.s32 7, %v226_v19  ;;  %v239_v30 = vsub.s32 6, %v226_v19  ;;  %s189_s29 = sand.u32 1, %s9425_s16  }
  0x1c   : > { %206 = vperm.xlu0 %9176, %v200_v1   ;;  %v228_v32 = vrot.slane %v199_v27, %v227_v21  ;;  %v232_v33 = vrot.slane %v199_v27, %v231_v22  ;;  %v236_v34 = vrot.slane %v199_v27, %v235_v23  ;;  %v296_v35 = vrot.slane %v199_v27, %v295_v24  ;;  %s8333_s30 = sshll.u32 %s189_s29, 7  ;;  %s14600_s19 = scalar_lea.sflag [#allocation3], %s189_s29 }
  0x1d   : > { %v300_v36 = vrot.slane %v199_v27, %v299_v25  ;;  %v304_v37 = vrot.slane %v199_v27, %v303_v26  ;;  %v308_v38 = vrot.slane %v199_v27, %v307_v28  ;;  %v240_v39 = vrot.slane %v199_v27, %v239_v30  ;;  %s13590_s5 = scalar_lea.vmem [#allocation2], %s8333_s30 }
  0x1e   : > { %v9577_v41 = vrot.slane %v228_v32, %v227_v21  ;;  %v9579_v42 = vrot.slane %v232_v33, %v227_v21  ;;  %v9581_v43 = vrot.slane %v236_v34, %v227_v21  ;;  %v9583_v44 = vrot.slane %v296_v35, %v295_v24  ;;  %s8267_s7 = sshll.u32 %s13590_s5, 4  ;;  %s14594_s7 = int_to_ptr.vmem [resolvable:$true] %s8267_s7 }
  0x1f   : > { %9174 = vset.pattern.permute.xlu1 %v9436_v4  ;;  %v9585_v45 = vrot.slane %v300_v36, %v295_v24  ;;  %v9587_v47 = vrot.slane %v304_v37, %v295_v24  ;;  %v9592_v51 = vrot.slane %v308_v38, %v295_v24  ;;  %v9594_v52 = vrot.slane %v240_v39, %v227_v21  ;;  %s9371_s11 = scalar_lea.vmem %s14594_s7, 2048  ;;  %p9378_p0 = scmp.lt.s32.totalorder %s14594_s7, %s9376_s13 }
  0x20   : > { %211 = vperm.xlu0 %9176, %v201_v3   ;;  %221 = vperm.xlu1 %9174, %v203_v5   ;;  %p9372_p11 = scmp.ne.s32.totalorder %s14594_s7, %s9371_s11  ;;  %p9379_p1 = scmp.lt.s32.totalorder %s9377_s14, %s9371_s11 }
  0x22   : > { %p9373_p12 = pnand %p9372_p11, %p9511_p5  ;;  %p9380_p2 = por %p9379_p1, %p9378_p0 }
  0x24   : > { %216 = vperm.xlu0 %9176, %v202_v0   ;;  %9177 = vset.pattern.permute.xlu1 %v9435_v2  ;;  %p9374_p13 = pneg %p9373_p12 }
  0x25   : > { %290 = vperm.xlu1 %9177, %v203_v5  }
  0x26   : > { %p9381_p3 = pnand %p9380_p2, %p9374_p13 }
  0x28   : > { %372 = vperm.xlu0 %9176, %v362_v6  }
  0x29   : > { %9178 = vset.pattern.permute.xlu1 %v9436_v4 }
  0x2a   : > { %367 = vperm.xlu1 %9178, %v361_v7  }
  0x2c   : > { %2076 = vperm.xlu0 %9176, %v8400_v8  }
  0x2e   : > { %377 = vperm.xlu1 %9178, %v363_v9  }
  0x30   : > { %2086 = vperm.xlu0 %9176, %v8402_v10  }
  0x32   : > { %382 = vperm.xlu1 %9178, %v364_v11  }
  0x34   : > { %5163 = vperm.xlu0 %9176, %v8472_v12  }
  0x36   : > { %2081 = vperm.xlu1 %9178, %v8401_v13  }
  0x38   : > { %5173 = vperm.xlu0 %9176, %v8474_v14  }
  0x3a   : > { %2091 = vperm.xlu1 %9178, %v8403_v15  }
  0x3e   : > { %5168 = vperm.xlu1 %9178, %v8473_v16  }
  0x42   : > { %5178 = vperm.xlu1 %9178, %v8475_v17  }
  0x96   : > { %v9570_v20 = vpop.permute.xlu0 %286  ;;  %v279_v29 = vpop.permute.xlu1 %278 }
  0x97   : > { %v337_v63 = vmul.f32 %v9583_v44, %v9570_v20  ;;  %v339_v0 = vmul.f32 %v9587_v47, %v9570_v20  ;;  %v329_v9 = vmul.f32 %v9583_v44, %v279_v29  ;;  %v330_v13 = vmul.f32 %v9585_v45, %v279_v29 }
  0x98   : > { %v9631_v17 = vmul.f32 %v9587_v47, %v279_v29  ;;  %v9637_v22 = vmul.f32 %v9592_v51, %v279_v29  ;;  %v9641_v23 = vmul.f32 %v9585_v45, %v9570_v20  ;;  %v9656_v35 = vmul.f32 %v9592_v51, %v9570_v20 }
  0x9a   : > { %v283_v46 = vpop.permute.xlu1 %282 }
  0x9b   : > { %v9575_v31 = vpop.permute.xlu0 %206  ;;  %v333_v54 = vmul.f32 %v9583_v44, %v283_v46  ;;  %v334_v55 = vmul.f32 %v9585_v45, %v283_v46  ;;  %v335_v56 = vmul.f32 %v9587_v47, %v283_v46  ;;  %v336_v1 = vmul.f32 %v9592_v51, %v283_v46 }
  0x9c   : > { %v261_v26 = vmul.f32 %v9577_v41, %v9575_v31  ;;  %v262_v27 = vmul.f32 %v9579_v42, %v9575_v31  ;;  %v9660_v36 = vmul.f32 %v9581_v43, %v9575_v31  ;;  %v9664_v39 = vmul.f32 %v9594_v52, %v9575_v31 }
  0x9f   : > { %v212_v40 = vpop.permute.xlu0 %211 }
  0xa0   : > { %v265_v48 = vmul.f32 %v9577_v41, %v212_v40  ;;  %v266_v49 = vmul.f32 %v9579_v42, %v212_v40  ;;  %v267_v50 = vmul.f32 %v9581_v43, %v212_v40  ;;  %v268_v57 = vmul.f32 %v9594_v52, %v212_v40 }
  0xa2   : > { %v349_v60 = vadd.f32 %v333_v54, %v265_v48  ;;  %v350_v61 = vadd.f32 %v334_v55, %v266_v49  ;;  %v351_v62 = vadd.f32 %v335_v56, %v267_v50  ;;  %v352_v6 = vadd.f32 %v336_v1, %v268_v57 }
  0xa3   : > { %v9596_v53 = vpop.permute.xlu0 %216  ;;  %v9666_v50 = vadd.f32 %v329_v9, %v261_v26  ;;  %v9668_v54 = vadd.f32 %v330_v13, %v262_v27 }
  0xa4   : > { %v269_v58 = vmul.f32 %v9577_v41, %v9596_v53  ;;  %v271_v59 = vmul.f32 %v9581_v43, %v9596_v53 }
  0xa6   : > { %v9617_v7 = vadd.f32 %v337_v63, %v269_v58  ;;  %v9619_v8 = vadd.f32 %v339_v0, %v271_v59  ;;  %v14652_v0 = vmov 683565275  }
  0xa7   : > { %v373_v2 = vpop.permute.xlu0 %372 }
  0xa8   : > { %v9611_v3 = vadd.f32 %v373_v2, %v349_v60  ;;  %v9613_v4 = vadd.f32 %v373_v2, %v350_v61  ;;  %v9615_v5 = vadd.f32 %v373_v2, %v351_v62  ;;  %v9626_v14 = vadd.f32 %v373_v2, %v352_v6 }
  0xa9   : > { %v14650_v2 = vmov 2475754826  }
  0xaa   : > { %14775 = vst [vmem:[#allocation5_spill] sm:$0xff] %v9611_v3  ;;  %14776 = vst [vmem:[#allocation6_spill] sm:$0xff] %v9615_v5  ;;  %v14647_v10 = vand.u32 2147483647, %v9611_v3  ;;  %v820_v11 = vand.u32 2139095040, %v9611_v3  ;;  %v924_v15 = vand.u32 2139095040, %v9613_v4 }
  0xab   : > { %v14648_v12 = vand.u32 2147483647, %v9613_v4  ;;  %v14646_v16 = vand.u32 2147483647, %v9615_v5  ;;  %v1028_v21 = vand.u32 2139095040, %v9615_v5  ;;  %v1132_v34 = vand.u32 2139095040, %v9626_v14 }
  0xac   : > { %v821_v18 = vshrl.u32 %v820_v11, 23  ;;  %v824_v19 = vand.u32 8388607, %v14647_v10  ;;  %v925_v24 = vshrl.u32 %v924_v15, 23  ;;  %v14656_v11 = vmov 2131351028  }
  0xad   : > { %v928_v25 = vand.u32 8388607, %v14648_v12  ;;  %v1029_v30 = vshrl.u32 %v1028_v21, 23  ;;  %v9651_v29 = vand.u32 8388607, %v14646_v16  ;;  %v1133_v48 = vshrl.u32 %v1132_v34, 23 }
  0xae   : > { %v8352_v28 = vadd.s32 4294967169, %v821_v18  ;;  %v825_v32 = vor.u32 8388608, %v824_v19  ;;  %v8356_v33 = vadd.s32 4294967169, %v925_v24  ;;  %v14662_v15 = vmov 2102212464  }
  0xaf   : > { %v8360_v38 = vadd.s32 4294967169, %v1029_v30  ;;  %v929_v40 = vor.u32 8388608, %v928_v25  ;;  %v1033_v56 = vor.u32 8388608, %v9651_v29  ;;  %v9677_v62 = vadd.s32 4294967169, %v1133_v48 }
  0xb0   : > { %v827_v37 = vadd.s32 1, %v8352_v28  ;;  %v931_v46 = vadd.s32 1, %v8356_v33  ;;  %v9670_v55 = vshll.u32 %v825_v32, 8  ;;  %v14660_v19 = vmov 920167782  }
  0xb1   : > { %v1035_v49 = vadd.s32 1, %v8360_v38  ;;  %v9675_v61 = vshll.u32 %v929_v40, 8  ;;  %v14658_v30 = vmov 1326507024  }
  0xb2   : > { %vm828_vm0 = vcmp.gt.s32.totalorder %v827_v37, 0  ;;  %vm932_vm1 = vcmp.gt.s32.totalorder %v931_v46, 0 }
  0xb3   : > { %v829_v20 = vsel %vm828_vm0, %v827_v37, 0  ;;  %v933_v59 = vsel %vm932_vm1, %v931_v46, 0  ;;  %vm1036_vm2 = vcmp.gt.s32.totalorder %v1035_v49, 0 }
  0xb4   : > { %v830_v57 = vshrl.u32 %v829_v20, 5  ;;  %v831_v58 = vand.u32 31, %v829_v20  ;;  %v9673_v31 = vshrl.u32 %v933_v59, 5  ;;  %v935_v60 = vand.u32 31, %v933_v59 }
  0xb5   : > { %v9681_v9 = vsel %vm1036_vm2, %v1035_v49, 0 }
  0xb6   : > { %v832_v63 = vsub.s32 32, %v831_v58  ;;  %v834_v1 = vshll.u32 %v14652_v0, %v831_v58  ;;  %v837_v6 = vshll.u32 %v14650_v2, %v831_v58  ;;  %v840_v13 = vshll.u32 %v14656_v11, %v831_v58 }
  0xb7   : > { %v843_v18 = vshll.u32 %v14662_v15, %v831_v58  ;;  %v846_v21 = vshll.u32 %v14660_v19, %v831_v58  ;;  %vm849_vm3 = vcmp.lt.s32.totalorder %v830_v57, 1  ;;  %vm850_vm4 = vcmp.lt.s32.totalorder %v830_v57, 2 }
  0xb8   : > { %v835_v24 = vshrl.u32 %v14650_v2, %v832_v63  ;;  %v838_v25 = vshrl.u32 %v14656_v11, %v832_v63  ;;  %v841_v26 = vshrl.u32 %v14662_v15, %v832_v63  ;;  %v833_v27 = vshrl.u32 %v14652_v0, %v832_v63 }
  0xb9   : > { %v844_v28 = vshrl.u32 %v14660_v19, %v832_v63  ;;  %v847_v32 = vshrl.u32 %v14658_v30, %v832_v63  ;;  %vm851_vm5 = vcmp.lt.s32.totalorder %v830_v57, 3  ;;  %v936_v38 = vsub.s32 32, %v935_v60 }
  0xba   : > { %v836_v33 = vor.u32 %v835_v24, %v834_v1  ;;  %v839_v34 = vor.u32 %v838_v25, %v837_v6  ;;  %v842_v37 = vor.u32 %v841_v26, %v840_v13  ;;  %vm852_vm6 = vcmp.lt.s32.totalorder %v830_v57, 4 }
  0xbb   : > { %v845_v40 = vor.u32 %v844_v28, %v843_v18  ;;  %v848_v46 = vor.u32 %v847_v32, %v846_v21  ;;  %v938_v48 = vshll.u32 %v14652_v0, %v935_v60  ;;  %v941_v1 = vshll.u32 %v14650_v2, %v935_v60 }
  0xbc   : > { %v853_v49 = vsel %vm849_vm3, %v833_v27, %v836_v33  ;;  %v854_v20 = vsel %vm852_vm6, %v842_v37, 2102212464  ;;  %v857_v58 = vsel %vm849_vm3, %v836_v33, %v839_v34  ;;  %v861_v59 = vsel %vm849_vm3, %v839_v34, %v842_v37 }
  0xbd   : > { %v855_v16 = vsel %vm851_vm5, %v839_v34, %v854_v20  ;;  %v858_v63 = vsel %vm852_vm6, %v845_v40, 920167782  ;;  %v862_v10 = vsel %vm852_vm6, %v848_v46, 1326507024  ;;  %v937_v18 = vshrl.u32 %v14652_v0, %v936_v38 }
  0xbe   : > { %v859_v6 = vsel %vm851_vm5, %v842_v37, %v858_v63  ;;  %v863_v13 = vsel %vm851_vm5, %v845_v40, %v862_v10  ;;  %v939_v21 = vshrl.u32 %v14650_v2, %v936_v38  ;;  %v856_v24 = vsel %vm850_vm4, %v853_v49, %v855_v16 }
  0xbf   : > { %v860_v25 = vsel %vm850_vm4, %v857_v58, %v859_v6  ;;  %v864_v26 = vsel %vm850_vm4, %v861_v59, %v863_v13  ;;  %v942_v27 = vshrl.u32 %v14656_v11, %v936_v38  ;;  %v944_v40 = vshll.u32 %v14656_v11, %v935_v60 }
  0xc0   : > { %v9707_v28 = vmul.u32.u64.low %v9670_v55, %v864_v26  ;;  %v9708_v32 = vmul.u32.u64.high %v9670_v55, %v864_v26, %v9707_v28  ;;  %v9711_v33 = vmul.u32.u64.low %v9670_v55, %v860_v25  ;;  %v9712_v34 = vmul.u32.u64.high %v9670_v55, %v860_v25, %v9711_v33 }
  0xc1   : > { %v940_v10 = vor.u32 %v939_v21, %v938_v48  ;;  %v943_v37 = vor.u32 %v942_v27, %v941_v1  ;;  %v945_v16 = vshrl.u32 %v14662_v15, %v936_v38  ;;  %v872_v57 = vmul.u32 %v9670_v55, %v856_v24 }
  0xc2   : > { %v947_v46 = vshll.u32 %v14662_v15, %v935_v60  ;;  %v948_v49 = vshrl.u32 %v14660_v19, %v936_v38  ;;  %v951_v20 = vshrl.u32 %v14658_v30, %v936_v38  ;;  %v950_v59 = vshll.u32 %v14660_v19, %v935_v60 }
  0xc3   : > { %v946_v58 = vor.u32 %v945_v16, %v944_v40  ;;  %vm953_vm7 = vcmp.lt.s32.totalorder %v9673_v31, 1  ;;  %vm954_vm8 = vcmp.lt.s32.totalorder %v9673_v31, 2  ;;  %vm874_vm9 = vc.u32 %v9708_v32, %v9711_v33 }
  0xc4   : > { %v875_v48 = vadd.s32 1, %v9712_v34  ;;  %v949_v63 = vor.u32 %v948_v49, %v947_v46  ;;  %vm955_vm10 = vcmp.lt.s32.totalorder %v9673_v31, 3  ;;  %v952_v55 = vor.u32 %v951_v20, %v950_v59 }
  0xc5   : > { %vm956_vm11 = vcmp.lt.s32.totalorder %v9673_v31, 4  ;;  %v957_v1 = vsel %vm953_vm7, %v937_v18, %v940_v10  ;;  %v961_v38 = vsel %vm953_vm7, %v940_v10, %v943_v37  ;;  %v965_v21 = vsel %vm953_vm7, %v943_v37, %v946_v58 }
  0xc6   : > { %v876_v6 = vsel %vm874_vm9, %v875_v48, %v9712_v34  ;;  %v958_v60 = vsel %vm956_vm11, %v946_v58, 2102212464  ;;  %v962_v13 = vsel %vm956_vm11, %v949_v63, 920167782  ;;  %v966_v27 = vsel %vm956_vm11, %v952_v55, 1326507024 }
  0xc7   : > { %v877_v24 = vadd.s32 %v876_v6, %v872_v57  ;;  %v959_v25 = vsel %vm955_vm10, %v943_v37, %v958_v60  ;;  %v963_v26 = vsel %vm955_vm10, %v946_v58, %v962_v13  ;;  %v967_v16 = vsel %vm955_vm10, %v949_v63, %v966_v27 }
  0xc8   : > { %v960_v28 = vsel %vm954_vm8, %v957_v1, %v959_v25  ;;  %v964_v40 = vsel %vm954_vm8, %v961_v38, %v963_v26  ;;  %v9735_v46 = vshrl.u32 %v9681_v9, 5  ;;  %v968_v34 = vsel %vm954_vm8, %v965_v21, %v967_v16  ;;  %v222_v25 = vpop.permute.xlu1 %221 }
  0xc9   : > { %v878_v18 = vadd.s32 536870912, %v877_v24  ;;  %v9740_v10 = vmul.u32.u64.low %v9675_v61, %v964_v40  ;;  %v9741_v57 = vmul.u32.u64.high %v9675_v61, %v964_v40, %v9740_v10  ;;  %v1039_v20 = vand.u32 31, %v9681_v9 }
  0xca   : > { %v9745_v37 = vmul.u32.u64.low %v9675_v61, %v968_v34  ;;  %v9746_v49 = vmul.u32.u64.high %v9675_v61, %v968_v34, %v9745_v37  ;;  %v9751_v58 = vadd.f32 %v9631_v17, %v9660_v36  ;;  %v9757_v31 = vshll.u32 %v1033_v56, 8 }
  0xcb   : > { %v9753_v59 = vshrl.u32 %v878_v18, 30  ;;  %v14649_v48 = vand.u32 2147483647, %v9626_v14  ;;  %v1139_v63 = vadd.s32 1, %v9677_v62  ;;  %v976_v55 = vmul.u32 %v9675_v61, %v960_v28 }
  0xcc   : > { %v1040_v1 = vsub.s32 32, %v1039_v20  ;;  %v1042_v38 = vshll.u32 %v14652_v0, %v1039_v20  ;;  %vm1057_vm12 = vcmp.lt.s32.totalorder %v9735_v46, 1  ;;  %v979_v36 = vadd.s32 1, %v9741_v57 }
  0xcd   : > { %14777 = vst [vmem:[#allocation7_spill] sm:$0xff] %v9753_v59  ;;  %v880_v17 = vshll.u32 %v9753_v59, 30  ;;  %v1045_v9 = vshll.u32 %v14650_v2, %v1039_v20  ;;  %v1048_v29 = vshll.u32 %v14656_v11, %v1039_v20  ;;  %vm1058_vm13 = vcmp.lt.s32.totalorder %v9735_v46, 2 }
  0xce   : > { %vm978_vm14 = vc.u32 %v9746_v49, %v9740_v10  ;;  %v1043_v56 = vshrl.u32 %v14650_v2, %v1040_v1  ;;  %v1051_v61 = vshll.u32 %v14662_v15, %v1039_v20  ;;  %v1054_v62 = vshll.u32 %v14660_v19, %v1039_v20 }
  0xcf   : > { %v9774_v6 = vsub.s32 %v877_v24, %v880_v17  ;;  %v980_v60 = vsel %vm978_vm14, %v979_v36, %v9741_v57  ;;  %v1046_v13 = vshrl.u32 %v14656_v11, %v1040_v1  ;;  %v1049_v21 = vshrl.u32 %v14662_v15, %v1040_v1 }
  0xd0   : > { %v981_v26 = vadd.s32 %v980_v60, %v976_v55  ;;  %v1044_v27 = vor.u32 %v1043_v56, %v1042_v38  ;;  %v1052_v28 = vshrl.u32 %v14660_v19, %v1040_v1  ;;  %v1055_v40 = vshrl.u32 %v14658_v30, %v1040_v1 }
  0xd1   : > { %v883_v16 = vsub.s32 0, %v9774_v6  ;;  %v1041_v18 = vshrl.u32 %v14652_v0, %v1040_v1  ;;  %v1047_v34 = vor.u32 %v1046_v13, %v1045_v9  ;;  %v1050_v24 = vor.u32 %v1049_v21, %v1048_v29  ;;  %v291_v13 = vpop.permute.xlu1 %290 }
  0xd2   : > { %v982_v37 = vadd.s32 536870912, %v981_v26  ;;  %v1053_v20 = vor.u32 %v1052_v28, %v1051_v61  ;;  %v1056_v57 = vor.u32 %v1055_v40, %v1054_v62  ;;  %vm1060_vm15 = vcmp.lt.s32.totalorder %v9735_v46, 4 }
  0xd3   : > { %v8353_v17 = vmin.u32 %v883_v16, %v9774_v6  ;;  %v1062_v36 = vsel %vm1060_vm15, %v1050_v24, 2102212464  ;;  %v1065_v55 = vsel %vm1057_vm12, %v1044_v27, %v1047_v34  ;;  %v1069_v38 = vsel %vm1057_vm12, %v1047_v34, %v1050_v24 }
  0xd4   : > { %v9789_v56 = vshrl.u32 %v982_v37, 30  ;;  %vm1059_vm0 = vcmp.lt.s32.totalorder %v9735_v46, 3  ;;  %v1066_v1 = vsel %vm1060_vm15, %v1053_v20, 920167782  ;;  %v1070_v9 = vsel %vm1060_vm15, %v1056_v57, 1326507024 }
  0xd5   : > { %v885_v29 = vclz %v8353_v17  ;;  %v1061_v61 = vsel %vm1057_vm12, %v1041_v18, %v1044_v27  ;;  %v1067_v62 = vsel %vm1059_vm0, %v1050_v24, %v1066_v1  ;;  %v1071_v60 = vsel %vm1059_vm0, %v1053_v20, %v1070_v9  ;;  %v9843_v1 = vpop.permute.xlu1 %367 }
  0xd6   : > { %14778 = vst [vmem:[#allocation8_spill] sm:$0xff] %v9789_v56  ;;  %v984_v21 = vshll.u32 %v9789_v56, 30  ;;  %v1063_v28 = vsel %vm1059_vm0, %v1047_v34, %v1062_v36  ;;  %v1068_v40 = vsel %vm1058_vm13, %v1065_v55, %v1067_v62  ;;  %v1072_v16 = vsel %vm1058_vm13, %v1069_v38, %v1071_v60 }
  0xd7   : > { %v8354_v37 = vadd.s32 4294967294, %v885_v29  ;;  %v9800_v12 = vmul.u32.u64.low %v9757_v31, %v1072_v16  ;;  %v9801_v57 = vmul.u32.u64.high %v9757_v31, %v1072_v16, %v9800_v12  ;;  %vm1140_vm1 = vcmp.gt.s32.totalorder %v1139_v63, 0 }
  0xd8   : > { %v9803_v17 = vsub.s32 %v981_v26, %v984_v21  ;;  %v9806_v27 = vmul.u32.u64.low %v9757_v31, %v1068_v40  ;;  %v9807_v18 = vmul.u32.u64.high %v9757_v31, %v1068_v40, %v9806_v27  ;;  %v1141_v34 = vsel %vm1140_vm1, %v1139_v63, 0 }
  0xd9   : > { %v9811_v24 = vmul.f32 %v9577_v41, %v222_v25  ;;  %v9814_v20 = vmul.f32 %v9579_v42, %v222_v25  ;;  %v1143_v36 = vand.u32 31, %v1141_v34  ;;  %v9818_v55 = vadd.f32 %v9637_v22, %v9664_v39 }
  0xda   : > { %v9821_v12 = vmul.f32 %v9581_v43, %v222_v25  ;;  %vm8355_vm2 = vcmp.lt.s32.totalorder %v8354_v37, 0  ;;  %v987_v26 = vsub.s32 0, %v9803_v17  ;;  %v1064_v63 = vsel %vm1058_vm13, %v1061_v61, %v1063_v28 }
  0xdb   : > { %v9827_v41 = vmul.f32 %v9594_v52, %v222_v25  ;;  %v9831_v38 = vmul.f32 %v9579_v42, %v9596_v53  ;;  %v9835_v22 = vmul.f32 %v9594_v52, %v9596_v53  ;;  %v1136_v43 = vand.u32 8388607, %v14649_v48 }
  0xdc   : > { %v8357_v39 = vmin.u32 %v987_v26, %v9803_v17  ;;  %vm1082_vm3 = vc.u32 %v9801_v57, %v9806_v27  ;;  %v1083_v46 = vadd.s32 1, %v9807_v18  ;;  %v1144_v25 = vsub.s32 32, %v1143_v36 }
  0xdd   : > { %14779 = vst [vmem:[#allocation9_spill] sm:$0xff] %v9827_v41  ;;  %v9846_v42 = vmul.f32 %v9583_v44, %v291_v13  ;;  %v9849_v9 = vmul.f32 %v9585_v45, %v291_v13  ;;  %v9851_v52 = vsel %vm8355_vm2, 0, %v8354_v37  ;;  %v1080_v53 = vmul.u32 %v9757_v31, %v1064_v63 }
  0xde   : > { %v9855_v29 = vmul.f32 %v9587_v47, %v291_v13  ;;  %v9858_v61 = vmul.f32 %v9592_v51, %v291_v13  ;;  %v989_v62 = vclz %v8357_v39  ;;  %v1084_v60 = vsel %vm1082_vm3, %v1083_v46, %v9807_v18 }
  0xdf   : > { %v1085_v21 = vadd.s32 %v1084_v60, %v1080_v53  ;;  %v1137_v28 = vor.u32 8388608, %v1136_v43  ;;  %v9863_v44 = vadd.f32 %v9843_v1, %v9666_v50  ;;  %v9867_v45 = vadd.f32 %v9843_v1, %v9668_v54 }
  0xe0   : > { %14780 = vst [vmem:[#allocation10_spill] sm:$0xff] %v9858_v61  ;;  %v893_v31 = vsub.s32 4294967266, %v9851_v52  ;;  %v8358_v47 = vadd.s32 4294967294, %v989_v62  ;;  %v1147_v40 = vshrl.u32 %v14650_v2, %v1144_v25  ;;  %v1150_v51 = vshrl.u32 %v14656_v11, %v1144_v25 }
  0xe1   : > { %14781 = vst [vmem:[#allocation11_spill] sm:$0xff] %v9867_v45  ;;  %v873_v13 = vadd.s32 %v9711_v33, %v9708_v32  ;;  %v1086_v16 = vadd.s32 536870912, %v1085_v21  ;;  %v1142_v37 = vshrl.u32 %v1141_v34, 5  ;;  %v1153_v18 = vshrl.u32 %v14662_v15, %v1144_v25 }
  0xe2   : > { %vm8359_vm4 = vcmp.lt.s32.totalorder %v8358_v47, 0  ;;  %v1146_v50 = vshll.u32 %v14652_v0, %v1143_v36  ;;  %v1149_v54 = vshll.u32 %v14650_v2, %v1143_v36  ;;  %v1156_v26 = vshrl.u32 %v14660_v19, %v1144_v25 }
  0xe3   : > { %v889_v63 = vsub.s32 32, %v9851_v52  ;;  %v9879_v43 = vsel %vm8359_vm4, 0, %v8358_v47  ;;  %v9881_v39 = vshrl.u32 %v1086_v16, 30  ;;  %v1152_v46 = vshll.u32 %v14656_v11, %v1143_v36 }
  0xe4   : > { %v894_v32 = vadd.s32 127, %v893_v31  ;;  %v1148_v33 = vor.u32 %v1147_v40, %v1146_v50  ;;  %v1151_v34 = vor.u32 %v1150_v51, %v1149_v54  ;;  %v1155_v53 = vshll.u32 %v14662_v15, %v1143_v36 }
  0xe5   : > { %14782 = vst [vmem:[#allocation12_spill] sm:$0xff] %v9881_v39  ;;  %v1088_v62 = vshll.u32 %v9881_v39, 30  ;;  %v1154_v60 = vor.u32 %v1153_v18, %v1152_v46  ;;  %v1158_v48 = vshll.u32 %v14660_v19, %v1143_v36  ;;  %v1159_v2 = vshrl.u32 %v14658_v30, %v1144_v25 }
  0xe6   : > { %v977_v47 = vadd.s32 %v9740_v10, %v9746_v49  ;;  %v997_v16 = vsub.s32 4294967266, %v9879_v43  ;;  %v1157_v0 = vor.u32 %v1156_v26, %v1155_v53  ;;  %v1177_v59 = vshll.u32 %v1137_v28, 8 }
  0xe7   : > { %v891_v11 = vshrl.u32 %v873_v13, %v889_v63  ;;  %v9891_v31 = vsub.s32 %v1085_v21, %v1088_v62  ;;  %v1160_v40 = vor.u32 %v1159_v2, %v1158_v48  ;;  %v895_v50 = vshll.u32 %v894_v32, 23 }
  0xe8   : > { %v14783_v54 = vmov 683565275   ;;  %vm1161_vm5 = vcmp.lt.s32.totalorder %v1142_v37, 1  ;;  %vm1164_vm6 = vcmp.lt.s32.totalorder %v1142_v37, 4  ;;  %v993_v36 = vsub.s32 32, %v9879_v43 }
  0xe9   : > { %v1145_v18 = vshrl.u32 %v14783_v54, %v1144_v25  ;;  %v1091_v46 = vsub.s32 0, %v9891_v31  ;;  %v1166_v10 = vsel %vm1164_vm6, %v1154_v60, 2102212464  ;;  %v1169_v49 = vsel %vm1161_vm5, %v1148_v33, %v1151_v34 }
  0xea   : > { %v998_v30 = vadd.s32 127, %v997_v16  ;;  %vm1162_vm7 = vcmp.lt.s32.totalorder %v1142_v37, 2  ;;  %vm1163_vm8 = vcmp.lt.s32.totalorder %v1142_v37, 3  ;;  %v1170_v28 = vsel %vm1164_vm6, %v1157_v0, 920167782 }
  0xeb   : > { %v8361_v21 = vmin.u32 %v1091_v46, %v9891_v31  ;;  %v1171_v2 = vsel %vm1163_vm8, %v1154_v60, %v1170_v28  ;;  %v1173_v48 = vsel %vm1161_vm5, %v1151_v34, %v1154_v60  ;;  %v1174_v13 = vsel %vm1164_vm6, %v1160_v40, 1326507024 }
  0xec   : > { %v1165_v26 = vsel %vm1161_vm5, %v1145_v18, %v1148_v33  ;;  %v1167_v63 = vsel %vm1163_vm8, %v1151_v34, %v1166_v10  ;;  %v1172_v25 = vsel %vm1162_vm7, %v1169_v49, %v1171_v2  ;;  %v1175_v32 = vsel %vm1163_vm8, %v1157_v0, %v1174_v13 }
  0xed   : > { %v1093_v53 = vclz %v8361_v21  ;;  %v1176_v62 = vsel %vm1162_vm7, %v1173_v48, %v1175_v32  ;;  %v9900_v19 = vmul.u32.u64.low %v1177_v59, %v1172_v25  ;;  %v9901_v15 = vmul.u32.u64.high %v1177_v59, %v1172_v25, %v9900_v19 }
  0xee   : > { %v890_v16 = vshll.u32 %v9774_v6, %v9851_v52  ;;  %v896_v51 = vor.u32 4788187, %v895_v50  ;;  %v9905_v39 = vmul.u32.u64.low %v1177_v59, %v1176_v62  ;;  %v9906_v46 = vmul.u32.u64.high %v1177_v59, %v1176_v62, %v9905_v39 }
  0xef   : > { %v995_v60 = vshrl.u32 %v977_v47, %v993_v36  ;;  %v8362_v40 = vadd.s32 4294967294, %v1093_v53  ;;  %v1168_v33 = vsel %vm1162_vm7, %v1165_v26, %v1167_v63  ;;  %v404_v34 = vand.u32 2139095040, %v9863_v44 }
  0xf0   : > { %v892_v0 = vor.u32 %v891_v11, %v890_v16  ;;  %v994_v18 = vshll.u32 %v9803_v17, %v9879_v43  ;;  %v508_v10 = vand.u32 2139095040, %v9867_v45  ;;  %v9915_v49 = vadd.f32 %v9641_v23, %v9831_v38 }
  0xf1   : > { %v999_v6 = vshll.u32 %v998_v30, 23  ;;  %vm8363_vm9 = vcmp.lt.s32.totalorder %v8362_v40, 0  ;;  %v1187_v52 = vadd.s32 1, %v9901_v15  ;;  %v405_v39 = vshrl.u32 %v404_v34, 23 }
  0xf2   : > { %v1096_v47 = vsel %vm8363_vm9, 0, %v8362_v40  ;;  %v1184_v37 = vmul.u32 %v1177_v59, %v1168_v33  ;;  %vm1186_vm10 = vc.u32 %v9906_v46, %v9900_v19  ;;  %v9921_v11 = vadd.f32 %v9656_v35, %v9835_v22 }
  0xf3   : > { %v897_v17 = vand.u32 2147483647, %v896_v51  ;;  %v9923_v43 = vor.u32 %v995_v60, %v994_v18  ;;  %v1188_v50 = vsel %vm1186_vm10, %v1187_v52, %v9901_v15  ;;  %v14784_v23 = vand.u32 2147483647, %v9863_v44 }
  0xf4   : > { %v1097_v38 = vsub.s32 32, %v1096_v47  ;;  %v1189_v36 = vadd.s32 %v1188_v50, %v1184_v37  ;;  %v8336_v28 = vadd.s32 4294967169, %v405_v39  ;;  %v509_v21 = vshrl.u32 %v508_v10, 23 }
  0xf5   : > { %v408_v30 = vand.u32 8388607, %v14784_v23  ;;  %v899_v2 = vcvt.s32.f32 %v892_v0  ;;  %v9928_v59 = vor.u32 4788187, %v999_v6  ;;  %v9932_v48 = vadd.f32 %v9843_v1, %v9751_v58 }
  0xf6   : > { %v9936_v35 = vadd.f32 %v9843_v1, %v9818_v55  ;;  %v1081_v15 = vadd.s32 %v9806_v27, %v9801_v57  ;;  %v1190_v22 = vadd.s32 536870912, %v1189_v36  ;;  %v411_v51 = vadd.s32 1, %v8336_v28 }
  0xf7   : > { %14785 = vst [vmem:[#allocation13_spill] sm:$0xff] %v9932_v48  ;;  %v8340_v13 = vadd.s32 4294967169, %v509_v21  ;;  %v9940_v26 = vmul.f32 %v899_v2, %v897_v17  ;;  %v1101_v63 = vsub.s32 4294967266, %v1096_v47  ;;  %v409_v25 = vor.u32 8388608, %v408_v30 }
  0xf8   : > { %v14666_v32 = vand.u32 2147483647, %v9867_v45  ;;  %v1099_v58 = vshrl.u32 %v1081_v15, %v1097_v38  ;;  %v9944_v62 = vshrl.u32 %v1190_v22, 30  ;;  %vm412_vm11 = vcmp.gt.s32.totalorder %v411_v51, 0 }
  0xf9   : > { %v413_v1 = vsel %vm412_vm11, %v411_v51, 0  ;;  %v515_v16 = vadd.s32 1, %v8340_v13  ;;  %v1098_v27 = vshll.u32 %v9891_v31, %v1096_v47  ;;  %v9950_v60 = vadd.s32 %v9900_v19, %v9906_v46 }
  0xfa   : > { %14786 = vst [vmem:[#allocation14_spill] sm:$0xff] %v9944_v62  ;;  %v1192_v40 = vshll.u32 %v9944_v62, 30  ;;  %v415_v33 = vand.u32 31, %v413_v1  ;;  %v1102_v34 = vadd.s32 127, %v1101_v63  ;;  %v9953_v0 = vshll.u32 %v409_v25, 8 }
  0xfb   : > { %v512_v18 = vand.u32 8388607, %v14666_v32  ;;  %v612_v10 = vand.u32 2139095040, %v9932_v48  ;;  %v9958_v6 = vor.u32 %v1099_v58, %v1098_v27  ;;  %v414_v39 = vshrl.u32 %v413_v1, 5 }
  0xfc   : > { %v9960_v52 = vsub.s32 %v1189_v36, %v1192_v40  ;;  %v416_v31 = vsub.s32 32, %v415_v33  ;;  %v418_v19 = vshll.u32 %v14783_v54, %v415_v33  ;;  %v14787_v46 = vmov 2475754826  }
  0xfd   : > { %v421_v47 = vshll.u32 %v14787_v46, %v415_v33  ;;  %v14788_v37 = vmov 2131351028   ;;  %vm516_vm12 = vcmp.gt.s32.totalorder %v515_v16, 0  ;;  %v14789_v38 = vmov 2102212464  }
  0xfe   : > { %v424_v17 = vshll.u32 %v14788_v37, %v415_v33  ;;  %v1195_v50 = vsub.s32 0, %v9960_v52  ;;  %v419_v23 = vshrl.u32 %v14787_v46, %v416_v31  ;;  %v422_v30 = vshrl.u32 %v14788_v37, %v416_v31 }
  0xff   : > { %v427_v28 = vshll.u32 %v14789_v38, %v415_v33  ;;  %v425_v36 = vshrl.u32 %v14789_v38, %v416_v31  ;;  %v14790_v21 = vmov 920167782   ;;  %v14791_v22 = vmov 1326507024  }
 0x100   : > { %v428_v2 = vshrl.u32 %v14790_v21, %v416_v31  ;;  %v430_v15 = vshll.u32 %v14790_v21, %v415_v33  ;;  %v431_v51 = vshrl.u32 %v14791_v22, %v416_v31  ;;  %v1103_v13 = vshll.u32 %v1102_v34, 23 }
 0x101   : > { %v8365_v63 = vmin.u32 %v1195_v50, %v9960_v52  ;;  %v420_v25 = vor.u32 %v419_v23, %v418_v19  ;;  %v423_v58 = vor.u32 %v422_v30, %v421_v47  ;;  %v426_v1 = vor.u32 %v425_v36, %v424_v17 }
 0x102   : > { %v429_v27 = vor.u32 %v428_v2, %v427_v28  ;;  %v432_v40 = vor.u32 %v431_v51, %v430_v15  ;;  %v513_v32 = vor.u32 8388608, %v512_v18  ;;  %vm433_vm13 = vcmp.lt.s32.totalorder %v414_v39, 1 }
 0x103   : > { %v1197_v53 = vclz %v8365_v63  ;;  %vm436_vm14 = vcmp.lt.s32.totalorder %v414_v39, 4  ;;  %v517_v55 = vsel %vm516_vm12, %v515_v16, 0  ;;  %vm434_vm15 = vcmp.lt.s32.totalorder %v414_v39, 2 }
 0x104   : > { %vm435_vm0 = vcmp.lt.s32.totalorder %v414_v39, 3  ;;  %v441_v33 = vsel %vm433_vm13, %v420_v25, %v423_v58  ;;  %v442_v57 = vsel %vm436_vm14, %v429_v27, 920167782  ;;  %v438_v34 = vsel %vm436_vm14, %v426_v1, 2102212464 }
 0x105   : > { %v8366_v62 = vadd.s32 4294967294, %v1197_v53  ;;  %v443_v56 = vsel %vm435_vm0, %v426_v1, %v442_v57  ;;  %v445_v19 = vsel %vm433_vm13, %v423_v58, %v426_v1  ;;  %v9977_v47 = vor.u32 4788187, %v1103_v13 }
 0x106   : > { %v417_v17 = vshrl.u32 %v14783_v54, %v416_v31  ;;  %v444_v18 = vsel %vm434_vm15, %v441_v33, %v443_v56  ;;  %v446_v50 = vsel %vm436_vm14, %v432_v40, 1326507024  ;;  %v439_v28 = vsel %vm435_vm0, %v423_v58, %v438_v34 }
 0x107   : > { %vm8367_vm1 = vcmp.lt.s32.totalorder %v8366_v62, 0  ;;  %v447_v23 = vsel %vm435_vm0, %v429_v27, %v446_v50  ;;  %v9982_v16 = vmul.u32.u64.low %v9953_v0, %v444_v18  ;;  %v9983_v30 = vmul.u32.u64.high %v9953_v0, %v444_v18, %v9982_v16 }
 0x108   : > { %v437_v53 = vsel %vm433_vm13, %v417_v17, %v420_v25  ;;  %v448_v57 = vsel %vm434_vm15, %v445_v19, %v447_v23  ;;  %v519_v36 = vand.u32 31, %v517_v55  ;;  %v1200_v15 = vsel %vm8367_vm1, 0, %v8366_v62 }
 0x109   : > { %v613_v31 = vshrl.u32 %v612_v10, 23  ;;  %v14792_v56 = vand.u32 2147483647, %v9932_v48  ;;  %v9994_v13 = vmul.u32.u64.low %v9953_v0, %v448_v57  ;;  %v9995_v63 = vmul.u32.u64.high %v9953_v0, %v448_v57, %v9994_v13 }
 0x10a   : > { %v520_v1 = vsub.s32 32, %v519_v36  ;;  %v9997_v27 = vshll.u32 %v513_v32, 8  ;;  %v1105_v25 = vand.u32 2147483647, %v9977_v47  ;;  %v440_v58 = vsel %vm434_vm15, %v437_v53, %v439_v28 }
 0x10b   : > { %v9991_v51 = vand.u32 8388607, %v14792_v56  ;;  %v459_v40 = vadd.s32 1, %v9983_v30  ;;  %v518_v33 = vshrl.u32 %v517_v55, 5  ;;  %v1201_v62 = vsub.s32 32, %v1200_v15 }
 0x10c   : > { %v1205_v10 = vsub.s32 4294967266, %v1200_v15  ;;  %v523_v34 = vshrl.u32 %v14787_v46, %v520_v1  ;;  %v526_v19 = vshrl.u32 %v14788_v37, %v520_v1  ;;  %v522_v17 = vshll.u32 %v14783_v54, %v519_v36 }
 0x10d   : > { %v525_v18 = vshll.u32 %v14787_v46, %v519_v36  ;;  %v528_v32 = vshll.u32 %v14788_v37, %v519_v36  ;;  %v529_v50 = vshrl.u32 %v14789_v38, %v520_v1  ;;  %v456_v39 = vmul.u32 %v9953_v0, %v440_v58 }
 0x10e   : > { %vm458_vm2 = vc.u32 %v9995_v63, %v9982_v16  ;;  %v531_v55 = vshll.u32 %v14789_v38, %v519_v36  ;;  %v8344_v47 = vadd.s32 4294967169, %v613_v31  ;;  %v524_v53 = vor.u32 %v523_v34, %v522_v17 }
 0x10f   : > { %v460_v23 = vsel %vm458_vm2, %v459_v40, %v9983_v30  ;;  %v527_v28 = vor.u32 %v526_v19, %v525_v18  ;;  %v530_v57 = vor.u32 %v529_v50, %v528_v32  ;;  %v532_v13 = vshrl.u32 %v14790_v21, %v520_v1 }
 0x110   : > { %v461_v56 = vadd.s32 %v460_v23, %v456_v39  ;;  %v534_v2 = vshll.u32 %v14790_v21, %v519_v36  ;;  %v535_v61 = vshrl.u32 %v14791_v22, %v520_v1  ;;  %v1202_v0 = vshll.u32 %v9960_v52, %v1200_v15 }
 0x111   : > { %v1203_v58 = vshrl.u32 %v9950_v60, %v1201_v62  ;;  %v1206_v41 = vadd.s32 127, %v1205_v10  ;;  %vm537_vm3 = vcmp.lt.s32.totalorder %v518_v33, 1  ;;  %v533_v31 = vor.u32 %v532_v13, %v531_v55 }
 0x112   : > { %v462_v48 = vadd.s32 536870912, %v461_v56  ;;  %v536_v45 = vor.u32 %v535_v61, %v534_v2  ;;  %vm540_vm4 = vcmp.lt.s32.totalorder %v518_v33, 4  ;;  %v521_v30 = vshrl.u32 %v14783_v54, %v520_v1 }
 0x113   : > { %v542_v40 = vsel %vm540_vm4, %v530_v57, 2102212464  ;;  %v545_v34 = vsel %vm537_vm3, %v524_v53, %v527_v28  ;;  %v549_v19 = vsel %vm537_vm3, %v527_v28, %v530_v57  ;;  %vm539_vm5 = vcmp.lt.s32.totalorder %v518_v33, 3 }
 0x114   : > { %v10019_v17 = vshrl.u32 %v462_v48, 30  ;;  %v546_v36 = vsel %vm540_vm4, %v533_v31, 920167782  ;;  %v550_v18 = vsel %vm540_vm4, %v536_v45, 1326507024  ;;  %vm538_vm6 = vcmp.lt.s32.totalorder %v518_v33, 2 }
 0x115   : > { %v541_v52 = vsel %vm537_vm3, %v521_v30, %v524_v53  ;;  %v547_v15 = vsel %vm539_vm5, %v530_v57, %v546_v36  ;;  %v551_v60 = vsel %vm539_vm5, %v533_v31, %v550_v18  ;;  %v543_v10 = vsel %vm539_vm5, %v527_v28, %v542_v40 }
 0x116   : > { %v464_v62 = vshll.u32 %v10019_v17, 30  ;;  %v548_v61 = vsel %vm538_vm6, %v545_v34, %v547_v15  ;;  %v552_v2 = vsel %vm538_vm6, %v549_v19, %v551_v60  ;;  %v1207_v1 = vshll.u32 %v1206_v41, 23 }
 0x117   : > { %v10025_v32 = vmul.u32.u64.low %v9997_v27, %v552_v2  ;;  %v10026_v50 = vmul.u32.u64.high %v9997_v27, %v552_v2, %v10025_v32  ;;  %v619_v48 = vadd.s32 1, %v8344_v47  ;;  %v10028_v39 = vor.u32 %v1203_v58, %v1202_v0 }
 0x118   : > { %v10030_v45 = vsub.s32 %v461_v56, %v464_v62  ;;  %v10033_v55 = vmul.u32.u64.low %v9997_v27, %v548_v61  ;;  %v10034_v23 = vmul.u32.u64.high %v9997_v27, %v548_v61, %v10033_v55  ;;  %v901_v53 = vxor.u32 2147483648, %v9940_v26 }
 0x119   : > { %v14793_v28 = vand.u32 2147483647, %v9928_v59  ;;  %v14794_v41 = vcvt.s32.f32 %v9923_v43  ;;  %v544_v13 = vsel %vm538_vm6, %v541_v52, %v543_v10  ;;  %vm620_vm7 = vcmp.gt.s32.totalorder %v619_v48, 0 }
 0x11a   : > { %v14795_v47 = vcvt.s32.f32 %v9958_v6  ;;  %v467_v0 = vsub.s32 0, %v10030_v45  ;;  %v617_v58 = vor.u32 8388608, %v9991_v51  ;;  %v621_v31 = vsel %vm620_vm7, %v619_v48, 0 }
 0x11b   : > { %v10042_v57 = vmul.f32 %v14794_v41, %v14793_v28  ;;  %v10051_v30 = vor.u32 4788187, %v1207_v1  ;;  %v10055_v59 = vadd.s32 %v9982_v16, %v9995_v63  ;;  %vm562_vm8 = vc.u32 %v10026_v50, %v10033_v55 }
 0x11c   : > { %v10047_v56 = vmul.f32 %v14795_v47, %v1105_v25  ;;  %v623_v43 = vand.u32 31, %v621_v31  ;;  %v1211_v33 = vcvt.s32.f32 %v10028_v39  ;;  %v8337_v6 = vmin.u32 %v467_v0, %v10030_v45 }
 0x11d   : > { %v560_v25 = vmul.u32 %v9997_v27, %v544_v13  ;;  %v563_v40 = vadd.s32 1, %v10034_v23  ;;  %v10063_v51 = vshrl.u32 %v621_v31, 5  ;;  %v716_v16 = vand.u32 2139095040, %v9936_v35 }
 0x11e   : > { %v624_v34 = vsub.s32 32, %v623_v43  ;;  %v626_v19 = vshll.u32 %v14783_v54, %v623_v43  ;;  %v469_v63 = vclz %v8337_v6  ;;  %v629_v18 = vshll.u32 %v14787_v46, %v623_v43 }
 0x11f   : > { %v564_v36 = vsel %vm562_vm8, %v563_v40, %v10034_v23  ;;  %v632_v52 = vshll.u32 %v14788_v37, %v623_v43  ;;  %v635_v62 = vshll.u32 %v14789_v38, %v623_v43  ;;  %v1209_v32 = vand.u32 2147483647, %v10051_v30 }
 0x120   : > { %v565_v15 = vadd.s32 %v564_v36, %v560_v25  ;;  %v627_v60 = vshrl.u32 %v14787_v46, %v624_v34  ;;  %v630_v27 = vshrl.u32 %v14788_v37, %v624_v34  ;;  %v8338_v10 = vadd.s32 4294967294, %v469_v63 }
 0x121   : > { %v633_v61 = vshrl.u32 %v14789_v38, %v624_v34  ;;  %v636_v2 = vshrl.u32 %v14790_v21, %v624_v34  ;;  %v639_v1 = vshrl.u32 %v14791_v22, %v624_v34  ;;  %v638_v13 = vshll.u32 %v14790_v21, %v623_v43 }
 0x122   : > { %v566_v48 = vadd.s32 536870912, %v565_v15  ;;  %v628_v39 = vor.u32 %v627_v60, %v626_v19  ;;  %v631_v23 = vor.u32 %v630_v27, %v629_v18  ;;  %vm8339_vm9 = vcmp.lt.s32.totalorder %v8338_v10, 0 }
 0x123   : > { %v634_v28 = vor.u32 %v633_v61, %v632_v52  ;;  %v637_v41 = vor.u32 %v636_v2, %v635_v62  ;;  %v472_v47 = vsel %vm8339_vm9, 0, %v8338_v10  ;;  %v657_v31 = vshll.u32 %v617_v58, 8 }
 0x124   : > { %v10078_v0 = vshrl.u32 %v566_v48, 30  ;;  %v717_v6 = vshrl.u32 %v716_v16, 23  ;;  %v477_v25 = vsub.s32 4294967266, %v472_v47  ;;  %v640_v40 = vor.u32 %v639_v1, %v638_v13  ;;  %v10104_v48 = vpop.permute.xlu1 %377 }
 0x125   : > { %vm641_vm10 = vcmp.lt.s32.totalorder %v10063_v51, 1  ;;  %vm644_vm11 = vcmp.lt.s32.totalorder %v10063_v51, 4  ;;  %v625_v19 = vshrl.u32 %v14783_v54, %v624_v34  ;;  %v473_v43 = vsub.s32 32, %v472_v47 }
 0x126   : > { %v568_v30 = vshll.u32 %v10078_v0, 30  ;;  %v646_v63 = vsel %vm644_vm11, %v634_v28, 2102212464  ;;  %v649_v36 = vsel %vm641_vm10, %v628_v39, %v631_v23  ;;  %vm642_vm12 = vcmp.lt.s32.totalorder %v10063_v51, 2 }
 0x127   : > { %vm643_vm13 = vcmp.lt.s32.totalorder %v10063_v51, 3  ;;  %v650_v58 = vsel %vm644_vm11, %v637_v41, 920167782  ;;  %v645_v18 = vsel %vm641_vm10, %v625_v19, %v628_v39  ;;  %v653_v60 = vsel %vm641_vm10, %v631_v23, %v634_v28 }
 0x128   : > { %v10090_v16 = vsub.s32 %v565_v15, %v568_v30  ;;  %v651_v52 = vsel %vm643_vm13, %v634_v28, %v650_v58  ;;  %vm819_vm14 = vcmp.lt.s32.totalorder %v9611_v3, 0  ;;  %v478_v34 = vadd.s32 127, %v477_v25 }
 0x129   : > { %v647_v27 = vsel %vm643_vm13, %v631_v23, %v646_v63  ;;  %v652_v62 = vsel %vm642_vm12, %v649_v36, %v651_v52  ;;  %v654_v10 = vsel %vm644_vm11, %v640_v40, 1326507024  ;;  %vm923_vm15 = vcmp.lt.s32.totalorder %v9613_v4, 0 }
 0x12a   : > { %vm1027_vm0 = vcmp.lt.s32.totalorder %v9615_v5, 0  ;;  %v571_v15 = vsub.s32 0, %v10090_v16  ;;  %v655_v61 = vsel %vm643_vm13, %v637_v41, %v654_v10  ;;  %v1212_v39 = vmul.f32 %v1211_v33, %v1209_v32 }
 0x12b   : > { %v10100_v2 = vmul.u32.u64.low %v657_v31, %v652_v62  ;;  %v10101_v1 = vmul.u32.u64.high %v657_v31, %v652_v62, %v10100_v2  ;;  %v475_v23 = vshrl.u32 %v10055_v59, %v473_v43  ;;  %v656_v28 = vsel %vm642_vm12, %v653_v60, %v655_v61 }
 0x12c   : > { %v14675_v13 = vand.u32 2147483647, %v9936_v35  ;;  %v8341_v25 = vmin.u32 %v571_v15, %v10090_v16  ;;  %v10111_v40 = vmul.u32.u64.low %v657_v31, %v656_v28  ;;  %v10112_v30 = vmul.u32.u64.high %v657_v31, %v656_v28, %v10111_v40 }
 0x12d   : > { %v8348_v41 = vadd.s32 4294967169, %v717_v6  ;;  %v474_v19 = vshll.u32 %v10030_v45, %v472_v47  ;;  %v479_v63 = vshll.u32 %v478_v34, 23  ;;  %v648_v36 = vsel %vm642_vm12, %v645_v18, %v647_v27 }
 0x12e   : > { %v10119_v59 = vadd.f32 %v10104_v48, %v9617_v7  ;;  %v1005_v33 = vxor.u32 2147483648, %v10042_v57  ;;  %v573_v32 = vclz %v8341_v25  ;;  %v667_v43 = vadd.s32 1, %v10101_v1 }
 0x12f   : > { %v723_v58 = vadd.s32 1, %v8348_v41  ;;  %v1109_v52 = vxor.u32 2147483648, %v10047_v56  ;;  %v1213_v60 = vxor.u32 2147483648, %v1212_v39  ;;  %v10124_v6 = vor.u32 %v475_v23, %v474_v19 }
 0x130   : > { %v720_v45 = vand.u32 8388607, %v14675_v13  ;;  %v8342_v51 = vadd.s32 4294967294, %v573_v32  ;;  %v664_v47 = vmul.u32 %v657_v31, %v648_v36  ;;  %vm666_vm1 = vc.u32 %v10112_v30, %v10100_v2 }
 0x131   : > { %vm724_vm2 = vcmp.gt.s32.totalorder %v723_v58, 0  ;;  %v10130_v7 = vor.u32 4788187, %v479_v63  ;;  %v668_v18 = vsel %vm666_vm1, %v667_v43, %v10101_v1  ;;  %v1236_v27 = vand.u32 2139095040, %v10119_v59 }
 0x132   : > { %v725_v34 = vsel %vm724_vm2, %v723_v58, 0  ;;  %v10139_v62 = vsel %vm819_vm14, %v901_v53, %v9940_v26  ;;  %vm1131_vm3 = vcmp.lt.s32.totalorder %v9626_v14, 0  ;;  %v669_v31 = vadd.s32 %v668_v18, %v664_v47 }
 0x133   : > { %14796 = vst [vmem:[#allocation15_spill] sm:$0xff] %v10139_v62  ;;  %v727_v10 = vand.u32 31, %v725_v34  ;;  %v10145_v15 = vsel %vm923_vm15, %v1005_v33, %v10042_v57  ;;  %v10150_v61 = vsel %vm1027_vm0, %v1109_v52, %v10047_v56  ;;  %v10154_v1 = vsel %vm1131_vm3, %v1213_v60, %v1212_v39 }
 0x134   : > { %14797 = vst [vmem:[#allocation16_spill] sm:$0xff] %v10150_v61  ;;  %vm8343_vm4 = vcmp.lt.s32.totalorder %v8342_v51, 0  ;;  %v483_v26 = vcvt.s32.f32 %v10124_v6  ;;  %v561_v53 = vadd.s32 %v10033_v55, %v10026_v50  ;;  %v670_v23 = vadd.s32 536870912, %v669_v31 }
 0x135   : > { %v10161_v57 = vadd.f32 %v10104_v48, %v9915_v49  ;;  %v481_v28 = vand.u32 2147483647, %v10130_v7  ;;  %v721_v25 = vor.u32 8388608, %v720_v45  ;;  %v728_v56 = vsub.s32 32, %v727_v10 }
 0x136   : > { %v1237_v40 = vshrl.u32 %v1236_v27, 23  ;;  %v10164_v41 = vsel %vm8343_vm4, 0, %v8342_v51  ;;  %v10166_v39 = vshrl.u32 %v670_v23, 30  ;;  %v726_v19 = vshrl.u32 %v725_v34, 5 }
 0x137   : > { %v730_v63 = vshll.u32 %v14783_v54, %v727_v10  ;;  %v731_v36 = vshrl.u32 %v14787_v46, %v728_v56  ;;  %v733_v50 = vshll.u32 %v14787_v46, %v727_v10  ;;  %v734_v55 = vshrl.u32 %v14788_v37, %v728_v56 }
 0x138   : > { %14798 = vst [vmem:[#allocation17_spill] sm:$0xff] %v10166_v39  ;;  %v737_v49 = vshrl.u32 %v14789_v38, %v728_v56  ;;  %v672_v33 = vshll.u32 %v10166_v39, 30  ;;  %v736_v32 = vshll.u32 %v14788_v37, %v727_v10  ;;  %v739_v43 = vshll.u32 %v14789_v38, %v727_v10 }
 0x139   : > { %v740_v58 = vshrl.u32 %v14790_v21, %v728_v56  ;;  %v732_v52 = vor.u32 %v731_v36, %v730_v63  ;;  %v735_v60 = vor.u32 %v734_v55, %v733_v50  ;;  %v10177_v6 = vshll.u32 %v721_v25, 8 }
 0x13a   : > { %v14680_v45 = vand.u32 2147483647, %v10119_v59  ;;  %v10180_v51 = vsub.s32 %v669_v31, %v672_v33  ;;  %v738_v47 = vor.u32 %v737_v49, %v736_v32  ;;  %v8368_v18 = vadd.s32 4294967169, %v1237_v40 }
 0x13b   : > { %v741_v7 = vor.u32 %v740_v58, %v739_v43  ;;  %v577_v34 = vsub.s32 32, %v10164_v41  ;;  %v581_v27 = vsub.s32 4294967266, %v10164_v41  ;;  %v742_v23 = vshll.u32 %v14790_v21, %v727_v10 }
 0x13c   : > { %v743_v13 = vshrl.u32 %v14791_v22, %v728_v56  ;;  %v675_v63 = vsub.s32 0, %v10180_v51  ;;  %v729_v25 = vshrl.u32 %v14783_v54, %v728_v56  ;;  %vm745_vm5 = vcmp.lt.s32.totalorder %v726_v19, 1 }
 0x13d   : > { %vm748_vm6 = vcmp.lt.s32.totalorder %v726_v19, 4  ;;  %vm747_vm7 = vcmp.lt.s32.totalorder %v726_v19, 3  ;;  %v753_v31 = vsel %vm745_vm5, %v732_v52, %v735_v60  ;;  %vm746_vm8 = vcmp.lt.s32.totalorder %v726_v19, 2 }
 0x13e   : > { %v744_v36 = vor.u32 %v743_v13, %v742_v23  ;;  %v754_v50 = vsel %vm748_vm6, %v741_v7, 920167782  ;;  %v8345_v40 = vmin.u32 %v675_v63, %v10180_v51  ;;  %v750_v55 = vsel %vm748_vm6, %v738_v47, 2102212464 }
 0x13f   : > { %v755_v49 = vsel %vm747_vm7, %v738_v47, %v754_v50  ;;  %v757_v33 = vsel %vm745_vm5, %v735_v60, %v738_v47  ;;  %v1240_v56 = vand.u32 8388607, %v14680_v45  ;;  %v582_v43 = vadd.s32 127, %v581_v27 }
 0x140   : > { %v756_v10 = vsel %vm746_vm8, %v753_v31, %v755_v49  ;;  %v758_v32 = vsel %vm748_vm6, %v744_v36, 1326507024  ;;  %v677_v58 = vclz %v8345_v40  ;;  %v749_v13 = vsel %vm745_vm5, %v729_v25, %v732_v52 }
 0x141   : > { %v759_v23 = vsel %vm747_vm7, %v741_v7, %v758_v32  ;;  %v751_v61 = vsel %vm747_vm7, %v735_v60, %v750_v55  ;;  %v10197_v63 = vmul.u32.u64.low %v10177_v6, %v756_v10  ;;  %v10198_v39 = vmul.u32.u64.high %v10177_v6, %v756_v10, %v10197_v63 }
 0x142   : > { %v760_v5 = vsel %vm746_vm8, %v757_v33, %v759_v23  ;;  %v579_v31 = vshrl.u32 %v561_v53, %v577_v34  ;;  %v8346_v50 = vadd.s32 4294967294, %v677_v58  ;;  %v10205_v49 = vmul.f32 %v483_v26, %v481_v28 }
 0x143   : > { %v10202_v47 = vmul.u32.u64.low %v10177_v6, %v760_v5  ;;  %v10203_v36 = vmul.u32.u64.high %v10177_v6, %v760_v5, %v10202_v47  ;;  %v10209_v52 = vadd.f32 %v10104_v48, %v9619_v8  ;;  %v10213_v60 = vadd.f32 %v10104_v48, %v9921_v11 }
 0x144   : > { %v1243_v7 = vadd.s32 1, %v8368_v18  ;;  %v578_v27 = vshll.u32 %v10090_v16, %v10164_v41  ;;  %vm8347_vm9 = vcmp.lt.s32.totalorder %v8346_v50, 0  ;;  %v752_v53 = vsel %vm746_vm8, %v749_v13, %v751_v61 }
 0x145   : > { %v1340_v5 = vand.u32 2139095040, %v10161_v57  ;;  %v583_v34 = vshll.u32 %v582_v43, 23  ;;  %v10219_v26 = vsel %vm8347_vm9, 0, %v8346_v50  ;;  %v771_v28 = vadd.s32 1, %v10198_v39 }
 0x146   : > { %vm1244_vm10 = vcmp.gt.s32.totalorder %v1243_v7, 0  ;;  %v10222_v8 = vor.u32 %v579_v31, %v578_v27  ;;  %v685_v11 = vsub.s32 4294967266, %v10219_v26  ;;  %v1241_v48 = vor.u32 8388608, %v1240_v56 }
 0x147   : > { %v14681_v18 = vand.u32 2147483647, %v10161_v57  ;;  %v681_v16 = vsub.s32 32, %v10219_v26  ;;  %v768_v41 = vmul.u32 %v10177_v6, %v752_v53  ;;  %vm770_vm11 = vc.u32 %v10203_v36, %v10197_v63 }
 0x148   : > { %v1245_v61 = vsel %vm1244_vm10, %v1243_v7, 0  ;;  %v665_v19 = vadd.s32 %v10100_v2, %v10112_v30  ;;  %v686_v25 = vadd.s32 127, %v685_v11  ;;  %v772_v40 = vsel %vm770_vm11, %v771_v28, %v10198_v39 }
 0x149   : > { %v1341_v55 = vshrl.u32 %v1340_v5, 23  ;;  %v10234_v33 = vor.u32 4788187, %v583_v34  ;;  %v773_v32 = vadd.s32 %v772_v40, %v768_v41  ;;  %v1247_v56 = vand.u32 31, %v1245_v61 }
 0x14a   : > { %v587_v43 = vcvt.s32.f32 %v10222_v8  ;;  %v682_v6 = vshll.u32 %v10180_v51, %v10219_v26  ;;  %v10239_v58 = vshll.u32 %v1241_v48, 8  ;;  %v10243_v2 = vand.u32 8388607, %v14681_v18 }
 0x14b   : > { %v683_v30 = vshrl.u32 %v665_v19, %v681_v16  ;;  %v774_v39 = vadd.s32 536870912, %v773_v32  ;;  %v1246_v13 = vshrl.u32 %v1245_v61, 5  ;;  %v1248_v23 = vsub.s32 32, %v1247_v56 }
 0x14c   : > { %v687_v31 = vshll.u32 %v686_v25, 23  ;;  %v1250_v50 = vshll.u32 %v14783_v54, %v1247_v56  ;;  %v1253_v47 = vshll.u32 %v14787_v46, %v1247_v56  ;;  %v8372_v7 = vadd.s32 4294967169, %v1341_v55 }
 0x14d   : > { %v10247_v27 = vshrl.u32 %v774_v39, 30  ;;  %v1251_v51 = vshrl.u32 %v14787_v46, %v1248_v23  ;;  %v1254_v53 = vshrl.u32 %v14788_v37, %v1248_v23  ;;  %v1256_v5 = vshll.u32 %v14788_v37, %v1247_v56 }
 0x14e   : > { %v1257_v34 = vshrl.u32 %v14789_v38, %v1248_v23  ;;  %v1259_v26 = vshll.u32 %v14789_v38, %v1247_v56  ;;  %v1260_v28 = vshrl.u32 %v14790_v21, %v1248_v23  ;;  %v1262_v11 = vshll.u32 %v14790_v21, %v1247_v56 }
 0x14f   : > { %v776_v48 = vshll.u32 %v10247_v27, 30  ;;  %v1252_v16 = vor.u32 %v1251_v51, %v1250_v50  ;;  %v1255_v41 = vor.u32 %v1254_v53, %v1253_v47  ;;  %v1263_v61 = vshrl.u32 %v14791_v22, %v1248_v23 }
 0x150   : > { %v1258_v19 = vor.u32 %v1257_v34, %v1256_v5  ;;  %v1261_v25 = vor.u32 %v1260_v28, %v1259_v26  ;;  %vm1265_vm12 = vcmp.lt.s32.totalorder %v1246_v13, 1  ;;  %vm1266_vm13 = vcmp.lt.s32.totalorder %v1246_v13, 2 }
 0x151   : > { %v10258_v40 = vsub.s32 %v773_v32, %v776_v48  ;;  %v1249_v55 = vshrl.u32 %v14783_v54, %v1248_v23  ;;  %v1264_v39 = vor.u32 %v1263_v61, %v1262_v11  ;;  %vm1268_vm1 = vcmp.lt.s32.totalorder %v1246_v13, 4 }
 0x152   : > { %vm1267_vm2 = vcmp.lt.s32.totalorder %v1246_v13, 3  ;;  %v1270_v45 = vsel %vm1268_vm1, %v1258_v19, 2102212464  ;;  %v1273_v18 = vsel %vm1265_vm12, %v1252_v16, %v1255_v41  ;;  %v1274_v56 = vsel %vm1268_vm1, %v1261_v25, 920167782 }
 0x153   : > { %v688_v10 = vor.u32 4788187, %v687_v31  ;;  %v779_v50 = vsub.s32 0, %v10258_v40  ;;  %v1275_v47 = vsel %vm1267_vm2, %v1258_v19, %v1274_v56  ;;  %v1277_v51 = vsel %vm1265_vm12, %v1255_v41, %v1258_v19 }
 0x154   : > { %v1269_v53 = vsel %vm1265_vm12, %v1249_v55, %v1252_v16  ;;  %v1271_v5 = vsel %vm1267_vm2, %v1255_v41, %v1270_v45  ;;  %v1276_v34 = vsel %vm1266_vm13, %v1273_v18, %v1275_v47  ;;  %v1278_v26 = vsel %vm1268_vm1, %v1264_v39, 1326507024 }
 0x155   : > { %v8349_v32 = vmin.u32 %v779_v50, %v10258_v40  ;;  %v1279_v28 = vsel %vm1267_vm2, %v1261_v25, %v1278_v26  ;;  %v10265_v23 = vmul.u32.u64.low %v10239_v58, %v1276_v34  ;;  %v10266_v11 = vmul.u32.u64.high %v10239_v58, %v1276_v34, %v10265_v23 }
 0x156   : > { %v585_v48 = vand.u32 2147483647, %v10234_v33  ;;  %v1280_v31 = vsel %vm1266_vm13, %v1277_v51, %v1279_v28  ;;  %v1347_v61 = vadd.s32 1, %v8372_v7  ;;  %v14682_v19 = vand.u32 2147483647, %v10209_v52 }
 0x157   : > { %v684_v16 = vor.u32 %v683_v30, %v682_v6  ;;  %v781_v45 = vclz %v8349_v32  ;;  %v10273_v18 = vmul.u32.u64.low %v10239_v58, %v1280_v31  ;;  %v10274_v41 = vmul.u32.u64.high %v10239_v58, %v1280_v31, %v10273_v18 }
 0x158   : > { %v689_v55 = vand.u32 2147483647, %v688_v10  ;;  %v1272_v25 = vsel %vm1266_vm13, %v1269_v53, %v1271_v5  ;;  %v1345_v39 = vor.u32 8388608, %v10243_v2  ;;  %vm1348_vm4 = vcmp.gt.s32.totalorder %v1347_v61, 0 }
 0x159   : > { %v8350_v56 = vadd.s32 4294967294, %v781_v45  ;;  %v1291_v33 = vadd.s32 1, %v10266_v11  ;;  %v1349_v50 = vsel %vm1348_vm4, %v1347_v61, 0  ;;  %v1444_v7 = vand.u32 2139095040, %v10209_v52 }
 0x15a   : > { %v10282_v6 = vmul.f32 %v587_v43, %v585_v48  ;;  %v769_v30 = vadd.s32 %v10197_v63, %v10203_v36  ;;  %v1351_v47 = vand.u32 31, %v1349_v50  ;;  %v10288_v10 = vand.u32 8388607, %v14682_v19 }
 0x15b   : > { %v691_v2 = vcvt.s32.f32 %v684_v16  ;;  %vm8351_vm5 = vcmp.lt.s32.totalorder %v8350_v56, 0  ;;  %v1288_v13 = vmul.u32 %v10239_v58, %v1272_v25  ;;  %vm1290_vm6 = vc.u32 %v10274_v41, %v10265_v23 }
 0x15c   : > { %v784_v51 = vsel %vm8351_vm5, 0, %v8350_v56  ;;  %v1292_v8 = vsel %vm1290_vm6, %v1291_v33, %v10266_v11  ;;  %v1352_v43 = vsub.s32 32, %v1351_v47  ;;  %v10294_v53 = vshll.u32 %v1345_v39, 8 }
 0x15d   : > { %v10296_v5 = vmul.f32 %v691_v2, %v689_v55  ;;  %v789_v63 = vsub.s32 4294967266, %v784_v51  ;;  %v1293_v36 = vadd.s32 %v1292_v8, %v1288_v13  ;;  %v1445_v34 = vshrl.u32 %v1444_v7, 23 }
 0x15e   : > { %v1354_v26 = vshll.u32 %v14783_v54, %v1351_v47  ;;  %v1355_v32 = vshrl.u32 %v14787_v46, %v1352_v43  ;;  %v1358_v58 = vshrl.u32 %v14788_v37, %v1352_v43  ;;  %v1449_v28 = vor.u32 8388608, %v10288_v10 }
 0x15f   : > { %v785_v48 = vsub.s32 32, %v784_v51  ;;  %v790_v31 = vadd.s32 127, %v789_v63  ;;  %v1294_v61 = vadd.s32 536870912, %v1293_v36  ;;  %v1350_v11 = vshrl.u32 %v1349_v50, 5 }
 0x160   : > { %v1356_v16 = vor.u32 %v1355_v32, %v1354_v26  ;;  %v1357_v45 = vshll.u32 %v14787_v46, %v1351_v47  ;;  %v1360_v18 = vshll.u32 %v14788_v37, %v1351_v47  ;;  %v1361_v55 = vshrl.u32 %v14789_v38, %v1352_v43 }
 0x161   : > { %v791_v25 = vshll.u32 %v790_v31, 23  ;;  %v10305_v39 = vshrl.u32 %v1294_v61, 30  ;;  %v1363_v56 = vshll.u32 %v14789_v38, %v1351_v47  ;;  %v1364_v33 = vshrl.u32 %v14790_v21, %v1352_v43 }
 0x162   : > { %v1359_v7 = vor.u32 %v1358_v58, %v1357_v45  ;;  %v1362_v10 = vor.u32 %v1361_v55, %v1360_v18  ;;  %v1366_v2 = vshll.u32 %v14790_v21, %v1351_v47  ;;  %v1367_v50 = vshrl.u32 %v14791_v22, %v1352_v43 }
 0x163   : > { %14799 = vst [vmem:[#allocation18_spill] sm:$0xff] %v10305_v39  ;;  %v1296_v13 = vshll.u32 %v10305_v39, 30  ;;  %v1365_v8 = vor.u32 %v1364_v33, %v1363_v56  ;;  %v8376_v63 = vadd.s32 4294967169, %v1445_v34  ;;  %v1548_v26 = vand.u32 2139095040, %v10213_v60 }
 0x164   : > { %v786_v32 = vshll.u32 %v10258_v40, %v784_v51  ;;  %v787_v31 = vshrl.u32 %v769_v30, %v785_v48  ;;  %v1353_v61 = vshrl.u32 %v14783_v54, %v1352_v43  ;;  %v1368_v19 = vor.u32 %v1367_v50, %v1366_v2 }
 0x165   : > { %v792_v62 = vor.u32 4788187, %v791_v25  ;;  %v10315_v3 = vsub.s32 %v1293_v36, %v1296_v13  ;;  %vm1369_vm7 = vcmp.lt.s32.totalorder %v1350_v11, 1  ;;  %vm1372_vm8 = vcmp.lt.s32.totalorder %v1350_v11, 4 }
 0x166   : > { %vm1371_vm9 = vcmp.lt.s32.totalorder %v1350_v11, 3  ;;  %v1374_v47 = vsel %vm1372_vm8, %v1362_v10, 2102212464  ;;  %v1377_v58 = vsel %vm1369_vm7, %v1356_v16, %v1359_v7  ;;  %v1378_v45 = vsel %vm1372_vm8, %v1365_v8, 920167782 }
 0x167   : > { %v1299_v18 = vsub.s32 0, %v10315_v3  ;;  %vm1370_vm10 = vcmp.lt.s32.totalorder %v1350_v11, 2  ;;  %v1379_v34 = vsel %vm1371_vm9, %v1362_v10, %v1378_v45  ;;  %v1381_v55 = vsel %vm1369_vm7, %v1359_v7, %v1362_v10 }
 0x168   : > { %v788_v56 = vor.u32 %v787_v31, %v786_v32  ;;  %v1380_v40 = vsel %vm1370_vm10, %v1377_v58, %v1379_v34  ;;  %v1382_v30 = vsel %vm1372_vm8, %v1368_v19, 1326507024  ;;  %v1451_v51 = vadd.s32 1, %v8376_v63 }
 0x169   : > { %v8369_v43 = vmin.u32 %v1299_v18, %v10315_v3  ;;  %v1373_v36 = vsel %vm1369_vm7, %v1353_v61, %v1356_v16  ;;  %v1375_v48 = vsel %vm1371_vm9, %v1359_v7, %v1374_v47  ;;  %v1383_v25 = vsel %vm1371_vm9, %v1365_v8, %v1382_v30 }
 0x16a   : > { %v1384_v33 = vsel %vm1370_vm10, %v1381_v55, %v1383_v25  ;;  %v10322_v2 = vmul.u32.u64.low %v10294_v53, %v1380_v40  ;;  %v10323_v50 = vmul.u32.u64.high %v10294_v53, %v1380_v40, %v10322_v2  ;;  %vm1452_vm11 = vcmp.gt.s32.totalorder %v1451_v51, 0 }
 0x16b   : > { %v793_v13 = vand.u32 2147483647, %v792_v62  ;;  %v1301_v10 = vclz %v8369_v43  ;;  %v10327_v32 = vmul.u32.u64.low %v10294_v53, %v1384_v33  ;;  %v10328_v31 = vmul.u32.u64.high %v10294_v53, %v1384_v33, %v10327_v32 }
 0x16c   : > { %v1376_v19 = vsel %vm1370_vm10, %v1373_v36, %v1375_v48  ;;  %v1453_v63 = vsel %vm1452_vm11, %v1451_v51, 0  ;;  %v1549_v16 = vshrl.u32 %v1548_v26, 23  ;;  %v10333_v7 = vadd.f32 %v9846_v42, %v9811_v24 }
 0x16d   : > { %v1289_v8 = vadd.s32 %v10265_v23, %v10274_v41  ;;  %v8370_v61 = vadd.s32 4294967294, %v1301_v10  ;;  %v1455_v47 = vand.u32 31, %v1453_v63  ;;  %v14685_v62 = vand.u32 2147483647, %v10213_v60 }
 0x16e   : > { %v795_v58 = vcvt.s32.f32 %v788_v56  ;;  %v1395_v45 = vadd.s32 1, %v10323_v50  ;;  %v10339_v18 = vshll.u32 %v1449_v28, 8  ;;  %v10343_v11 = vadd.f32 %v9855_v29, %v9821_v12 }
 0x16f   : > { %vm8371_vm12 = vcmp.lt.s32.totalorder %v8370_v61, 0  ;;  %v1392_v24 = vmul.u32 %v10294_v53, %v1376_v19  ;;  %vm1394_vm13 = vc.u32 %v10328_v31, %v10322_v2  ;;  %v1456_v42 = vsub.s32 32, %v1455_v47 }
 0x170   : > { %v10348_v23 = vmul.f32 %v795_v58, %v793_v13  ;;  %v1304_v41 = vsel %vm8371_vm12, 0, %v8370_v61  ;;  %v1396_v26 = vsel %vm1394_vm13, %v1395_v45, %v10323_v50  ;;  %v8380_v34 = vadd.s32 4294967169, %v1549_v16 }
 0x171   : > { %v1305_v55 = vsub.s32 32, %v1304_v41  ;;  %v1309_v28 = vsub.s32 4294967266, %v1304_v41  ;;  %v1397_v56 = vadd.s32 %v1396_v26, %v1392_v24  ;;  %v1454_v40 = vshrl.u32 %v1453_v63, 5 }
 0x172   : > { %v1458_v12 = vshll.u32 %v14783_v54, %v1455_v47  ;;  %v1459_v29 = vshrl.u32 %v14787_v46, %v1456_v42  ;;  %v1461_v53 = vshll.u32 %v14787_v46, %v1455_v47  ;;  %v1462_v30 = vshrl.u32 %v14788_v37, %v1456_v42 }
 0x173   : > { %v1310_v51 = vadd.s32 127, %v1309_v28  ;;  %v1398_v43 = vadd.s32 536870912, %v1397_v56  ;;  %v1464_v36 = vshll.u32 %v14788_v37, %v1455_v47  ;;  %v1465_v48 = vshrl.u32 %v14789_v38, %v1456_v42 }
 0x174   : > { %v1307_v25 = vshrl.u32 %v1289_v8, %v1305_v55  ;;  %v1460_v33 = vor.u32 %v1459_v29, %v1458_v12  ;;  %v1467_v50 = vshll.u32 %v14789_v38, %v1455_v47  ;;  %v1468_v13 = vshrl.u32 %v14790_v21, %v1456_v42 }
 0x175   : > { %v1311_v10 = vshll.u32 %v1310_v51, 23  ;;  %v10359_v32 = vshrl.u32 %v1398_v43, 30  ;;  %v1463_v19 = vor.u32 %v1462_v30, %v1461_v53  ;;  %v1466_v63 = vor.u32 %v1465_v48, %v1464_v36 }
 0x176   : > { %v1306_v16 = vshll.u32 %v10315_v3, %v1304_v41  ;;  %v1469_v61 = vor.u32 %v1468_v13, %v1467_v50  ;;  %v1470_v58 = vshll.u32 %v14790_v21, %v1455_v47  ;;  %v1471_v45 = vshrl.u32 %v14791_v22, %v1456_v42 }
 0x177   : > { %14800 = vst [vmem:[#allocation19_spill] sm:$0xff] %v10359_v32  ;;  %v1400_v24 = vshll.u32 %v10359_v32, 30  ;;  %v1457_v8 = vshrl.u32 %v14783_v54, %v1456_v42  ;;  %v1552_v26 = vand.u32 8388607, %v14685_v62  ;;  %v1555_v55 = vadd.s32 1, %v8380_v34 }
 0x178   : > { %v1308_v28 = vor.u32 %v1307_v25, %v1306_v16  ;;  %v1472_v12 = vor.u32 %v1471_v45, %v1470_v58  ;;  %vm1473_vm1 = vcmp.lt.s32.totalorder %v1454_v40, 1  ;;  %vm1476_vm2 = vcmp.lt.s32.totalorder %v1454_v40, 4 }
 0x179   : > { %v1312_v29 = vor.u32 4788187, %v1311_v10  ;;  %v10368_v53 = vsub.s32 %v1397_v56, %v1400_v24  ;;  %v1478_v3 = vsel %vm1476_vm2, %v1466_v63, 2102212464  ;;  %v1481_v41 = vsel %vm1473_vm1, %v1460_v33, %v1463_v19 }
 0x17a   : > { %vm1475_vm4 = vcmp.lt.s32.totalorder %v1454_v40, 3  ;;  %v1482_v47 = vsel %vm1476_vm2, %v1469_v61, 920167782  ;;  %v1485_v30 = vsel %vm1473_vm1, %v1463_v19, %v1466_v63  ;;  %v1486_v51 = vsel %vm1476_vm2, %v1472_v12, 1326507024 }
 0x17b   : > { %v1403_v43 = vsub.s32 0, %v10368_v53  ;;  %vm1474_vm5 = vcmp.lt.s32.totalorder %v1454_v40, 2  ;;  %v1477_v42 = vsel %vm1473_vm1, %v1457_v8, %v1460_v33  ;;  %v1483_v36 = vsel %vm1475_vm4, %v1466_v63, %v1482_v47 }
 0x17c   : > { %v1479_v48 = vsel %vm1475_vm4, %v1463_v19, %v1478_v3  ;;  %v1484_v34 = vsel %vm1474_vm5, %v1481_v41, %v1483_v36  ;;  %v1487_v25 = vsel %vm1475_vm4, %v1469_v61, %v1486_v51  ;;  %vm1556_vm6 = vcmp.gt.s32.totalorder %v1555_v55, 0 }
 0x17d   : > { %v1313_v50 = vand.u32 2147483647, %v1312_v29  ;;  %v8373_v13 = vmin.u32 %v1403_v43, %v10368_v53  ;;  %v1488_v56 = vsel %vm1474_vm5, %v1485_v30, %v1487_v25  ;;  %v1557_v10 = vsel %vm1556_vm6, %v1555_v55, 0 }
 0x17e   : > { %v10373_v16 = vmul.u32.u64.low %v10339_v18, %v1488_v56  ;;  %v10374_v58 = vmul.u32.u64.high %v10339_v18, %v1488_v56, %v10373_v16  ;;  %v10377_v45 = vmul.u32.u64.low %v10339_v18, %v1484_v34  ;;  %v10378_v24 = vmul.u32.u64.high %v10339_v18, %v1484_v34, %v10377_v45 }
 0x17f   : > { %v589_v40 = vxor.u32 2147483648, %v10282_v6  ;;  %v1405_v33 = vclz %v8373_v13  ;;  %v1480_v19 = vsel %vm1474_vm5, %v1477_v42, %v1479_v48  ;;  %v1559_v63 = vand.u32 31, %v1557_v10 }
 0x180   : > { %v693_v61 = vxor.u32 2147483648, %v10296_v5  ;;  %v797_v8 = vxor.u32 2147483648, %v10348_v23  ;;  %v1315_v12 = vcvt.s32.f32 %v1308_v28  ;;  %v1553_v55 = vor.u32 8388608, %v1552_v26 }
 0x181   : > { %v1393_v29 = vadd.s32 %v10322_v2, %v10328_v31  ;;  %v8374_v3 = vadd.s32 4294967294, %v1405_v33  ;;  %v1560_v41 = vsub.s32 32, %v1559_v63  ;;  %v358_v47 = vadd.f32 %v9849_v9, %v9814_v20 }
 0x182   : > { %v10388_v30 = vmul.f32 %v1315_v12, %v1313_v50  ;;  %v1496_v51 = vmul.u32 %v10339_v18, %v1480_v19  ;;  %vm1498_vm7 = vc.u32 %v10374_v58, %v10377_v45  ;;  %v1499_v43 = vadd.s32 1, %v10378_v24  ;;  %v14801_v12 = vld [vmem:[#allocation11_spill] sm:$0xff] }
 0x183   : > { %vm8375_vm8 = vcmp.lt.s32.totalorder %v8374_v3, 0  ;;  %v10394_v28 = vshrl.u32 %v1557_v10, 5  ;;  %v1563_v26 = vshrl.u32 %v14787_v46, %v1560_v41  ;;  %v1566_v2 = vshrl.u32 %v14788_v37, %v1560_v41  ;;  %v10407_v10 = vpop.permute.xlu1 %382 }
 0x184   : > { %v1408_v31 = vsel %vm8375_vm8, 0, %v8374_v3  ;;  %v1500_v42 = vsel %vm1498_vm7, %v1499_v43, %v10378_v24  ;;  %v1569_v20 = vshrl.u32 %v14789_v38, %v1560_v41  ;;  %v10400_v9 = vshll.u32 %v1553_v55, 8 }
 0x185   : > { %v1413_v18 = vsub.s32 4294967266, %v1408_v31  ;;  %v1501_v36 = vadd.s32 %v1500_v42, %v1496_v51  ;;  %v1562_v48 = vshll.u32 %v14783_v54, %v1559_v63  ;;  %v1565_v34 = vshll.u32 %v14787_v46, %v1559_v63 }
 0x186   : > { %v1409_v25 = vsub.s32 32, %v1408_v31  ;;  %v1568_v50 = vshll.u32 %v14788_v37, %v1559_v63  ;;  %v1571_v13 = vshll.u32 %v14789_v38, %v1559_v63  ;;  %v1572_v56 = vshrl.u32 %v14790_v21, %v1560_v41 }
 0x187   : > { %v1414_v16 = vadd.s32 127, %v1413_v18  ;;  %v1502_v24 = vadd.s32 536870912, %v1501_v36  ;;  %v1564_v33 = vor.u32 %v1563_v26, %v1562_v48  ;;  %v1567_v19 = vor.u32 %v1566_v2, %v1565_v34  ;;  %v14804_v2 = vld [vmem:[#allocation13_spill] sm:$0xff] }
 0x188   : > { %vm403_vm9 = vcmp.lt.s32.totalorder %v9863_v44, 0  ;;  %vm507_vm10 = vcmp.lt.s32.totalorder %v14801_v12, 0  ;;  %v1570_v55 = vor.u32 %v1569_v20, %v1568_v50  ;;  %v1573_v3 = vor.u32 %v1572_v56, %v1571_v13 }
 0x189   : > { %v1574_v51 = vshll.u32 %v14790_v21, %v1559_v63  ;;  %v1575_v43 = vshrl.u32 %v14791_v22, %v1560_v41  ;;  %v1410_v42 = vshll.u32 %v10368_v53, %v1408_v31  ;;  %v10414_v62 = vshrl.u32 %v1502_v24, 30 }
 0x18a   : > { %v10418_v18 = vadd.f32 %v10407_v10, %v10333_v7  ;;  %v10421_v26 = vadd.f32 %v10407_v10, %v358_v47  ;;  %vm611_vm11 = vcmp.lt.s32.totalorder %v14804_v2, 0  ;;  %vm715_vm12 = vcmp.lt.s32.totalorder %v9936_v35, 0 }
 0x18b   : > { %14802 = vst [vmem:[#allocation11_spill] sm:$0xff] %v10414_v62  ;;  %v1411_v20 = vshrl.u32 %v1393_v29, %v1409_v25  ;;  %v1415_v48 = vshll.u32 %v1414_v16, 23  ;;  %v1576_v63 = vor.u32 %v1575_v43, %v1574_v51  ;;  %vm1577_vm13 = vcmp.lt.s32.totalorder %v10394_v28, 1 }
 0x18c   : > { %14803 = vst [vmem:[#allocation20_spill] sm:$0xff] %v10421_v26  ;;  %v1504_v53 = vshll.u32 %v10414_v62, 30  ;;  %vm1579_vm1 = vcmp.lt.s32.totalorder %v10394_v28, 3  ;;  %vm1580_vm2 = vcmp.lt.s32.totalorder %v10394_v28, 4  ;;  %v1585_v7 = vsel %vm1577_vm13, %v1564_v33, %v1567_v19 }
 0x18d   : > { %v1582_v47 = vsel %vm1580_vm2, %v1570_v55, 2102212464  ;;  %v1586_v31 = vsel %vm1580_vm2, %v1573_v3, 920167782  ;;  %v1589_v34 = vsel %vm1577_vm13, %v1567_v19, %v1570_v55  ;;  %v1590_v50 = vsel %vm1580_vm2, %v1576_v63, 1326507024 }
 0x18e   : > { %v10433_v29 = vsub.s32 %v1501_v36, %v1504_v53  ;;  %v1561_v25 = vshrl.u32 %v14783_v54, %v1560_v41  ;;  %vm1578_vm4 = vcmp.lt.s32.totalorder %v10394_v28, 2  ;;  %v1587_v13 = vsel %vm1579_vm1, %v1570_v55, %v1586_v31 }
 0x18f   : > { %v1412_v56 = vor.u32 %v1411_v20, %v1410_v42  ;;  %v1416_v16 = vor.u32 4788187, %v1415_v48  ;;  %v1588_v24 = vsel %vm1578_vm4, %v1585_v7, %v1587_v13  ;;  %v1591_v51 = vsel %vm1579_vm1, %v1573_v3, %v1590_v50 }
 0x190   : > { %v1507_v43 = vsub.s32 0, %v10433_v29  ;;  %v1581_v36 = vsel %vm1577_vm13, %v1561_v25, %v1564_v33  ;;  %v1583_v41 = vsel %vm1579_vm1, %v1567_v19, %v1582_v47  ;;  %v1592_v63 = vsel %vm1578_vm4, %v1589_v34, %v1591_v51 }
 0x191   : > { %v10451_v55 = vmul.u32.u64.low %v10400_v9, %v1592_v63  ;;  %v10452_v42 = vmul.u32.u64.high %v10400_v9, %v1592_v63, %v10451_v55  ;;  %v10455_v20 = vmul.u32.u64.low %v10400_v9, %v1588_v24  ;;  %v10456_v48 = vmul.u32.u64.high %v10400_v9, %v1588_v24, %v10455_v20 }
 0x192   : > { %v14805_v3 = vxor.u32 2147483648, %v10205_v49  ;;  %v10470_v19 = vsel %vm507_vm10, %v589_v40, %v10282_v6  ;;  %v8377_v53 = vmin.u32 %v1507_v43, %v10433_v29  ;;  %v14686_v7 = vand.u32 2147483647, %v10418_v18 }
 0x193   : > { %v1417_v47 = vand.u32 2147483647, %v1416_v16  ;;  %v1584_v31 = vsel %vm1578_vm4, %v1581_v36, %v1583_v41  ;;  %v1652_v34 = vand.u32 2139095040, %v10418_v18  ;;  %v10483_v50 = vsel %vm611_vm11, %v693_v61, %v10296_v5  ;;  %v14808_v36 = vld [vmem:[#allocation10_spill] sm:$0xff] }
 0x194   : > { %v10463_v33 = vsel %vm403_vm9, %v14805_v3, %v10205_v49  ;;  %v1756_v49 = vand.u32 2139095040, %v10421_v26  ;;  %14806 = vst [vmem:[#allocation21_spill] sm:$0xff] %v10483_v50  ;;  %v10490_v6 = vsel %vm715_vm12, %v797_v8, %v10348_v23  ;;  %v1509_v28 = vclz %v8377_v53  ;;  %v14807_v8 = vld [vmem:[#allocation9_spill] sm:$0xff] }
 0x195   : > { %v1419_v25 = vcvt.s32.f32 %v1412_v56  ;;  %vm1602_vm5 = vc.u32 %v10452_v42, %v10455_v20  ;;  %v1603_v13 = vadd.s32 1, %v10456_v48  ;;  %v1653_v16 = vshrl.u32 %v1652_v34, 23 }
 0x196   : > { %v8378_v24 = vadd.s32 4294967294, %v1509_v28  ;;  %v1600_v5 = vmul.u32 %v10400_v9, %v1584_v31  ;;  %v1656_v61 = vand.u32 8388607, %v14686_v7  ;;  %v1757_v51 = vshrl.u32 %v1756_v49, 23 }
 0x197   : > { %v10498_v43 = vmul.f32 %v1419_v25, %v1417_v47  ;;  %v1604_v23 = vsel %vm1602_vm5, %v1603_v13, %v10456_v48  ;;  %v360_v41 = vadd.f32 %v14808_v36, %v14807_v8  ;;  %v8384_v56 = vadd.s32 4294967169, %v1653_v16 }
 0x198   : > { %vm8379_vm6 = vcmp.lt.s32.totalorder %v8378_v24, 0  ;;  %v1605_v63 = vadd.s32 %v1604_v23, %v1600_v5  ;;  %v10505_v55 = vadd.f32 %v10407_v10, %v10343_v11  ;;  %v8388_v3 = vadd.s32 4294967169, %v1757_v51 }
 0x199   : > { %v1497_v9 = vadd.s32 %v10377_v45, %v10374_v58  ;;  %v1512_v53 = vsel %vm8379_vm6, 0, %v8378_v24  ;;  %v1659_v31 = vadd.s32 1, %v8384_v56  ;;  %v14687_v47 = vand.u32 2147483647, %v10421_v26 }
 0x19a   : > { %14809 = vst [vmem:[#allocation9_spill] sm:$0xff] %v10505_v55  ;;  %v1517_v34 = vsub.s32 4294967266, %v1512_v53  ;;  %v1606_v48 = vadd.s32 536870912, %v1605_v63  ;;  %v10511_v49 = vadd.f32 %v10407_v10, %v360_v41  ;;  %v1657_v28 = vor.u32 8388608, %v1656_v61 }
 0x19b   : > { %v1513_v13 = vsub.s32 32, %v1512_v53  ;;  %vm1660_vm7 = vcmp.gt.s32.totalorder %v1659_v31, 0  ;;  %v1763_v11 = vadd.s32 1, %v8388_v3  ;;  %v10518_v45 = vadd.s32 %v10455_v20, %v10452_v42 }
 0x19c   : > { %v1518_v16 = vadd.s32 127, %v1517_v34  ;;  %v10514_v5 = vshrl.u32 %v1606_v48, 30  ;;  %v1661_v51 = vsel %vm1660_vm7, %v1659_v31, 0  ;;  %v1760_v10 = vand.u32 8388607, %v14687_v47 }
 0x19d   : > { %v1663_v24 = vand.u32 31, %v1661_v51  ;;  %v1860_v61 = vand.u32 2139095040, %v10505_v55  ;;  %v1514_v23 = vshll.u32 %v10433_v29, %v1512_v53  ;;  %v10525_v41 = vshll.u32 %v1657_v28, 8 }
 0x19e   : > { %14810 = vst [vmem:[#allocation10_spill] sm:$0xff] %v10514_v5  ;;  %v1519_v8 = vshll.u32 %v1518_v16, 23  ;;  %v1608_v36 = vshll.u32 %v10514_v5, 30  ;;  %v1515_v56 = vshrl.u32 %v1497_v9, %v1513_v13  ;;  %v1662_v3 = vshrl.u32 %v1661_v51, 5 }
 0x19f   : > { %v1664_v31 = vsub.s32 32, %v1663_v24  ;;  %vm1764_vm8 = vcmp.gt.s32.totalorder %v1763_v11, 0  ;;  %v1666_v42 = vshll.u32 %v14783_v54, %v1663_v24  ;;  %v1669_v20 = vshll.u32 %v14787_v46, %v1663_v24 }
 0x1a0   : > { %v10527_v34 = vsub.s32 %v1605_v63, %v1608_v36  ;;  %v1672_v48 = vshll.u32 %v14788_v37, %v1663_v24  ;;  %v1520_v7 = vor.u32 4788187, %v1519_v8  ;;  %v1675_v13 = vshll.u32 %v14789_v38, %v1663_v24 }
 0x1a1   : > { %v1667_v29 = vshrl.u32 %v14787_v46, %v1664_v31  ;;  %v1670_v53 = vshrl.u32 %v14788_v37, %v1664_v31  ;;  %v1673_v28 = vshrl.u32 %v14789_v38, %v1664_v31  ;;  %v1676_v63 = vshrl.u32 %v14790_v21, %v1664_v31 }
 0x1a2   : > { %v1611_v9 = vsub.s32 0, %v10527_v34  ;;  %v1678_v16 = vshll.u32 %v14790_v21, %v1663_v24  ;;  %v1679_v25 = vshrl.u32 %v14791_v22, %v1664_v31  ;;  %v1761_v58 = vor.u32 8388608, %v1760_v10 }
 0x1a3   : > { %v1668_v51 = vor.u32 %v1667_v29, %v1666_v42  ;;  %v1671_v36 = vor.u32 %v1670_v53, %v1669_v20  ;;  %v1674_v47 = vor.u32 %v1673_v28, %v1672_v48  ;;  %v1677_v40 = vor.u32 %v1676_v63, %v1675_v13 }
 0x1a4   : > { %v8381_v8 = vmin.u32 %v1611_v9, %v10527_v34  ;;  %v1861_v62 = vshrl.u32 %v1860_v61, 23  ;;  %v1516_v39 = vor.u32 %v1515_v56, %v1514_v23  ;;  %v1680_v5 = vor.u32 %v1679_v25, %v1678_v16 }
 0x1a5   : > { %vm1684_vm13 = vcmp.lt.s32.totalorder %v1662_v3, 4  ;;  %v1765_v32 = vsel %vm1764_vm8, %v1763_v11, 0  ;;  %v1665_v2 = vshrl.u32 %v14783_v54, %v1664_v31  ;;  %vm1681_vm1 = vcmp.lt.s32.totalorder %v1662_v3, 1 }
 0x1a6   : > { %v1613_v50 = vclz %v8381_v8  ;;  %v1686_v24 = vsel %vm1684_vm13, %v1674_v47, 2102212464  ;;  %v1521_v42 = vand.u32 2147483647, %v1520_v7  ;;  %vm1683_vm2 = vcmp.lt.s32.totalorder %v1662_v3, 3 }
 0x1a7   : > { %v1689_v20 = vsel %vm1681_vm1, %v1668_v51, %v1671_v36  ;;  %v1690_v48 = vsel %vm1684_vm13, %v1677_v40, 920167782  ;;  %vm1682_vm4 = vcmp.lt.s32.totalorder %v1662_v3, 2  ;;  %v1693_v61 = vsel %vm1681_vm1, %v1671_v36, %v1674_v47 }
 0x1a8   : > { %v8382_v29 = vadd.s32 4294967294, %v1613_v50  ;;  %v1691_v10 = vsel %vm1683_vm2, %v1674_v47, %v1690_v48  ;;  %v1685_v23 = vsel %vm1681_vm1, %v1665_v2, %v1668_v51  ;;  %v1687_v25 = vsel %vm1683_vm2, %v1671_v36, %v1686_v24 }
 0x1a9   : > { %v1692_v56 = vsel %vm1682_vm4, %v1689_v20, %v1691_v10  ;;  %v1694_v11 = vsel %vm1684_vm13, %v1680_v5, 1326507024  ;;  %v1767_v50 = vand.u32 31, %v1765_v32  ;;  %v10553_v13 = vshll.u32 %v1761_v58, 8 }
 0x1aa   : > { %vm8383_vm5 = vcmp.lt.s32.totalorder %v8382_v29, 0  ;;  %v1695_v31 = vsel %vm1683_vm2, %v1677_v40, %v1694_v11  ;;  %v10548_v53 = vmul.u32.u64.low %v10525_v41, %v1692_v56  ;;  %v10549_v28 = vmul.u32.u64.high %v10525_v41, %v1692_v56, %v10548_v53 }
 0x1ab   : > { %v1616_v7 = vsel %vm8383_vm5, 0, %v8382_v29  ;;  %v1696_v9 = vsel %vm1682_vm4, %v1693_v61, %v1695_v31  ;;  %v1523_v47 = vcvt.s32.f32 %v1516_v39  ;;  %v1688_v63 = vsel %vm1682_vm4, %v1685_v23, %v1687_v25 }
 0x1ac   : > { %v1621_v2 = vsub.s32 4294967266, %v1616_v7  ;;  %v1766_v16 = vshrl.u32 %v1765_v32, 5  ;;  %v1617_v51 = vsub.s32 32, %v1616_v7  ;;  %v1768_v36 = vsub.s32 32, %v1767_v50 }
 0x1ad   : > { %v10557_v5 = vmul.u32.u64.low %v10525_v41, %v1696_v9  ;;  %v10558_v40 = vmul.u32.u64.high %v10525_v41, %v1696_v9, %v10557_v5  ;;  %v10560_v8 = vmul.f32 %v1523_v47, %v1521_v42  ;;  %v1707_v24 = vadd.s32 1, %v10549_v28 }
 0x1ae   : > { %v8392_v20 = vadd.s32 4294967169, %v1861_v62  ;;  %v14811_v48 = vand.u32 2147483647, %v10505_v55  ;;  %v1704_v39 = vmul.u32 %v10525_v41, %v1688_v63  ;;  %v1770_v3 = vshll.u32 %v14783_v54, %v1767_v50 }
 0x1af   : > { %v1771_v32 = vshrl.u32 %v14787_v46, %v1768_v36  ;;  %v1774_v29 = vshrl.u32 %v14788_v37, %v1768_v36  ;;  %v1622_v10 = vadd.s32 127, %v1621_v2  ;;  %v1773_v61 = vshll.u32 %v14787_v46, %v1767_v50 }
 0x1b0   : > { %v10565_v58 = vand.u32 8388607, %v14811_v48  ;;  %v1776_v42 = vshll.u32 %v14788_v37, %v1767_v50  ;;  %v1777_v23 = vshrl.u32 %v14789_v38, %v1768_v36  ;;  %v1619_v62 = vshrl.u32 %v10518_v45, %v1617_v51 }
 0x1b1   : > { %vm1706_vm6 = vc.u32 %v10558_v40, %v10548_v53  ;;  %v1779_v41 = vshll.u32 %v14789_v38, %v1767_v50  ;;  %vm1785_vm7 = vcmp.lt.s32.totalorder %v1766_v16, 1  ;;  %v1772_v56 = vor.u32 %v1771_v32, %v1770_v3 }
 0x1b2   : > { %v1708_v25 = vsel %vm1706_vm6, %v1707_v24, %v10549_v28  ;;  %v1775_v11 = vor.u32 %v1774_v29, %v1773_v61  ;;  %v1778_v31 = vor.u32 %v1777_v23, %v1776_v42  ;;  %v1780_v47 = vshrl.u32 %v14790_v21, %v1768_v36 }
 0x1b3   : > { %v1709_v9 = vadd.s32 %v1708_v25, %v1704_v39  ;;  %v1782_v2 = vshll.u32 %v14790_v21, %v1767_v50  ;;  %v1783_v63 = vshrl.u32 %v14791_v22, %v1768_v36  ;;  %v1618_v45 = vshll.u32 %v10527_v34, %v1616_v7 }
 0x1b4   : > { %v1623_v51 = vshll.u32 %v1622_v10, 23  ;;  %vm1786_vm8 = vcmp.lt.s32.totalorder %v1766_v16, 2  ;;  %vm1788_vm13 = vcmp.lt.s32.totalorder %v1766_v16, 4  ;;  %v1781_v48 = vor.u32 %v1780_v47, %v1779_v41 }
 0x1b5   : > { %v1710_v5 = vadd.s32 536870912, %v1709_v9  ;;  %v1784_v55 = vor.u32 %v1783_v63, %v1782_v2  ;;  %v1790_v26 = vsel %vm1788_vm13, %v1778_v31, 2102212464  ;;  %v10583_v28 = vor.u32 %v1619_v62, %v1618_v45 }
 0x1b6   : > { %v1769_v24 = vshrl.u32 %v14783_v54, %v1768_v36  ;;  %v1793_v39 = vsel %vm1785_vm7, %v1772_v56, %v1775_v11  ;;  %v1797_v3 = vsel %vm1785_vm7, %v1775_v11, %v1778_v31  ;;  %vm1787_vm1 = vcmp.lt.s32.totalorder %v1766_v16, 3 }
 0x1b7   : > { %v10588_v50 = vshrl.u32 %v1710_v5, 30  ;;  %v1794_v32 = vsel %vm1788_vm13, %v1781_v48, 920167782  ;;  %v1798_v34 = vsel %vm1788_vm13, %v1784_v55, 1326507024  ;;  %v1791_v29 = vsel %vm1787_vm1, %v1775_v11, %v1790_v26 }
 0x1b8   : > { %v1789_v7 = vsel %vm1785_vm7, %v1769_v24, %v1772_v56  ;;  %v1795_v10 = vsel %vm1787_vm1, %v1778_v31, %v1794_v32  ;;  %v1799_v61 = vsel %vm1787_vm1, %v1781_v48, %v1798_v34  ;;  %v10591_v42 = vor.u32 4788187, %v1623_v51 }
 0x1b9   : > { %14812 = vst [vmem:[#allocation22_spill] sm:$0xff] %v10588_v50  ;;  %v1712_v23 = vshll.u32 %v10588_v50, 30  ;;  %v1796_v36 = vsel %vm1786_vm8, %v1793_v39, %v1795_v10  ;;  %v1800_v62 = vsel %vm1786_vm8, %v1797_v3, %v1799_v61  ;;  %v1865_v47 = vor.u32 8388608, %v10565_v58 }
 0x1ba   : > { %v10597_v41 = vmul.u32.u64.low %v10553_v13, %v1800_v62  ;;  %v10598_v25 = vmul.u32.u64.high %v10553_v13, %v1800_v62, %v10597_v41  ;;  %v1867_v55 = vadd.s32 1, %v8392_v20  ;;  %v1792_v26 = vsel %vm1786_vm8, %v1789_v7, %v1791_v29 }
 0x1bb   : > { %v10601_v2 = vsub.s32 %v1709_v9, %v1712_v23  ;;  %v10605_v56 = vmul.u32.u64.low %v10553_v13, %v1796_v36  ;;  %v10606_v11 = vmul.u32.u64.high %v10553_v13, %v1796_v36, %v10605_v56  ;;  %v10612_v63 = vadd.s32 %v10548_v53, %v10558_v40 }
 0x1bc   : > { %vm1868_vm2 = vcmp.gt.s32.totalorder %v1867_v55, 0  ;;  %v1964_v45 = vand.u32 2139095040, %v10511_v49  ;;  %v1808_v51 = vmul.u32 %v10553_v13, %v1792_v26  ;;  %v10621_v48 = vshll.u32 %v1865_v47, 8 }
 0x1bd   : > { %v1715_v16 = vsub.s32 0, %v10601_v2  ;;  %v1869_v9 = vsel %vm1868_vm2, %v1867_v55, 0  ;;  %vm1810_vm4 = vc.u32 %v10598_v25, %v10605_v56  ;;  %v1811_v40 = vadd.s32 1, %v10606_v11 }
 0x1be   : > { %v1871_v5 = vand.u32 31, %v1869_v9  ;;  %v14701_v24 = vand.u32 2147483647, %v10511_v49  ;;  %v1870_v3 = vshrl.u32 %v1869_v9, 5  ;;  %v1965_v7 = vshrl.u32 %v1964_v45, 23 }
 0x1bf   : > { %v8385_v53 = vmin.u32 %v1715_v16, %v10601_v2  ;;  %v1812_v29 = vsel %vm1810_vm4, %v1811_v40, %v10606_v11  ;;  %vm1235_vm6 = vcmp.lt.s32.totalorder %v10119_v59, 0  ;;  %vm1339_vm7 = vcmp.lt.s32.totalorder %v10161_v57, 0 }
 0x1c0   : > { %v1872_v32 = vsub.s32 32, %v1871_v5  ;;  %v1874_v34 = vshll.u32 %v14783_v54, %v1871_v5  ;;  %v1877_v10 = vshll.u32 %v14787_v46, %v1871_v5  ;;  %v1880_v61 = vshll.u32 %v14788_v37, %v1871_v5 }
 0x1c1   : > { %v1717_v13 = vclz %v8385_v53  ;;  %v1813_v23 = vadd.s32 %v1812_v29, %v1808_v51  ;;  %v1883_v41 = vshll.u32 %v14789_v38, %v1871_v5  ;;  %v10639_v53 = vand.u32 8388607, %v14701_v24 }
 0x1c2   : > { %v1875_v36 = vshrl.u32 %v14787_v46, %v1872_v32  ;;  %v1878_v62 = vshrl.u32 %v14788_v37, %v1872_v32  ;;  %v1881_v55 = vshrl.u32 %v14789_v38, %v1872_v32  ;;  %v1884_v26 = vshrl.u32 %v14790_v21, %v1872_v32 }
 0x1c3   : > { %v8386_v47 = vadd.s32 4294967294, %v1717_v13  ;;  %v1887_v45 = vshrl.u32 %v14791_v22, %v1872_v32  ;;  %v1814_v16 = vadd.s32 536870912, %v1813_v23  ;;  %v1886_v29 = vshll.u32 %v14790_v21, %v1871_v5 }
 0x1c4   : > { %v1876_v11 = vor.u32 %v1875_v36, %v1874_v34  ;;  %v1879_v9 = vor.u32 %v1878_v62, %v1877_v10  ;;  %v1882_v51 = vor.u32 %v1881_v55, %v1880_v61  ;;  %v1885_v40 = vor.u32 %v1884_v26, %v1883_v41 }
 0x1c5   : > { %vm8387_vm5 = vcmp.lt.s32.totalorder %v8386_v47, 0  ;;  %vm14704_vm8 = vcmp.lt.s32.totalorder %v10209_v52, 0  ;;  %v10645_v39 = vshrl.u32 %v1814_v16, 30  ;;  %v1873_v34 = vshrl.u32 %v14783_v54, %v1872_v32 }
 0x1c6   : > { %v1720_v13 = vsel %vm8387_vm5, 0, %v8386_v47  ;;  %vm1889_vm13 = vcmp.lt.s32.totalorder %v1870_v3, 1  ;;  %v1888_v62 = vor.u32 %v1887_v45, %v1886_v29  ;;  %vm1892_vm1 = vcmp.lt.s32.totalorder %v1870_v3, 4 }
 0x1c7   : > { %v1721_v10 = vsub.s32 32, %v1720_v13  ;;  %v1725_v36 = vsub.s32 4294967266, %v1720_v13  ;;  %v1816_v61 = vshll.u32 %v10645_v39, 30  ;;  %vm1890_vm2 = vcmp.lt.s32.totalorder %v1870_v3, 2 }
 0x1c8   : > { %v1894_v5 = vsel %vm1892_vm1, %v1882_v51, 2102212464  ;;  %v1897_v41 = vsel %vm1889_vm13, %v1876_v11, %v1879_v9  ;;  %vm1891_vm4 = vcmp.lt.s32.totalorder %v1870_v3, 3  ;;  %v1893_v47 = vsel %vm1889_vm13, %v1873_v34, %v1876_v11 }
 0x1c9   : > { %v1726_v55 = vadd.s32 127, %v1725_v36  ;;  %v1898_v26 = vsel %vm1892_vm1, %v1885_v40, 920167782  ;;  %v10653_v16 = vsub.s32 %v1813_v23, %v1816_v61  ;;  %v1895_v32 = vsel %vm1891_vm4, %v1879_v9, %v1894_v5 }
 0x1ca   : > { %v1899_v24 = vsel %vm1891_vm4, %v1882_v51, %v1898_v26  ;;  %v1901_v45 = vsel %vm1889_vm13, %v1879_v9, %v1882_v51  ;;  %v1723_v29 = vshrl.u32 %v10612_v63, %v1721_v10  ;;  %v1902_v31 = vsel %vm1892_vm1, %v1888_v62, 1326507024 }
 0x1cb   : > { %v1727_v58 = vshll.u32 %v1726_v55, 23  ;;  %v1900_v20 = vsel %vm1890_vm2, %v1897_v41, %v1899_v24  ;;  %v1819_v36 = vsub.s32 0, %v10653_v16  ;;  %v1903_v50 = vsel %vm1891_vm4, %v1885_v40, %v1902_v31 }
 0x1cc   : > { %v10661_v11 = vmul.u32.u64.low %v10621_v48, %v1900_v20  ;;  %v10662_v34 = vmul.u32.u64.high %v10621_v48, %v1900_v20, %v10661_v11  ;;  %v1722_v23 = vshll.u32 %v10601_v2, %v1720_v13  ;;  %v1896_v9 = vsel %vm1890_vm2, %v1893_v47, %v1895_v32 }
 0x1cd   : > { %v1728_v61 = vor.u32 4788187, %v1727_v58  ;;  %v1904_v63 = vsel %vm1890_vm2, %v1901_v45, %v1903_v50  ;;  %v8389_v51 = vmin.u32 %v1819_v36, %v10653_v16  ;;  %v8396_v62 = vadd.s32 4294967169, %v1965_v7 }
 0x1ce   : > { %v10670_v24 = vmul.u32.u64.low %v10621_v48, %v1904_v63  ;;  %v10671_v10 = vmul.u32.u64.high %v10621_v48, %v1904_v63, %v10670_v24  ;;  %v14813_v31 = vxor.u32 2147483648, %v10388_v30  ;;  %v14814_v2 = vxor.u32 2147483648, %v10498_v43 }
 0x1cf   : > { %v14815_v58 = vxor.u32 2147483648, %v10560_v8  ;;  %v1724_v7 = vor.u32 %v1723_v29, %v1722_v23  ;;  %v14816_v40 = vand.u32 2147483647, %v10591_v42  ;;  %v1821_v5 = vclz %v8389_v51 }
 0x1d0   : > { %v10678_v20 = vsel %vm1235_vm6, %v14813_v31, %v10388_v30  ;;  %v10685_v50 = vsel %vm1339_vm7, %v14814_v2, %v10498_v43  ;;  %v14817_v30 = vcvt.s32.f32 %v10583_v28  ;;  %v1915_v41 = vadd.s32 1, %v10662_v34 }
 0x1d1   : > { %v10692_v3 = vsel %vm14704_vm8, %v14815_v58, %v10560_v8  ;;  %v1971_v55 = vadd.s32 1, %v8396_v62  ;;  %v1729_v43 = vand.u32 2147483647, %v1728_v61  ;;  %v1912_v47 = vmul.u32 %v10621_v48, %v1896_v9 }
 0x1d2   : > { %v10698_v13 = vmul.f32 %v14817_v30, %v14816_v40  ;;  %v1969_v26 = vor.u32 8388608, %v10639_v53  ;;  %v14818_v32 = vand.u32 2147483647, %v14801_v12  ;;  %v8390_v42 = vadd.s32 4294967294, %v1821_v5 }
 0x1d3   : > { %vm1914_vm13 = vc.u32 %v10671_v10, %v10661_v11  ;;  %vm1972_vm1 = vcmp.gt.s32.totalorder %v1971_v55, 0  ;;  %v14821_v28 = vsub.s32 4, %v10078_v0  ;;  %v1731_v48 = vcvt.s32.f32 %v1724_v7 }
 0x1d4   : > { %vm10705_vm5 = vcmp.le.f32.partialorder %v14818_v32, 0.7853982  ;;  %v1916_v53 = vsel %vm1914_vm13, %v1915_v41, %v10662_v34  ;;  %v1973_v29 = vsel %vm1972_vm1, %v1971_v55, 0  ;;  %v1809_v23 = vadd.s32 %v10605_v56, %v10598_v25 }
 0x1d5   : > { %v592_v45 = vsel %vm507_vm10, %v14821_v28, %v10078_v0  ;;  %v593_v36 = vsel %vm10705_vm5, %v14801_v12, %v10470_v19  ;;  %vm8391_vm2 = vcmp.lt.s32.totalorder %v8390_v42, 0  ;;  %v1917_v61 = vadd.s32 %v1916_v53, %v1912_v47 }
 0x1d6   : > { %v1975_v9 = vand.u32 31, %v1973_v29  ;;  %v10723_v63 = vmul.f32 %v1731_v48, %v1729_v43  ;;  %v1824_v51 = vsel %vm8391_vm2, 0, %v8390_v42  ;;  %v10725_v24 = vshll.u32 %v1969_v26, 8 }
 0x1d7   : > { %v594_v0 = vsel %vm10705_vm5, 0, %v592_v45  ;;  %v1825_v34 = vsub.s32 32, %v1824_v51  ;;  %v1829_v62 = vsub.s32 4294967266, %v1824_v51  ;;  %v1918_v31 = vadd.s32 536870912, %v1917_v61 }
 0x1d8   : > { %9179 = vcosq.f32 %v593_v36  ;;  %v1974_v2 = vshrl.u32 %v1973_v29, 5  ;;  %v1976_v19 = vsub.s32 32, %v1975_v9  ;;  %v1978_v58 = vshll.u32 %v14783_v54, %v1975_v9 }
 0x1d9   : > { %9181 = vsinq.f32 %v593_v36  ;;  %v1827_v25 = vshrl.u32 %v1809_v23, %v1825_v34  ;;  %v10730_v56 = vshrl.u32 %v1918_v31, 30  ;;  %v1981_v7 = vshll.u32 %v14787_v46, %v1975_v9 }
 0x1da   : > { %v1984_v40 = vshll.u32 %v14788_v37, %v1975_v9  ;;  %v1830_v30 = vadd.s32 127, %v1829_v62  ;;  %v1979_v5 = vshrl.u32 %v14787_v46, %v1976_v19  ;;  %v1982_v41 = vshrl.u32 %v14788_v37, %v1976_v19 }
 0x1db   : > { %v1985_v55 = vshrl.u32 %v14789_v38, %v1976_v19  ;;  %v1826_v43 = vshll.u32 %v10653_v16, %v1824_v51  ;;  %v1920_v47 = vshll.u32 %v10730_v56, 30  ;;  %v1987_v26 = vshll.u32 %v14789_v38, %v1975_v9 }
 0x1dc   : > { %v1988_v32 = vshrl.u32 %v14790_v21, %v1976_v19  ;;  %v1980_v8 = vor.u32 %v1979_v5, %v1978_v58  ;;  %v1983_v42 = vor.u32 %v1982_v41, %v1981_v7  ;;  %v598_v45 = vadd.s32 3, %v594_v0 }
 0x1dd   : > { %v1986_v28 = vor.u32 %v1985_v55, %v1984_v40  ;;  %v10741_v48 = vor.u32 %v1827_v25, %v1826_v43  ;;  %v10743_v53 = vsub.s32 %v1917_v61, %v1920_v47  ;;  %v1977_v29 = vshrl.u32 %v14783_v54, %v1976_v19 }
 0x1de   : > { %v1989_v36 = vor.u32 %v1988_v32, %v1987_v26  ;;  %v1831_v23 = vshll.u32 %v1830_v30, 23  ;;  %v1990_v16 = vshll.u32 %v14790_v21, %v1975_v9  ;;  %v1991_v51 = vshrl.u32 %v14791_v22, %v1976_v19 }
 0x1df   : > { %vm1993_vm10 = vcmp.lt.s32.totalorder %v1974_v2, 1  ;;  %v1923_v34 = vsub.s32 0, %v10743_v53  ;;  %vm1995_vm4 = vcmp.lt.s32.totalorder %v1974_v2, 3  ;;  %vm1996_vm5 = vcmp.lt.s32.totalorder %v1974_v2, 4 }
 0x1e0   : > { %v1997_v62 = vsel %vm1993_vm10, %v1977_v29, %v1980_v8  ;;  %v1992_v0 = vor.u32 %v1991_v51, %v1990_v16  ;;  %v1998_v31 = vsel %vm1996_vm5, %v1986_v28, 2102212464  ;;  %v2001_v61 = vsel %vm1993_vm10, %v1980_v8, %v1983_v42 }
 0x1e1   : > { %v2002_v58 = vsel %vm1996_vm5, %v1989_v36, 920167782  ;;  %v8393_v7 = vmin.u32 %v1923_v34, %v10743_v53  ;;  %vm1994_vm13 = vcmp.lt.s32.totalorder %v1974_v2, 2  ;;  %v1999_v9 = vsel %vm1995_vm4, %v1983_v42, %v1998_v31 }
 0x1e2   : > { %v9180_v25 = vpop.eup %9179  ;;  %v2003_v19 = vsel %vm1995_vm4, %v1986_v28, %v2002_v58  ;;  %v1832_v30 = vor.u32 4788187, %v1831_v23  ;;  %v2005_v41 = vsel %vm1993_vm10, %v1983_v42, %v1986_v28  ;;  %v2006_v55 = vsel %vm1996_vm5, %v1992_v0, 1326507024 }
 0x1e3   : > { %v9182_v40 = vpop.eup %9181  ;;  %v2004_v5 = vsel %vm1994_vm13, %v2001_v61, %v2003_v19  ;;  %v1925_v43 = vclz %v8393_v7  ;;  %v2000_v47 = vsel %vm1994_vm13, %v1997_v62, %v1999_v9  ;;  %v2007_v26 = vsel %vm1995_vm4, %v1989_v36, %v2006_v55  ;;  %v14825_v61 = vld [vmem:[#allocation8_spill] sm:$0xff] }
 0x1e4   : > { %vm597_vm1 = vweird.f32 %v14801_v12  ;;  %v14822_v32 = vand.u32 2147483647, %v9613_v4  ;;  %v2008_v29 = vsel %vm1994_vm13, %v2005_v41, %v2007_v26  ;;  %v599_v51 = vand.u32 3, %v598_v45 }
 0x1e5   : > { %v10764_v16 = vmul.u32.u64.low %v10725_v24, %v2004_v5  ;;  %v10765_v23 = vmul.u32.u64.high %v10725_v24, %v2004_v5, %v10764_v16  ;;  %v1835_v42 = vcvt.s32.f32 %v10741_v48  ;;  %v8394_v28 = vadd.s32 4294967294, %v1925_v43 }
 0x1e6   : > { %vm10759_vm2 = vcmp.le.f32.partialorder %v14822_v32, 0.7853982  ;;  %v10769_v2 = vmul.u32.u64.low %v10725_v24, %v2008_v29  ;;  %v10770_v36 = vmul.u32.u64.high %v10725_v24, %v2008_v29, %v10769_v2  ;;  %v1833_v34 = vand.u32 2147483647, %v1832_v30 }
 0x1e7   : > { %v2016_v62 = vmul.u32 %v10725_v24, %v2000_v47  ;;  %vm601_vm10 = vcmp.eq.s32.totalorder %v599_v51, 0  ;;  %v602_v0 = vxor.u32 2147483648, %v9182_v40  ;;  %vm8395_vm4 = vcmp.lt.s32.totalorder %v8394_v28, 0 }
 0x1e8   : > { %v605_v31 = vxor.u32 2147483648, %v9180_v25  ;;  %v1007_v58 = vsub.s32 4, %v14825_v61  ;;  %v1009_v45 = vsel %vm10759_vm2, %v9613_v4, %v10145_v15  ;;  %v1928_v48 = vsel %vm8395_vm4, 0, %v8394_v28 }
 0x1e9   : > { %v2019_v7 = vadd.s32 1, %v10765_v23  ;;  %v603_v9 = vsel %vm601_vm10, %v9180_v25, %v602_v0  ;;  %9183 = vcosq.f32 %v1009_v45  ;;  %v1929_v19 = vsub.s32 32, %v1928_v48 }
 0x1ea   : > { %v1933_v30 = vsub.s32 4294967266, %v1928_v48  ;;  %vm600_vm5 = vcmp.lt.s32.totalorder %v599_v51, 2  ;;  %vm604_vm13 = vcmp.eq.s32.totalorder %v599_v51, 2  ;;  %vm2018_vm8 = vc.u32 %v10770_v36, %v10764_v16 }
 0x1eb   : > { %v606_v24 = vsel %vm604_vm13, %v605_v31, %v9182_v40  ;;  %v1008_v5 = vsel %vm923_vm15, %v1007_v58, %v14825_v61  ;;  %9185 = vsinq.f32 %v1009_v45  ;;  %v1913_v15 = vadd.s32 %v10661_v11, %v10671_v10 }
 0x1ec   : > { %v1934_v41 = vadd.s32 127, %v1933_v30  ;;  %v2020_v55 = vsel %vm2018_vm8, %v2019_v7, %v10765_v23  ;;  %v607_v25 = vsel %vm600_vm5, %v603_v9, %v606_v24  ;;  %v10786_v43 = vmul.f32 %v1835_v42, %v1833_v34 }
 0x1ed   : > { %v2021_v47 = vadd.s32 %v2020_v55, %v2016_v62  ;;  %v10790_v26 = vsel %vm597_vm1, nan, %v607_v25  ;;  %v1010_v40 = vsel %vm10759_vm2, 0, %v1008_v5  ;;  %v1931_v32 = vshrl.u32 %v1913_v15, %v1929_v19 }
 0x1ee   : > { %v1935_v29 = vshll.u32 %v1934_v41, 23  ;;  %v1014_v51 = vadd.s32 3, %v1010_v40  ;;  %v2107_v28 = vand.u32 4294901760, %v10790_v26  ;;  %v1629_v11 = vxor.u32 2147483648, %v10698_v13 }
 0x1ef   : > { %v1733_v10 = vxor.u32 2147483648, %v10723_v63  ;;  %v2022_v23 = vadd.s32 536870912, %v2021_v47  ;;  %v799_v42 = vsub.s32 4, %v10247_v27  ;;  %v1930_v2 = vshll.u32 %v10743_v53, %v1928_v48 }
 0x1f0   : > { %v1936_v12 = vor.u32 4788187, %v1935_v29  ;;  %v10800_v34 = vsub.f32 %v10790_v26, %v2107_v28  ;;  %v14826_v8 = vand.u32 2147483647, %v9936_v35  ;;  %v1015_v31 = vand.u32 3, %v1014_v51 }
 0x1f1   : > { %v10808_v0 = vshrl.u32 %v2022_v23, 30  ;;  %v800_v61 = vsel %vm715_vm12, %v799_v42, %v10247_v27  ;;  %v1837_v58 = vxor.u32 2147483648, %v10786_v43  ;;  %v1932_v45 = vor.u32 %v1931_v32, %v1930_v2 }
 0x1f2   : > { %vm10804_vm15 = vcmp.le.f32.partialorder %v14826_v8, 0.7853982  ;;  %v10819_v48 = vadd.s32 %v10764_v16, %v10770_v36  ;;  %v14829_v7 = vand.u32 2147483647, %v9626_v14  ;;  %v1937_v5 = vand.u32 2147483647, %v1936_v12 }
 0x1f3   : > { %v801_v53 = vsel %vm10804_vm15, %v9936_v35, %v10490_v6  ;;  %v9184_v19 = vpop.eup %9183  ;;  %v2024_v27 = vshll.u32 %v10808_v0, 30  ;;  %v802_v30 = vsel %vm10804_vm15, 0, %v800_v61  ;;  %v14832_v6 = vld [vmem:[#allocation14_spill] sm:$0xff]  ;;  %vm1020_vm12 = vcmp.eq.s32.totalorder %v1015_v31, 2 }
 0x1f4   : > { %vm10823_vm8 = vcmp.le.f32.partialorder %v14829_v7, 0.7853982  ;;  %9187 = vcosq.f32 %v801_v53  ;;  %v1215_v24 = vsub.s32 4, %v14832_v6  ;;  %v1021_v15 = vxor.u32 2147483648, %v9184_v19 }
 0x1f5   : > { %9189 = vsinq.f32 %v801_v53  ;;  %v806_v16 = vadd.s32 3, %v802_v30  ;;  %v9186_v36 = vpop.eup %9185  ;;  %v10831_v41 = vsub.s32 %v2021_v47, %v2024_v27  ;;  %v1217_v25 = vsel %vm10823_vm8, %v9626_v14, %v10154_v1 }
 0x1f6   : > { %v1216_v55 = vsel %vm1131_vm3, %v1215_v24, %v14832_v6  ;;  %v1939_v26 = vcvt.s32.f32 %v1932_v45  ;;  %vm1013_vm1 = vweird.f32 %v9613_v4  ;;  %v1018_v40 = vxor.u32 2147483648, %v9186_v36 }
 0x1f7   : > { %v1022_v32 = vsel %vm1020_vm12, %v1021_v15, %v9186_v36  ;;  %v2027_v29 = vsub.s32 0, %v10831_v41  ;;  %vm1017_vm2 = vcmp.eq.s32.totalorder %v1015_v31, 0  ;;  %v1218_v47 = vsel %vm10823_vm8, 0, %v1216_v55  ;;  %v14836_v36 = vld [vmem:[#allocation7_spill] sm:$0xff] }
 0x1f8   : > { %9191 = vcosq.f32 %v1217_v25  ;;  %v10844_v51 = vmul.f32 %v1939_v26, %v1937_v5  ;;  %vm1016_vm3 = vcmp.lt.s32.totalorder %v1015_v31, 2  ;;  %v1019_v23 = vsel %vm1017_vm2, %v9184_v19, %v1018_v40  ;;  %v14837_v26 = vld [vmem:[#allocation5_spill] sm:$0xff] }
 0x1f9   : > { %v807_v42 = vand.u32 3, %v806_v16  ;;  %v8397_v2 = vmin.u32 %v2027_v29, %v10831_v41  ;;  %v1023_v1 = vsel %vm1016_vm3, %v1019_v23, %v1022_v32  ;;  %9193 = vsinq.f32 %v1217_v25  ;;  %v14844_v32 = vld [vmem:[#allocation13_spill] sm:$0xff] }
 0x1fa   : > { %v14833_v4 = vand.u32 2147483647, %v9863_v44  ;;  %v1024_v8 = vsel %vm1013_vm1, nan, %v1023_v1  ;;  %v1222_v62 = vadd.s32 3, %v1218_v47  ;;  %v487_v61 = vsub.s32 4, %v10019_v17  ;;  %v14841_v1 = vld [vmem:[#allocation15_spill] sm:$0xff] }
 0x1fb   : > { %v2029_v53 = vclz %v8397_v2  ;;  %v2111_v45 = vand.u32 4294901760, %v1024_v8  ;;  %vm805_vm4 = vweird.f32 %v9936_v35  ;;  %v1941_v7 = vxor.u32 2147483648, %v10844_v51 }
 0x1fc   : > { %vm10849_vm10 = vcmp.le.f32.partialorder %v14833_v4, 0.7853982  ;;  %v1223_v9 = vand.u32 3, %v1222_v62  ;;  %v488_v19 = vsel %vm403_vm9, %v487_v61, %v10019_v17  ;;  %vm808_vm5 = vcmp.lt.s32.totalorder %v807_v42, 2 }
 0x1fd   : > { %v489_v31 = vsel %vm10849_vm10, %v9863_v44, %v10463_v33  ;;  %v8398_v30 = vadd.s32 4294967294, %v2029_v53  ;;  %v10863_v6 = vpack.c.bf16 %v2111_v45, %v2107_v28  ;;  %v10865_v24 = vsub.f32 %v1024_v8, %v2111_v45  ;;  %v14842_v53 = vld [vmem:[#allocation20_spill] sm:$0xff]  ;;  %v14843_v45 = vld [vmem:[#allocation9_spill] sm:$0xff] }
 0x1fe   : > { %9195 = vcosq.f32 %v489_v31  ;;  %v9188_v27 = vpop.eup %9187  ;;  %v490_v33 = vsel %vm10849_vm10, 0, %v488_v19  ;;  %vm809_vm13 = vcmp.eq.s32.totalorder %v807_v42, 0  ;;  %vm812_vm15 = vcmp.eq.s32.totalorder %v807_v42, 2 }
 0x1ff   : > { %9197 = vsinq.f32 %v489_v31  ;;  %v9190_v5 = vpop.eup %9189  ;;  %v813_v15 = vxor.u32 2147483648, %v9188_v27  ;;  %vm8399_vm8 = vcmp.lt.s32.totalorder %v8398_v30, 0  ;;  %8547 = vmatprep.subr.bf16.mxu0 %v10863_v6  ;;  %vm1221_vm9 = vweird.f32 %v9626_v14 }
 0x200   : > { %v810_v16 = vxor.u32 2147483648, %v9190_v5  ;;  %v494_v17 = vadd.s32 3, %v490_v33  ;;  %v903_v28 = vsub.s32 4, %v14836_v36  ;;  %v2032_v55 = vsel %vm8399_vm8, 0, %v8398_v30 }
 0x201   : > { %v814_v25 = vsel %vm812_vm15, %v813_v15, %v9190_v5  ;;  %vm1228_vm12 = vcmp.eq.s32.totalorder %v1223_v9, 2  ;;  %v14838_v40 = vand.u32 2147483647, %v14837_v26  ;;  %vm1547_vm2 = vcmp.lt.s32.totalorder %v10213_v60, 0 }
 0x202   : > { %v9192_v29 = vpop.eup %9191  ;;  %vm1651_vm3 = vcmp.lt.s32.totalorder %v10418_v18, 0  ;;  %v2033_v47 = vsub.s32 32, %v2032_v55  ;;  %v2037_v23 = vsub.s32 4294967266, %v2032_v55  ;;  %v811_v2 = vsel %vm809_vm13, %v9188_v27, %v810_v16 }
 0x203   : > { %vm10874_vm1 = vcmp.le.f32.partialorder %v14838_v40, 0.7853982  ;;  %v815_v12 = vsel %vm808_vm5, %v811_v2, %v814_v25  ;;  %v1229_v8 = vxor.u32 2147483648, %v9192_v29  ;;  %v495_v62 = vand.u32 3, %v494_v17  ;;  %v9194_v31 = vpop.eup %9193 }
 0x204   : > { %v905_v4 = vsel %vm10874_vm1, %v14837_v26, %v14841_v1  ;;  %v904_v61 = vsel %vm819_vm14, %v903_v28, %v14836_v36  ;;  %vm1755_vm10 = vcmp.lt.s32.totalorder %v14842_v53, 0  ;;  %vm1859_vm15 = vcmp.lt.s32.totalorder %v14843_v45, 0 }
 0x205   : > { %v2034_v19 = vshll.u32 %v10831_v41, %v2032_v55  ;;  %v2035_v27 = vshrl.u32 %v10819_v48, %v2033_v47  ;;  %v2038_v30 = vadd.s32 127, %v2037_v23  ;;  %v816_v42 = vsel %vm805_vm4, nan, %v815_v12 }
 0x206   : > { %vm1224_vm5 = vcmp.lt.s32.totalorder %v1223_v9, 2  ;;  %vm1225_vm13 = vcmp.eq.s32.totalorder %v1223_v9, 0  ;;  %v1226_v33 = vxor.u32 2147483648, %v9194_v31  ;;  %v1230_v5 = vsel %vm1228_vm12, %v1229_v8, %v9194_v31 }
 0x207   : > { %v2036_v16 = vor.u32 %v2035_v27, %v2034_v19  ;;  %v2039_v17 = vshll.u32 %v2038_v30, 23  ;;  %v2797_v36 = vand.u32 4294901760, %v816_v42  ;;  %v906_v28 = vsel %vm10874_vm1, 0, %v904_v61  ;;  %v14849_v19 = vld [vmem:[#allocation21_spill] sm:$0xff] }
 0x208   : > { %v9196_v15 = vpop.eup %9195  ;;  %v1227_v41 = vsel %vm1225_vm13, %v9192_v29, %v1226_v33  ;;  %vm497_vm14 = vcmp.eq.s32.totalorder %v495_v62, 0  ;;  %9199 = vcosq.f32 %v905_v4  ;;  %vm500_vm4 = vcmp.eq.s32.totalorder %v495_v62, 2 }
 0x209   : > { %v9198_v25 = vpop.eup %9197  ;;  %v501_v48 = vxor.u32 2147483648, %v9196_v15  ;;  %v2040_v55 = vor.u32 4788187, %v2039_v17  ;;  %v1231_v35 = vsel %vm1224_vm5, %v1227_v41, %v1230_v5  ;;  %9201 = vsinq.f32 %v905_v4  ;;  %v14848_v4 = vld [vmem:[#allocation17_spill] sm:$0xff] }
 0x20a   : > { %v498_v40 = vxor.u32 2147483648, %v9198_v25  ;;  %v1232_v9 = vsel %vm1221_vm9, nan, %v1231_v35  ;;  %v910_v23 = vadd.s32 3, %v906_v28  ;;  %v14845_v8 = vand.u32 2147483647, %v14844_v32 }
 0x20b   : > { %v502_v47 = vsel %vm500_vm4, %v501_v48, %v9198_v25  ;;  %v2041_v2 = vand.u32 2147483647, %v2040_v55  ;;  %v2801_v1 = vand.u32 4294901760, %v1232_v9  ;;  %v10911_v61 = vsel %vm1547_vm2, %v1629_v11, %v10698_v13  ;;  %v14856_v48 = vld [vmem:[#allocation19_spill] sm:$0xff] }
 0x20c   : > { %v499_v12 = vsel %vm497_vm14, %v9196_v15, %v498_v40  ;;  %vm10902_vm8 = vcmp.le.f32.partialorder %v14845_v8, 0.7853982  ;;  %v10918_v14 = vsel %vm1651_vm3, %v1733_v10, %v10723_v63  ;;  %v695_v31 = vsub.s32 4, %v14848_v4 }
 0x20d   : > { %v697_v27 = vsel %vm10902_vm8, %v14844_v32, %v14849_v19  ;;  %v2043_v30 = vcvt.s32.f32 %v2036_v16  ;;  %v10925_v33 = vpack.c.bf16 %v2801_v1, %v2797_v36  ;;  %vm496_vm9 = vcmp.lt.s32.totalorder %v495_v62, 2  ;;  %v14854_v16 = vld [vmem:[#allocation12_spill] sm:$0xff] }
 0x20e   : > { %v911_v13 = vand.u32 3, %v910_v23  ;;  %v1838_v11 = vsel %vm1755_vm10, %v1837_v58, %v10786_v43  ;;  %v10937_v63 = vsel %vm1859_vm15, %v1941_v7, %v10844_v51  ;;  %vm493_vm12 = vweird.f32 %v9863_v44  ;;  %v14850_v44 = vld [vmem:[#allocation6_spill] sm:$0xff] }
 0x20f   : > { %v503_v10 = vsel %vm496_vm9, %v499_v12, %v502_v47  ;;  %v2044_v5 = vmul.f32 %v2043_v30, %v2041_v2  ;;  %8595 = vmatprep.subr.bf16.mxu1 %v10925_v33  ;;  %v10941_v62 = vsub.f32 %v816_v42, %v2797_v36  ;;  %v696_v15 = vsel %vm611_vm11, %v695_v31, %v14848_v4  ;;  %v14855_v36 = vld [vmem:[#allocation16_spill] sm:$0xff] }
 0x210   : > { %9203 = vcosq.f32 %v697_v27  ;;  %v10946_v43 = vsub.f32 %v1232_v9, %v2801_v1  ;;  %vm909_vm1 = vweird.f32 %v14837_v26  ;;  %v698_v58 = vsel %vm10902_vm8, 0, %v696_v15 }
 0x211   : > { %9205 = vsinq.f32 %v697_v27  ;;  %v14851_v51 = vand.u32 2147483647, %v14850_v44  ;;  %vm1963_vm13 = vcmp.lt.s32.totalorder %v10511_v49, 0  ;;  %v504_v42 = vsel %vm493_vm12, nan, %v503_v10 }
 0x212   : > { %vm912_vm14 = vcmp.lt.s32.totalorder %v911_v13, 2  ;;  %v1111_v17 = vsub.s32 4, %v14854_v16  ;;  %v9200_v25 = vpop.eup %9199  ;;  %vm913_vm11 = vcmp.eq.s32.totalorder %v911_v13, 0  ;;  %v702_v41 = vadd.s32 3, %v698_v58 }
 0x213   : > { %vm10953_vm5 = vcmp.le.f32.partialorder %v14851_v51, 0.7853982  ;;  %v1423_v55 = vsub.s32 4, %v14856_v48  ;;  %v917_v35 = vxor.u32 2147483648, %v9200_v25  ;;  %v14857_v9 = vand.u32 2147483647, %v10161_v57  ;;  %v9202_v23 = vpop.eup %9201 }
 0x214   : > { %v1113_v28 = vsel %vm10953_vm5, %v14850_v44, %v14855_v36  ;;  %v1112_v40 = vsel %vm1027_vm0, %v1111_v17, %v14854_v16  ;;  %vm916_vm8 = vcmp.eq.s32.totalorder %v911_v13, 2  ;;  %v2045_v8 = vxor.u32 2147483648, %v2044_v5 }
 0x215   : > { %9207 = vcosq.f32 %v1113_v28  ;;  %vm10969_vm4 = vcmp.le.f32.partialorder %v14857_v9, 0.7853982  ;;  %v1114_v2 = vsel %vm10953_vm5, 0, %v1112_v40  ;;  %v1424_v1 = vsel %vm1339_vm7, %v1423_v55, %v14856_v48 }
 0x216   : > { %9209 = vsinq.f32 %v1113_v28  ;;  %v1425_v12 = vsel %vm10969_vm4, %v10161_v57, %v10685_v50  ;;  %v914_v29 = vxor.u32 2147483648, %v9202_v23  ;;  %v918_v4 = vsel %vm916_vm8, %v917_v35, %v9202_v23 }
 0x217   : > { %v2109_v31 = vand.u32 4294901760, %v504_v42  ;;  %vm701_vm0 = vweird.f32 %v14844_v32  ;;  %v1118_v19 = vadd.s32 3, %v1114_v2  ;;  %v1426_v27 = vsel %vm10969_vm4, 0, %v1424_v1 }
 0x218   : > { %9211 = vcosq.f32 %v1425_v12  ;;  %v915_v30 = vsel %vm913_vm11, %v9200_v25, %v914_v29  ;;  %v703_v10 = vand.u32 3, %v702_v41  ;;  %v14860_v15 = vand.u32 2147483647, %v14842_v53 }
 0x219   : > { %9213 = vsinq.f32 %v1425_v12  ;;  %v919_v50 = vsel %vm912_vm14, %v915_v30, %v918_v4  ;;  %v1119_v51 = vand.u32 3, %v1118_v19  ;;  %v1430_v7 = vadd.s32 3, %v1426_v27 }
 0x21a   : > { %vm10988_vm7 = vcmp.le.f32.partialorder %v14860_v15, 0.7853982  ;;  %v9204_v17 = vpop.eup %9203  ;;  %v10998_v36 = vsel %vm909_vm1, nan, %v919_v50  ;;  %v11000_v28 = vsub.f32 %v504_v42, %v2109_v31  ;;  %v1839_v25 = vsub.s32 4, %v10645_v39 }
 0x21b   : > { %v1841_v16 = vsel %vm10988_vm7, %v14842_v53, %v1838_v11  ;;  %v9206_v41 = vpop.eup %9205  ;;  %v11005_v13 = vsel %vm1963_vm13, %v2045_v8, %v2044_v5  ;;  %v2113_v48 = vand.u32 4294901760, %v10998_v36  ;;  %v709_v55 = vxor.u32 2147483648, %v9204_v17 }
 0x21c   : > { %9215 = vcosq.f32 %v1841_v16  ;;  %vm1117_vm9 = vweird.f32 %v14850_v44  ;;  %vm704_vm12 = vcmp.lt.s32.totalorder %v703_v10, 2  ;;  %vm705_vm5 = vcmp.eq.s32.totalorder %v703_v10, 0 }
 0x21d   : > { %v706_v26 = vxor.u32 2147483648, %v9206_v41  ;;  %vm708_vm1 = vcmp.eq.s32.totalorder %v703_v10, 2  ;;  %v11009_v42 = vpack.c.bf16 %v2113_v48, %v2109_v31  ;;  %vm1121_vm14 = vcmp.eq.s32.totalorder %v1119_v51, 0  ;;  %v14863_v31 = vld [vmem:[#allocation10_spill] sm:$0xff] }
 0x21e   : > { %v710_v35 = vsel %vm708_vm1, %v709_v55, %v9206_v41  ;;  %v1431_v40 = vand.u32 3, %v1430_v7  ;;  %v1840_v5 = vsel %vm1755_vm10, %v1839_v25, %v10645_v39  ;;  %9217 = vsinq.f32 %v1841_v16 }
 0x21f   : > { %v9208_v11 = vpop.eup %9207  ;;  %v707_v47 = vsel %vm705_vm5, %v9204_v17, %v706_v26  ;;  %8549 = vmatpush1.bf16.msra.mxu0 %v11009_v42  ;;  %vm1124_vm11 = vcmp.eq.s32.totalorder %v1119_v51, 2  ;;  %v1842_v12 = vsel %vm10988_vm7, 0, %v1840_v5  ;;  %v1631_v19 = vsub.s32 4, %v14863_v31 }
 0x220   : > { %v9210_v9 = vpop.eup %9209  ;;  %v1125_v23 = vxor.u32 2147483648, %v9208_v11  ;;  %v711_v2 = vsel %vm704_vm12, %v707_v47, %v710_v35  ;;  %v1846_v4 = vadd.s32 3, %v1842_v12  ;;  %vm1120_vm4 = vcmp.lt.s32.totalorder %v1119_v51, 2 }
 0x221   : > { %v1122_v1 = vxor.u32 2147483648, %v9210_v9  ;;  %v712_v8 = vsel %vm701_vm0, nan, %v711_v2  ;;  %v14864_v10 = vand.u32 2147483647, %v10213_v60  ;;  %v1632_v32 = vsel %vm1547_vm2, %v1631_v19, %v14863_v31 }
 0x222   : > { %v1126_v29 = vsel %vm1124_vm11, %v1125_v23, %v9210_v9  ;;  %v9212_v27 = vpop.eup %9211  ;;  %v2799_v30 = vand.u32 4294901760, %v712_v8  ;;  %vm1433_vm8 = vcmp.eq.s32.totalorder %v1431_v40, 0  ;;  %vm1436_vm0 = vcmp.eq.s32.totalorder %v1431_v40, 2 }
 0x223   : > { %v1123_v39 = vsel %vm1121_vm14, %v9208_v11, %v1122_v1  ;;  %vm11023_vm10 = vcmp.le.f32.partialorder %v14864_v10, 0.7853982  ;;  %v9214_v58 = vpop.eup %9213  ;;  %v1437_v7 = vxor.u32 2147483648, %v9212_v27  ;;  %v1847_v26 = vand.u32 3, %v1846_v4 }
 0x224   : > { %v1127_v50 = vsel %vm1120_vm4, %v1123_v39, %v1126_v29  ;;  %v1633_v51 = vsel %vm11023_vm10, %v10213_v60, %v10911_v61  ;;  %v1434_v17 = vxor.u32 2147483648, %v9214_v58  ;;  %v1634_v11 = vsel %vm11023_vm10, 0, %v1632_v32 }
 0x225   : > { %v1128_v16 = vsel %vm1117_vm9, nan, %v1127_v50  ;;  %v1438_v55 = vsel %vm1436_vm0, %v1437_v7, %v9214_v58  ;;  %vm1432_vm7 = vcmp.lt.s32.totalorder %v1431_v40, 2  ;;  %9219 = vcosq.f32 %v1633_v51 }
 0x226   : > { %v9216_v25 = vpop.eup %9215  ;;  %v2803_v41 = vand.u32 4294901760, %v1128_v16  ;;  %v1435_v35 = vsel %vm1433_vm8, %v9212_v27, %v1434_v17  ;;  %vm1429_vm2 = vweird.f32 %v10161_v57  ;;  %9221 = vsinq.f32 %v1633_v51 }
 0x227   : > { %v1853_v9 = vxor.u32 2147483648, %v9216_v25  ;;  %v1439_v61 = vsel %vm1432_vm7, %v1435_v35, %v1438_v55  ;;  %vm1845_vm9 = vweird.f32 %v14842_v53  ;;  %v1638_v44 = vadd.s32 3, %v1634_v11  ;;  %v14874_v35 = vld [vmem:[#allocation22_spill] sm:$0xff] }
 0x228   : > { %v11038_v47 = vpack.c.bf16 %v2803_v41, %v2799_v30  ;;  %v14867_v23 = vand.u32 2147483647, %v10511_v49  ;;  %v2047_v40 = vsub.s32 4, %v10808_v0  ;;  %v9218_v2 = vpop.eup %9217  ;;  %v11050_v1 = vsub.f32 %v10998_v36, %v2113_v48  ;;  %v14870_v48 = vld [vmem:[#allocation18_spill] sm:$0xff] }
 0x229   : > { %v1440_v57 = vsel %vm1429_vm2, nan, %v1439_v61  ;;  %vm1852_vm5 = vcmp.eq.s32.totalorder %v1847_v26, 2  ;;  %vm1848_vm1 = vcmp.lt.s32.totalorder %v1847_v26, 2  ;;  %v1850_v29 = vxor.u32 2147483648, %v9218_v2 }
 0x22a   : > { %vm11044_vm12 = vcmp.le.f32.partialorder %v14867_v23, 0.7853982  ;;  %8597 = vmatpush1.bf16.msra.mxu1 %v11038_v47  ;;  %v1854_v4 = vsel %vm1852_vm5, %v1853_v9, %v9218_v2  ;;  %v2048_v31 = vsel %vm1963_vm13, %v2047_v40, %v10808_v0  ;;  %vm1849_vm14 = vcmp.eq.s32.totalorder %v1847_v26, 0 }
 0x22b   : > { %v2049_v12 = vsel %vm11044_vm12, %v10511_v49, %v11005_v13  ;;  %v2050_v36 = vsel %vm11044_vm12, 0, %v2048_v31  ;;  %v1319_v19 = vsub.s32 4, %v14870_v48  ;;  %v1851_v27 = vsel %vm1849_vm14, %v9216_v25, %v1850_v29 }
 0x22c   : > { %9223 = vcosq.f32 %v2049_v12  ;;  %v2115_v39 = vand.u32 4294901760, %v1440_v57  ;;  %v1639_v10 = vand.u32 3, %v1638_v44  ;;  %v14871_v15 = vand.u32 2147483647, %v10119_v59 }
 0x22d   : > { %v1855_v58 = vsel %vm1848_vm1, %v1851_v27, %v1854_v4  ;;  %9225 = vsinq.f32 %v2049_v12  ;;  %v2054_v50 = vadd.s32 3, %v2050_v36  ;;  %v1320_v0 = vsel %vm1235_vm6, %v1319_v19, %v14870_v48  ;;  %v14881_v19 = vld [vmem:[#allocation11_spill] sm:$0xff] }
 0x22e   : > { %vm11065_vm11 = vcmp.le.f32.partialorder %v14871_v15, 0.7853982  ;;  %v1856_v7 = vsel %vm1845_vm9, nan, %v1855_v58  ;;  %vm1637_vm13 = vweird.f32 %v10213_v60  ;;  %v11081_v17 = vsub.f32 %v712_v8, %v2799_v30 }
 0x22f   : > { %v1321_v32 = vsel %vm11065_vm11, %v10119_v59, %v10678_v20  ;;  %v1322_v51 = vsel %vm11065_vm11, 0, %v1320_v0  ;;  %v11083_v25 = vsub.f32 %v1128_v16, %v2803_v41  ;;  %v2119_v55 = vand.u32 4294901760, %v1856_v7  ;;  %v9220_v26 = vpop.eup %9219 }
 0x230   : > { %9227 = vcosq.f32 %v1321_v32  ;;  %v2055_v11 = vand.u32 3, %v2054_v50  ;;  %v1326_v53 = vadd.s32 3, %v1322_v51  ;;  %v1735_v9 = vsub.s32 4, %v14874_v35  ;;  %v9222_v61 = vpop.eup %9221 }
 0x231   : > { %9229 = vsinq.f32 %v1321_v32  ;;  %v11086_v44 = vpack.c.bf16 %v2119_v55, %v2115_v39  ;;  %v11088_v23 = vsub.f32 %v1440_v57, %v2115_v39  ;;  %vm1640_vm6 = vcmp.lt.s32.totalorder %v1639_v10, 2 }
 0x232   : > { %v1645_v20 = vxor.u32 2147483648, %v9220_v26  ;;  %vm1641_vm4 = vcmp.eq.s32.totalorder %v1639_v10, 0  ;;  %v1642_v8 = vxor.u32 2147483648, %v9222_v61  ;;  %vm1644_vm10 = vcmp.eq.s32.totalorder %v1639_v10, 2 }
 0x233   : > { %v14875_v30 = vand.u32 2147483647, %v10418_v18  ;;  %8551 = vmatprep.subr.bf16.mxu0 %v11086_v44  ;;  %v11097_v41 = vsub.f32 %v1856_v7, %v2119_v55  ;;  %vm2053_vm0 = vweird.f32 %v10511_v49  ;;  %v1736_v40 = vsel %vm1651_vm3, %v1735_v9, %v14874_v35 }
 0x234   : > { %v1646_v5 = vsel %vm1644_vm10, %v1645_v20, %v9222_v61  ;;  %v1643_v57 = vsel %vm1641_vm4, %v9220_v26, %v1642_v8  ;;  %vm2056_vm7 = vcmp.lt.s32.totalorder %v2055_v11, 2  ;;  %v1327_v12 = vand.u32 3, %v1326_v53 }
 0x235   : > { %vm11092_vm8 = vcmp.le.f32.partialorder %v14875_v30, 0.7853982  ;;  %v14878_v29 = vand.u32 2147483647, %v10209_v52  ;;  %v1647_v36 = vsel %vm1640_vm6, %v1643_v57, %v1646_v5  ;;  %v1527_v27 = vsub.s32 4, %v14881_v19 }
 0x236   : > { %v1737_v2 = vsel %vm11092_vm8, %v10418_v18, %v10918_v14  ;;  %v9224_v31 = vpop.eup %9223  ;;  %v1738_v48 = vsel %vm11092_vm8, 0, %v1736_v40  ;;  %v1648_v14 = vsel %vm1637_vm13, nan, %v1647_v36  ;;  %vm1325_vm3 = vweird.f32 %v10119_v59 }
 0x237   : > { %vm11109_vm2 = vcmp.le.f32.partialorder %v14878_v29, 0.7853982  ;;  %9231 = vcosq.f32 %v1737_v2  ;;  %v2061_v39 = vxor.u32 2147483648, %v9224_v31  ;;  %v1742_v15 = vadd.s32 3, %v1738_v48  ;;  %v9226_v13 = vpop.eup %9225 }
 0x238   : > { %9233 = vsinq.f32 %v1737_v2  ;;  %vm2057_vm9 = vcmp.eq.s32.totalorder %v2055_v11, 0  ;;  %vm2060_vm12 = vcmp.eq.s32.totalorder %v2055_v11, 2  ;;  %vm14882_vm5 = vcmp.lt.s32.totalorder %v10209_v52, 0 }
 0x239   : > { %v1528_v10 = vsel %vm14882_vm5, %v1527_v27, %v14881_v19  ;;  %v1529_v58 = vsel %vm11109_vm2, %v10209_v52, %v10692_v3  ;;  %v2058_v50 = vxor.u32 2147483648, %v9226_v13  ;;  %v2062_v60 = vsel %vm2060_vm12, %v2061_v39, %v9226_v13 }
 0x23a   : > { %vm1328_vm1 = vcmp.lt.s32.totalorder %v1327_v12, 2  ;;  %v1530_v0 = vsel %vm11109_vm2, 0, %v1528_v10  ;;  %v9228_v7 = vpop.eup %9227  ;;  %v2805_v32 = vand.u32 4294901760, %v1648_v14  ;;  %vm1329_vm14 = vcmp.eq.s32.totalorder %v1327_v12, 0 }
 0x23b   : > { %9235 = vcosq.f32 %v1529_v58  ;;  %v1534_v51 = vadd.s32 3, %v1530_v0  ;;  %v9230_v55 = vpop.eup %9229  ;;  %v2059_v26 = vsel %vm2057_vm9, %v9224_v31, %v2058_v50  ;;  %vm1332_vm11 = vcmp.eq.s32.totalorder %v1327_v12, 2 }
 0x23c   : > { %v1333_v53 = vxor.u32 2147483648, %v9228_v7  ;;  %v1743_v35 = vand.u32 3, %v1742_v15  ;;  %v2063_v9 = vsel %vm2056_vm7, %v2059_v26, %v2062_v60  ;;  %v1330_v61 = vxor.u32 2147483648, %v9230_v55 }
 0x23d   : > { %9237 = vsinq.f32 %v1529_v58  ;;  %v14883_v3 = vand.u32 2147483647, %v14843_v45  ;;  %v2064_v8 = vsel %vm2053_vm0, nan, %v2063_v9  ;;  %vm1741_vm6 = vweird.f32 %v10418_v18 }
 0x23e   : > { %v1334_v30 = vsel %vm1332_vm11, %v1333_v53, %v9230_v55  ;;  %v11139_v16 = vand.u32 3, %v1534_v51  ;;  %v1943_v5 = vsub.s32 4, %v10730_v56  ;;  %v2809_v11 = vand.u32 4294901760, %v2064_v8 }
 0x23f   : > { %vm11132_vm13 = vcmp.le.f32.partialorder %v14883_v3, 0.7853982  ;;  %v11142_v40 = vsub.f32 %v1648_v14, %v2805_v32  ;;  %v1331_v2 = vsel %vm1329_vm14, %v9228_v7, %v1330_v61  ;;  %vm1744_vm4 = vcmp.lt.s32.totalorder %v1743_v35, 2 }
 0x240   : > { %v1945_v57 = vsel %vm11132_vm13, %v14843_v45, %v10937_v63  ;;  %v1335_v49 = vsel %vm1328_vm1, %v1331_v2, %v1334_v30  ;;  %vm1745_vm10 = vcmp.eq.s32.totalorder %v1743_v35, 0  ;;  %vm1748_vm8 = vcmp.eq.s32.totalorder %v1743_v35, 2 }
 0x241   : > { %v9232_v29 = vpop.eup %9231  ;;  %v11150_v4 = vpack.c.bf16 %v2809_v11, %v2805_v32  ;;  %v1336_v31 = vsel %vm1325_vm3, nan, %v1335_v49  ;;  %vm1537_vm0 = vcmp.eq.s32.totalorder %v11139_v16, 0  ;;  %vm1540_vm7 = vcmp.eq.s32.totalorder %v11139_v16, 2 }
 0x242   : > { %v1944_v36 = vsel %vm1859_vm15, %v1943_v5, %v10730_v56  ;;  %v9234_v63 = vpop.eup %9233  ;;  %v1749_v12 = vxor.u32 2147483648, %v9232_v29  ;;  %v2117_v48 = vand.u32 4294901760, %v1336_v31  ;;  %vm1536_vm2 = vcmp.lt.s32.totalorder %v11139_v16, 2 }
 0x243   : > { %v1946_v19 = vsel %vm11132_vm13, 0, %v1944_v36  ;;  %9239 = vcosq.f32 %v1945_v57  ;;  %8599 = vmatprep.subr.bf16.mxu1 %v11150_v4  ;;  %v1746_v59 = vxor.u32 2147483648, %v9234_v63  ;;  %vm1533_vm3 = vweird.f32 %v10209_v52 }
 0x244   : > { %9241 = vsinq.f32 %v1945_v57  ;;  %v1950_v27 = vadd.s32 3, %v1946_v19  ;;  %v2226_v14 = vand.u32 4294901760, %v10800_v34  ;;  %v11165_v39 = vsub.f32 %v2064_v8, %v2809_v11  ;;  %v2065_v8 = vld [vmem:[%s14643_s2] sm:$0xff] }
 0x245   : > { %v1750_v56 = vsel %vm1748_vm8, %v1749_v12, %v9234_v63  ;;  %v2238_v15 = vand.u32 4294901760, %v10865_v24  ;;  %v2916_v13 = vand.u32 4294901760, %v10941_v62  ;;  %v9236_v10 = vpop.eup %9235  ;;  %v1747_v58 = vsel %vm1745_vm10, %v9232_v29, %v1746_v59 }
 0x246   : > { %v1951_v50 = vand.u32 3, %v1950_v27  ;;  %v2227_v60 = vsub.f32 %v10800_v34, %v2226_v14  ;;  %v2928_v0 = vand.u32 4294901760, %v10946_v43  ;;  %v1751_v7 = vsel %vm1744_vm4, %v1747_v58, %v1750_v56 }
 0x247   : > { %v1541_v32 = vxor.u32 2147483648, %v9236_v10  ;;  %v2239_v51 = vsub.f32 %v10865_v24, %v2238_v15  ;;  %v2917_v55 = vsub.f32 %v10941_v62, %v2916_v13  ;;  %v9238_v26 = vpop.eup %9237  ;;  %v1752_v53 = vsel %vm1741_vm6, nan, %v1751_v7 }
 0x248   : > { %v11184_v9 = vsub.f32 %v1336_v31, %v2117_v48  ;;  %vm1953_vm15 = vcmp.eq.s32.totalorder %v1951_v50, 0  ;;  %vm1956_vm9 = vcmp.eq.s32.totalorder %v1951_v50, 2  ;;  %v2121_v61 = vand.u32 4294901760, %v1752_v53 }
 0x249   : > { %v1538_v35 = vxor.u32 2147483648, %v9238_v26  ;;  %v1542_v3 = vsel %vm1540_vm7, %v1541_v32, %v9238_v26  ;;  %vm1952_vm12 = vcmp.lt.s32.totalorder %v1951_v50, 2  ;;  %v2228_v20 = vand.u32 4294901760, %v2227_v60 }
 0x24a   : > { %vm1949_vm5 = vweird.f32 %v14843_v45  ;;  %v2240_v30 = vand.u32 4294901760, %v2239_v51  ;;  %v2918_v18 = vand.u32 4294901760, %v2917_v55  ;;  %v2929_v5 = vsub.f32 %v10946_v43, %v2928_v0  ;;  %v2066_v55 = vld [vmem:[%s14643_s2 + $0x8] sm:$0xff] }
 0x24b   : > { %v11195_v11 = vpack.c.bf16 %v2121_v61, %v2117_v48  ;;  %v11197_v2 = vsub.f32 %v1752_v53, %v2121_v61  ;;  %v1539_v57 = vsel %vm1537_vm0, %v9236_v10, %v1538_v35  ;;  %v14714_v49 = vmov 0.0  }
 0x24c   : > { %2179 = vmatprep.mubr.f32.mxu0 %v14714_v49  ;;  %2869 = vmatprep.mubr.f32.mxu1 %v14714_v49  ;;  %vm2094_vm1 = vcmask 261120   ;;  %v1543_v29 = vsel %vm1536_vm2, %v1539_v57, %v1542_v3  ;;  %v8554_v31 = vpack.c.bf16 %v2240_v30, %v2228_v20  ;;  %v2930_v36 = vand.u32 4294901760, %v2929_v5 }
 0x24d   : > { %v2096_v63 = vsel %vm2094_vm1, %v2065_v8, 0  ;;  %v9240_v12 = vpop.eup %9239  ;;  %8553 = vmatpush1.bf16.msra.mxu0 %v11195_v11  ;;  %v1544_v48 = vsel %vm1533_vm3, nan, %v1543_v29  ;;  %v2232_v59 = vand.u32 4294901760, %v11000_v28  ;;  %v2244_v27 = vand.u32 4294901760, %v11050_v1 }
 0x24e   : > { %v11209_v19 = vand.u32 4294901760, %v2096_v63  ;;  %v9242_v56 = vpop.eup %9241  ;;  %v1957_v10 = vxor.u32 2147483648, %v9240_v12  ;;  %v2807_v16 = vand.u32 4294901760, %v1544_v48  ;;  %8555 = vmatprep.subr.bf16.mxu0 %v8554_v31  ;;  %v8602_v58 = vpack.c.bf16 %v2930_v36, %v2918_v18 }
 0x24f   : > { %v14713_v60 = vand.u32 4294901760, %v11081_v17  ;;  %v1954_v7 = vxor.u32 2147483648, %v9242_v56  ;;  %v2233_v52 = vsub.f32 %v11000_v28, %v2232_v59  ;;  %v2245_v51 = vsub.f32 %v11050_v1, %v2244_v27 }
 0x250   : > { %v11215_v32 = vsub.f32 %v2096_v63, %v11209_v19  ;;  %v1958_v26 = vsel %vm1956_vm9, %v1957_v10, %v9242_v56  ;;  %v11227_v53 = vsub.f32 %v1544_v48, %v2807_v16  ;;  %v14712_v35 = vand.u32 4294901760, %v11083_v25 }
 0x251   : > { %v2923_v61 = vsub.f32 %v11081_v17, %v14713_v60  ;;  %v1955_v3 = vsel %vm1953_vm15, %v9240_v12, %v1954_v7  ;;  %v2234_v8 = vand.u32 4294901760, %v2233_v52  ;;  %v2246_v30 = vand.u32 4294901760, %v2245_v51 }
 0x252   : > { %v11235_v20 = vand.u32 4294901760, %v11215_v32  ;;  %v1959_v18 = vsel %vm1952_vm12, %v1955_v3, %v1958_v26  ;;  %v2935_v57 = vsub.f32 %v11083_v25, %v14712_v35  ;;  %v2099_v29 = vsel %vm2094_vm1, %v2066_v55, 0 }
 0x253   : > { %v2924_v5 = vand.u32 4294901760, %v2923_v61  ;;  %v1960_v31 = vsel %vm1949_vm5, nan, %v1959_v18  ;;  %v8556_v63 = vpack.c.bf16 %v2246_v30, %v2234_v8  ;;  %v11246_v12 = vand.u32 4294901760, %v2099_v29 }
 0x254   : > { %v2183_v36 = vsub.f32 %v11215_v32, %v11235_v20  ;;  %v2811_v48 = vand.u32 4294901760, %v1960_v31  ;;  %v2936_v56 = vand.u32 4294901760, %v2935_v57  ;;  %v14711_v50 = vand.u32 4294901760, %v11088_v23 }
 0x255   : > { %v14708_v10 = vand.u32 4294901760, %v11097_v41  ;;  %v11251_v52 = vsub.f32 %v2099_v29, %v11246_v12  ;;  %v14705_v51 = vand.u32 4294901760, %v11142_v40  ;;  %v14706_v45 = vand.u32 4294901760, %v11165_v39 }
 0x256   : > { %v2184_v7 = vand.u32 4294901760, %v2183_v36  ;;  %v11255_v55 = vpack.c.bf16 %v2811_v48, %v2807_v16  ;;  %v11257_v26 = vsub.f32 %v1960_v31, %v2811_v48  ;;  %v8604_v61 = vpack.c.bf16 %v2936_v56, %v2924_v5 }
 0x257   : > { %v2251_v3 = vsub.f32 %v11088_v23, %v14711_v50  ;;  %v11263_v8 = vand.u32 4294901760, %v11251_v52  ;;  %v2263_v30 = vsub.f32 %v11097_v41, %v14708_v10  ;;  %v2941_v16 = vsub.f32 %v11142_v40, %v14705_v51 }
 0x258   : > { %2185 = vmatmul.mubr.f32.vlgmr.msra.gmra.mrb[0].mxu0 %v2184_v7  ;;  %v2953_v18 = vsub.f32 %v11165_v39, %v14706_v45  ;;  %8601 = vmatpush1.bf16.msra.mxu1 %v11255_v55  ;;  %v14707_v57 = vand.u32 4294901760, %v11184_v9  ;;  %v14709_v29 = vand.u32 4294901760, %v11197_v2  ;;  %v14710_v31 = vand.u32 4294901760, %v11227_v53 }
 0x259   : > { %8557 = vmatpush1.bf16.msra.mxu0 %v8556_v63  ;;  %v2252_v5 = vand.u32 4294901760, %v2251_v3  ;;  %8603 = vmatprep.subr.bf16.mxu1 %v8602_v58  ;;  %v2194_v36 = vsub.f32 %v11251_v52, %v11263_v8  ;;  %v2264_v48 = vand.u32 4294901760, %v2263_v30  ;;  %v2942_v56 = vand.u32 4294901760, %v2941_v16  ;;  %v2067_v30 = vld [vmem:[%s14643_s2 + $0x10] sm:$0xff]  ;;  %v2068_v16 = vld [vmem:[%s14643_s2 + $0x18] sm:$0xff] }
 0x25a   : > { %2190 = vmatprep.mubr.f32.mxu0 %v14714_v49  ;;  %v2954_v51 = vand.u32 4294901760, %v2953_v18  ;;  %v2257_v63 = vsub.f32 %v11184_v9, %v14707_v57  ;;  %v2269_v3 = vsub.f32 %v11197_v2, %v14709_v29  ;;  %v2947_v58 = vsub.f32 %v11227_v53, %v14710_v31 }
 0x25b   : > { %v2958_v45 = vand.u32 4294901760, %v11257_v26  ;;  %2875 = vmatmul.mubr.f32.vlgmr.msra.gmra.mrb[0].mxu1 %v2184_v7  ;;  %v2195_v18 = vand.u32 4294901760, %v2194_v36  ;;  %v8558_v57 = vpack.c.bf16 %v2264_v48, %v2252_v5  ;;  %v8562_v29 = vpack.c.bf16 %v10865_v24, %v10800_v34 }
 0x25c   : > { %v8606_v10 = vpack.c.bf16 %v2954_v51, %v2942_v56  ;;  %8605 = vmatpush1.bf16.msra.mxu1 %v8604_v61  ;;  %2880 = vmatprep.mubr.f32.mxu1 %v14714_v49  ;;  %v2258_v31 = vand.u32 4294901760, %v2257_v63  ;;  %v2270_v50 = vand.u32 4294901760, %v2269_v3  ;;  %v2948_v60 = vand.u32 4294901760, %v2947_v58 }
 0x25d   : > { %v2959_v35 = vsub.f32 %v11257_v26, %v2958_v45  ;;  %2196 = vmatmul.mubr.f32.gmra.mrb[2].mxu0 %v2195_v18  ;;  %8559 = vmatprep.subr.bf16.mxu0 %v8558_v57  ;;  %v2102_v7 = vsel %vm2094_vm1, %v2067_v30, 0  ;;  %v2105_v5 = vsel %vm2094_vm1, %v2068_v16, 0  ;;  %v8564_v24 = vpack.c.bf16 %v11050_v1, %v11000_v28 }
 0x25e   : > { %8607 = vmatprep.subr.bf16.mxu1 %v8606_v10  ;;  %v8560_v51 = vpack.c.bf16 %v2270_v50, %v2258_v31  ;;  %2201 = vmatprep.mubr.f32.mxu0 %v14714_v49  ;;  %v11306_v61 = vand.u32 4294901760, %v2102_v7  ;;  %v11308_v48 = vand.u32 4294901760, %v2105_v5  ;;  %v8578_v50 = vpack.c.bf16 %v2238_v15, %v2226_v14 }
 0x25f   : > { %v2960_v36 = vand.u32 4294901760, %v2959_v35  ;;  %2886 = vmatmul.mubr.f32.gmra.mrb[2].mxu1 %v2195_v18  ;;  %v8610_v35 = vpack.c.bf16 %v10946_v43, %v10941_v62  ;;  %v8612_v14 = vpack.c.bf16 %v11083_v25, %v11081_v17  ;;  %v8566_v15 = vpack.c.bf16 %v11097_v41, %v11088_v23 }
 0x260   : > { %8561 = vmatpush1.bf16.msra.mxu0 %v8560_v51  ;;  %2891 = vmatprep.mubr.f32.mxu1 %v14714_v49  ;;  %v11312_v57 = vsub.f32 %v2102_v7, %v11306_v61  ;;  %v11315_v63 = vsub.f32 %v2105_v5, %v11308_v48  ;;  %v8614_v58 = vpack.c.bf16 %v11165_v39, %v11142_v40  ;;  %v14886_v43 = vand.u32 4294901760, %v11081_v17 }
 0x261   : > { %v8608_v56 = vpack.c.bf16 %v2960_v36, %v2948_v60  ;;  %8563 = vmatprep.subr.bf16.mxu0 %v8562_v29  ;;  %v8568_v30 = vpack.c.bf16 %v11197_v2, %v11184_v9  ;;  %v8616_v16 = vpack.c.bf16 %v11257_v26, %v11227_v53  ;;  %v8580_v62 = vpack.c.bf16 %v2244_v27, %v2232_v59 }
 0x262   : > { %v11324_v60 = vand.u32 4294901760, %v11312_v57  ;;  %v11327_v10 = vand.u32 4294901760, %v11315_v63  ;;  %v14889_v18 = vand.u32 4294901760, %v11097_v41  ;;  %v14890_v5 = vand.u32 4294901760, %v11142_v40 }
 0x263   : > { %8609 = vmatpush1.bf16.msra.mxu1 %v8608_v56  ;;  %v14891_v28 = vand.u32 4294901760, %v11165_v39  ;;  %v14892_v17 = vand.u32 4294901760, %v11184_v9  ;;  %v14894_v41 = vand.u32 4294901760, %v11227_v53 }
 0x264   : > { %8611 = vmatprep.subr.bf16.mxu1 %v8610_v35  ;;  %v2205_v31 = vsub.f32 %v11312_v57, %v11324_v60  ;;  %v2216_v29 = vsub.f32 %v11315_v63, %v11327_v10 }
 0x265   : > { %v8630_v1 = vpack.c.bf16 %v14891_v28, %v14890_v5  ;;  %v8632_v40 = vpack.c.bf16 %v2958_v45, %v14894_v41 }
 0x266   : > { %v2206_v3 = vand.u32 4294901760, %v2205_v31  ;;  %v2217_v34 = vand.u32 4294901760, %v2216_v29 }
 0x268   : > { %2207 = vmatmul.mubr.f32.gmra.mrb[4].mxu0 %v2206_v3  ;;  %2897 = vmatmul.mubr.f32.gmra.mrb[4].mxu1 %v2206_v3 }
 0x269   : > { %2212 = vmatprep.mubr.f32.mxu0 %v14714_v49  ;;  %2902 = vmatprep.mubr.f32.mxu1 %v14714_v49 }
 0x26c   : > { %2218 = vmatmul.mubr.f32.gmra.mrb[6].mxu0 %v2217_v34  ;;  %2908 = vmatmul.mubr.f32.gmra.mrb[6].mxu1 %v2217_v34 }
 0x26d   : > { %2328 = vmatprep.mubr.f32.mxu0 %v14714_v49  ;;  %3018 = vmatprep.mubr.f32.mxu1 %v14714_v49 }
 0x270   : > { %2330 = vmatmul.mubr.f32.vlgmr.msra.gmra.mrb[0].mxu0 %v11209_v19  ;;  %3020 = vmatmul.mubr.f32.vlgmr.msra.gmra.mrb[0].mxu1 %v11209_v19 }
 0x271   : > { %8565 = vmatpush1.bf16.msra.mxu0 %v8564_v24  ;;  %8613 = vmatpush1.bf16.msra.mxu1 %v8612_v14 }
 0x272   : > { %8567 = vmatprep.subr.bf16.mxu0 %v8566_v15  ;;  %8615 = vmatprep.subr.bf16.mxu1 %v8614_v58 }
 0x273   : > { %2335 = vmatprep.mubr.f32.mxu0 %v14714_v49  ;;  %3025 = vmatprep.mubr.f32.mxu1 %v14714_v49 }
 0x274   : > { %2337 = vmatmul.mubr.f32.gmra.mrb[2].mxu0 %v11246_v12  ;;  %3027 = vmatmul.mubr.f32.gmra.mrb[2].mxu1 %v11246_v12 }
 0x275   : > { %8569 = vmatpush1.bf16.msra.mxu0 %v8568_v30  ;;  %8617 = vmatpush1.bf16.msra.mxu1 %v8616_v16 }
 0x276   : > { %8571 = vmatprep.subr.bf16.mxu0 %v10863_v6  ;;  %8619 = vmatprep.subr.bf16.mxu1 %v10925_v33 }
 0x277   : > { %2342 = vmatprep.mubr.f32.mxu0 %v14714_v49  ;;  %3032 = vmatprep.mubr.f32.mxu1 %v14714_v49 }
 0x278   : > { %2344 = vmatmul.mubr.f32.gmra.mrb[4].mxu0 %v11306_v61  ;;  %3034 = vmatmul.mubr.f32.gmra.mrb[4].mxu1 %v11306_v61 }
 0x279   : > { %2349 = vmatprep.mubr.f32.mxu0 %v14714_v49  ;;  %3039 = vmatprep.mubr.f32.mxu1 %v14714_v49 }
 0x27c   : > { %2351 = vmatmul.mubr.f32.gmra.mrb[6].mxu0 %v11308_v48  ;;  %3041 = vmatmul.mubr.f32.gmra.mrb[6].mxu1 %v11308_v48 }
 0x27d   : > { %2437 = vmatprep.mubr.f32.mxu0 %v14714_v49  ;;  %3127 = vmatprep.mubr.f32.mxu1 %v14714_v49 }
 0x280   : > { %2440 = vmatmul.mubr.f32.vlgmr.msra.gmra.mrb[0].mxu0 %v11215_v32  ;;  %3130 = vmatmul.mubr.f32.vlgmr.msra.gmra.mrb[0].mxu1 %v11215_v32  ;;  %v8626_v32 = vpack.c.bf16 %v2928_v0, %v2916_v13  ;;  %v14887_v13 = vand.u32 4294901760, %v11083_v25  ;;  %v14893_v25 = vand.u32 4294901760, %v11197_v2 }
 0x281   : > { %8573 = vmatpush1.bf16.msra.mxu0 %v11009_v42  ;;  %8621 = vmatpush1.bf16.msra.mxu1 %v11038_v47 }
 0x282   : > { %8575 = vmatprep.subr.bf16.mxu0 %v11086_v44  ;;  %8623 = vmatprep.subr.bf16.mxu1 %v11150_v4  ;;  %v8628_v0 = vpack.c.bf16 %v14887_v13, %v14886_v43 }
 0x283   : > { %2445 = vmatprep.mubr.f32.mxu0 %v14714_v49  ;;  %3135 = vmatprep.mubr.f32.mxu1 %v14714_v49 }
 0x284   : > { %2448 = vmatmul.mubr.f32.gmra.mrb[2].mxu0 %v11251_v52  ;;  %3138 = vmatmul.mubr.f32.gmra.mrb[2].mxu1 %v11251_v52  ;;  %v14888_v52 = vand.u32 4294901760, %v11088_v23  ;;  %v8584_v23 = vpack.c.bf16 %v14893_v25, %v14892_v17 }
 0x285   : > { %8577 = vmatpush1.bf16.msra.mxu0 %v11195_v11  ;;  %8625 = vmatpush1.bf16.msra.mxu1 %v11255_v55 }
 0x286   : > { %8579 = vmatprep.subr.bf16.mxu0 %v8578_v50  ;;  %8627 = vmatprep.subr.bf16.mxu1 %v8626_v32  ;;  %v8582_v7 = vpack.c.bf16 %v14889_v18, %v14888_v52 }
 0x287   : > { %2453 = vmatprep.mubr.f32.mxu0 %v14714_v49  ;;  %3143 = vmatprep.mubr.f32.mxu1 %v14714_v49 }
 0x288   : > { %2456 = vmatmul.mubr.f32.gmra.mrb[4].mxu0 %v11312_v57  ;;  %3146 = vmatmul.mubr.f32.gmra.mrb[4].mxu1 %v11312_v57 }
 0x289   : > { %2461 = vmatprep.mubr.f32.mxu0 %v14714_v49  ;;  %3151 = vmatprep.mubr.f32.mxu1 %v14714_v49 }
 0x28c   : > { %2464 = vmatmul.mubr.f32.gmra.mrb[6].mxu0 %v11315_v63  ;;  %3154 = vmatmul.mubr.f32.gmra.mrb[6].mxu1 %v11315_v63 }
 0x28d   : > { %2542 = vmatprep.mubr.f32.mxu0 %v14714_v49  ;;  %3232 = vmatprep.mubr.f32.mxu1 %v14714_v49 }
 0x290   : > { %2546 = vmatmul.mubr.f32.vlgmr.msra.gmra.mrb[0].mxu0 %v11235_v20  ;;  %3236 = vmatmul.mubr.f32.vlgmr.msra.gmra.mrb[0].mxu1 %v11235_v20 }
 0x291   : > { %8581 = vmatpush1.bf16.msra.mxu0 %v8580_v62  ;;  %8629 = vmatpush1.bf16.msra.mxu1 %v8628_v0 }
 0x292   : > { %8583 = vmatprep.subr.bf16.mxu0 %v8582_v7  ;;  %8631 = vmatprep.subr.bf16.mxu1 %v8630_v1 }
 0x293   : > { %2551 = vmatprep.mubr.f32.mxu0 %v14714_v49  ;;  %3241 = vmatprep.mubr.f32.mxu1 %v14714_v49 }
 0x294   : > { %2555 = vmatmul.mubr.f32.gmra.mrb[2].mxu0 %v11263_v8  ;;  %3245 = vmatmul.mubr.f32.gmra.mrb[2].mxu1 %v11263_v8 }
 0x295   : > { %8585 = vmatpush1.bf16.msra.mxu0 %v8584_v23  ;;  %8633 = vmatpush1.bf16.msra.mxu1 %v8632_v40 }
 0x296   : > { %8587 = vmatprep.subr.bf16.mxu0 %v10863_v6  ;;  %8635 = vmatprep.subr.bf16.mxu1 %v10925_v33  ;;  %v2077_v6 = vpop.permute.xlu0 %2076 }
 0x297   : > { %2560 = vmatprep.mubr.f32.mxu0 %v14714_v49  ;;  %3250 = vmatprep.mubr.f32.mxu1 %v14714_v49 }
 0x298   : > { %2564 = vmatmul.mubr.f32.gmra.mrb[4].mxu0 %v11324_v60  ;;  %3254 = vmatmul.mubr.f32.gmra.mrb[4].mxu1 %v11324_v60 }
 0x299   : > { %2569 = vmatprep.mubr.f32.mxu0 %v14714_v49  ;;  %3259 = vmatprep.mubr.f32.mxu1 %v14714_v49 }
 0x29c   : > { %2573 = vmatmul.mubr.f32.gmra.mrb[6].mxu0 %v11327_v10  ;;  %3263 = vmatmul.mubr.f32.gmra.mrb[6].mxu1 %v11327_v10 }
 0x29d   : > { %2667 = vmatprep.mubr.f32.mxu0 %v14714_v49  ;;  %3357 = vmatprep.mubr.f32.mxu1 %v14714_v49 }
 0x2a0   : > { %2669 = vmatmul.mubr.f32.vlgmr.msra.gmra.mrb[0].mxu0 %v11209_v19  ;;  %3359 = vmatmul.mubr.f32.vlgmr.msra.gmra.mrb[0].mxu1 %v11209_v19 }
 0x2a1   : > { %8589 = vmatpush1.bf16.msra.mxu0 %v11009_v42  ;;  %8637 = vmatpush1.bf16.msra.mxu1 %v11038_v47 }
 0x2a2   : > { %8591 = vmatprep.subr.bf16.mxu0 %v11086_v44  ;;  %8639 = vmatprep.subr.bf16.mxu1 %v11150_v4 }
 0x2a3   : > { %2674 = vmatprep.mubr.f32.mxu0 %v14714_v49  ;;  %3364 = vmatprep.mubr.f32.mxu1 %v14714_v49 }
 0x2a4   : > { %2676 = vmatmul.mubr.f32.gmra.mrb[2].mxu0 %v11246_v12  ;;  %3366 = vmatmul.mubr.f32.gmra.mrb[2].mxu1 %v11246_v12 }
 0x2a5   : > { %8593 = vmatpush1.bf16.msra.mxu0 %v11195_v11  ;;  %8641 = vmatpush1.bf16.msra.mxu1 %v11255_v55 }
 0x2a6   : > { %2681 = vmatprep.mubr.f32.mxu0 %v14714_v49  ;;  %3371 = vmatprep.mubr.f32.mxu1 %v14714_v49 }
 0x2a8   : > { %2683 = vmatmul.mubr.f32.gmra.mrb[4].mxu0 %v11306_v61  ;;  %3373 = vmatmul.mubr.f32.gmra.mrb[4].mxu1 %v11306_v61 }
 0x2a9   : > { %2688 = vmatprep.mubr.f32.mxu0 %v14714_v49  ;;  %3378 = vmatprep.mubr.f32.mxu1 %v14714_v49 }
 0x2ac   : > { %2690 = vmatmul.mubr.f32.gmra.mrb[6].mxu0 %v11308_v48  ;;  %3380 = vmatmul.mubr.f32.gmra.mrb[6].mxu1 %v11308_v48 }
 0x2ad   : > { %2768 = vmatprep.mubr.f32.mxu0 %v14714_v49  ;;  %3458 = vmatprep.mubr.f32.mxu1 %v14714_v49 }
 0x2b0   : > { %2770 = vmatmul.mubr.f32.vlgmr.msra.gmra.mrb[0].mxu0 %v11209_v19  ;;  %3460 = vmatmul.mubr.f32.vlgmr.msra.gmra.mrb[0].mxu1 %v11209_v19 }
 0x2b1   : > { %2775 = vmatprep.mubr.f32.mxu0 %v14714_v49  ;;  %3465 = vmatprep.mubr.f32.mxu1 %v14714_v49 }
 0x2b4   : > { %2777 = vmatmul.mubr.f32.gmra.mrb[2].mxu0 %v11246_v12  ;;  %3467 = vmatmul.mubr.f32.gmra.mrb[2].mxu1 %v11246_v12 }
 0x2b5   : > { %2782 = vmatprep.mubr.f32.mxu0 %v14714_v49  ;;  %3472 = vmatprep.mubr.f32.mxu1 %v14714_v49 }
 0x2b8   : > { %2784 = vmatmul.mubr.f32.gmra.mrb[4].mxu0 %v11306_v61  ;;  %3474 = vmatmul.mubr.f32.gmra.mrb[4].mxu1 %v11306_v61 }
 0x2b9   : > { %2789 = vmatprep.mubr.f32.mxu0 %v14714_v49  ;;  %3479 = vmatprep.mubr.f32.mxu1 %v14714_v49 }
 0x2bc   : > { %2791 = vmatmul.mubr.f32.gmra.mrb[6].mxu0 %v11308_v48  ;;  %3481 = vmatmul.mubr.f32.gmra.mrb[6].mxu1 %v11308_v48 }
 0x2bd   : > { %5265 = vmatprep.mubr.f32.mxu0 %v14714_v49  ;;  %5955 = vmatprep.mubr.f32.mxu1 %v14714_v49 }
 0x383   : > { %v2771_v33 = vpop.f32.mrb[0].mxu0  ;;  %v3461_v42 = vpop.f32.mrb[0].mxu1 }
 0x384   : > { %v11473_v47 = vadd.f32 %v2771_v33, %v2077_v6  ;;  %v11475_v44 = vadd.f32 %v3461_v42, %v2077_v6  ;;  %v2773_v4 = vpop.f32.mrb[1].mxu0  ;;  %v3463_v39 = vpop.f32.mrb[1].mxu1 }
 0x385   : > { %v11477_v9 = vadd.f32 %v2773_v4, %v2077_v6  ;;  %v11496_v60 = vadd.f32 %v3463_v39, %v2077_v6 }
 0x386   : > { %14895 = vst [vmem:[#allocation8_spill] sm:$0xff] %v11473_v47  ;;  %14896 = vst [vmem:[#allocation14_spill] sm:$0xff] %v11475_v44  ;;  %v3487_v11 = vand.u32 2147483647, %v11473_v47  ;;  %v3490_v2 = vand.u32 2139095040, %v11473_v47  ;;  %v3698_v59 = vand.u32 2139095040, %v11475_v44 }
 0x387   : > { %v3695_v19 = vand.u32 2147483647, %v11475_v44  ;;  %v11483_v27 = vpop.f32.mrb[2].mxu0  ;;  %v3594_v20 = vand.u32 2139095040, %v11477_v9  ;;  %v11490_v51 = vpop.f32.mrb[2].mxu1  ;;  %14897 = vst [vmem:[#allocation7_spill] sm:$0xff] %v11496_v60 }
 0x388   : > { %v3491_v53 = vshrl.u32 %v3490_v2, 23  ;;  %v3494_v12 = vand.u32 8388607, %v3487_v11  ;;  %v3699_v45 = vshrl.u32 %v3698_v59, 23  ;;  %v11492_v56 = vpop.f32.mrb[3].mxu0  ;;  %v11494_v57 = vpop.f32.mrb[3].mxu1 }
 0x389   : > { %v3702_v55 = vand.u32 8388607, %v3695_v19  ;;  %v3595_v8 = vshrl.u32 %v3594_v20, 23  ;;  %v3591_v15 = vand.u32 2147483647, %v11477_v9  ;;  %v3802_v58 = vand.u32 2139095040, %v11496_v60 }
 0x38a   : > { %v8404_v26 = vadd.s32 4294967169, %v3491_v53  ;;  %v8412_v36 = vadd.s32 4294967169, %v3699_v45  ;;  %v3495_v63 = vor.u32 8388608, %v3494_v12 }
 0x38b   : > { %v8408_v48 = vadd.s32 4294967169, %v3595_v8  ;;  %v3703_v35 = vor.u32 8388608, %v3702_v55  ;;  %v11517_v6 = vpop.f32.mrb[4].mxu0 }
 0x38c   : > { %v3497_v61 = vadd.s32 1, %v8404_v26  ;;  %v3705_v50 = vadd.s32 1, %v8412_v36  ;;  %v11498_v24 = vshll.u32 %v3495_v63, 8 }
 0x38d   : > { %v3601_v31 = vadd.s32 1, %v8408_v48  ;;  %v11500_v14 = vshll.u32 %v3703_v35, 8 }
 0x38e   : > { %vm3498_vm14 = vcmp.gt.s32.totalorder %v3497_v61, 0  ;;  %vm3706_vm11 = vcmp.gt.s32.totalorder %v3705_v50, 0 }
 0x38f   : > { %v3499_v10 = vsel %vm3498_vm14, %v3497_v61, 0  ;;  %v3707_v34 = vsel %vm3706_vm11, %v3705_v50, 0  ;;  %vm3602_vm13 = vcmp.gt.s32.totalorder %v3601_v31, 0 }
 0x390   : > { %v3500_v29 = vshrl.u32 %v3499_v10, 5  ;;  %v3501_v3 = vand.u32 31, %v3499_v10  ;;  %v11505_v32 = vshrl.u32 %v3707_v34, 5  ;;  %v3709_v62 = vand.u32 31, %v3707_v34 }
 0x392   : > { %v3502_v30 = vsub.s32 32, %v3501_v3  ;;  %v3504_v16 = vshll.u32 %v14783_v54, %v3501_v3  ;;  %v3507_v43 = vshll.u32 %v14787_v46, %v3501_v3  ;;  %v3510_v13 = vshll.u32 %v14788_v37, %v3501_v3 }
 0x393   : > { %v3513_v0 = vshll.u32 %v14789_v38, %v3501_v3  ;;  %v3516_v52 = vshll.u32 %v14790_v21, %v3501_v3  ;;  %vm3519_vm6 = vcmp.lt.s32.totalorder %v3500_v29, 1  ;;  %vm3520_vm4 = vcmp.lt.s32.totalorder %v3500_v29, 2 }
 0x394   : > { %v3505_v18 = vshrl.u32 %v14787_v46, %v3502_v30  ;;  %v3508_v7 = vshrl.u32 %v14788_v37, %v3502_v30  ;;  %v3511_v5 = vshrl.u32 %v14789_v38, %v3502_v30  ;;  %v3503_v28 = vshrl.u32 %v14783_v54, %v3502_v30 }
 0x395   : > { %v3514_v1 = vshrl.u32 %v14790_v21, %v3502_v30  ;;  %v3517_v17 = vshrl.u32 %v14791_v22, %v3502_v30  ;;  %v3710_v40 = vsub.s32 32, %v3709_v62  ;;  %vm3521_vm10 = vcmp.lt.s32.totalorder %v3500_v29, 3 }
 0x396   : > { %v3506_v25 = vor.u32 %v3505_v18, %v3504_v16  ;;  %v3509_v23 = vor.u32 %v3508_v7, %v3507_v43  ;;  %v3512_v41 = vor.u32 %v3511_v5, %v3510_v13  ;;  %vm3522_vm8 = vcmp.lt.s32.totalorder %v3500_v29, 4 }
 0x397   : > { %v3515_v33 = vor.u32 %v3514_v1, %v3513_v0  ;;  %v3518_v42 = vor.u32 %v3517_v17, %v3516_v52  ;;  %v3712_v45 = vshll.u32 %v14783_v54, %v3709_v62  ;;  %v3713_v8 = vshrl.u32 %v14787_v46, %v3710_v40 }
 0x398   : > { %v3523_v4 = vsel %vm3519_vm6, %v3503_v28, %v3506_v25  ;;  %v3524_v39 = vsel %vm3522_vm8, %v3512_v41, 2102212464  ;;  %v3527_v2 = vsel %vm3519_vm6, %v3506_v25, %v3509_v23  ;;  %v3531_v59 = vsel %vm3519_vm6, %v3509_v23, %v3512_v41 }
 0x399   : > { %v3525_v53 = vsel %vm3521_vm10, %v3509_v23, %v3524_v39  ;;  %v3528_v20 = vsel %vm3522_vm8, %v3515_v33, 920167782  ;;  %v3532_v12 = vsel %vm3522_vm8, %v3518_v42, 1326507024  ;;  %v3715_v36 = vshll.u32 %v14787_v46, %v3709_v62 }
 0x39a   : > { %v3529_v55 = vsel %vm3521_vm10, %v3512_v41, %v3528_v20  ;;  %v3533_v26 = vsel %vm3521_vm10, %v3515_v33, %v3532_v12  ;;  %v3526_v61 = vsel %vm3520_vm4, %v3523_v4, %v3525_v53  ;;  %v3716_v35 = vshrl.u32 %v14788_v37, %v3710_v40 }
 0x39b   : > { %v3530_v48 = vsel %vm3520_vm4, %v3527_v2, %v3529_v55  ;;  %v3534_v63 = vsel %vm3520_vm4, %v3531_v59, %v3533_v26  ;;  %v3714_v30 = vor.u32 %v3713_v8, %v3712_v45  ;;  %v3718_v43 = vshll.u32 %v14788_v37, %v3709_v62 }
 0x39c   : > { %v11530_v50 = vmul.u32.u64.low %v11498_v24, %v3534_v63  ;;  %v11531_v10 = vmul.u32.u64.high %v11498_v24, %v3534_v63, %v11530_v50  ;;  %v11534_v3 = vmul.u32.u64.low %v11498_v24, %v3530_v48  ;;  %v11535_v34 = vmul.u32.u64.high %v11498_v24, %v3530_v48, %v11534_v3 }
 0x39d   : > { %v3717_v16 = vor.u32 %v3716_v35, %v3715_v36  ;;  %v3719_v13 = vshrl.u32 %v14789_v38, %v3710_v40  ;;  %v3721_v29 = vshll.u32 %v14789_v38, %v3709_v62  ;;  %v3722_v0 = vshrl.u32 %v14790_v21, %v3710_v40 }
 0x39e   : > { %v3725_v52 = vshrl.u32 %v14791_v22, %v3710_v40  ;;  %v3603_v18 = vsel %vm3602_vm13, %v3601_v31, 0  ;;  %v3542_v7 = vmul.u32 %v11498_v24, %v3526_v61  ;;  %v3711_v5 = vshrl.u32 %v14783_v54, %v3710_v40 }
 0x39f   : > { %v3720_v28 = vor.u32 %v3719_v13, %v3718_v43  ;;  %v3724_v1 = vshll.u32 %v14790_v21, %v3709_v62  ;;  %vm3544_vm0 = vc.u32 %v11531_v10, %v11534_v3  ;;  %v3545_v17 = vadd.s32 1, %v11535_v34  ;;  %v11576_v13 = vpop.f32.mrb[4].mxu1 }
 0x3a0   : > { %v3723_v25 = vor.u32 %v3722_v0, %v3721_v29  ;;  %vm3727_vm7 = vcmp.lt.s32.totalorder %v11505_v32, 1  ;;  %vm3729_vm2 = vcmp.lt.s32.totalorder %v11505_v32, 3  ;;  %vm3730_vm3 = vcmp.lt.s32.totalorder %v11505_v32, 4 }
 0x3a1   : > { %v3726_v23 = vor.u32 %v3725_v52, %v3724_v1  ;;  %v3735_v31 = vsel %vm3727_vm7, %v3714_v30, %v3717_v16  ;;  %v3546_v24 = vsel %vm3544_vm0, %v3545_v17, %v11535_v34  ;;  %v3732_v41 = vsel %vm3730_vm3, %v3720_v28, 2102212464 }
 0x3a2   : > { %v3736_v40 = vsel %vm3730_vm3, %v3723_v25, 920167782  ;;  %v3739_v33 = vsel %vm3727_vm7, %v3717_v16, %v3720_v28  ;;  %v3547_v62 = vadd.s32 %v3546_v24, %v3542_v7  ;;  %vm3728_vm15 = vcmp.lt.s32.totalorder %v11505_v32, 2 }
 0x3a3   : > { %v3737_v42 = vsel %vm3729_vm2, %v3720_v28, %v3736_v40  ;;  %v3740_v4 = vsel %vm3730_vm3, %v3726_v23, 1326507024  ;;  %v3731_v39 = vsel %vm3727_vm7, %v3711_v5, %v3714_v30  ;;  %v3733_v2 = vsel %vm3729_vm2, %v3717_v16, %v3732_v41 }
 0x3a4   : > { %v3738_v59 = vsel %vm3728_vm15, %v3735_v31, %v3737_v42  ;;  %v3741_v53 = vsel %vm3729_vm2, %v3723_v25, %v3740_v4  ;;  %v3548_v20 = vadd.s32 536870912, %v3547_v62  ;;  %v3605_v36 = vand.u32 31, %v3603_v18 }
 0x3a5   : > { %v3742_v12 = vsel %vm3728_vm15, %v3739_v33, %v3741_v53  ;;  %v11556_v45 = vmul.u32.u64.low %v11500_v14, %v3738_v59  ;;  %v11557_v55 = vmul.u32.u64.high %v11500_v14, %v3738_v59, %v11556_v45  ;;  %v3734_v32 = vsel %vm3728_vm15, %v3731_v39, %v3733_v2 }
 0x3a6   : > { %v11561_v26 = vmul.u32.u64.low %v11500_v14, %v3742_v12  ;;  %v11562_v8 = vmul.u32.u64.high %v11500_v14, %v3742_v12, %v11561_v26  ;;  %v11564_v61 = vshrl.u32 %v3548_v20, 30  ;;  %v3606_v48 = vsub.s32 32, %v3605_v36 }
 0x3a7   : > { %v3753_v35 = vadd.s32 1, %v11557_v55  ;;  %v3598_v50 = vand.u32 8388607, %v3591_v15  ;;  %v3803_v34 = vshrl.u32 %v3802_v58, 23  ;;  %v3750_v30 = vmul.u32 %v11500_v14, %v3734_v32 }
 0x3a8   : > { %v3550_v63 = vshll.u32 %v11564_v61, 30  ;;  %vm3752_vm9 = vc.u32 %v11562_v8, %v11556_v45  ;;  %v3604_v16 = vshrl.u32 %v3603_v18, 5  ;;  %v3609_v43 = vshrl.u32 %v14787_v46, %v3606_v48 }
 0x3a9   : > { %v3754_v0 = vsel %vm3752_vm9, %v3753_v35, %v11557_v55  ;;  %v3608_v52 = vshll.u32 %v14783_v54, %v3605_v36  ;;  %v3612_v7 = vshrl.u32 %v14788_v37, %v3606_v48  ;;  %v3611_v58 = vshll.u32 %v14787_v46, %v3605_v36 }
 0x3aa   : > { %v11578_v29 = vsub.s32 %v3547_v62, %v3550_v63  ;;  %v3755_v5 = vadd.s32 %v3754_v0, %v3750_v30  ;;  %v3614_v14 = vshll.u32 %v14788_v37, %v3605_v36  ;;  %v3615_v28 = vshrl.u32 %v14789_v38, %v3606_v48 }
 0x3ab   : > { %v3610_v1 = vor.u32 %v3609_v43, %v3608_v52  ;;  %v3617_v17 = vshll.u32 %v14789_v38, %v3605_v36  ;;  %v3618_v25 = vshrl.u32 %v14790_v21, %v3606_v48  ;;  %v3613_v31 = vor.u32 %v3612_v7, %v3611_v58 }
 0x3ac   : > { %v3553_v18 = vsub.s32 0, %v11578_v29  ;;  %v3756_v23 = vadd.s32 536870912, %v3755_v5  ;;  %v3620_v24 = vshll.u32 %v14790_v21, %v3605_v36  ;;  %v3621_v41 = vshrl.u32 %v14791_v22, %v3606_v48 }
 0x3ad   : > { %v3616_v33 = vor.u32 %v3615_v28, %v3614_v14  ;;  %v3619_v62 = vor.u32 %v3618_v25, %v3617_v17  ;;  %vm3626_vm12 = vcmp.lt.s32.totalorder %v3604_v16, 4  ;;  %v3599_v2 = vor.u32 8388608, %v3598_v50 }
 0x3ae   : > { %v8405_v40 = vmin.u32 %v3553_v18, %v11578_v29  ;;  %v11592_v42 = vshrl.u32 %v3756_v23, 30  ;;  %v3622_v4 = vor.u32 %v3621_v41, %v3620_v24  ;;  %vm3623_vm5 = vcmp.lt.s32.totalorder %v3604_v16, 1 }
 0x3af   : > { %v3632_v59 = vsel %vm3626_vm12, %v3619_v62, 920167782  ;;  %vm3625_vm14 = vcmp.lt.s32.totalorder %v3604_v16, 3  ;;  %v3631_v20 = vsel %vm3623_vm5, %v3610_v1, %v3613_v31  ;;  %v8416_v12 = vadd.s32 4294967169, %v3803_v34 }
 0x3b0   : > { %v3555_v39 = vclz %v8405_v40  ;;  %v3758_v53 = vshll.u32 %v11592_v42, 30  ;;  %v3633_v26 = vsel %vm3625_vm14, %v3616_v33, %v3632_v59  ;;  %v3635_v36 = vsel %vm3623_vm5, %v3613_v31, %v3616_v33 }
 0x3b1   : > { %v3636_v32 = vsel %vm3626_vm12, %v3622_v4, 1326507024  ;;  %vm3624_vm11 = vcmp.lt.s32.totalorder %v3604_v16, 2  ;;  %v3607_v50 = vshrl.u32 %v14783_v54, %v3606_v48  ;;  %v3628_v30 = vsel %vm3626_vm12, %v3616_v33, 2102212464 }
 0x3b2   : > { %v8406_v55 = vadd.s32 4294967294, %v3555_v39  ;;  %v11600_v63 = vsub.s32 %v3755_v5, %v3758_v53  ;;  %v3637_v35 = vsel %vm3625_vm14, %v3619_v62, %v3636_v32  ;;  %v3634_v0 = vsel %vm3624_vm11, %v3631_v20, %v3633_v26  ;;  %v11632_v26 = vpop.f32.mrb[5].mxu0 }
 0x3b3   : > { %v3638_v43 = vsel %vm3624_vm11, %v3635_v36, %v3637_v35  ;;  %v3639_v52 = vshll.u32 %v3599_v2, 8  ;;  %v3809_v7 = vadd.s32 1, %v8416_v12  ;;  %v3627_v5 = vsel %vm3623_vm5, %v3607_v50, %v3610_v1  ;;  %v11629_v12 = vpop.permute.xlu1 %2081 }
 0x3b4   : > { %vm8407_vm13 = vcmp.lt.s32.totalorder %v8406_v55, 0  ;;  %v3761_v34 = vsub.s32 0, %v11600_v63  ;;  %v3629_v28 = vsel %vm3625_vm14, %v3613_v31, %v3628_v30  ;;  %v14718_v23 = vand.u32 2147483647, %v11496_v60 }
 0x3b5   : > { %v3558_v58 = vsel %vm8407_vm13, 0, %v8406_v55  ;;  %v11611_v18 = vmul.u32.u64.low %v3639_v52, %v3638_v43  ;;  %v11612_v17 = vmul.u32.u64.high %v3639_v52, %v3638_v43, %v11611_v18  ;;  %vm3810_vm6 = vcmp.gt.s32.totalorder %v3809_v7, 0 }
 0x3b6   : > { %v8413_v14 = vmin.u32 %v3761_v34, %v11600_v63  ;;  %v11614_v48 = vmul.u32.u64.low %v3639_v52, %v3634_v0  ;;  %v11615_v25 = vmul.u32.u64.high %v3639_v52, %v3634_v0, %v11614_v48  ;;  %v3559_v24 = vsub.s32 32, %v3558_v58 }
 0x3b7   : > { %v3563_v40 = vsub.s32 4294967266, %v3558_v58  ;;  %v3630_v33 = vsel %vm3624_vm11, %v3627_v5, %v3629_v28  ;;  %v3811_v1 = vsel %vm3810_vm6, %v3809_v7, 0  ;;  %v3543_v62 = vadd.s32 %v11534_v3, %v11531_v10 }
 0x3b8   : > { %v3763_v41 = vclz %v8413_v14  ;;  %vm3648_vm4 = vc.u32 %v11612_v17, %v11614_v48  ;;  %v3573_v4 = vsub.s32 4, %v11564_v61  ;;  %v3649_v39 = vadd.s32 1, %v11615_v25 }
 0x3b9   : > { %v3806_v2 = vand.u32 8388607, %v14718_v23  ;;  %v3813_v59 = vand.u32 31, %v3811_v1  ;;  %v3561_v53 = vshrl.u32 %v3543_v62, %v3559_v24  ;;  %v3781_v16 = vsub.s32 4, %v11592_v42 }
 0x3ba   : > { %v8414_v31 = vadd.s32 4294967294, %v3763_v41  ;;  %v3646_v20 = vmul.u32 %v3639_v52, %v3630_v33  ;;  %v3564_v55 = vadd.s32 127, %v3563_v40  ;;  %v3650_v10 = vsel %vm3648_vm4, %v3649_v39, %v11615_v25 }
 0x3bb   : > { %v3814_v3 = vsub.s32 32, %v3813_v59  ;;  %vm3489_vm8 = vcmp.lt.s32.totalorder %v11473_v47, 0  ;;  %vm3697_vm0 = vcmp.lt.s32.totalorder %v11475_v44, 0  ;;  %v11638_v32 = vadd.f32 %v11483_v27, %v11629_v12 }
 0x3bc   : > { %vm8415_vm10 = vcmp.lt.s32.totalorder %v8414_v31, 0  ;;  %v3651_v36 = vadd.s32 %v3650_v10, %v3646_v20  ;;  %v3560_v35 = vshll.u32 %v11578_v29, %v3558_v58  ;;  %v11644_v50 = vsel %vm3489_vm8, %v3573_v4, %v11564_v61 }
 0x3bd   : > { %14898 = vst [vmem:[#allocation5_spill] sm:$0xff] %v11638_v32  ;;  %v3751_v30 = vadd.s32 %v11556_v45, %v11562_v8  ;;  %v3807_v43 = vor.u32 8388608, %v3806_v2  ;;  %v11648_v34 = vsel %vm8415_vm10, 0, %v8414_v31  ;;  %v11653_v0 = vsel %vm3697_vm0, %v3781_v16, %v11592_v42 }
 0x3be   : > { %v3652_v27 = vadd.s32 536870912, %v3651_v36  ;;  %v3817_v52 = vshrl.u32 %v14787_v46, %v3814_v3  ;;  %v3562_v29 = vor.u32 %v3561_v53, %v3560_v35  ;;  %v3565_v7 = vshll.u32 %v3564_v55, 23 }
 0x3bf   : > { %v11656_v58 = vshrl.u32 %v3811_v1, 5  ;;  %v3820_v61 = vshrl.u32 %v14788_v37, %v3814_v3  ;;  %v3816_v45 = vshll.u32 %v14783_v54, %v3813_v59  ;;  %v3819_v8 = vshll.u32 %v14787_v46, %v3813_v59 }
 0x3c0   : > { %v11659_v5 = vshrl.u32 %v3652_v27, 30  ;;  %v3823_v14 = vshrl.u32 %v14789_v38, %v3814_v3  ;;  %v3771_v42 = vsub.s32 4294967266, %v11648_v34  ;;  %v3825_v28 = vshll.u32 %v14789_v38, %v3813_v59 }
 0x3c1   : > { %v3826_v18 = vshrl.u32 %v14790_v21, %v3814_v3  ;;  %v11667_v25 = vshll.u32 %v3807_v43, 8  ;;  %v3818_v41 = vor.u32 %v3817_v52, %v3816_v45  ;;  %v3821_v40 = vor.u32 %v3820_v61, %v3819_v8 }
 0x3c2   : > { %v3654_v24 = vshll.u32 %v11659_v5, 30  ;;  %v3822_v33 = vshll.u32 %v14788_v37, %v3813_v59  ;;  %v3566_v1 = vor.u32 4788187, %v3565_v7  ;;  %v3569_v62 = vcvt.s32.f32 %v3562_v29 }
 0x3c3   : > { %v3827_v31 = vor.u32 %v3826_v18, %v3825_v28  ;;  %v3906_v4 = vand.u32 2139095040, %v11638_v32  ;;  %vm11674_vm7 = vcmp.le.f32.partialorder %v3487_v11, 0.7853982  ;;  %vm3831_vm2 = vcmp.lt.s32.totalorder %v11656_v58, 1 }
 0x3c4   : > { %v11678_v2 = vsub.s32 %v3651_v36, %v3654_v24  ;;  %v3824_v53 = vor.u32 %v3823_v14, %v3822_v33  ;;  %vm3832_vm3 = vcmp.lt.s32.totalorder %v11656_v58, 2  ;;  %vm11684_vm15 = vcmp.le.f32.partialorder %v3695_v19, 0.7853982 }
 0x3c5   : > { %v3767_v20 = vsub.s32 32, %v11648_v34  ;;  %v3772_v55 = vadd.s32 127, %v3771_v42  ;;  %v3828_v11 = vshll.u32 %v14790_v21, %v3813_v59  ;;  %v3829_v10 = vshrl.u32 %v14791_v22, %v3814_v3 }
 0x3c6   : > { %v3657_v36 = vsub.s32 0, %v11678_v2  ;;  %vm3833_vm9 = vcmp.lt.s32.totalorder %v11656_v58, 3  ;;  %vm3834_vm12 = vcmp.lt.s32.totalorder %v11656_v58, 4  ;;  %v3839_v35 = vsel %vm3831_vm2, %v3818_v41, %v3821_v40 }
 0x3c7   : > { %v3567_v19 = vand.u32 2147483647, %v3566_v1  ;;  %v3815_v43 = vshrl.u32 %v14783_v54, %v3814_v3  ;;  %v3830_v27 = vor.u32 %v3829_v10, %v3828_v11  ;;  %v3840_v52 = vsel %vm3834_vm12, %v3827_v31, 920167782 }
 0x3c8   : > { %v8409_v29 = vmin.u32 %v3657_v36, %v11678_v2  ;;  %v3836_v7 = vsel %vm3834_vm12, %v3824_v53, 2102212464  ;;  %v3841_v59 = vsel %vm3833_vm9, %v3824_v53, %v3840_v52  ;;  %v3843_v61 = vsel %vm3831_vm2, %v3821_v40, %v3824_v53 }
 0x3c9   : > { %v3769_v45 = vshrl.u32 %v3751_v30, %v3767_v20  ;;  %v3773_v8 = vshll.u32 %v3772_v55, 23  ;;  %v3842_v14 = vsel %vm3832_vm3, %v3839_v35, %v3841_v59  ;;  %v3844_v42 = vsel %vm3834_vm12, %v3830_v27, 1326507024 }
 0x3ca   : > { %v3659_v28 = vclz %v8409_v29  ;;  %v3835_v3 = vsel %vm3831_vm2, %v3815_v43, %v3818_v41  ;;  %v3845_v18 = vsel %vm3833_vm9, %v3827_v31, %v3844_v42  ;;  %v3907_v24 = vshrl.u32 %v3906_v4, 23 }
 0x3cb   : > { %v3837_v33 = vsel %vm3833_vm9, %v3821_v40, %v3836_v7  ;;  %v3846_v1 = vsel %vm3832_vm3, %v3843_v61, %v3845_v18  ;;  %v11713_v30 = vmul.u32.u64.low %v11667_v25, %v3842_v14  ;;  %v11714_v53 = vmul.u32.u64.high %v11667_v25, %v3842_v14, %v11713_v30 }
 0x3cc   : > { %v3570_v20 = vmul.f32 %v3569_v62, %v3567_v19  ;;  %v8410_v55 = vadd.s32 4294967294, %v3659_v28  ;;  %v11718_v11 = vmul.u32.u64.low %v11667_v25, %v3846_v1  ;;  %v11719_v41 = vmul.u32.u64.high %v11667_v25, %v3846_v1, %v11718_v11 }
 0x3cd   : > { %v3576_v31 = vsel %vm11674_vm7, 0, %v11644_v50  ;;  %v3768_v40 = vshll.u32 %v11600_v63, %v11648_v34  ;;  %v3774_v4 = vor.u32 4788187, %v3773_v8  ;;  %v8420_v10 = vadd.s32 4294967169, %v3907_v24  ;;  %v11739_v8 = vpop.f32.mrb[5].mxu1 }
 0x3ce   : > { %v3784_v36 = vsel %vm11684_vm15, 0, %v11653_v0  ;;  %vm8411_vm5 = vcmp.lt.s32.totalorder %v8410_v55, 0  ;;  %v3838_v62 = vsel %vm3832_vm3, %v3835_v3, %v3837_v33  ;;  %v3903_v35 = vand.u32 2147483647, %v11638_v32 }
 0x3cf   : > { %v3770_v19 = vor.u32 %v3769_v45, %v3768_v40  ;;  %v3662_v43 = vsel %vm8411_vm5, 0, %v8410_v55  ;;  %v3857_v27 = vadd.s32 1, %v11714_v53  ;;  %v3913_v50 = vadd.s32 1, %v8420_v10 }
 0x3d0   : > { %v3571_v52 = vxor.u32 2147483648, %v3570_v20  ;;  %v3647_v63 = vadd.s32 %v11614_v48, %v11612_v17  ;;  %v3663_v34 = vsub.s32 32, %v3662_v43  ;;  %v3667_v29 = vsub.s32 4294967266, %v3662_v43 }
 0x3d1   : > { %v3775_v7 = vand.u32 2147483647, %v3774_v4  ;;  %v3854_v0 = vmul.u32 %v11667_v25, %v3838_v62  ;;  %vm3856_vm14 = vc.u32 %v11719_v41, %v11713_v30  ;;  %vm3914_vm11 = vcmp.gt.s32.totalorder %v3913_v50, 0 }
 0x3d2   : > { %v3665_v58 = vshrl.u32 %v3647_v63, %v3663_v34  ;;  %v3668_v59 = vadd.s32 127, %v3667_v29  ;;  %v3858_v61 = vsel %vm3856_vm14, %v3857_v27, %v11714_v53  ;;  %v3915_v45 = vsel %vm3914_vm11, %v3913_v50, 0 }
 0x3d3   : > { %v11741_v14 = vadd.s32 3, %v3576_v31  ;;  %v3777_v42 = vcvt.s32.f32 %v3770_v19  ;;  %v3859_v17 = vadd.s32 %v3858_v61, %v3854_v0  ;;  %v3917_v48 = vand.u32 31, %v3915_v45 }
 0x3d4   : > { %v3572_v28 = vsel %vm3489_vm8, %v3571_v52, %v3570_v20  ;;  %v11745_v25 = vadd.s32 3, %v3784_v36  ;;  %v3664_v3 = vshll.u32 %v11678_v2, %v3662_v43  ;;  %v3669_v18 = vshll.u32 %v3668_v59, 23 }
 0x3d5   : > { %v3778_v24 = vmul.f32 %v3777_v42, %v3775_v7  ;;  %v3860_v33 = vadd.s32 536870912, %v3859_v17  ;;  %v3910_v1 = vand.u32 8388607, %v3903_v35  ;;  %v3918_v53 = vsub.s32 32, %v3917_v48 }
 0x3d6   : > { %v3666_v55 = vor.u32 %v3665_v58, %v3664_v3  ;;  %v11750_v11 = vshrl.u32 %v3915_v45, 5  ;;  %v3920_v31 = vshll.u32 %v14783_v54, %v3917_v48  ;;  %v11755_v40 = vadd.f32 %v11490_v51, %v11629_v12 }
 0x3d7   : > { %v11757_v20 = vshrl.u32 %v3860_v33, 30  ;;  %v3921_v2 = vshrl.u32 %v14787_v46, %v3918_v53  ;;  %v3923_v4 = vshll.u32 %v14787_v46, %v3917_v48  ;;  %v3924_v10 = vshrl.u32 %v14788_v37, %v3918_v53 }
 0x3d8   : > { %14903 = vst [vmem:[#allocation15_spill] sm:$0xff] %v11755_v40  ;;  %v3670_v36 = vor.u32 4788187, %v3669_v18  ;;  %v3927_v62 = vshrl.u32 %v14789_v38, %v3918_v53  ;;  %v3929_v19 = vshll.u32 %v14789_v38, %v3917_v48  ;;  %v3930_v43 = vshrl.u32 %v14790_v21, %v3918_v53 }
 0x3d9   : > { %v3862_v27 = vshll.u32 %v11757_v20, 30  ;;  %v3922_v50 = vor.u32 %v3921_v2, %v3920_v31  ;;  %v3925_v51 = vor.u32 %v3924_v10, %v3923_v4  ;;  %v3926_v52 = vshll.u32 %v14788_v37, %v3917_v48 }
 0x3da   : > { %v3575_v63 = vsel %vm11674_vm7, %v11473_v47, %v3572_v28  ;;  %v3931_v34 = vor.u32 %v3930_v43, %v3929_v19  ;;  %v3932_v29 = vshll.u32 %v14790_v21, %v3917_v48  ;;  %v3933_v7 = vshrl.u32 %v14791_v22, %v3918_v53 }
 0x3db   : > { %v3779_v0 = vxor.u32 2147483648, %v3778_v24  ;;  %v11772_v58 = vsub.s32 %v3859_v17, %v3862_v27  ;;  %v3911_v59 = vor.u32 8388608, %v3910_v1  ;;  %v3928_v61 = vor.u32 %v3927_v62, %v3926_v52 }
 0x3dc   : > { %v3671_v45 = vand.u32 2147483647, %v3670_v36  ;;  %v3934_v42 = vor.u32 %v3933_v7, %v3932_v29  ;;  %vm3935_vm13 = vcmp.lt.s32.totalorder %v11750_v11, 1  ;;  %v4114_v3 = vand.u32 2139095040, %v11755_v40 }
 0x3dd   : > { %v3673_v18 = vcvt.s32.f32 %v3666_v55  ;;  %v3865_v39 = vsub.s32 0, %v11772_v58  ;;  %vm3938_vm6 = vcmp.lt.s32.totalorder %v11750_v11, 4  ;;  %v3943_v48 = vsel %vm3935_vm13, %v3922_v50, %v3925_v51 }
 0x3de   : > { %v3919_v28 = vshrl.u32 %v14783_v54, %v3918_v53  ;;  %vm3936_vm4 = vcmp.lt.s32.totalorder %v11750_v11, 2  ;;  %vm3937_vm10 = vcmp.lt.s32.totalorder %v11750_v11, 3  ;;  %v3944_v17 = vsel %vm3938_vm6, %v3931_v34, 920167782 }
 0x3df   : > { %v8417_v33 = vmin.u32 %v3865_v39, %v11772_v58  ;;  %v3940_v1 = vsel %vm3938_vm6, %v3928_v61, 2102212464  ;;  %v3945_v31 = vsel %vm3937_vm10, %v3928_v61, %v3944_v17  ;;  %v3947_v55 = vsel %vm3935_vm13, %v3925_v51, %v3928_v61 }
 0x3e0   : > { %v3674_v2 = vmul.f32 %v3673_v18, %v3671_v45  ;;  %v3946_v4 = vsel %vm3936_vm4, %v3943_v48, %v3945_v31  ;;  %v3948_v10 = vsel %vm3938_vm6, %v3934_v42, 1326507024  ;;  %v3951_v36 = vshll.u32 %v3911_v59, 8 }
 0x3e1   : > { %vm3593_vm8 = vcmp.lt.s32.totalorder %v11477_v9, 0  ;;  %v3867_v53 = vclz %v8417_v33  ;;  %v3939_v62 = vsel %vm3935_vm13, %v3919_v28, %v3922_v50  ;;  %v3949_v19 = vsel %vm3937_vm10, %v3931_v34, %v3948_v10 }
 0x3e2   : > { %v4115_v43 = vshrl.u32 %v4114_v3, 23  ;;  %v3941_v27 = vsel %vm3937_vm10, %v3925_v51, %v3940_v1  ;;  %v3950_v52 = vsel %vm3936_vm4, %v3947_v55, %v3949_v19  ;;  %vm3801_vm7 = vcmp.lt.s32.totalorder %v11496_v60, 0  ;;  %v11837_v55 = vpop.permute.xlu0 %2086  ;;  %v11854_v19 = vpop.f32.mrb[6].mxu0 }
 0x3e3   : > { %v11793_v29 = vmul.u32.u64.low %v3951_v36, %v3946_v4  ;;  %v11794_v7 = vmul.u32.u64.high %v3951_v36, %v3946_v4, %v11793_v29  ;;  %v8418_v61 = vadd.s32 4294967294, %v3867_v53  ;;  %v11802_v18 = vand.u32 3, %v11741_v14 }
 0x3e4   : > { %v11798_v59 = vmul.u32.u64.low %v3951_v36, %v3950_v52  ;;  %v11799_v45 = vmul.u32.u64.high %v3951_v36, %v3950_v52, %v11798_v59  ;;  %v8428_v42 = vadd.s32 4294967169, %v4115_v43  ;;  %v3780_v50 = vsel %vm3697_vm0, %v3779_v0, %v3778_v24 }
 0x3e5   : > { %14904 = vst [vmem:[#allocation20_spill] sm:$0xff] %v11802_v18  ;;  %v11807_v51 = vand.u32 3, %v11745_v25  ;;  %v14716_v34 = vand.u32 2147483647, %v11755_v40  ;;  %vm8419_vm2 = vcmp.lt.s32.totalorder %v8418_v61, 0  ;;  %v3942_v3 = vsel %vm3936_vm4, %v3939_v62, %v3941_v27 }
 0x3e6   : > { %v4121_v39 = vadd.s32 1, %v8428_v42  ;;  %v11814_v48 = vadd.f32 %v11492_v56, %v11629_v12  ;;  %9243 = vcosq.f32 %v3575_v63  ;;  %v3677_v14 = vsub.s32 4, %v11659_v5 }
 0x3e7   : > { %14905 = vst [vmem:[#allocation9_spill] sm:$0xff] %v11807_v51  ;;  %v11817_v28 = vsel %vm8419_vm2, 0, %v8418_v61  ;;  %v3961_v24 = vadd.s32 1, %v11794_v7  ;;  %9245 = vsinq.f32 %v3575_v63  ;;  %v3783_v25 = vsel %vm11684_vm15, %v11475_v44, %v3780_v50 }
 0x3e8   : > { %v3675_v0 = vxor.u32 2147483648, %v3674_v2  ;;  %v3885_v11 = vsub.s32 4, %v11757_v20  ;;  %v3958_v17 = vmul.u32 %v3951_v36, %v3942_v3  ;;  %vm3960_vm0 = vc.u32 %v11799_v45, %v11793_v29 }
 0x3e9   : > { %v4118_v56 = vand.u32 8388607, %v14716_v34  ;;  %vm4122_vm3 = vcmp.gt.s32.totalorder %v4121_v39, 0  ;;  %vm11830_vm9 = vcmp.le.f32.partialorder %v3591_v15, 0.7853982  ;;  %v3875_v16 = vsub.s32 4294967266, %v11817_v28 }
 0x3ea   : > { %v3962_v63 = vsel %vm3960_vm0, %v3961_v24, %v11794_v7  ;;  %v4123_v1 = vsel %vm4122_vm3, %v4121_v39, 0  ;;  %v4010_v31 = vand.u32 2139095040, %v11814_v48  ;;  %9247 = vcosq.f32 %v3783_v25 }
 0x3eb   : > { %v11842_v4 = vsel %vm3593_vm8, %v3677_v14, %v11659_v5  ;;  %v3963_v10 = vadd.s32 %v3962_v63, %v3958_v17  ;;  %v4125_v15 = vand.u32 31, %v4123_v1  ;;  %9249 = vsinq.f32 %v3783_v25 }
 0x3ec   : > { %v3855_v36 = vadd.s32 %v11713_v30, %v11719_v41  ;;  %v11848_v53 = vadd.f32 %v11494_v57, %v11629_v12  ;;  %v11852_v62 = vadd.f32 %v11517_v6, %v11837_v55  ;;  %v3871_v43 = vsub.s32 32, %v11817_v28 }
 0x3ed   : > { %v11860_v5 = vsel %vm3801_vm7, %v3885_v11, %v11757_v20  ;;  %v3964_v27 = vadd.s32 536870912, %v3963_v10  ;;  %v4126_v52 = vsub.s32 32, %v4125_v15  ;;  %v3676_v30 = vsel %vm3593_vm8, %v3675_v0, %v3674_v2 }
 0x3ee   : > { %14908 = vst [vmem:[#allocation13_spill] sm:$0xff] %v11848_v53  ;;  %14909 = vst [vmem:[#allocation17_spill] sm:$0xff] %v11852_v62  ;;  %v3876_v57 = vadd.s32 127, %v3875_v16  ;;  %v4119_v12 = vor.u32 8388608, %v4118_v56  ;;  %v4011_v41 = vshrl.u32 %v4010_v31, 23  ;;  %v4128_v6 = vshll.u32 %v14783_v54, %v4125_v15 }
 0x3ef   : > { %v11864_v7 = vshrl.u32 %v3964_v27, 30  ;;  %v4129_v61 = vshrl.u32 %v14787_v46, %v4126_v52  ;;  %v4132_v59 = vshrl.u32 %v14788_v37, %v4126_v52  ;;  %v4131_v42 = vshll.u32 %v14787_v46, %v4125_v15 }
 0x3f0   : > { %v4135_v20 = vshrl.u32 %v14789_v38, %v4126_v52  ;;  %v4137_v50 = vshll.u32 %v14789_v38, %v4125_v15  ;;  %v4138_v3 = vshrl.u32 %v14790_v21, %v4126_v52  ;;  %v11873_v2 = vpop.eup %9243  ;;  %v3873_v39 = vshrl.u32 %v3855_v36, %v3871_v43 }
 0x3f1   : > { %14910 = vst [vmem:[#allocation21_spill] sm:$0xff] %v11873_v2  ;;  %v3966_v14 = vshll.u32 %v11864_v7, 30  ;;  %v4124_v24 = vshrl.u32 %v4123_v1, 5  ;;  %v4134_v25 = vshll.u32 %v14788_v37, %v4125_v15  ;;  %v11877_v0 = vpop.eup %9245  ;;  %v4130_v11 = vor.u32 %v4129_v61, %v4128_v6 }
 0x3f2   : > { %14911 = vst [vmem:[#allocation6_spill] sm:$0xff] %v11877_v0  ;;  %v4133_v17 = vor.u32 %v4132_v59, %v4131_v42  ;;  %v4139_v56 = vor.u32 %v4138_v3, %v4137_v50  ;;  %v4141_v16 = vshrl.u32 %v14791_v22, %v4126_v52  ;;  %v11883_v63 = vsel %vm11830_vm9, %v11477_v9, %v3676_v30 }
 0x3f3   : > { %v11885_v31 = vsub.s32 %v3963_v10, %v3966_v14  ;;  %v4136_v36 = vor.u32 %v4135_v20, %v4134_v25  ;;  %v4140_v43 = vshll.u32 %v14790_v21, %v4125_v15  ;;  %v3872_v1 = vshll.u32 %v11772_v58, %v11817_v28 }
 0x3f4   : > { %v3877_v27 = vshll.u32 %v3876_v57, 23  ;;  %v4159_v49 = vshll.u32 %v4119_v12, 8  ;;  %v14717_v6 = vand.u32 2147483647, %v11814_v48  ;;  %v11891_v61 = vpop.eup %9247  ;;  %vm4143_vm15 = vcmp.lt.s32.totalorder %v4124_v24, 1 }
 0x3f5   : > { %14912 = vst [vmem:[#allocation12_spill] sm:$0xff] %v11891_v61  ;;  %v3969_v59 = vsub.s32 0, %v11885_v31  ;;  %v4142_v42 = vor.u32 %v4141_v16, %v4140_v43  ;;  %vm4146_vm12 = vcmp.lt.s32.totalorder %v4124_v24, 4  ;;  %v11894_v30 = vpop.eup %9249  ;;  %v3874_v10 = vor.u32 %v3873_v39, %v3872_v1 }
 0x3f6   : > { %14913 = vst [vmem:[#allocation16_spill] sm:$0xff] %v11894_v30  ;;  %vm3905_vm5 = vcmp.lt.s32.totalorder %v11638_v32, 0  ;;  %v4151_v15 = vsel %vm4143_vm15, %v4130_v11, %v4133_v17  ;;  %v4152_v58 = vsel %vm4146_vm12, %v4139_v56, 920167782  ;;  %v8424_v28 = vadd.s32 4294967169, %v4011_v41 }
 0x3f7   : > { %v8421_v57 = vmin.u32 %v3969_v59, %v11885_v31  ;;  %v4127_v12 = vshrl.u32 %v14783_v54, %v4126_v52  ;;  %vm4145_vm14 = vcmp.lt.s32.totalorder %v4124_v24, 3  ;;  %v4148_v20 = vsel %vm4146_vm12, %v4136_v36, 2102212464 }
 0x3f8   : > { %v3878_v50 = vor.u32 4788187, %v3877_v27  ;;  %vm4144_vm11 = vcmp.lt.s32.totalorder %v4124_v24, 2  ;;  %v4153_v3 = vsel %vm4145_vm14, %v4136_v36, %v4152_v58  ;;  %v4155_v14 = vsel %vm4143_vm15, %v4133_v17, %v4136_v36 }
 0x3f9   : > { %vm11905_vm13 = vcmp.le.f32.partialorder %v3903_v35, 0.7853982  ;;  %v3971_v25 = vclz %v8421_v57  ;;  %v4147_v41 = vsel %vm4143_vm15, %v4127_v12, %v4130_v11  ;;  %v4154_v16 = vsel %vm4144_vm11, %v4151_v15, %v4153_v3 }
 0x3fa   : > { %v4156_v52 = vsel %vm4146_vm12, %v4142_v42, 1326507024  ;;  %v4149_v43 = vsel %vm4145_vm14, %v4133_v17, %v4148_v20  ;;  %v11912_v27 = vmul.u32.u64.low %v4159_v49, %v4154_v16  ;;  %v11913_v59 = vmul.u32.u64.high %v4159_v49, %v4154_v16, %v11912_v27  ;;  %v11924_v17 = vpop.f32.mrb[6].mxu1 }
 0x3fb   : > { %v4157_v1 = vsel %vm4145_vm14, %v4139_v56, %v4156_v52  ;;  %v8422_v36 = vadd.s32 4294967294, %v3971_v25  ;;  %v3989_v58 = vsub.s32 4, %v11864_v7  ;;  %v4017_v34 = vadd.s32 1, %v8424_v28 }
 0x3fc   : > { %v4158_v35 = vsel %vm4144_vm11, %v4155_v14, %v4157_v1  ;;  %9251 = vcosq.f32 %v11883_v63  ;;  %v4014_v42 = vand.u32 8388607, %v14717_v6  ;;  %v3879_v56 = vand.u32 2147483647, %v3878_v50 }
 0x3fd   : > { %v11919_v57 = vmul.u32.u64.low %v4159_v49, %v4158_v35  ;;  %v11920_v11 = vmul.u32.u64.high %v4159_v49, %v4158_v35, %v11919_v57  ;;  %vm8423_vm6 = vcmp.lt.s32.totalorder %v8422_v36, 0  ;;  %v4150_v15 = vsel %vm4144_vm11, %v4147_v41, %v4149_v43 }
 0x3fe   : > { %vm4018_vm4 = vcmp.gt.s32.totalorder %v4017_v34, 0  ;;  %v3974_v12 = vsel %vm8423_vm6, 0, %v8422_v36  ;;  %v4169_v20 = vadd.s32 1, %v11913_v59  ;;  %v3881_v14 = vcvt.s32.f32 %v3874_v10 }
 0x3ff   : > { %v4019_v3 = vsel %vm4018_vm4, %v4017_v34, 0  ;;  %v3979_v25 = vsub.s32 4294967266, %v3974_v12  ;;  %v3990_v16 = vsel %vm3905_vm5, %v3989_v58, %v11864_v7  ;;  %v4218_v52 = vand.u32 2139095040, %v11848_v53 }
 0x400   : > { %v3959_v50 = vadd.s32 %v11793_v29, %v11799_v45  ;;  %v4166_v24 = vmul.u32 %v4159_v49, %v4150_v15  ;;  %vm4168_vm10 = vc.u32 %v11920_v11, %v11912_v27  ;;  %v4021_v41 = vand.u32 31, %v4019_v3 }
 0x401   : > { %v3882_v43 = vmul.f32 %v3881_v14, %v3879_v56  ;;  %v3980_v34 = vadd.s32 127, %v3979_v25  ;;  %v4170_v1 = vsel %vm4168_vm10, %v4169_v20, %v11913_v59  ;;  %v4015_v10 = vor.u32 8388608, %v4014_v42 }
 0x402   : > { %v3975_v36 = vsub.s32 32, %v3974_v12  ;;  %v3992_v35 = vsel %vm11905_vm13, 0, %v3990_v16  ;;  %v4171_v7 = vadd.s32 %v4170_v1, %v4166_v24  ;;  %v4022_v58 = vsub.s32 32, %v4021_v41 }
 0x403   : > { %v4020_v57 = vshrl.u32 %v4019_v3, 5  ;;  %v4024_v6 = vshll.u32 %v14783_v54, %v4021_v41  ;;  %v4027_v49 = vshll.u32 %v14787_v46, %v4021_v41  ;;  %v4219_v29 = vshrl.u32 %v4218_v52, 23 }
 0x404   : > { %v3981_v45 = vshll.u32 %v3980_v34, 23  ;;  %v4172_v15 = vadd.s32 536870912, %v4171_v7  ;;  %v4025_v56 = vshrl.u32 %v14787_v46, %v4022_v58  ;;  %v4028_v14 = vshrl.u32 %v14788_v37, %v4022_v58 }
 0x405   : > { %v4030_v59 = vshll.u32 %v14788_v37, %v4021_v41  ;;  %v4031_v42 = vshrl.u32 %v14789_v38, %v4022_v58  ;;  %v4033_v20 = vshll.u32 %v14789_v38, %v4021_v41  ;;  %v4034_v25 = vshrl.u32 %v14790_v21, %v4022_v58 }
 0x406   : > { %v11948_v3 = vpop.eup %9251  ;;  %v3977_v16 = vshrl.u32 %v3959_v50, %v3975_v36  ;;  %v11950_v24 = vshrl.u32 %v4172_v15, 30  ;;  %v4026_v52 = vor.u32 %v4025_v56, %v4024_v6  ;;  %v4029_v34 = vor.u32 %v4028_v14, %v4027_v49 }
 0x407   : > { %v4032_v1 = vor.u32 %v4031_v42, %v4030_v59  ;;  %v4035_v28 = vor.u32 %v4034_v25, %v4033_v20  ;;  %v4036_v23 = vshll.u32 %v14790_v21, %v4021_v41  ;;  %v4037_v61 = vshrl.u32 %v14791_v22, %v4022_v58 }
 0x408   : > { %v3883_v51 = vxor.u32 2147483648, %v3882_v43  ;;  %v3996_v30 = vadd.s32 3, %v3992_v35  ;;  %v4174_v44 = vshll.u32 %v11950_v24, 30  ;;  %v4055_v2 = vshll.u32 %v4015_v10, 8 }
 0x409   : > { %v14916_v0 = vand.u32 2147483647, %v11496_v60  ;;  %v3976_v6 = vshll.u32 %v11885_v31, %v3974_v12  ;;  %v3982_v50 = vor.u32 4788187, %v3981_v45  ;;  %v4038_v36 = vor.u32 %v4037_v61, %v4036_v23 }
 0x40a   : > { %vm4039_vm2 = vcmp.lt.s32.totalorder %v4020_v57, 1  ;;  %v11962_v49 = vsub.s32 %v4171_v7, %v4174_v44  ;;  %vm4042_vm0 = vcmp.lt.s32.totalorder %v4020_v57, 4  ;;  %v8432_v35 = vadd.s32 4294967169, %v4219_v29 }
 0x40b   : > { %vm11957_vm8 = vcmp.le.f32.partialorder %v14916_v0, 0.7853982  ;;  %v4047_v41 = vsel %vm4039_vm2, %v4026_v52, %v4029_v34  ;;  %v3978_v15 = vor.u32 %v3977_v16, %v3976_v6  ;;  %vm4041_vm3 = vcmp.lt.s32.totalorder %v4020_v57, 3 }
 0x40c   : > { %v4044_v10 = vsel %vm4042_vm0, %v4032_v1, 2102212464  ;;  %v4048_v56 = vsel %vm4042_vm0, %v4035_v28, 920167782  ;;  %vm4113_vm15 = vcmp.lt.s32.totalorder %v11755_v40, 0  ;;  %v4177_v0 = vsub.s32 0, %v11962_v49 }
 0x40d   : > { %v4023_v14 = vshrl.u32 %v14783_v54, %v4022_v58  ;;  %vm4040_vm12 = vcmp.lt.s32.totalorder %v4020_v57, 2  ;;  %v4049_v31 = vsel %vm4041_vm3, %v4032_v1, %v4048_v56  ;;  %v3983_v23 = vand.u32 2147483647, %v3982_v50 }
 0x40e   : > { %v4050_v44 = vsel %vm4040_vm12, %v4047_v41, %v4049_v31  ;;  %v4051_v61 = vsel %vm4039_vm2, %v4029_v34, %v4032_v1  ;;  %v4052_v12 = vsel %vm4042_vm0, %v4038_v36, 1326507024  ;;  %v8429_v7 = vmin.u32 %v4177_v0, %v11962_v49  ;;  %v12001_v0 = vpop.f32.mrb[7].mxu0 }
 0x40f   : > { %v4043_v29 = vsel %vm4039_vm2, %v4023_v14, %v4026_v52  ;;  %v4045_v45 = vsel %vm4041_vm3, %v4029_v34, %v4044_v10  ;;  %v4053_v59 = vsel %vm4041_vm3, %v4035_v28, %v4052_v12  ;;  %v3884_v42 = vsel %vm3801_vm7, %v3883_v51, %v3882_v43 }
 0x410   : > { %v4054_v20 = vsel %vm4040_vm12, %v4051_v61, %v4053_v59  ;;  %v11975_v58 = vmul.u32.u64.low %v4055_v2, %v4050_v44  ;;  %v11976_v25 = vmul.u32.u64.high %v4055_v2, %v4050_v44, %v11975_v58  ;;  %v3985_v16 = vcvt.s32.f32 %v3978_v15 }
 0x411   : > { %v4179_v6 = vclz %v8429_v7  ;;  %v11979_v50 = vmul.u32.u64.low %v4055_v2, %v4054_v20  ;;  %v11980_v1 = vmul.u32.u64.high %v4055_v2, %v4054_v20, %v11979_v50  ;;  %9253 = vsinq.f32 %v11883_v63 }
 0x412   : > { %v4197_v52 = vsub.s32 4, %v11950_v24  ;;  %v4046_v28 = vsel %vm4040_vm12, %v4043_v29, %v4045_v45  ;;  %v4225_v34 = vadd.s32 1, %v8432_v35  ;;  %v11988_v51 = vsel %vm11957_vm8, %v11496_v60, %v3884_v42 }
 0x413   : > { %v11990_v43 = vmul.f32 %v3985_v16, %v3983_v23  ;;  %v11992_v36 = vand.u32 3, %v3996_v30  ;;  %v8430_v41 = vadd.s32 4294967294, %v4179_v6  ;;  %v4167_v15 = vadd.s32 %v11912_v27, %v11920_v11 }
 0x414   : > { %v4065_v63 = vadd.s32 1, %v11976_v25  ;;  %v14920_v10 = vand.u32 2147483647, %v11848_v53  ;;  %vm4226_vm7 = vcmp.gt.s32.totalorder %v4225_v34, 0  ;;  %v4062_v35 = vmul.u32 %v4055_v2, %v4046_v28 }
 0x415   : > { %14919 = vst [vmem:[#allocation19_spill] sm:$0xff] %v11992_v36  ;;  %vm8431_vm14 = vcmp.lt.s32.totalorder %v8430_v41, 0  ;;  %vm4064_vm11 = vc.u32 %v11980_v1, %v11975_v58  ;;  %v4227_v56 = vsel %vm4226_vm7, %v4225_v34, 0  ;;  %v12006_v14 = vsel %vm4113_vm15, %v4197_v52, %v11950_v24 }
 0x416   : > { %v4222_v57 = vand.u32 8388607, %v14920_v10  ;;  %v4182_v30 = vsel %vm8431_vm14, 0, %v8430_v41  ;;  %v4066_v27 = vsel %vm4064_vm11, %v4065_v63, %v11976_v25  ;;  %v4229_v11 = vand.u32 31, %v4227_v56 }
 0x417   : > { %v3987_v31 = vxor.u32 2147483648, %v11990_v43  ;;  %v4183_v23 = vsub.s32 32, %v4182_v30  ;;  %v4187_v44 = vsub.s32 4294967266, %v4182_v30  ;;  %v4067_v2 = vadd.s32 %v4066_v27, %v4062_v35 }
 0x418   : > { %v4184_v61 = vshll.u32 %v11962_v49, %v4182_v30  ;;  %v4223_v12 = vor.u32 8388608, %v4222_v57  ;;  %v12011_v7 = vshrl.u32 %v4227_v56, 5  ;;  %v4230_v29 = vsub.s32 32, %v4229_v11 }
 0x419   : > { %v4185_v45 = vshrl.u32 %v4167_v15, %v4183_v23  ;;  %v4188_v59 = vadd.s32 127, %v4187_v44  ;;  %v4068_v42 = vadd.s32 536870912, %v4067_v2  ;;  %v4232_v24 = vshll.u32 %v14783_v54, %v4229_v11 }
 0x41a   : > { %v4233_v20 = vshrl.u32 %v14787_v46, %v4230_v29  ;;  %v4235_v25 = vshll.u32 %v14787_v46, %v4229_v11  ;;  %v4236_v16 = vshrl.u32 %v14788_v37, %v4230_v29  ;;  %v4239_v6 = vshrl.u32 %v14789_v38, %v4230_v29 }
 0x41b   : > { %v4189_v50 = vshll.u32 %v4188_v59, 23  ;;  %v12018_v52 = vshrl.u32 %v4068_v42, 30  ;;  %v4238_v49 = vshll.u32 %v14788_v37, %v4229_v11  ;;  %v4242_v28 = vshrl.u32 %v14790_v21, %v4230_v29  ;;  %v12022_v34 = vpop.eup %9253 }
 0x41c   : > { %v4186_v41 = vor.u32 %v4185_v45, %v4184_v61  ;;  %v4234_v15 = vor.u32 %v4233_v20, %v4232_v24  ;;  %v4237_v63 = vor.u32 %v4236_v16, %v4235_v25  ;;  %v4241_v10 = vshll.u32 %v14789_v38, %v4229_v11 }
 0x41d   : > { %v14921_v57 = vand.u32 2147483647, %v11755_v40  ;;  %v4190_v56 = vor.u32 4788187, %v4189_v50  ;;  %v4070_v30 = vshll.u32 %v12018_v52, 30  ;;  %v4240_v27 = vor.u32 %v4239_v6, %v4238_v49 }
 0x41e   : > { %v4322_v23 = vand.u32 2139095040, %v11852_v62  ;;  %v4243_v44 = vor.u32 %v4242_v28, %v4241_v10  ;;  %v4244_v59 = vshll.u32 %v14790_v21, %v4229_v11  ;;  %v4245_v61 = vshrl.u32 %v14791_v22, %v4230_v29 }
 0x41f   : > { %vm12027_vm6 = vcmp.le.f32.partialorder %v14921_v57, 0.7853982  ;;  %v4263_v45 = vshll.u32 %v4223_v12, 8  ;;  %v4191_v42 = vand.u32 2147483647, %v4190_v56  ;;  %v12035_v24 = vsub.s32 %v4067_v2, %v4070_v30 }
 0x420   : > { %v4231_v20 = vshrl.u32 %v14783_v54, %v4230_v29  ;;  %vm4247_vm4 = vcmp.lt.s32.totalorder %v12011_v7, 1  ;;  %v4193_v25 = vcvt.s32.f32 %v4186_v41  ;;  %v4246_v16 = vor.u32 %v4245_v61, %v4244_v59 }
 0x421   : > { %vm4250_vm10 = vcmp.lt.s32.totalorder %v12011_v7, 4  ;;  %v4255_v6 = vsel %vm4247_vm4, %v4234_v15, %v4237_v63  ;;  %v4073_v50 = vsub.s32 0, %v12035_v24  ;;  %vm4249_vm2 = vcmp.lt.s32.totalorder %v12011_v7, 3 }
 0x422   : > { %v4252_v11 = vsel %vm4250_vm10, %v4240_v27, 2102212464  ;;  %v4256_v49 = vsel %vm4250_vm10, %v4243_v44, 920167782  ;;  %vm4248_vm0 = vcmp.lt.s32.totalorder %v12011_v7, 2  ;;  %v4259_v2 = vsel %vm4247_vm4, %v4237_v63, %v4240_v27 }
 0x423   : > { %v4257_v12 = vsel %vm4249_vm2, %v4240_v27, %v4256_v49  ;;  %v4260_v28 = vsel %vm4250_vm10, %v4246_v16, 1326507024  ;;  %v4194_v10 = vmul.f32 %v4193_v25, %v4191_v42  ;;  %v8425_v29 = vmin.u32 %v4073_v50, %v12035_v24 }
 0x424   : > { %v4251_v57 = vsel %vm4247_vm4, %v4231_v20, %v4234_v15  ;;  %v4258_v41 = vsel %vm4248_vm0, %v4255_v6, %v4257_v12  ;;  %v4253_v56 = vsel %vm4249_vm2, %v4237_v63, %v4252_v11  ;;  %v4261_v30 = vsel %vm4249_vm2, %v4243_v44, %v4260_v28  ;;  %v12082_v11 = vpop.f32.mrb[7].mxu1 }
 0x425   : > { %v12046_v59 = vmul.u32.u64.low %v4263_v45, %v4258_v41  ;;  %v12047_v61 = vmul.u32.u64.high %v4263_v45, %v4258_v41, %v12046_v59  ;;  %v4075_v36 = vclz %v8425_v29  ;;  %v4262_v47 = vsel %vm4248_vm0, %v4259_v2, %v4261_v30 }
 0x426   : > { %v14730_v27 = vand.u32 2147483647, %v11852_v62  ;;  %v4323_v16 = vshrl.u32 %v4322_v23, 23  ;;  %v3988_v15 = vsel %vm3905_vm5, %v3987_v31, %v11990_v43  ;;  %v4200_v63 = vsel %vm12027_vm6, 0, %v12006_v14 }
 0x427   : > { %v12059_v44 = vmul.u32.u64.low %v4263_v45, %v4262_v47  ;;  %v12060_v42 = vmul.u32.u64.high %v4263_v45, %v4262_v47, %v12059_v44  ;;  %9255 = vcosq.f32 %v11988_v51  ;;  %v8426_v20 = vadd.s32 4294967294, %v4075_v36 }
 0x428   : > { %v4254_v25 = vsel %vm4248_vm0, %v4251_v57, %v4253_v56  ;;  %v8436_v6 = vadd.s32 4294967169, %v4323_v16  ;;  %9257 = vsinq.f32 %v11988_v51  ;;  %v4195_v23 = vxor.u32 2147483648, %v4194_v10 }
 0x429   : > { %v4273_v50 = vadd.s32 1, %v12047_v61  ;;  %v12069_v43 = vadd.f32 %v11576_v13, %v11837_v55  ;;  %v3991_v47 = vsel %vm11905_vm13, %v11638_v32, %v3988_v15  ;;  %v12074_v14 = vadd.s32 3, %v4200_v63 }
 0x42a   : > { %vm8427_vm5 = vcmp.lt.s32.totalorder %v8426_v20, 0  ;;  %v4329_v36 = vadd.s32 1, %v8436_v6  ;;  %v4270_v7 = vmul.u32 %v4263_v45, %v4254_v25  ;;  %vm4272_vm3 = vc.u32 %v12060_v42, %v12046_v59 }
 0x42b   : > { %14924 = vst [vmem:[#allocation10_spill] sm:$0xff] %v12069_v43  ;;  %v4078_v31 = vsel %vm8427_vm5, 0, %v8426_v20  ;;  %v12080_v51 = vand.u32 8388607, %v14730_v27  ;;  %v4063_v13 = vadd.s32 %v11975_v58, %v11980_v1  ;;  %v4274_v12 = vsel %vm4272_vm3, %v4273_v50, %v12047_v61 }
 0x42c   : > { %v4079_v39 = vsub.s32 32, %v4078_v31  ;;  %v4083_v49 = vsub.s32 4294967266, %v4078_v31  ;;  %v4196_v2 = vsel %vm4113_vm15, %v4195_v23, %v4194_v10  ;;  %v4275_v45 = vadd.s32 %v4274_v12, %v4270_v7 }
 0x42d   : > { %vm4330_vm13 = vcmp.gt.s32.totalorder %v4329_v36, 0  ;;  %v4530_v28 = vand.u32 2139095040, %v12069_v43  ;;  %9259 = vcosq.f32 %v3991_v47  ;;  %v12092_v58 = vadd.f32 %v11632_v26, %v11837_v55 }
 0x42e   : > { %v4081_v29 = vshrl.u32 %v4063_v13, %v4079_v39  ;;  %v4084_v57 = vadd.s32 127, %v4083_v49  ;;  %v4331_v41 = vsel %vm4330_vm13, %v4329_v36, 0  ;;  %9261 = vsinq.f32 %v3991_v47 }
 0x42f   : > { %v4276_v56 = vadd.s32 536870912, %v4275_v45  ;;  %v4333_v30 = vand.u32 31, %v4331_v41  ;;  %v12097_v1 = vsel %vm12027_vm6, %v11755_v40, %v4196_v2  ;;  %v4080_v10 = vshll.u32 %v12035_v24, %v4078_v31 }
 0x430   : > { %v4085_v61 = vshll.u32 %v4084_v57, 23  ;;  %v4327_v63 = vor.u32 8388608, %v12080_v51  ;;  %v4531_v20 = vshrl.u32 %v4530_v28, 23  ;;  %v4332_v6 = vshrl.u32 %v4331_v41, 5 }
 0x431   : > { %v12101_v15 = vshrl.u32 %v4276_v56, 30  ;;  %v4334_v44 = vsub.s32 32, %v4333_v30  ;;  %v12104_v25 = vpop.eup %9255  ;;  %v4082_v26 = vor.u32 %v4081_v29, %v4080_v10  ;;  %v4336_v23 = vshll.u32 %v14783_v54, %v4333_v30 }
 0x432   : > { %v4339_v35 = vshll.u32 %v14787_v46, %v4333_v30  ;;  %v12108_v50 = vpop.eup %9257  ;;  %v4086_v24 = vor.u32 4788187, %v4085_v61  ;;  %v4342_v31 = vshll.u32 %v14788_v37, %v4333_v30  ;;  %v4345_v13 = vshll.u32 %v14789_v38, %v4333_v30 }
 0x433   : > { %v4278_v47 = vshll.u32 %v12101_v15, 30  ;;  %v4337_v36 = vshrl.u32 %v14787_v46, %v4334_v44  ;;  %v4340_v7 = vshrl.u32 %v14788_v37, %v4334_v44  ;;  %v4343_v51 = vshrl.u32 %v14789_v38, %v4334_v44 }
 0x434   : > { %v4346_v39 = vshrl.u32 %v14790_v21, %v4334_v44  ;;  %9263 = vcosq.f32 %v12097_v1  ;;  %v14735_v2 = vand.u32 2147483647, %v12069_v43  ;;  %v8444_v41 = vadd.s32 4294967169, %v4531_v20 }
 0x435   : > { %v12118_v49 = vsub.s32 %v4275_v45, %v4278_v47  ;;  %v4338_v12 = vor.u32 %v4337_v36, %v4336_v23  ;;  %v4341_v28 = vor.u32 %v4340_v7, %v4339_v35  ;;  %v4344_v29 = vor.u32 %v4343_v51, %v4342_v31 }
 0x436   : > { %v4347_v57 = vor.u32 %v4346_v39, %v4345_v13  ;;  %v4089_v56 = vcvt.s32.f32 %v4082_v26  ;;  %v4348_v61 = vshll.u32 %v14790_v21, %v4333_v30  ;;  %v4349_v16 = vshrl.u32 %v14791_v22, %v4334_v44 }
 0x437   : > { %v4281_v10 = vsub.s32 0, %v12118_v49  ;;  %v12124_v27 = vpop.eup %9259  ;;  %v4087_v40 = vand.u32 2147483647, %v4086_v24  ;;  %v4335_v45 = vshrl.u32 %v14783_v54, %v4334_v44  ;;  %vm4351_vm15 = vcmp.lt.s32.totalorder %v4332_v6, 1 }
 0x438   : > { %14925 = vst [vmem:[#allocation18_spill] sm:$0xff] %v12124_v27  ;;  %vm4354_vm12 = vcmp.lt.s32.totalorder %v4332_v6, 4  ;;  %v12127_v23 = vpop.eup %9261  ;;  %v4350_v47 = vor.u32 %v4349_v16, %v4348_v61  ;;  %v4359_v26 = vsel %vm4351_vm15, %v4338_v12, %v4341_v28  ;;  %vm4352_vm7 = vcmp.lt.s32.totalorder %v4332_v6, 2 }
 0x439   : > { %14926 = vst [vmem:[#allocation22_spill] sm:$0xff] %v12127_v23  ;;  %v8433_v35 = vmin.u32 %v4281_v10, %v12118_v49  ;;  %v4356_v20 = vsel %vm4354_vm12, %v4344_v29, 2102212464  ;;  %vm4353_vm14 = vcmp.lt.s32.totalorder %v4332_v6, 3  ;;  %v4355_v30 = vsel %vm4351_vm15, %v4335_v45, %v4338_v12 }
 0x43a   : > { %v4360_v36 = vsel %vm4354_vm12, %v4347_v57, 920167782  ;;  %vm4009_vm11 = vcmp.lt.s32.totalorder %v11814_v48, 0  ;;  %v4357_v31 = vsel %vm4353_vm14, %v4341_v28, %v4356_v20  ;;  %v4363_v7 = vsel %vm4351_vm15, %v4341_v28, %v4344_v29 }
 0x43b   : > { %v4283_v24 = vclz %v8433_v35  ;;  %v4361_v44 = vsel %vm4353_vm14, %v4344_v29, %v4360_v36  ;;  %v4090_v51 = vmul.f32 %v4089_v56, %v4087_v40  ;;  %v4364_v39 = vsel %vm4354_vm12, %v4350_v47, 1326507024 }
 0x43c   : > { %v4362_v13 = vsel %vm4352_vm7, %v4359_v26, %v4361_v44  ;;  %v4367_v16 = vshll.u32 %v4327_v63, 8  ;;  %v4365_v61 = vsel %vm4353_vm14, %v4347_v57, %v4364_v39  ;;  %v4534_v27 = vand.u32 8388607, %v14735_v2 }
 0x43d   : > { %v8434_v10 = vadd.s32 4294967294, %v4283_v24  ;;  %v4537_v12 = vadd.s32 1, %v8444_v41  ;;  %v4358_v45 = vsel %vm4352_vm7, %v4355_v30, %v4357_v31  ;;  %v4366_v23 = vsel %vm4352_vm7, %v4363_v7, %v4365_v61 }
 0x43e   : > { %v12139_v35 = vmul.u32.u64.low %v4367_v16, %v4362_v13  ;;  %v12140_v20 = vmul.u32.u64.high %v4367_v16, %v4362_v13, %v12139_v35  ;;  %v12143_v40 = vpop.eup %9263  ;;  %v12145_v28 = vmul.u32.u64.low %v4367_v16, %v4366_v23  ;;  %v12146_v29 = vmul.u32.u64.high %v4367_v16, %v4366_v23, %v12145_v28 }
 0x43f   : > { %14927 = vst [vmem:[#allocation11_spill] sm:$0xff] %v12143_v40  ;;  %vm8435_vm6 = vcmp.lt.s32.totalorder %v8434_v10, 0  ;;  %vm4538_vm4 = vcmp.gt.s32.totalorder %v4537_v12, 0  ;;  %9265 = vsinq.f32 %v12097_v1  ;;  %v4091_v63 = vxor.u32 2147483648, %v4090_v51 }
 0x440   : > { %v4286_v57 = vsel %vm8435_vm6, 0, %v8434_v10  ;;  %v4539_v41 = vsel %vm4538_vm4, %v4537_v12, 0  ;;  %v4271_v6 = vadd.s32 %v12046_v59, %v12060_v42  ;;  %v4535_v26 = vor.u32 8388608, %v4534_v27 }
 0x441   : > { %v4287_v56 = vsub.s32 32, %v4286_v57  ;;  %v4291_v47 = vsub.s32 4294967266, %v4286_v57  ;;  %v4374_v30 = vmul.u32 %v4367_v16, %v4358_v45  ;;  %v4377_v36 = vadd.s32 1, %v12140_v20 }
 0x442   : > { %v4541_v24 = vand.u32 31, %v4539_v41  ;;  %v14928_v23 = vand.u32 2147483647, %v11814_v48  ;;  %v4288_v1 = vshll.u32 %v12118_v49, %v4286_v57  ;;  %vm4376_vm2 = vc.u32 %v12146_v29, %v12139_v35 }
 0x443   : > { %v4289_v7 = vshrl.u32 %v4271_v6, %v4287_v56  ;;  %v4292_v13 = vadd.s32 127, %v4291_v47  ;;  %v4092_v59 = vsel %vm4009_vm11, %v4091_v63, %v4090_v51  ;;  %v4378_v27 = vsel %vm4376_vm2, %v4377_v36, %v12140_v20 }
 0x444   : > { %vm12155_vm10 = vcmp.le.f32.partialorder %v14928_v23, 0.7853982  ;;  %v12165_v42 = vshrl.u32 %v4539_v41, 5  ;;  %v4542_v39 = vsub.s32 32, %v4541_v24  ;;  %vm4321_vm0 = vcmp.lt.s32.totalorder %v11852_v62, 0 }
 0x445   : > { %v4290_v16 = vor.u32 %v4289_v7, %v4288_v1  ;;  %v4293_v10 = vshll.u32 %v4292_v13, 23  ;;  %v4379_v61 = vadd.s32 %v4378_v27, %v4374_v30  ;;  %v4544_v49 = vshll.u32 %v14783_v54, %v4541_v24 }
 0x446   : > { %v4545_v12 = vshrl.u32 %v14787_v46, %v4542_v39  ;;  %v4547_v45 = vshll.u32 %v14787_v46, %v4541_v24  ;;  %v4548_v28 = vshrl.u32 %v14788_v37, %v4542_v39  ;;  %v4551_v51 = vshrl.u32 %v14789_v38, %v4542_v39 }
 0x447   : > { %v4294_v63 = vor.u32 4788187, %v4293_v10  ;;  %v4297_v20 = vcvt.s32.f32 %v4290_v16  ;;  %v4380_v57 = vadd.s32 536870912, %v4379_v61  ;;  %v4550_v41 = vshll.u32 %v14788_v37, %v4541_v24 }
 0x448   : > { %v14931_v6 = vand.u32 2147483647, %v11852_v62  ;;  %v4546_v47 = vor.u32 %v4545_v12, %v4544_v49  ;;  %v4549_v30 = vor.u32 %v4548_v28, %v4547_v45  ;;  %v4553_v36 = vshll.u32 %v14789_v38, %v4541_v24 }
 0x449   : > { %v4554_v23 = vshrl.u32 %v14790_v21, %v4542_v39  ;;  %vm4217_vm3 = vcmp.lt.s32.totalorder %v11848_v53, 0  ;;  %v4295_v1 = vand.u32 2147483647, %v4294_v63  ;;  %v4381_v7 = vshrl.u32 %v4380_v57, 30  ;;  %v12185_v16 = vpop.eup %9265 }
 0x44a   : > { %vm12176_vm5 = vcmp.le.f32.partialorder %v14931_v6, 0.7853982  ;;  %v4556_v13 = vshll.u32 %v14790_v21, %v4541_v24  ;;  %v4557_v27 = vshrl.u32 %v14791_v22, %v4542_v39  ;;  %14934 = vst [vmem:[#allocation23_spill] sm:$0xff] %v12185_v16  ;;  %v4552_v10 = vor.u32 %v4551_v51, %v4550_v41 }
 0x44b   : > { %v4555_v6 = vor.u32 %v4554_v23, %v4553_v36  ;;  %v12187_v2 = vshll.u32 %v4535_v26, 8  ;;  %v4426_v49 = vand.u32 2139095040, %v12092_v58  ;;  %v4298_v12 = vmul.f32 %v4297_v20, %v4295_v1 }
 0x44c   : > { %v4382_v45 = vshll.u32 %v4381_v7, 30  ;;  %v4405_v28 = vsub.s32 4, %v4381_v7  ;;  %v4558_v31 = vor.u32 %v4557_v27, %v4556_v13  ;;  %v4095_v63 = vsel %vm12155_vm10, %v11814_v48, %v4092_v59 }
 0x44d   : > { %v4543_v24 = vshrl.u32 %v14783_v54, %v4542_v39  ;;  %vm4559_vm13 = vcmp.lt.s32.totalorder %v12165_v42, 1  ;;  %v14935_v57 = vand.u32 2147483647, %v12092_v58  ;;  %v14936_v26 = vand.u32 2147483647, %v11848_v53 }
 0x44e   : > { %v14937_v41 = vmov 0  ;;  %v4299_v20 = vxor.u32 2147483648, %v4298_v12  ;;  %v12205_v36 = vsub.s32 %v4379_v61, %v4382_v45  ;;  %vm4562_vm12 = vcmp.lt.s32.totalorder %v12165_v42, 4 }
 0x44f   : > { %v12197_v51 = vand.u32 8388607, %v14935_v57  ;;  %vm12201_vm15 = vcmp.le.f32.partialorder %v14936_v26, 0.7853982  ;;  %v4567_v59 = vsel %vm4559_vm13, %v4546_v47, %v4549_v30  ;;  %v4406_v39 = vsel %vm4321_vm0, %v4405_v28, %v4381_v7 }
 0x450   : > { %v14938_v41 = vsel %vm12201_vm15, 4294967295, %v14937_v41  ;;  %v4564_v23 = vsel %vm4562_vm12, %v4552_v10, 2102212464  ;;  %v4568_v1 = vsel %vm4562_vm12, %v4555_v6, 920167782  ;;  %v4385_v27 = vsub.s32 0, %v12205_v36 }
 0x451   : > { %14939 = vst [vmem:[#allocation24_spill] sm:$0xff] %v14938_v41  ;;  %v4572_v13 = vsel %vm4562_vm12, %v4558_v31, 1326507024  ;;  %vm4561_vm7 = vcmp.lt.s32.totalorder %v12165_v42, 3  ;;  %v4571_v57 = vsel %vm4559_vm13, %v4549_v30, %v4552_v10  ;;  %v4427_v61 = vshrl.u32 %v4426_v49, 23 }
 0x452   : > { %vm4560_vm14 = vcmp.lt.s32.totalorder %v12165_v42, 2  ;;  %v4563_v45 = vsel %vm4559_vm13, %v4543_v24, %v4546_v47  ;;  %v4569_v26 = vsel %vm4561_vm7, %v4552_v10, %v4568_v1  ;;  %v4573_v40 = vsel %vm4561_vm7, %v4555_v6, %v4572_v13 }
 0x453   : > { %v8437_v7 = vmin.u32 %v4385_v27, %v12205_v36  ;;  %v4408_v31 = vsel %vm12176_vm5, 0, %v4406_v39  ;;  %v4565_v28 = vsel %vm4561_vm7, %v4549_v30, %v4564_v23  ;;  %v4570_v16 = vsel %vm4560_vm14, %v4567_v59, %v4569_v26 }
 0x454   : > { %v4300_v32 = vsel %vm4217_vm3, %v4299_v20, %v4298_v12  ;;  %v4574_v49 = vsel %vm4560_vm14, %v4571_v57, %v4573_v40  ;;  %v12229_v60 = vmul.u32.u64.low %v12187_v2, %v4570_v16  ;;  %v12230_v47 = vmul.u32.u64.high %v12187_v2, %v4570_v16, %v12229_v60 }
 0x455   : > { %v4387_v10 = vclz %v8437_v7  ;;  %v12234_v6 = vmul.u32.u64.low %v12187_v2, %v4574_v49  ;;  %v12235_v24 = vmul.u32.u64.high %v12187_v2, %v4574_v49, %v12234_v6  ;;  %v8440_v30 = vadd.s32 4294967169, %v4427_v61 }
 0x456   : > { %v12238_v39 = vand.u32 3, %v12074_v14  ;;  %v14941_v12 = vsub.s32 4, %v12018_v52  ;;  %9267 = vcosq.f32 %v4095_v63  ;;  %v4566_v16 = vsel %vm4560_vm14, %v4563_v45, %v4565_v28  ;;  %v12272_v28 = vpop.permute.xlu1 %2091 }
 0x457   : > { %9269 = vsinq.f32 %v4095_v63  ;;  %v4301_v20 = vsub.s32 4, %v12101_v15  ;;  %v8438_v59 = vadd.s32 4294967294, %v4387_v10  ;;  %v4433_v23 = vadd.s32 1, %v8440_v30 }
 0x458   : > { %14940 = vst [vmem:[#allocation25_spill] sm:$0xff] %v12238_v39  ;;  %v12245_v40 = vsel %vm4009_vm11, %v14941_v12, %v12018_v52  ;;  %v4303_v14 = vsel %vm12201_vm15, %v11848_v53, %v4300_v32  ;;  %v4412_v1 = vadd.s32 3, %v4408_v31  ;;  %v4585_v13 = vadd.s32 1, %v12230_v47 }
 0x459   : > { %v4431_v27 = vor.u32 8388608, %v12197_v51  ;;  %vm8439_vm11 = vcmp.lt.s32.totalorder %v8438_v59, 0  ;;  %v4582_v52 = vmul.u32 %v12187_v2, %v4566_v16  ;;  %vm4584_vm6 = vc.u32 %v12235_v24, %v12229_v60 }
 0x45a   : > { %vm4434_vm4 = vcmp.gt.s32.totalorder %v4433_v23, 0  ;;  %v4390_v42 = vsel %vm8439_vm11, 0, %v8438_v59  ;;  %v4586_v63 = vsel %vm4584_vm6, %v4585_v13, %v12230_v47  ;;  %v12261_v61 = vadd.f32 %v11739_v8, %v11837_v55 }
 0x45b   : > { %v4435_v57 = vsel %vm4434_vm4, %v4433_v23, 0  ;;  %v4375_v32 = vadd.s32 %v12139_v35, %v12146_v29  ;;  %v4391_v45 = vsub.s32 32, %v4390_v42  ;;  %v4395_v51 = vsub.s32 4294967266, %v4390_v42 }
 0x45c   : > { %14942 = vst [vmem:[#allocation26_spill] sm:$0xff] %v12261_v61  ;;  %v4587_v26 = vadd.s32 %v4586_v63, %v4582_v52  ;;  %v12268_v2 = vsel %vm4217_vm3, %v4301_v20, %v12101_v15  ;;  %9271 = vcosq.f32 %v4303_v14  ;;  %v12270_v7 = vand.u32 3, %v4412_v1 }
 0x45d   : > { %14943 = vst [vmem:[#allocation27_spill] sm:$0xff] %v12268_v2  ;;  %v4437_v31 = vand.u32 31, %v4435_v57  ;;  %9273 = vsinq.f32 %v4303_v14  ;;  %v4393_v8 = vshrl.u32 %v4375_v32, %v4391_v45  ;;  %v4396_v55 = vadd.s32 127, %v4395_v51 }
 0x45e   : > { %14944 = vst [vmem:[#allocation28_spill] sm:$0xff] %v12270_v7  ;;  %v4588_v49 = vadd.s32 536870912, %v4587_v26  ;;  %v12274_v35 = vshll.u32 %v4431_v27, 8  ;;  %v4634_v29 = vand.u32 2139095040, %v12261_v61  ;;  %v12279_v10 = vadd.f32 %v11854_v19, %v12272_v28 }
 0x45f   : > { %v4438_v47 = vsub.s32 32, %v4437_v31  ;;  %v4392_v15 = vshll.u32 %v12205_v36, %v4390_v42  ;;  %v4397_v6 = vshll.u32 %v4396_v55, 23  ;;  %vm4529_vm2 = vcmp.lt.s32.totalorder %v12069_v43, 0 }
 0x460   : > { %v4589_v30 = vshrl.u32 %v4588_v49, 30  ;;  %v4436_v12 = vshrl.u32 %v4435_v57, 5  ;;  %v12283_v16 = vpop.eup %9267  ;;  %v4440_v20 = vshll.u32 %v14783_v54, %v4437_v31  ;;  %v4446_v27 = vshll.u32 %v14788_v37, %v4437_v31 }
 0x461   : > { %v4441_v59 = vshrl.u32 %v14787_v46, %v4438_v47  ;;  %v4444_v23 = vshrl.u32 %v14788_v37, %v4438_v47  ;;  %v4447_v14 = vshrl.u32 %v14789_v38, %v4438_v47  ;;  %v12289_v1 = vpop.eup %9269  ;;  %v4394_v19 = vor.u32 %v4393_v8, %v4392_v15 }
 0x462   : > { %v4398_v13 = vor.u32 4788187, %v4397_v6  ;;  %v4590_v36 = vshll.u32 %v4589_v30, 30  ;;  %v4613_v52 = vsub.s32 4, %v4589_v30  ;;  %v4443_v42 = vshll.u32 %v14787_v46, %v4437_v31 }
 0x463   : > { %v4449_v63 = vshll.u32 %v14789_v38, %v4437_v31  ;;  %v4450_v57 = vshrl.u32 %v14790_v21, %v4438_v47  ;;  %v14945_v45 = vand.u32 2147483647, %v12069_v43  ;;  %v4442_v8 = vor.u32 %v4441_v59, %v4440_v20 }
 0x464   : > { %v4399_v32 = vand.u32 2147483647, %v4398_v13  ;;  %v12301_v55 = vsub.s32 %v4587_v26, %v4590_v36  ;;  %v4448_v49 = vor.u32 %v4447_v14, %v4446_v27  ;;  %v4445_v15 = vor.u32 %v4444_v23, %v4443_v42 }
 0x465   : > { %vm12297_vm3 = vcmp.le.f32.partialorder %v14945_v45, 0.7853982  ;;  %v4451_v6 = vor.u32 %v4450_v57, %v4449_v63  ;;  %v4452_v7 = vshll.u32 %v14790_v21, %v4437_v31  ;;  %v4453_v39 = vshrl.u32 %v14791_v22, %v4438_v47 }
 0x466   : > { %v4401_v53 = vcvt.s32.f32 %v4394_v19  ;;  %v4583_v13 = vadd.s32 %v12229_v60, %v12235_v24  ;;  %v4593_v41 = vsub.s32 0, %v12301_v55  ;;  %v12309_v2 = vpop.eup %9271  ;;  %v4439_v26 = vshrl.u32 %v14783_v54, %v4438_v47 }
 0x467   : > { %14948 = vst [vmem:[#allocation29_spill] sm:$0xff] %v12309_v2  ;;  %v4454_v20 = vor.u32 %v4453_v39, %v4452_v7  ;;  %vm4458_vm13 = vcmp.lt.s32.totalorder %v4436_v12, 4  ;;  %v4635_v59 = vshrl.u32 %v4634_v29, 23  ;;  %v12312_v23 = vpop.eup %9273  ;;  %vm4455_vm12 = vcmp.lt.s32.totalorder %v4436_v12, 1 }
 0x468   : > { %v4402_v31 = vmul.f32 %v4401_v53, %v4399_v32  ;;  %v8445_v14 = vmin.u32 %v4593_v41, %v12301_v55  ;;  %v4460_v19 = vsel %vm4458_vm13, %v4448_v49, 2102212464  ;;  %v4614_v60 = vsel %vm4529_vm2, %v4613_v52, %v4589_v30 }
 0x469   : > { %vm4457_vm7 = vcmp.lt.s32.totalorder %v4436_v12, 3  ;;  %v4463_v24 = vsel %vm4455_vm12, %v4442_v8, %v4445_v15  ;;  %v4464_v36 = vsel %vm4458_vm13, %v4451_v6, 920167782  ;;  %vm4456_vm14 = vcmp.lt.s32.totalorder %v4436_v12, 2 }
 0x46a   : > { %v4595_v27 = vclz %v8445_v14  ;;  %v4465_v39 = vsel %vm4457_vm7, %v4448_v49, %v4464_v36  ;;  %v4467_v7 = vsel %vm4455_vm12, %v4445_v15, %v4448_v49  ;;  %v4459_v47 = vsel %vm4455_vm12, %v4439_v26, %v4442_v8 }
 0x46b   : > { %v4461_v29 = vsel %vm4457_vm7, %v4445_v15, %v4460_v19  ;;  %v4466_v42 = vsel %vm4456_vm14, %v4463_v24, %v4465_v39  ;;  %v4468_v53 = vsel %vm4458_vm13, %v4454_v20, 1326507024  ;;  %v4403_v41 = vxor.u32 2147483648, %v4402_v31 }
 0x46c   : > { %v8446_v63 = vadd.s32 4294967294, %v4595_v27  ;;  %v4469_v57 = vsel %vm4457_vm7, %v4451_v6, %v4468_v53  ;;  %v8448_v32 = vadd.s32 4294967169, %v4635_v59  ;;  %v4616_v30 = vsel %vm12297_vm3, 0, %v4614_v60 }
 0x46d   : > { %v4470_v52 = vsel %vm4456_vm14, %v4467_v7, %v4469_v57  ;;  %v12323_v45 = vmul.u32.u64.low %v12274_v35, %v4466_v42  ;;  %v12324_v2 = vmul.u32.u64.high %v12274_v35, %v4466_v42, %v12323_v45  ;;  %v4462_v49 = vsel %vm4456_vm14, %v4459_v47, %v4461_v29 }
 0x46e   : > { %vm8447_vm11 = vcmp.lt.s32.totalorder %v8446_v63, 0  ;;  %v12328_v8 = vmul.u32.u64.low %v12274_v35, %v4470_v52  ;;  %v12329_v15 = vmul.u32.u64.high %v12274_v35, %v4470_v52, %v12328_v8  ;;  %v14949_v26 = vand.u32 2147483647, %v12261_v61 }
 0x46f   : > { %v4598_v12 = vsel %vm8447_vm11, 0, %v8446_v63  ;;  %v4641_v20 = vadd.s32 1, %v8448_v32  ;;  %v14748_v59 = vand.u32 2147483647, %v12279_v10  ;;  %v4404_v14 = vsel %vm4321_vm0, %v4403_v41, %v4402_v31 }
 0x470   : > { %v4638_v6 = vand.u32 8388607, %v14949_v26  ;;  %v4599_v19 = vsub.s32 32, %v4598_v12  ;;  %v4603_v60 = vsub.s32 4294967266, %v4598_v12  ;;  %v4620_v24 = vadd.s32 3, %v4616_v30 }
 0x471   : > { %v4600_v36 = vshll.u32 %v12301_v55, %v4598_v12  ;;  %v4478_v27 = vmul.u32 %v12274_v35, %v4462_v49  ;;  %v4481_v39 = vadd.s32 1, %v12324_v2  ;;  %vm4642_vm6 = vcmp.gt.s32.totalorder %v4641_v20, 0 }
 0x472   : > { %v4601_v7 = vshrl.u32 %v4583_v13, %v4599_v19  ;;  %v4604_v47 = vadd.s32 127, %v4603_v60  ;;  %vm4480_vm4 = vc.u32 %v12329_v15, %v12323_v45  ;;  %v4738_v29 = vand.u32 2139095040, %v12279_v10 }
 0x473   : > { %v4482_v42 = vsel %vm4480_vm4, %v4481_v39, %v12324_v2  ;;  %v4643_v31 = vsel %vm4642_vm6, %v4641_v20, 0  ;;  %v12345_v53 = vadd.f32 %v11924_v17, %v12272_v28  ;;  %v12349_v35 = vadd.f32 %v12001_v0, %v12272_v28 }
 0x474   : > { %v4602_v55 = vor.u32 %v4601_v7, %v4600_v36  ;;  %v4605_v41 = vshll.u32 %v4604_v47, 23  ;;  %v4483_v13 = vadd.s32 %v4482_v42, %v4478_v27  ;;  %v12353_v63 = vadd.f32 %v12082_v11, %v12272_v28 }
 0x475   : > { %v4407_v2 = vsel %vm12176_vm5, %v11852_v62, %v4404_v14  ;;  %v12358_v57 = vand.u32 3, %v4620_v24  ;;  %v4639_v32 = vor.u32 8388608, %v4638_v6  ;;  %v4645_v17 = vand.u32 31, %v4643_v31 }
 0x476   : > { %v4606_v30 = vor.u32 4788187, %v4605_v41  ;;  %v4484_v52 = vadd.s32 536870912, %v4483_v13  ;;  %v4739_v49 = vshrl.u32 %v4738_v29, 23  ;;  %v12362_v0 = vand.u32 8388607, %v14748_v59 }
 0x477   : > { %14950 = vst [vmem:[#allocation30_spill] sm:$0xff] %v12358_v57  ;;  %v4609_v8 = vcvt.s32.f32 %v4602_v55  ;;  %v4644_v12 = vshrl.u32 %v4643_v31, 5  ;;  %v4646_v26 = vsub.s32 32, %v4645_v17  ;;  %v4648_v11 = vshll.u32 %v14783_v54, %v4645_v17 }
 0x478   : > { %v4607_v28 = vand.u32 2147483647, %v4606_v30  ;;  %v4485_v20 = vshrl.u32 %v4484_v52, 30  ;;  %v4651_v56 = vshll.u32 %v14787_v46, %v4645_v17  ;;  %v4654_v14 = vshll.u32 %v14788_v37, %v4645_v17 }
 0x479   : > { %v4649_v6 = vshrl.u32 %v14787_v46, %v4646_v26  ;;  %v4652_v19 = vshrl.u32 %v14788_v37, %v4646_v26  ;;  %v4655_v60 = vshrl.u32 %v14789_v38, %v4646_v26  ;;  %v4657_v24 = vshll.u32 %v14789_v38, %v4645_v17 }
 0x47a   : > { %v4610_v36 = vmul.f32 %v4609_v8, %v4607_v28  ;;  %v4486_v27 = vshll.u32 %v4485_v20, 30  ;;  %v4658_v39 = vshrl.u32 %v14790_v21, %v4646_v26  ;;  %v4660_v7 = vshll.u32 %v14790_v21, %v4645_v17 }
 0x47b   : > { %v4650_v47 = vor.u32 %v4649_v6, %v4648_v11  ;;  %v4653_v29 = vor.u32 %v4652_v19, %v4651_v56  ;;  %v4656_v42 = vor.u32 %v4655_v60, %v4654_v14  ;;  %v4661_v31 = vshrl.u32 %v14791_v22, %v4646_v26 }
 0x47c   : > { %v4611_v55 = vxor.u32 2147483648, %v4610_v36  ;;  %v12374_v41 = vsub.s32 %v4483_v13, %v4486_v27  ;;  %v4659_v30 = vor.u32 %v4658_v39, %v4657_v24  ;;  %v4679_v52 = vshll.u32 %v4639_v32, 8 }
 0x47d   : > { %v4662_v59 = vor.u32 %v4661_v31, %v4660_v7  ;;  %vm4666_vm0 = vcmp.lt.s32.totalorder %v4644_v12, 4  ;;  %v8452_v57 = vadd.s32 4294967169, %v4739_v49  ;;  %v4743_v8 = vor.u32 8388608, %v12362_v0 }
 0x47e   : > { %vm4425_vm5 = vcmp.lt.s32.totalorder %v12092_v58, 0  ;;  %v4489_v28 = vsub.s32 0, %v12374_v41  ;;  %v4647_v17 = vshrl.u32 %v14783_v54, %v4646_v26  ;;  %vm4663_vm13 = vcmp.lt.s32.totalorder %v4644_v12, 1 }
 0x47f   : > { %v4668_v11 = vsel %vm4666_vm0, %v4656_v42, 2102212464  ;;  %vm4664_vm12 = vcmp.lt.s32.totalorder %v4644_v12, 2  ;;  %vm4665_vm7 = vcmp.lt.s32.totalorder %v4644_v12, 3  ;;  %v4671_v13 = vsel %vm4663_vm13, %v4650_v47, %v4653_v29 }
 0x480   : > { %v4672_v56 = vsel %vm4666_vm0, %v4659_v30, 920167782  ;;  %v4612_v32 = vsel %vm4529_vm2, %v4611_v55, %v4610_v36  ;;  %v8441_v49 = vmin.u32 %v4489_v28, %v12374_v41  ;;  %v4667_v0 = vsel %vm4663_vm13, %v4647_v17, %v4650_v47 }
 0x481   : > { %v4673_v14 = vsel %vm4665_vm7, %v4656_v42, %v4672_v56  ;;  %v4669_v6 = vsel %vm4665_vm7, %v4653_v29, %v4668_v11  ;;  %v4675_v60 = vsel %vm4663_vm13, %v4653_v29, %v4656_v42  ;;  %v4676_v26 = vsel %vm4666_vm0, %v4662_v59, 1326507024 }
 0x482   : > { %v4674_v19 = vsel %vm4664_vm12, %v4671_v13, %v4673_v14  ;;  %v4491_v24 = vclz %v8441_v49  ;;  %v4677_v27 = vsel %vm4665_vm7, %v4659_v30, %v4676_v26  ;;  %9275 = vcosq.f32 %v4407_v2 }
 0x483   : > { %v12387_v39 = vmul.u32.u64.low %v4679_v52, %v4674_v19  ;;  %v12388_v7 = vmul.u32.u64.high %v4679_v52, %v4674_v19, %v12387_v39  ;;  %v4509_v31 = vsub.s32 4, %v4485_v20  ;;  %v4678_v36 = vsel %vm4664_vm12, %v4675_v60, %v4677_v27 }
 0x484   : > { %v4745_v55 = vadd.s32 1, %v8452_v57  ;;  %9277 = vsinq.f32 %v4407_v2  ;;  %v8442_v47 = vadd.s32 4294967294, %v4491_v24  ;;  %v12398_v59 = vsel %vm12297_vm3, %v12069_v43, %v4612_v32 }
 0x485   : > { %v12392_v28 = vmul.u32.u64.low %v4679_v52, %v4678_v36  ;;  %v12393_v17 = vmul.u32.u64.high %v4679_v52, %v4678_v36, %v12392_v28  ;;  %v4479_v29 = vadd.s32 %v12323_v45, %v12329_v15  ;;  %v4670_v42 = vsel %vm4664_vm12, %v4667_v0, %v4669_v6 }
 0x486   : > { %vm4746_vm2 = vcmp.gt.s32.totalorder %v4745_v55, 0  ;;  %vm8443_vm14 = vcmp.lt.s32.totalorder %v8442_v47, 0  ;;  %v4689_v30 = vadd.s32 1, %v12388_v7  ;;  %v12404_v2 = vshll.u32 %v4743_v8, 8 }
 0x487   : > { %v4747_v57 = vsel %vm4746_vm2, %v4745_v55, 0  ;;  %v4494_v11 = vsel %vm8443_vm14, 0, %v8442_v47  ;;  %v12408_v13 = vsel %vm4425_vm5, %v4509_v31, %v4485_v20  ;;  %9279 = vcosq.f32 %v12398_v59 }
 0x488   : > { %v4749_v51 = vand.u32 31, %v4747_v57  ;;  %v4495_v45 = vsub.s32 32, %v4494_v11  ;;  %v4499_v15 = vsub.s32 4294967266, %v4494_v11  ;;  %v4686_v12 = vmul.u32 %v4679_v52, %v4670_v42 }
 0x489   : > { %v4496_v32 = vshll.u32 %v12374_v41, %v4494_v11  ;;  %vm4688_vm3 = vc.u32 %v12393_v17, %v12387_v39  ;;  %v4946_v49 = vand.u32 2139095040, %v12345_v53  ;;  %v4748_v47 = vshrl.u32 %v4747_v57, 5 }
 0x48a   : > { %v4750_v8 = vsub.s32 32, %v4749_v51  ;;  %v4497_v0 = vshrl.u32 %v4479_v29, %v4495_v45  ;;  %v4500_v14 = vadd.s32 127, %v4499_v15  ;;  %v4690_v20 = vsel %vm4688_vm3, %v4689_v30, %v12388_v7 }
 0x48b   : > { %v4752_v6 = vshll.u32 %v14783_v54, %v4749_v51  ;;  %v4691_v19 = vadd.s32 %v4690_v20, %v4686_v12  ;;  %v4755_v26 = vshll.u32 %v14787_v46, %v4749_v51  ;;  %v4758_v27 = vshll.u32 %v14788_v37, %v4749_v51 }
 0x48c   : > { %v4753_v60 = vshrl.u32 %v14787_v46, %v4750_v8  ;;  %v4756_v52 = vshrl.u32 %v14788_v37, %v4750_v8  ;;  %v4498_v41 = vor.u32 %v4497_v0, %v4496_v32  ;;  %v4501_v24 = vshll.u32 %v4500_v14, 23  ;;  %v12423_v36 = vpop.eup %9275 }
 0x48d   : > { %v4759_v31 = vshrl.u32 %v14789_v38, %v4750_v8  ;;  %14951 = vst [vmem:[#allocation31_spill] sm:$0xff] %v12423_v36  ;;  %v4692_v55 = vadd.s32 536870912, %v4691_v19  ;;  %v4761_v7 = vshll.u32 %v14789_v38, %v4749_v51  ;;  %v4762_v28 = vshrl.u32 %v14790_v21, %v4750_v8 }
 0x48e   : > { %v12427_v29 = vpop.eup %9277  ;;  %v4502_v42 = vor.u32 4788187, %v4501_v24  ;;  %v4754_v30 = vor.u32 %v4753_v60, %v4752_v6  ;;  %v4757_v11 = vor.u32 %v4756_v52, %v4755_v26  ;;  %v4764_v32 = vshll.u32 %v14790_v21, %v4749_v51 }
 0x48f   : > { %14952 = vst [vmem:[#allocation32_spill] sm:$0xff] %v12427_v29  ;;  %v4760_v45 = vor.u32 %v4759_v31, %v4758_v27  ;;  %v4693_v15 = vshrl.u32 %v4692_v55, 30  ;;  %v4763_v12 = vor.u32 %v4762_v28, %v4761_v7  ;;  %v4765_v0 = vshrl.u32 %v14791_v22, %v4750_v8 }
 0x490   : > { %v4503_v14 = vand.u32 2147483647, %v4502_v42  ;;  %v4505_v20 = vcvt.s32.f32 %v4498_v41  ;;  %v4947_v56 = vshrl.u32 %v4946_v49, 23  ;;  %v14953_v57 = vand.u32 2147483647, %v12345_v53 }
 0x491   : > { %v14954_v36 = vand.u32 2147483647, %v12092_v58  ;;  %v4694_v6 = vshll.u32 %v4693_v15, 30  ;;  %v4766_v60 = vor.u32 %v4765_v0, %v4764_v32  ;;  %vm4767_vm6 = vcmp.lt.s32.totalorder %v4748_v47, 1  ;;  %v12439_v26 = vpop.eup %9279 }
 0x492   : > { %v4950_v43 = vand.u32 8388607, %v14953_v57  ;;  %vm4770_vm4 = vcmp.lt.s32.totalorder %v4748_v47, 4  ;;  %14957 = vst [vmem:[#allocation33_spill] sm:$0xff] %v12439_v26  ;;  %v4506_v51 = vmul.f32 %v4505_v20, %v4503_v14  ;;  %vm4769_vm0 = vcmp.lt.s32.totalorder %v4748_v47, 3 }
 0x493   : > { %vm12435_vm11 = vcmp.le.f32.partialorder %v14954_v36, 0.7853982  ;;  %v4775_v52 = vsel %vm4767_vm6, %v4754_v30, %v4757_v11  ;;  %v4776_v49 = vsel %vm4770_vm4, %v4763_v12, 920167782  ;;  %vm4633_vm13 = vcmp.lt.s32.totalorder %v12261_v61, 0 }
 0x494   : > { %v12444_v41 = vsub.s32 %v4691_v19, %v4694_v6  ;;  %vm4768_vm12 = vcmp.lt.s32.totalorder %v4748_v47, 2  ;;  %v4772_v24 = vsel %vm4770_vm4, %v4760_v45, 2102212464  ;;  %v4777_v27 = vsel %vm4769_vm0, %v4760_v45, %v4776_v49 }
 0x495   : > { %v4507_v31 = vxor.u32 2147483648, %v4506_v51  ;;  %v4751_v36 = vshrl.u32 %v14783_v54, %v4750_v8  ;;  %v4778_v55 = vsel %vm4768_vm12, %v4775_v52, %v4777_v27  ;;  %v4779_v7 = vsel %vm4767_vm6, %v4757_v11, %v4760_v45 }
 0x496   : > { %v4697_v28 = vsub.s32 0, %v12444_v41  ;;  %v4780_v42 = vsel %vm4770_vm4, %v4766_v60, 1326507024  ;;  %v12454_v32 = vmul.u32.u64.low %v12404_v2, %v4778_v55  ;;  %v12455_v19 = vmul.u32.u64.high %v12404_v2, %v4778_v55, %v12454_v32 }
 0x497   : > { %v4771_v0 = vsel %vm4767_vm6, %v4751_v36, %v4754_v30  ;;  %v4773_v14 = vsel %vm4769_vm0, %v4757_v11, %v4772_v24  ;;  %v4781_v20 = vsel %vm4769_vm0, %v4763_v12, %v4780_v42  ;;  %v8460_v8 = vadd.s32 4294967169, %v4947_v56 }
 0x498   : > { %v4508_v57 = vsel %vm4425_vm5, %v4507_v31, %v4506_v51  ;;  %v8449_v45 = vmin.u32 %v4697_v28, %v12444_v41  ;;  %v4782_v6 = vsel %vm4768_vm12, %v4779_v7, %v4781_v20  ;;  %v14754_v60 = vand.u32 2147483647, %v12349_v35 }
 0x499   : > { %v4717_v52 = vsub.s32 4, %v4693_v15  ;;  %v12467_v49 = vmul.u32.u64.low %v12404_v2, %v4782_v6  ;;  %v12468_v27 = vmul.u32.u64.high %v12404_v2, %v4782_v6, %v12467_v49  ;;  %v4953_v30 = vadd.s32 1, %v8460_v8 }
 0x49a   : > { %v4699_v36 = vclz %v8449_v45  ;;  %v4774_v11 = vsel %vm4768_vm12, %v4771_v0, %v4773_v14  ;;  %v4793_v56 = vadd.s32 1, %v12455_v19  ;;  %v4951_v12 = vor.u32 8388608, %v4950_v43 }
 0x49b   : > { %9281 = vsinq.f32 %v12398_v59  ;;  %v12476_v51 = vsel %vm12435_vm11, %v12092_v58, %v4508_v57  ;;  %v4687_v24 = vadd.s32 %v12387_v39, %v12393_v17  ;;  %vm4954_vm5 = vcmp.gt.s32.totalorder %v4953_v30, 0 }
 0x49c   : > { %v8450_v31 = vadd.s32 4294967294, %v4699_v36  ;;  %v4955_v55 = vsel %vm4954_vm5, %v4953_v30, 0  ;;  %v4842_v7 = vand.u32 2139095040, %v12349_v35  ;;  %v12483_v47 = vand.u32 8388607, %v14754_v60 }
 0x49d   : > { %v12487_v43 = vsel %vm4633_vm13, %v4717_v52, %v4693_v15  ;;  %v4790_v59 = vmul.u32 %v12404_v2, %v4774_v11  ;;  %vm4792_vm7 = vc.u32 %v12468_v27, %v12454_v32  ;;  %v4957_v28 = vand.u32 31, %v4955_v55 }
 0x49e   : > { %14958 = vst [vmem:[#allocation34_spill] sm:$0xff] %v12487_v43  ;;  %9283 = vcosq.f32 %v12476_v51  ;;  %vm8451_vm2 = vcmp.lt.s32.totalorder %v8450_v31, 0  ;;  %vm4737_vm14 = vcmp.lt.s32.totalorder %v12279_v10, 0  ;;  %v4794_v39 = vsel %vm4792_vm7, %v4793_v56, %v12455_v19 }
 0x49f   : > { %v12495_v17 = vshll.u32 %v4951_v12, 8  ;;  %v4702_v42 = vsel %vm8451_vm2, 0, %v8450_v31  ;;  %v4795_v0 = vadd.s32 %v4794_v39, %v4790_v59  ;;  %v12497_v14 = vshrl.u32 %v4955_v55, 5 }
 0x4a0   : > { %v4958_v15 = vsub.s32 32, %v4957_v28  ;;  %v4703_v20 = vsub.s32 32, %v4702_v42  ;;  %v4707_v2 = vsub.s32 4294967266, %v4702_v42  ;;  %v14959_v8 = vand.u32 2147483647, %v12279_v10 }
 0x4a1   : > { %v4843_v45 = vshrl.u32 %v4842_v7, 23  ;;  %v4704_v19 = vshll.u32 %v12444_v41, %v4702_v42  ;;  %v4796_v52 = vadd.s32 536870912, %v4795_v0  ;;  %v4960_v49 = vshll.u32 %v14783_v54, %v4957_v28 }
 0x4a2   : > { %vm12501_vm3 = vcmp.le.f32.partialorder %v14959_v8, 0.7853982  ;;  %v4961_v30 = vshrl.u32 %v14787_v46, %v4958_v15  ;;  %v4705_v36 = vshrl.u32 %v4687_v24, %v4703_v20  ;;  %v4708_v11 = vadd.s32 127, %v4707_v2 }
 0x4a3   : > { %v4964_v56 = vshrl.u32 %v14788_v37, %v4958_v15  ;;  %v4967_v12 = vshrl.u32 %v14789_v38, %v4958_v15  ;;  %v4797_v31 = vshrl.u32 %v4796_v52, 30  ;;  %v4963_v59 = vshll.u32 %v14787_v46, %v4957_v28 }
 0x4a4   : > { %v4962_v55 = vor.u32 %v4961_v30, %v4960_v49  ;;  %v4966_v7 = vshll.u32 %v14788_v37, %v4957_v28  ;;  %v4706_v39 = vor.u32 %v4705_v36, %v4704_v19  ;;  %v4709_v8 = vshll.u32 %v4708_v11, 23 }
 0x4a5   : > { %v4969_v41 = vshll.u32 %v14789_v38, %v4957_v28  ;;  %v4970_v42 = vshrl.u32 %v14790_v21, %v4958_v15  ;;  %v12515_v60 = vpop.eup %9281  ;;  %v4798_v24 = vshll.u32 %v4797_v31, 30  ;;  %v4821_v20 = vsub.s32 4, %v4797_v31 }
 0x4a6   : > { %14962 = vst [vmem:[#allocation35_spill] sm:$0xff] %v12515_v60  ;;  %v4968_v2 = vor.u32 %v4967_v12, %v4966_v7  ;;  %v4973_v6 = vshrl.u32 %v14791_v22, %v4958_v15  ;;  %v4710_v26 = vor.u32 4788187, %v4709_v8  ;;  %v4965_v52 = vor.u32 %v4964_v56, %v4963_v59 }
 0x4a7   : > { %v4971_v49 = vor.u32 %v4970_v42, %v4969_v41  ;;  %v4972_v30 = vshll.u32 %v14790_v21, %v4957_v28  ;;  %v14963_v62 = vand.u32 2147483647, %v12261_v61  ;;  %v14964_v19 = vmov 0 }
 0x4a8   : > { %v4713_v36 = vcvt.s32.f32 %v4706_v39  ;;  %v12525_v11 = vsub.s32 %v4795_v0, %v4798_v24  ;;  %v4822_v60 = vsel %vm4737_vm14, %v4821_v20, %v4797_v31  ;;  %v4959_v12 = vshrl.u32 %v14783_v54, %v4958_v15  ;;  %v12530_v7 = vpop.eup %9283 }
 0x4a9   : > { %vm12521_vm6 = vcmp.le.f32.partialorder %v14963_v62, 0.7853982  ;;  %14967 = vst [vmem:[#allocation37_spill] sm:$0xff] %v12530_v7  ;;  %v4711_v56 = vand.u32 2147483647, %v4710_v26  ;;  %v4974_v59 = vor.u32 %v4973_v6, %v4972_v30  ;;  %vm4975_vm4 = vcmp.lt.s32.totalorder %v12497_v14, 1 }
 0x4aa   : > { %v14965_v19 = vsel %vm12521_vm6, 4294967295, %v14964_v19  ;;  %vm4978_vm0 = vcmp.lt.s32.totalorder %v12497_v14, 4  ;;  %v4801_v62 = vsub.s32 0, %v12525_v11  ;;  %v4824_v28 = vsel %vm12501_vm3, 0, %v4822_v60 }
 0x4ab   : > { %14966 = vst [vmem:[#allocation36_spill] sm:$0xff] %v14965_v19  ;;  %vm4976_vm12 = vcmp.lt.s32.totalorder %v12497_v14, 2  ;;  %v4980_v0 = vsel %vm4978_vm0, %v4968_v2, 2102212464  ;;  %v4714_v31 = vmul.f32 %v4713_v36, %v4711_v56  ;;  %vm4977_vm5 = vcmp.lt.s32.totalorder %v12497_v14, 3 }
 0x4ac   : > { %v4983_v26 = vsel %vm4975_vm4, %v4962_v55, %v4965_v52  ;;  %v4984_v15 = vsel %vm4978_vm0, %v4971_v49, 920167782  ;;  %v8453_v6 = vmin.u32 %v4801_v62, %v12525_v11  ;;  %v4979_v39 = vsel %vm4975_vm4, %v4959_v12, %v4962_v55 }
 0x4ad   : > { %v4981_v60 = vsel %vm4977_vm5, %v4965_v52, %v4980_v0  ;;  %v4985_v8 = vsel %vm4977_vm5, %v4968_v2, %v4984_v15  ;;  %v4715_v41 = vxor.u32 2147483648, %v4714_v31  ;;  %v4987_v24 = vsel %vm4975_vm4, %v4965_v52, %v4968_v2 }
 0x4ae   : > { %v4986_v42 = vsel %vm4976_vm12, %v4983_v26, %v4985_v8  ;;  %v4988_v20 = vsel %vm4978_vm0, %v4974_v59, 1326507024  ;;  %v4803_v30 = vclz %v8453_v6  ;;  %v4828_v12 = vadd.s32 3, %v4824_v28 }
 0x4af   : > { %v4989_v36 = vsel %vm4977_vm5, %v4971_v49, %v4988_v20  ;;  %v12555_v56 = vmul.u32.u64.low %v12495_v17, %v4986_v42  ;;  %v12556_v62 = vmul.u32.u64.high %v12495_v17, %v4986_v42, %v12555_v56  ;;  %v4716_v55 = vsel %vm4633_vm13, %v4715_v41, %v4714_v31 }
 0x4b0   : > { %v4990_v0 = vsel %vm4976_vm12, %v4987_v24, %v4989_v36  ;;  %v8456_v26 = vadd.s32 4294967169, %v4843_v45  ;;  %v8454_v15 = vadd.s32 4294967294, %v4803_v30  ;;  %v4982_v2 = vsel %vm4976_vm12, %v4979_v39, %v4981_v60 }
 0x4b1   : > { %v12565_v52 = vmul.u32.u64.low %v12495_v17, %v4990_v0  ;;  %v12566_v59 = vmul.u32.u64.high %v12495_v17, %v4990_v0, %v12565_v52  ;;  %9285 = vsinq.f32 %v12476_v51  ;;  %v4719_v49 = vsel %vm12521_vm6, %v12261_v61, %v4716_v55 }
 0x4b2   : > { %v4849_v31 = vadd.s32 1, %v8456_v26  ;;  %v14759_v28 = vand.u32 2147483647, %v12353_v63  ;;  %v4791_v45 = vadd.s32 %v12454_v32, %v12468_v27  ;;  %vm8455_vm13 = vcmp.lt.s32.totalorder %v8454_v15, 0 }
 0x4b3   : > { %v5001_v14 = vadd.s32 1, %v12556_v62  ;;  %v5050_v6 = vand.u32 2139095040, %v12353_v63  ;;  %v4806_v39 = vsel %vm8455_vm13, 0, %v8454_v15  ;;  %v12577_v60 = vand.u32 3, %v4828_v12 }
 0x4b4   : > { %v4998_v51 = vmul.u32 %v12495_v17, %v4982_v2  ;;  %vm4850_vm7 = vcmp.gt.s32.totalorder %v4849_v31, 0  ;;  %9287 = vcosq.f32 %v4719_v49  ;;  %v4807_v8 = vsub.s32 32, %v4806_v39 }
 0x4b5   : > { %14968 = vst [vmem:[#allocation38_spill] sm:$0xff] %v12577_v60  ;;  %v4811_v41 = vsub.s32 4294967266, %v4806_v39  ;;  %v14969_v42 = vor.u32 8388608, %v12483_v47  ;;  %9289 = vsinq.f32 %v4719_v49  ;;  %vm5000_vm2 = vc.u32 %v12566_v59, %v12555_v56 }
 0x4b6   : > { %v4851_v32 = vsel %vm4850_vm7, %v4849_v31, 0  ;;  %v5051_v27 = vshrl.u32 %v5050_v6, 23  ;;  %v4808_v20 = vshll.u32 %v12525_v11, %v4806_v39  ;;  %v4809_v30 = vshrl.u32 %v4791_v45, %v4807_v8 }
 0x4b7   : > { %v12582_v24 = vshll.u32 %v14969_v42, 8  ;;  %v4812_v36 = vadd.s32 127, %v4811_v41  ;;  %vm4945_vm4 = vcmp.lt.s32.totalorder %v12345_v53, 0  ;;  %v5002_v17 = vsel %vm5000_vm2, %v5001_v14, %v12556_v62 }
 0x4b8   : > { %v5003_v55 = vadd.s32 %v5002_v17, %v4998_v51  ;;  %v4853_v12 = vand.u32 31, %v4851_v32  ;;  %v12590_v47 = vand.u32 8388607, %v14759_v28  ;;  %v4810_v26 = vor.u32 %v4809_v30, %v4808_v20 }
 0x4b9   : > { %v4813_v15 = vshll.u32 %v4812_v36, 23  ;;  %v14970_v11 = vand.u32 2147483647, %v12345_v53  ;;  %v12602_v62 = vadd.s32 %v12555_v56, %v12566_v59  ;;  %v4852_v52 = vshrl.u32 %v4851_v32, 5 }
 0x4ba   : > { %v5004_v49 = vadd.s32 536870912, %v5003_v55  ;;  %v4854_v31 = vsub.s32 32, %v4853_v12  ;;  %v4856_v45 = vshll.u32 %v14783_v54, %v4853_v12  ;;  %v8464_v14 = vadd.s32 4294967169, %v5051_v27 }
 0x4bb   : > { %vm12597_vm0 = vcmp.le.f32.partialorder %v14970_v11, 0.7853982  ;;  %v4814_v6 = vor.u32 4788187, %v4813_v15  ;;  %v4817_v39 = vcvt.s32.f32 %v4810_v26  ;;  %v4859_v51 = vshll.u32 %v14787_v46, %v4853_v12  ;;  %v12607_v41 = vpop.eup %9285 }
 0x4bc   : > { %v4862_v8 = vshll.u32 %v14788_v37, %v4853_v12  ;;  %v5005_v42 = vshrl.u32 %v5004_v49, 30  ;;  %v4857_v20 = vshrl.u32 %v14787_v46, %v4854_v31  ;;  %v4860_v56 = vshrl.u32 %v14788_v37, %v4854_v31 }
 0x4bd   : > { %v4865_v59 = vshll.u32 %v14789_v38, %v4853_v12  ;;  %v4815_v32 = vand.u32 2147483647, %v4814_v6  ;;  %v4863_v30 = vshrl.u32 %v14789_v38, %v4854_v31  ;;  %v4866_v27 = vshrl.u32 %v14790_v21, %v4854_v31 }
 0x4be   : > { %v4868_v36 = vshll.u32 %v14790_v21, %v4853_v12  ;;  %v5006_v17 = vshll.u32 %v5005_v42, 30  ;;  %v5029_v26 = vsub.s32 4, %v5005_v42  ;;  %v4858_v15 = vor.u32 %v4857_v20, %v4856_v45  ;;  %v12615_v28 = vpop.eup %9287 }
 0x4bf   : > { %v4861_v11 = vor.u32 %v4860_v56, %v4859_v51  ;;  %v4818_v49 = vmul.f32 %v4817_v39, %v4815_v32  ;;  %v4864_v0 = vor.u32 %v4863_v30, %v4862_v8  ;;  %v4867_v60 = vor.u32 %v4866_v27, %v4865_v59  ;;  %v12618_v19 = vpop.eup %9289 }
 0x4c0   : > { %v4869_v61 = vshrl.u32 %v14791_v22, %v4854_v31  ;;  %v12620_v6 = vsub.s32 %v5003_v55, %v5006_v17  ;;  %v5030_v43 = vsel %vm4945_vm4, %v5029_v26, %v5005_v42  ;;  %v4855_v12 = vshrl.u32 %v14783_v54, %v4854_v31 }
 0x4c1   : > { %vm4871_vm12 = vcmp.lt.s32.totalorder %v4852_v52, 1  ;;  %v4819_v7 = vxor.u32 2147483648, %v4818_v49  ;;  %vm4873_vm5 = vcmp.lt.s32.totalorder %v4852_v52, 3  ;;  %vm4874_vm13 = vcmp.lt.s32.totalorder %v4852_v52, 4 }
 0x4c2   : > { %v4870_v45 = vor.u32 %v4869_v61, %v4868_v36  ;;  %v5009_v39 = vsub.s32 0, %v12620_v6  ;;  %v5032_v51 = vsel %vm12597_vm0, 0, %v5030_v43  ;;  %v4875_v8 = vsel %vm4871_vm12, %v4855_v12, %v4858_v15 }
 0x4c3   : > { %v4876_v20 = vsel %vm4874_vm13, %v4864_v0, 2102212464  ;;  %v4820_v55 = vsel %vm4737_vm14, %v4819_v7, %v4818_v49  ;;  %v4879_v56 = vsel %vm4871_vm12, %v4858_v15, %v4861_v11  ;;  %v4880_v31 = vsel %vm4874_vm13, %v4867_v60, 920167782 }
 0x4c4   : > { %v4877_v42 = vsel %vm4873_vm5, %v4861_v11, %v4876_v20  ;;  %v8461_v61 = vmin.u32 %v5009_v39, %v12620_v6  ;;  %vm4872_vm7 = vcmp.lt.s32.totalorder %v4852_v52, 2  ;;  %v4883_v59 = vsel %vm4871_vm12, %v4861_v11, %v4864_v0 }
 0x4c5   : > { %v5055_v32 = vor.u32 8388608, %v12590_v47  ;;  %v4823_v43 = vsel %vm12501_vm3, %v12279_v10, %v4820_v55  ;;  %v5036_v30 = vadd.s32 3, %v5032_v51  ;;  %v4881_v27 = vsel %vm4873_vm5, %v4864_v0, %v4880_v31 }
 0x4c6   : > { %v4884_v7 = vsel %vm4874_vm13, %v4870_v45, 1326507024  ;;  %v5011_v36 = vclz %v8461_v61  ;;  %v4878_v17 = vsel %vm4872_vm7, %v4875_v8, %v4877_v42  ;;  %v4882_v26 = vsel %vm4872_vm7, %v4879_v56, %v4881_v27 }
 0x4c7   : > { %v4885_v15 = vsel %vm4873_vm5, %v4867_v60, %v4884_v7  ;;  %v12642_v12 = vmul.u32.u64.low %v12582_v24, %v4882_v26  ;;  %v12643_v11 = vmul.u32.u64.high %v12582_v24, %v4882_v26, %v12642_v12  ;;  %v5057_v47 = vadd.s32 1, %v8464_v14 }
 0x4c8   : > { %v4886_v49 = vsel %vm4872_vm7, %v4883_v59, %v4885_v15  ;;  %v8462_v39 = vadd.s32 4294967294, %v5011_v36  ;;  %v12650_v0 = vshll.u32 %v5055_v32, 8  ;;  %9291 = vcosq.f32 %v4823_v43 }
 0x4c9   : > { %v12647_v57 = vmul.u32.u64.low %v12582_v24, %v4886_v49  ;;  %v12648_v51 = vmul.u32.u64.high %v12582_v24, %v4886_v49, %v12647_v57  ;;  %v12652_v45 = vand.u32 3, %v5036_v30  ;;  %v4894_v52 = vmul.u32 %v12582_v24, %v4878_v17 }
 0x4ca   : > { %vm5058_vm14 = vcmp.gt.s32.totalorder %v5057_v47, 0  ;;  %9293 = vsinq.f32 %v4823_v43  ;;  %vm8463_vm3 = vcmp.lt.s32.totalorder %v8462_v39, 0  ;;  %v14973_v14 = vsel %vm11830_vm9, 0, %v11842_v4 }
 0x4cb   : > { %v5059_v60 = vsel %vm5058_vm14, %v5057_v47, 0  ;;  %v12659_v8 = vadd.s32 3, %v14973_v14  ;;  %v5014_v20 = vsel %vm8463_vm3, 0, %v8462_v39  ;;  %v4897_v55 = vadd.s32 1, %v12643_v11 }
 0x4cc   : > { %v5061_v42 = vand.u32 31, %v5059_v60  ;;  %v3688_v56 = vxor.u32 2147483648, %v12022_v34  ;;  %v5015_v31 = vsub.s32 32, %v5014_v20  ;;  %v5019_v61 = vsub.s32 4294967266, %v5014_v20 }
 0x4cd   : > { %v12663_v59 = vshrl.u32 %v5059_v60, 5  ;;  %v4096_v24 = vsel %vm12155_vm10, 0, %v12245_v40  ;;  %v5016_v33 = vshll.u32 %v12620_v6, %v5014_v20  ;;  %vm4896_vm9 = vc.u32 %v12648_v51, %v12642_v12 }
 0x4ce   : > { %v5062_v4 = vsub.s32 32, %v5061_v42  ;;  %v5064_v32 = vshll.u32 %v14783_v54, %v5061_v42  ;;  %v5017_v43 = vshrl.u32 %v12602_v62, %v5015_v31  ;;  %v5020_v30 = vadd.s32 127, %v5019_v61 }
 0x4cf   : > { %v4898_v27 = vsel %vm4896_vm9, %v4897_v55, %v12643_v11  ;;  %v5067_v7 = vshll.u32 %v14787_v46, %v5061_v42  ;;  %v5070_v6 = vshll.u32 %v14788_v37, %v5061_v42  ;;  %v5073_v60 = vshll.u32 %v14789_v38, %v5061_v42 }
 0x4d0   : > { %v4899_v36 = vadd.s32 %v4898_v27, %v4894_v52  ;;  %v5065_v17 = vshrl.u32 %v14787_v46, %v5062_v4  ;;  %v5068_v26 = vshrl.u32 %v14788_v37, %v5062_v4  ;;  %v5018_v15 = vor.u32 %v5017_v43, %v5016_v33 }
 0x4d1   : > { %v5021_v49 = vshll.u32 %v5020_v30, 23  ;;  %v5063_v47 = vshrl.u32 %v14783_v54, %v5062_v4  ;;  %v5071_v39 = vshrl.u32 %v14789_v38, %v5062_v4  ;;  %v5074_v11 = vshrl.u32 %v14790_v21, %v5062_v4 }
 0x4d2   : > { %v4900_v57 = vadd.s32 536870912, %v4899_v36  ;;  %v5066_v62 = vor.u32 %v5065_v17, %v5064_v32  ;;  %v5025_v52 = vcvt.s32.f32 %v5018_v15  ;;  %v5069_v20 = vor.u32 %v5068_v26, %v5067_v7  ;;  %v12682_v31 = vpop.eup %9291 }
 0x4d3   : > { %v5022_v14 = vor.u32 4788187, %v5021_v49  ;;  %v5072_v55 = vor.u32 %v5071_v39, %v5070_v6  ;;  %vm4841_vm2 = vcmp.lt.s32.totalorder %v12349_v35, 0  ;;  %v5075_v33 = vor.u32 %v5074_v11, %v5073_v60 }
 0x4d4   : > { %v4901_v61 = vshrl.u32 %v4900_v57, 30  ;;  %v5076_v43 = vshll.u32 %v14790_v21, %v5061_v42  ;;  %v5077_v30 = vshrl.u32 %v14791_v22, %v5062_v4  ;;  %v12687_v27 = vpop.eup %9293  ;;  %vm5079_vm12 = vcmp.lt.s32.totalorder %v12663_v59, 1 }
 0x4d5   : > { %v5023_v32 = vand.u32 2147483647, %v5022_v14  ;;  %vm5080_vm5 = vcmp.lt.s32.totalorder %v12663_v59, 2  ;;  %vm5081_vm13 = vcmp.lt.s32.totalorder %v12663_v59, 3  ;;  %vm5082_vm7 = vcmp.lt.s32.totalorder %v12663_v59, 4 }
 0x4d6   : > { %v4902_v7 = vshll.u32 %v4901_v61, 30  ;;  %v5078_v17 = vor.u32 %v5077_v30, %v5076_v43  ;;  %v5083_v26 = vsel %vm5079_vm12, %v5063_v47, %v5066_v62  ;;  %v5084_v42 = vsel %vm5082_vm7, %v5072_v55, 2102212464 }
 0x4d7   : > { %v5026_v6 = vmul.f32 %v5025_v52, %v5023_v32  ;;  %v5087_v4 = vsel %vm5079_vm12, %v5066_v62, %v5069_v20  ;;  %v5088_v15 = vsel %vm5082_vm7, %v5075_v33, 920167782  ;;  %v4925_v39 = vsub.s32 4, %v4901_v61 }
 0x4d8   : > { %v12701_v49 = vsub.s32 %v4899_v36, %v4902_v7  ;;  %v5085_v57 = vsel %vm5081_vm13, %v5069_v20, %v5084_v42  ;;  %v5089_v60 = vsel %vm5081_vm13, %v5072_v55, %v5088_v15  ;;  %v5091_v62 = vsel %vm5079_vm12, %v5069_v20, %v5072_v55 }
 0x4d9   : > { %v5027_v47 = vxor.u32 2147483648, %v5026_v6  ;;  %v5086_v11 = vsel %vm5080_vm5, %v5083_v26, %v5085_v57  ;;  %v5090_v14 = vsel %vm5080_vm5, %v5087_v4, %v5089_v60  ;;  %vm3683_vm14 = vweird.f32 %v11477_v9 }
 0x4da   : > { %v4905_v36 = vsub.s32 0, %v12701_v49  ;;  %v5092_v52 = vsel %vm5082_vm7, %v5078_v17, 1326507024  ;;  %v12718_v43 = vmul.u32.u64.low %v12650_v0, %v5090_v14  ;;  %v12719_v30 = vmul.u32.u64.high %v12650_v0, %v5090_v14, %v12718_v43 }
 0x4db   : > { %v5028_v32 = vsel %vm4945_vm4, %v5027_v47, %v5026_v6  ;;  %v5093_v7 = vsel %vm5081_vm13, %v5075_v33, %v5092_v52  ;;  %v3685_v26 = vand.u32 3, %v12659_v8  ;;  %v3691_v20 = vxor.u32 2147483648, %v11948_v3 }
 0x4dc   : > { %v4895_v55 = vadd.s32 %v12642_v12, %v12648_v51  ;;  %v8457_v42 = vmin.u32 %v4905_v36, %v12701_v49  ;;  %v5094_v17 = vsel %vm5080_vm5, %v5091_v62, %v5093_v7  ;;  %v4100_v6 = vadd.s32 3, %v4096_v24 }
 0x4dd   : > { %v12738_v33 = vsel %vm4841_vm2, %v4925_v39, %v4901_v61  ;;  %v12741_v8 = vmul.u32.u64.low %v12650_v0, %v5094_v17  ;;  %v12742_v4 = vmul.u32.u64.high %v12650_v0, %v5094_v17, %v12741_v8  ;;  %v5102_v12 = vmul.u32 %v12650_v0, %v5086_v11 }
 0x4de   : > { %vm4099_vm4 = vweird.f32 %v11814_v48  ;;  %v5031_v51 = vsel %vm12597_vm0, %v12345_v53, %v5028_v32  ;;  %v4907_v44 = vclz %v8457_v42  ;;  %v5105_v40 = vadd.s32 1, %v12719_v30 }
 0x4df   : > { %vm3687_vm10 = vcmp.eq.s32.totalorder %v3685_v26, 0  ;;  %vm3690_vm3 = vcmp.eq.s32.totalorder %v3685_v26, 2  ;;  %v4101_v24 = vand.u32 3, %v4100_v6  ;;  %v4104_v61 = vxor.u32 2147483648, %v12289_v1 }
 0x4e0   : > { %v3689_v59 = vsel %vm3687_vm10, %v11948_v3, %v3688_v56  ;;  %v8458_v15 = vadd.s32 4294967294, %v4907_v44  ;;  %vm3686_vm9 = vcmp.lt.s32.totalorder %v3685_v26, 2  ;;  %v3692_v0 = vsel %vm3690_vm3, %v3691_v20, %v12022_v34 }
 0x4e1   : > { %v4107_v39 = vxor.u32 2147483648, %v12283_v16  ;;  %9295 = vcosq.f32 %v5031_v51  ;;  %vm5104_vm0 = vc.u32 %v12742_v4, %v12718_v43  ;;  %v3693_v2 = vsel %vm3686_vm9, %v3689_v59, %v3692_v0 }
 0x4e2   : > { %v3888_v57 = vsel %vm11957_vm8, 0, %v11860_v5  ;;  %vm8459_vm12 = vcmp.lt.s32.totalorder %v8458_v15, 0  ;;  %v5106_v3 = vsel %vm5104_vm0, %v5105_v40, %v12719_v30  ;;  %v3694_v56 = vsel %vm3683_vm14, nan, %v3693_v2  ;;  %v14987_v2 = vld [vmem:[#allocation22_spill] sm:$0xff] }
 0x4e3   : > { %vm4103_vm5 = vcmp.eq.s32.totalorder %v4101_v24, 0  ;;  %v4910_v60 = vsel %vm8459_vm12, 0, %v8458_v15  ;;  %v5107_v47 = vadd.s32 %v5106_v3, %v5102_v12  ;;  %vm4106_vm13 = vcmp.eq.s32.totalorder %v4101_v24, 2  ;;  %v14974_v12 = vld [vmem:[#allocation7_spill] sm:$0xff] }
 0x4e4   : > { %v4105_v34 = vsel %vm4103_vm5, %v12283_v16, %v4104_v61  ;;  %v4911_v11 = vsub.s32 32, %v4910_v60  ;;  %v4915_v14 = vsub.s32 4294967266, %v4910_v60  ;;  %vm4102_vm7 = vcmp.lt.s32.totalorder %v4101_v24, 2 }
 0x4e5   : > { %v4108_v62 = vsel %vm4106_vm13, %v4107_v39, %v12289_v1  ;;  %v4912_v18 = vshll.u32 %v12701_v49, %v4910_v60  ;;  %v5108_v5 = vadd.s32 536870912, %v5107_v47  ;;  %v5193_v52 = vand.u32 4294901760, %v3694_v56  ;;  %v14978_v39 = vld [vmem:[#allocation27_spill] sm:$0xff] }
 0x4e6   : > { %v4109_v36 = vsel %vm4102_vm7, %v4105_v34, %v4108_v62  ;;  %v4913_v30 = vshrl.u32 %v4895_v55, %v4911_v11  ;;  %v4916_v32 = vadd.s32 127, %v4915_v14  ;;  %vm5049_vm8 = vcmp.lt.s32.totalorder %v12353_v63, 0  ;;  %v14980_v14 = vld [vmem:[#allocation29_spill] sm:$0xff] }
 0x4e7   : > { %v4110_v9 = vsel %vm4099_vm4, nan, %v4109_v36  ;;  %v3892_v7 = vadd.s32 3, %v3888_v57  ;;  %9297 = vsinq.f32 %v5031_v51  ;;  %v5109_v16 = vshrl.u32 %v5108_v5, 30  ;;  %v14981_v5 = vld [vmem:[#allocation13_spill] sm:$0xff] }
 0x4e8   : > { %v5197_v26 = vand.u32 4294901760, %v4110_v9  ;;  %v3896_v20 = vxor.u32 2147483648, %v12108_v50  ;;  %v4914_v42 = vor.u32 %v4913_v30, %v4912_v18  ;;  %v4917_v1 = vshll.u32 %v4916_v32, 23  ;;  %v14982_v32 = vld [vmem:[#allocation8_spill] sm:$0xff] }
 0x4e9   : > { %v3893_v17 = vand.u32 3, %v3892_v7  ;;  %v3899_v49 = vxor.u32 2147483648, %v12104_v25  ;;  %v12772_v6 = vadd.s32 %v12718_v43, %v12742_v4  ;;  %v5110_v55 = vshll.u32 %v5109_v16, 30  ;;  %v14984_v7 = vld [vmem:[#allocation6_spill] sm:$0xff] }
 0x4ea   : > { %v12774_v8 = vpack.c.bf16 %v5197_v26, %v5193_v52  ;;  %vm3891_vm14 = vweird.f32 %v14974_v12  ;;  %v14975_v48 = vand.u32 2147483647, %v12349_v35  ;;  %v4918_v44 = vor.u32 4788187, %v4917_v1 }
 0x4eb   : > { %v5133_v40 = vsub.s32 4, %v5109_v16  ;;  %v12783_v59 = vsub.f32 %v3694_v56, %v5193_v52  ;;  %vm3895_vm10 = vcmp.eq.s32.totalorder %v3893_v17, 0  ;;  %v12785_v24 = vpop.eup %9295  ;;  %v4921_v43 = vcvt.s32.f32 %v4914_v42 }
 0x4ec   : > { %vm12779_vm4 = vcmp.le.f32.partialorder %v14975_v48, 0.7853982  ;;  %v12787_v4 = vsub.s32 %v5107_v47, %v5110_v55  ;;  %8643 = vmatprep.subr.bf16.mxu0 %v12774_v8  ;;  %v3897_v61 = vsel %vm3895_vm10, %v12104_v25, %v3896_v20  ;;  %vm3898_vm3 = vcmp.eq.s32.totalorder %v3893_v17, 2 }
 0x4ed   : > { %v4919_v15 = vand.u32 2147483647, %v4918_v44  ;;  %vm3894_vm9 = vcmp.lt.s32.totalorder %v3893_v17, 2  ;;  %v3900_v0 = vsel %vm3898_vm3, %v3899_v49, %v12108_v50  ;;  %v4304_v57 = vsel %vm12201_vm15, 0, %v14978_v39 }
 0x4ee   : > { %v5113_v3 = vsub.s32 0, %v12787_v4  ;;  %v12796_v56 = vsub.f32 %v4110_v9, %v5197_v26  ;;  %v3901_v60 = vsel %vm3894_vm9, %v3897_v61, %v3900_v0  ;;  %v4308_v47 = vadd.s32 3, %v4304_v57  ;;  %v14983_v9 = vld [vmem:[#allocation20_spill] sm:$0xff] }
 0x4ef   : > { %v4922_v34 = vmul.f32 %v4921_v43, %v4919_v15  ;;  %v3902_v11 = vsel %vm3891_vm14, nan, %v3901_v60  ;;  %v4312_v25 = vxor.u32 2147483648, %v12312_v23  ;;  %v4315_v62 = vxor.u32 2147483648, %v14980_v14  ;;  %v14986_v15 = vld [vmem:[#allocation5_spill] sm:$0xff] }
 0x4f0   : > { %v8465_v50 = vmin.u32 %v5113_v3, %v12787_v4  ;;  %v12805_v18 = vsel %vm5049_vm8, %v5133_v40, %v5109_v16  ;;  %vm4307_vm15 = vweird.f32 %v14981_v5  ;;  %v4309_v36 = vand.u32 3, %v4308_v47  ;;  %v14985_v40 = vld [vmem:[#allocation21_spill] sm:$0xff] }
 0x4f1   : > { %v4923_v52 = vxor.u32 2147483648, %v4922_v34  ;;  %v5883_v30 = vand.u32 4294901760, %v3902_v11  ;;  %vm3579_vm0 = vweird.f32 %v14982_v32  ;;  %vm3582_vm12 = vcmp.lt.s32.totalorder %v14983_v9, 2  ;;  %v12811_v20 = vpop.eup %9297  ;;  %v14993_v32 = vld [vmem:[#allocation12_spill] sm:$0xff] }
 0x4f2   : > { %v3584_v26 = vxor.u32 2147483648, %v14984_v7  ;;  %v5115_v42 = vclz %v8465_v50  ;;  %vm4311_vm5 = vcmp.eq.s32.totalorder %v4309_v36, 0  ;;  %vm4314_vm13 = vcmp.eq.s32.totalorder %v4309_v36, 2 }
 0x4f3   : > { %vm3583_vm7 = vcmp.eq.s32.totalorder %v14983_v9, 0  ;;  %v4924_v16 = vsel %vm4841_vm2, %v4923_v52, %v4922_v34  ;;  %vm4310_vm14 = vcmp.lt.s32.totalorder %v4309_v36, 2  ;;  %v4313_v1 = vsel %vm4311_vm5, %v14980_v14, %v4312_v25  ;;  %v14988_v34 = vld [vmem:[#allocation19_spill] sm:$0xff]  ;;  %v14989_v14 = vld [vmem:[#allocation18_spill] sm:$0xff] }
 0x4f4   : > { %v4316_v17 = vsel %vm4314_vm13, %v4315_v62, %v12312_v23  ;;  %v4927_v49 = vsel %vm12779_vm4, %v12349_v35, %v4924_v16  ;;  %v8466_v55 = vadd.s32 4294967294, %v5115_v42  ;;  %vm3586_vm10 = vcmp.eq.s32.totalorder %v14983_v9, 2  ;;  %v14990_v9 = vld [vmem:[#allocation14_spill] sm:$0xff] }
 0x4f5   : > { %v4317_v12 = vsel %vm4310_vm14, %v4313_v1, %v4316_v17  ;;  %v12824_v44 = vsub.f32 %v3902_v11, %v5883_v30  ;;  %v3585_v43 = vsel %vm3583_vm7, %v14985_v40, %v3584_v26  ;;  %v3587_v61 = vxor.u32 2147483648, %v14985_v40  ;;  %v14992_v17 = vld [vmem:[#allocation9_spill] sm:$0xff] }
 0x4f6   : > { %v4318_v48 = vsel %vm4307_vm15, nan, %v4317_v12  ;;  %9299 = vcosq.f32 %v4927_v49  ;;  %vm8467_vm2 = vcmp.lt.s32.totalorder %v8466_v55, 0  ;;  %vm3995_vm3 = vweird.f32 %v14986_v15 }
 0x4f7   : > { %v5887_v23 = vand.u32 4294901760, %v4318_v48  ;;  %9301 = vsinq.f32 %v4927_v49  ;;  %v5118_v0 = vsel %vm8467_vm2, 0, %v8466_v55  ;;  %v3588_v39 = vsel %vm3586_vm10, %v3587_v61, %v14984_v7 }
 0x4f8   : > { %v4000_v57 = vxor.u32 2147483648, %v14987_v2  ;;  %v5119_v3 = vsub.s32 32, %v5118_v0  ;;  %v5123_v60 = vsub.s32 4294967266, %v5118_v0  ;;  %vm3999_vm9 = vcmp.eq.s32.totalorder %v14988_v34, 0 }
 0x4f9   : > { %v12831_v47 = vpack.c.bf16 %v5887_v23, %v5883_v30  ;;  %v5120_v11 = vshll.u32 %v12787_v4, %v5118_v0  ;;  %v3589_v25 = vsel %vm3582_vm12, %v3585_v43, %v3588_v39  ;;  %vm3998_vm15 = vcmp.lt.s32.totalorder %v14988_v34, 2 }
 0x4fa   : > { %v4001_v62 = vsel %vm3999_vm9, %v14989_v14, %v4000_v57  ;;  %v5121_v50 = vshrl.u32 %v12772_v6, %v5119_v3  ;;  %v5124_v5 = vadd.s32 127, %v5123_v60  ;;  %v3590_v36 = vsel %vm3579_vm0, nan, %v3589_v25  ;;  %v14991_v6 = vld [vmem:[#allocation16_spill] sm:$0xff]  ;;  %v14997_v60 = vld [vmem:[#allocation15_spill] sm:$0xff] }
 0x4fb   : > { %8691 = vmatprep.subr.bf16.mxu1 %v12831_v47  ;;  %v4003_v52 = vxor.u32 2147483648, %v14989_v14  ;;  %v12844_v30 = vsub.f32 %v4318_v48, %v5887_v23  ;;  %vm4002_vm5 = vcmp.eq.s32.totalorder %v14988_v34, 2  ;;  %v5195_v4 = vand.u32 4294901760, %v3590_v36  ;;  %v14998_v34 = vld [vmem:[#allocation23_spill] sm:$0xff] }
 0x4fc   : > { %vm3787_vm12 = vweird.f32 %v14990_v9  ;;  %v5122_v7 = vor.u32 %v5121_v50, %v5120_v11  ;;  %v5125_v26 = vshll.u32 %v5124_v5, 23  ;;  %v3792_v16 = vxor.u32 2147483648, %v14991_v6  ;;  %v15000_v5 = vld [vmem:[#allocation11_spill] sm:$0xff] }
 0x4fd   : > { %v4004_v42 = vsel %vm4002_vm5, %v4003_v52, %v14987_v2  ;;  %vm3790_vm13 = vcmp.lt.s32.totalorder %v14992_v17, 2  ;;  %vm3791_vm0 = vcmp.eq.s32.totalorder %v14992_v17, 0  ;;  %v3795_v49 = vxor.u32 2147483648, %v14993_v32 }
 0x4fe   : > { %v4005_v1 = vsel %vm3998_vm15, %v4001_v62, %v4004_v42  ;;  %v14994_v55 = vand.u32 2147483647, %v12353_v63  ;;  %v5126_v48 = vor.u32 4788187, %v5125_v26  ;;  %v3793_v43 = vsel %vm3791_vm0, %v14993_v32, %v3792_v16  ;;  %v14999_v62 = vld [vmem:[#allocation25_spill] sm:$0xff] }
 0x4ff   : > { %v4006_v40 = vsel %vm3995_vm3, nan, %v4005_v1  ;;  %vm3794_vm14 = vcmp.eq.s32.totalorder %v14992_v17, 2  ;;  %v5129_v61 = vcvt.s32.f32 %v5122_v7  ;;  %v12863_v0 = vsub.f32 %v3590_v36, %v5195_v4  ;;  %v15001_v32 = vld [vmem:[#allocation37_spill] sm:$0xff] }
 0x500   : > { %vm12855_vm7 = vcmp.le.f32.partialorder %v14994_v55, 0.7853982  ;;  %v5199_v23 = vand.u32 4294901760, %v4006_v40  ;;  %v3796_v39 = vsel %vm3794_vm14, %v3795_v49, %v14991_v6  ;;  %v9300_v2 = vpop.eup %9299  ;;  %v5127_v57 = vand.u32 2147483647, %v5126_v48 }
 0x501   : > { %v3797_v3 = vsel %vm3790_vm13, %v3793_v43, %v3796_v39  ;;  %vm4203_vm10 = vweird.f32 %v14997_v60  ;;  %v4208_v11 = vxor.u32 2147483648, %v14998_v34  ;;  %v9302_v25 = vpop.eup %9301  ;;  %vm4206_vm2 = vcmp.lt.s32.totalorder %v14999_v62, 2 }
 0x502   : > { %v12868_v15 = vpack.c.bf16 %v5199_v23, %v5195_v4  ;;  %v3798_v14 = vsel %vm3787_vm12, nan, %v3797_v3  ;;  %vm4207_vm3 = vcmp.eq.s32.totalorder %v14999_v62, 0  ;;  %v5130_v50 = vmul.f32 %v5129_v61, %v5127_v57 }
 0x503   : > { %v4209_v36 = vsel %vm4207_vm3, %v15000_v5, %v4208_v11  ;;  %v4211_v52 = vxor.u32 2147483648, %v15000_v5  ;;  %v5885_v7 = vand.u32 4294901760, %v3798_v14  ;;  %v12877_v26 = vsub.f32 %v4006_v40, %v5199_v23  ;;  %v15002_v23 = vld [vmem:[#allocation34_spill] sm:$0xff] }
 0x504   : > { %8645 = vmatpush1.bf16.msra.mxu0 %v12868_v15  ;;  %vm4210_vm9 = vcmp.eq.s32.totalorder %v14999_v62, 2  ;;  %v4512_v4 = vsel %vm12435_vm11, 0, %v12408_v13  ;;  %vm4515_vm15 = vweird.f32 %v12092_v58  ;;  %v5131_v9 = vxor.u32 2147483648, %v5130_v50 }
 0x505   : > { %v4212_v42 = vsel %vm4210_vm9, %v4211_v52, %v14998_v34  ;;  %v4516_v6 = vadd.s32 3, %v4512_v4  ;;  %v4520_v16 = vxor.u32 2147483648, %v12607_v41  ;;  %v12886_v17 = vsub.f32 %v3798_v14, %v5885_v7 }
 0x506   : > { %v4213_v1 = vsel %vm4206_vm2, %v4209_v36, %v4212_v42  ;;  %v4523_v49 = vxor.u32 2147483648, %v15001_v32  ;;  %v4928_v55 = vsel %vm12779_vm4, 0, %v12738_v33  ;;  %v5132_v13 = vsel %vm5049_vm8, %v5131_v9, %v5130_v50 }
 0x507   : > { %v4214_v29 = vsel %vm4203_vm10, nan, %v4213_v1  ;;  %v4517_v48 = vand.u32 3, %v4516_v6  ;;  %v4932_v40 = vadd.s32 3, %v4928_v55  ;;  %v5135_v43 = vsel %vm12855_vm7, %v12353_v63, %v5132_v13  ;;  %v15006_v55 = vld [vmem:[#allocation28_spill] sm:$0xff] }
 0x508   : > { %v5889_v61 = vand.u32 4294901760, %v4214_v29  ;;  %vm4931_vm11 = vweird.f32 %v12349_v35  ;;  %v4720_v51 = vsel %vm12521_vm6, 0, %v15002_v23  ;;  %9303 = vcosq.f32 %v5135_v43  ;;  %v15007_v35 = vld [vmem:[#allocation32_spill] sm:$0xff] }
 0x509   : > { %vm4519_vm4 = vcmp.eq.s32.totalorder %v4517_v48, 0  ;;  %v4936_v33 = vxor.u32 2147483648, %v9302_v25  ;;  %v4939_v57 = vxor.u32 2147483648, %v9300_v2  ;;  %9305 = vsinq.f32 %v5135_v43 }
 0x50a   : > { %v12903_v3 = vpack.c.bf16 %v5889_v61, %v5885_v7  ;;  %v4521_v60 = vsel %vm4519_vm4, %v15001_v32, %v4520_v16  ;;  %vm4522_vm8 = vcmp.eq.s32.totalorder %v4517_v48, 2  ;;  %vm4518_vm5 = vcmp.lt.s32.totalorder %v4517_v48, 2  ;;  %v15004_v16 = vld [vmem:[#allocation26_spill] sm:$0xff]  ;;  %v15005_v32 = vld [vmem:[#allocation17_spill] sm:$0xff] }
 0x50b   : > { %v4524_v34 = vsel %vm4522_vm8, %v4523_v49, %v12607_v41  ;;  %v4933_v11 = vand.u32 3, %v4932_v40  ;;  %v4724_v14 = vadd.s32 3, %v4720_v51  ;;  %v4728_v50 = vxor.u32 2147483648, %v12618_v19  ;;  %v15008_v51 = vld [vmem:[#allocation31_spill] sm:$0xff] }
 0x50c   : > { %8693 = vmatpush1.bf16.msra.mxu1 %v12903_v3  ;;  %v4525_v62 = vsel %vm4518_vm5, %v4521_v60, %v4524_v34  ;;  %v4731_v5 = vxor.u32 2147483648, %v12615_v28  ;;  %v5136_v36 = vsel %vm12855_vm7, 0, %v12805_v18  ;;  %v12915_v42 = vsub.f32 %v4214_v29, %v5889_v61  ;;  %v15009_v34 = vld [vmem:[#allocation38_spill] sm:$0xff] }
 0x50d   : > { %v4526_v52 = vsel %vm4515_vm15, nan, %v4525_v62  ;;  %vm4934_vm6 = vcmp.lt.s32.totalorder %v4933_v11, 2  ;;  %vm4935_vm12 = vcmp.eq.s32.totalorder %v4933_v11, 0  ;;  %vm4938_vm13 = vcmp.eq.s32.totalorder %v4933_v11, 2 }
 0x50e   : > { %v4937_v41 = vsel %vm4935_vm12, %v9300_v2, %v4936_v33  ;;  %v4940_v7 = vsel %vm4938_vm13, %v4939_v57, %v9302_v25  ;;  %v5201_v4 = vand.u32 4294901760, %v4526_v52  ;;  %v4725_v9 = vand.u32 3, %v4724_v14 }
 0x50f   : > { %v4941_v6 = vsel %vm4934_vm6, %v4937_v41, %v4940_v7  ;;  %vm4723_vm0 = vweird.f32 %v15004_v16  ;;  %v5140_v1 = vadd.s32 3, %v5136_v36  ;;  %vm5139_vm10 = vweird.f32 %v12353_v63 }
 0x510   : > { %v4942_v12 = vsel %vm4931_vm11, nan, %v4941_v6  ;;  %v12920_v18 = vsub.f32 %v4526_v52, %v5201_v4  ;;  %vm4726_vm7 = vcmp.lt.s32.totalorder %v4725_v9, 2  ;;  %vm4727_vm14 = vcmp.eq.s32.totalorder %v4725_v9, 0 }
 0x511   : > { %v5205_v58 = vand.u32 4294901760, %v4942_v12  ;;  %v4729_v2 = vsel %vm4727_vm14, %v12615_v28, %v4728_v50  ;;  %vm4730_vm2 = vcmp.eq.s32.totalorder %v4725_v9, 2  ;;  %v5141_v25 = vand.u32 3, %v5140_v1  ;;  %v15011_v1 = vld [vmem:[#allocation30_spill] sm:$0xff] }
 0x512   : > { %vm4411_vm3 = vweird.f32 %v15005_v32  ;;  %v4732_v49 = vsel %vm4730_vm2, %v4731_v5, %v12618_v19  ;;  %vm4414_vm9 = vcmp.lt.s32.totalorder %v15006_v55, 2  ;;  %vm4415_vm15 = vcmp.eq.s32.totalorder %v15006_v55, 0  ;;  %v9304_v29 = vpop.eup %9303 }
 0x513   : > { %v4416_v13 = vxor.u32 2147483648, %v15007_v35  ;;  %v12929_v48 = vpack.c.bf16 %v5205_v58, %v5201_v4  ;;  %v12931_v40 = vsub.f32 %v4942_v12, %v5205_v58  ;;  %v4733_v43 = vsel %vm4726_vm7, %v4729_v2, %v4732_v49  ;;  %v9306_v28 = vpop.eup %9305  ;;  %v15010_v4 = vld [vmem:[#allocation10_spill] sm:$0xff]  ;;  %v15012_v58 = vld [vmem:[#allocation35_spill] sm:$0xff] }
 0x514   : > { %vm5142_vm11 = vcmp.lt.s32.totalorder %v5141_v25, 2  ;;  %v4734_v61 = vsel %vm4723_vm0, nan, %v4733_v43  ;;  %vm5143_vm4 = vcmp.eq.s32.totalorder %v5141_v25, 0  ;;  %vm5146_vm8 = vcmp.eq.s32.totalorder %v5141_v25, 2 }
 0x515   : > { %v5147_v19 = vxor.u32 2147483648, %v9304_v29  ;;  %8647 = vmatprep.subr.bf16.mxu0 %v12929_v48  ;;  %v5144_v23 = vxor.u32 2147483648, %v9306_v28  ;;  %v5891_v39 = vand.u32 4294901760, %v4734_v61  ;;  %v4417_v33 = vsel %vm4415_vm15, %v15008_v51, %v4416_v13 }
 0x516   : > { %vm4418_vm5 = vcmp.eq.s32.totalorder %v15006_v55, 2  ;;  %v4419_v60 = vxor.u32 2147483648, %v15008_v51  ;;  %vm4827_vm6 = vweird.f32 %v12279_v10  ;;  %vm4830_vm12 = vcmp.lt.s32.totalorder %v15009_v34, 2  ;;  %v15013_v55 = vld [vmem:[#allocation33_spill] sm:$0xff] }
 0x517   : > { %v5148_v57 = vsel %vm5146_vm8, %v5147_v19, %v9306_v28  ;;  %v5145_v11 = vsel %vm5143_vm4, %v9304_v29, %v5144_v23  ;;  %v12941_v14 = vsub.f32 %v4734_v61, %v5891_v39  ;;  %vm4831_vm13 = vcmp.eq.s32.totalorder %v15009_v34, 0  ;;  %v8468_v61 = vld [vmem:[%s14643_s2 + $0x20] sm:$0xff] }
 0x518   : > { %v4832_v62 = vxor.u32 2147483648, %v12687_v27  ;;  %v5149_v50 = vsel %vm5142_vm11, %v5145_v11, %v5148_v57  ;;  %v4420_v5 = vsel %vm4418_vm5, %v4419_v60, %v15007_v35  ;;  %vm4834_vm0 = vcmp.eq.s32.totalorder %v15009_v34, 2 }
 0x519   : > { %v4835_v36 = vxor.u32 2147483648, %v12682_v31  ;;  %v5150_v52 = vsel %vm5139_vm10, nan, %v5149_v50  ;;  %v4421_v41 = vsel %vm4414_vm9, %v4417_v33, %v4420_v5  ;;  %vm4619_vm7 = vweird.f32 %v15010_v4 }
 0x51a   : > { %v4833_v7 = vsel %vm4831_vm13, %v12682_v31, %v4832_v62  ;;  %v5895_v9 = vand.u32 4294901760, %v5150_v52  ;;  %v4422_v6 = vsel %vm4411_vm3, nan, %v4421_v41  ;;  %vm4622_vm14 = vcmp.lt.s32.totalorder %v15011_v1, 2 }
 0x51b   : > { %v4836_v16 = vsel %vm4834_vm0, %v4835_v36, %v12687_v27  ;;  %v5203_v63 = vand.u32 4294901760, %v4422_v6  ;;  %vm4623_vm10 = vcmp.eq.s32.totalorder %v15011_v1, 0  ;;  %v4624_v2 = vxor.u32 2147483648, %v15012_v58 }
 0x51c   : > { %v4837_v12 = vsel %vm4830_vm12, %v4833_v7, %v4836_v16  ;;  %v12963_v25 = vpack.c.bf16 %v5895_v9, %v5891_v39  ;;  %v12965_v31 = vsub.f32 %v5150_v52, %v5895_v9  ;;  %vm4626_vm2 = vcmp.eq.s32.totalorder %v15011_v1, 2 }
 0x51d   : > { %v4838_v32 = vsel %vm4827_vm6, nan, %v4837_v12  ;;  %v12970_v49 = vsub.f32 %v4422_v6, %v5203_v63  ;;  %v4625_v35 = vsel %vm4623_vm10, %v15013_v55, %v4624_v2  ;;  %v4627_v13 = vxor.u32 2147483648, %v15013_v55 }
 0x51e   : > { %v5207_v27 = vand.u32 4294901760, %v4838_v32  ;;  %8695 = vmatprep.subr.bf16.mxu1 %v12963_v25  ;;  %vm5035_vm3 = vweird.f32 %v12345_v53  ;;  %vm5038_vm9 = vcmp.lt.s32.totalorder %v12652_v45, 2  ;;  %vm5039_vm15 = vcmp.eq.s32.totalorder %v12652_v45, 0  ;;  %v8469_v53 = vld [vmem:[%s14643_s2 + $0x28] sm:$0xff] }
 0x51f   : > { %v5040_v10 = vxor.u32 2147483648, %v12811_v20  ;;  %v4628_v28 = vsel %vm4626_vm2, %v4627_v13, %v15012_v58  ;;  %vm5042_vm11 = vcmp.eq.s32.totalorder %v12652_v45, 2  ;;  %v5043_v39 = vxor.u32 2147483648, %v12785_v24 }
 0x520   : > { %v12979_v29 = vpack.c.bf16 %v5207_v27, %v5203_v63  ;;  %v12981_v43 = vsub.f32 %v4838_v32, %v5207_v27  ;;  %v4629_v19 = vsel %vm4622_vm14, %v4625_v35, %v4628_v28  ;;  %v5312_v51 = vand.u32 4294901760, %v12783_v59 }
 0x521   : > { %v5041_v23 = vsel %vm5039_vm15, %v12785_v24, %v5040_v10  ;;  %v4630_v33 = vsel %vm4619_vm7, nan, %v4629_v19  ;;  %v5324_v57 = vand.u32 4294901760, %v12796_v56  ;;  %v6002_v60 = vand.u32 4294901760, %v12824_v44 }
 0x522   : > { %8649 = vmatpush1.bf16.msra.mxu0 %v12979_v29  ;;  %v6014_v34 = vand.u32 4294901760, %v12844_v30  ;;  %v5044_v11 = vsel %vm5042_vm11, %v5043_v39, %v12811_v20  ;;  %v5893_v62 = vand.u32 4294901760, %v4630_v33  ;;  %v5313_v24 = vsub.f32 %v12783_v59, %v5312_v51 }
 0x523   : > { %v5182_v50 = vsel %vm2094_vm1, %v8468_v61, 0  ;;  %v5045_v5 = vsel %vm5038_vm9, %v5041_v23, %v5044_v11  ;;  %v5325_v36 = vsub.f32 %v12796_v56, %v5324_v57  ;;  %v6003_v52 = vsub.f32 %v12824_v44, %v6002_v60 }
 0x524   : > { %v6015_v20 = vsub.f32 %v12844_v30, %v6014_v34  ;;  %v5046_v41 = vsel %vm5035_vm3, nan, %v5045_v5  ;;  %v13017_v7 = vsub.f32 %v4630_v33, %v5893_v62  ;;  %v5314_v4 = vand.u32 4294901760, %v5313_v24 }
 0x525   : > { %v13019_v45 = vand.u32 4294901760, %v5182_v50  ;;  %v5897_v9 = vand.u32 4294901760, %v5046_v41  ;;  %v5326_v6 = vand.u32 4294901760, %v5325_v36  ;;  %v6004_v16 = vand.u32 4294901760, %v6003_v52 }
 0x526   : > { %v6016_v1 = vand.u32 4294901760, %v6015_v20  ;;  %v5318_v63 = vand.u32 4294901760, %v12863_v0  ;;  %v5330_v58 = vand.u32 4294901760, %v12877_v26  ;;  %v6008_v2 = vand.u32 4294901760, %v12886_v17 }
 0x527   : > { %v13022_v12 = vsub.f32 %v5182_v50, %v13019_v45  ;;  %v13030_v32 = vpack.c.bf16 %v5897_v9, %v5893_v62  ;;  %v13032_v27 = vsub.f32 %v5046_v41, %v5897_v9  ;;  %v8650_v55 = vpack.c.bf16 %v5326_v6, %v5314_v4 }
 0x528   : > { %v8698_v35 = vpack.c.bf16 %v6016_v1, %v6004_v16  ;;  %v5319_v10 = vsub.f32 %v12863_v0, %v5318_v63  ;;  %v5331_v28 = vsub.f32 %v12877_v26, %v5330_v58  ;;  %v6009_v61 = vsub.f32 %v12886_v17, %v6008_v2 }
 0x529   : > { %v13035_v13 = vand.u32 4294901760, %v13022_v12  ;;  %8697 = vmatpush1.bf16.msra.mxu1 %v13030_v32  ;;  %8651 = vmatprep.subr.bf16.mxu0 %v8650_v55  ;;  %v14772_v19 = vand.u32 4294901760, %v12915_v42  ;;  %v5185_v23 = vsel %vm2094_vm1, %v8469_v53, 0  ;;  %v14771_v39 = vand.u32 4294901760, %v12920_v18 }
 0x52a   : > { %v14769_v33 = vand.u32 4294901760, %v12931_v40  ;;  %8699 = vmatprep.subr.bf16.mxu1 %v8698_v35  ;;  %v5320_v62 = vand.u32 4294901760, %v5319_v10  ;;  %v5332_v24 = vand.u32 4294901760, %v5331_v28  ;;  %v6010_v50 = vand.u32 4294901760, %v6009_v61 }
 0x52b   : > { %v5269_v11 = vsub.f32 %v13022_v12, %v13035_v13  ;;  %v6021_v5 = vsub.f32 %v12915_v42, %v14772_v19  ;;  %v13056_v36 = vand.u32 4294901760, %v5185_v23  ;;  %v5337_v52 = vsub.f32 %v12920_v18, %v14771_v39 }
 0x52c   : > { %v5349_v20 = vsub.f32 %v12931_v40, %v14769_v33  ;;  %v8652_v4 = vpack.c.bf16 %v5332_v24, %v5320_v62  ;;  %v14768_v9 = vand.u32 4294901760, %v12941_v14  ;;  %v14767_v6 = vand.u32 4294901760, %v12965_v31 }
 0x52d   : > { %v5270_v41 = vand.u32 4294901760, %v5269_v11  ;;  %v6022_v16 = vand.u32 4294901760, %v6021_v5  ;;  %v13067_v1 = vsub.f32 %v5185_v23, %v13056_v36  ;;  %v5338_v53 = vand.u32 4294901760, %v5337_v52 }
 0x52e   : > { %v5350_v55 = vand.u32 4294901760, %v5349_v20  ;;  %v6027_v35 = vsub.f32 %v12941_v14, %v14768_v9  ;;  %v6039_v10 = vsub.f32 %v12965_v31, %v14767_v6  ;;  %v14766_v28 = vand.u32 4294901760, %v12970_v49 }
 0x52f   : > { %5271 = vmatmul.mubr.f32.vlgmr.msra.gmra.mrb[8].mxu0 %v5270_v41  ;;  %5961 = vmatmul.mubr.f32.vlgmr.msra.gmra.mrb[8].mxu1 %v5270_v41  ;;  %v14765_v61 = vand.u32 4294901760, %v12981_v43  ;;  %v8700_v11 = vpack.c.bf16 %v6022_v16, %v6010_v50  ;;  %v15014_v23 = vmov 0.0   ;;  %v13079_v62 = vand.u32 4294901760, %v13067_v1 }
 0x530   : > { %8653 = vmatpush1.bf16.msra.mxu0 %v8652_v4  ;;  %5276 = vmatprep.mubr.f32.mxu0 %v15014_v23  ;;  %v8654_v24 = vpack.c.bf16 %v5350_v55, %v5338_v53  ;;  %v14770_v5 = vand.u32 4294901760, %v13017_v7  ;;  %v6028_v52 = vand.u32 4294901760, %v6027_v35  ;;  %v6040_v20 = vand.u32 4294901760, %v6039_v10  ;;  %v8470_v4 = vld [vmem:[%s14643_s2 + $0x30] sm:$0xff]  ;;  %v8471_v35 = vld [vmem:[%s14643_s2 + $0x38] sm:$0xff] }
 0x531   : > { %5966 = vmatprep.mubr.f32.mxu1 %v15014_v23  ;;  %v5343_v41 = vsub.f32 %v12970_v49, %v14766_v28  ;;  %v5355_v50 = vsub.f32 %v12981_v43, %v14765_v61  ;;  %8701 = vmatpush1.bf16.msra.mxu1 %v8700_v11  ;;  %v5280_v16 = vsub.f32 %v13067_v1, %v13079_v62  ;;  %v6044_v55 = vand.u32 4294901760, %v13032_v27 }
 0x532   : > { %8655 = vmatprep.subr.bf16.mxu0 %v8654_v24  ;;  %v6033_v53 = vsub.f32 %v13017_v7, %v14770_v5  ;;  %v8702_v10 = vpack.c.bf16 %v6040_v20, %v6028_v52  ;;  %v5188_v24 = vsel %vm2094_vm1, %v8470_v4, 0  ;;  %v5191_v5 = vsel %vm2094_vm1, %v8471_v35, 0 }
 0x533   : > { %v5344_v61 = vand.u32 4294901760, %v5343_v41  ;;  %v5356_v28 = vand.u32 4294901760, %v5355_v50  ;;  %v5281_v6 = vand.u32 4294901760, %v5280_v16  ;;  %v6045_v11 = vsub.f32 %v13032_v27, %v6044_v55 }
 0x534   : > { %8703 = vmatprep.subr.bf16.mxu1 %v8702_v10  ;;  %v13105_v33 = vand.u32 4294901760, %v5188_v24  ;;  %v6034_v39 = vand.u32 4294901760, %v6033_v53  ;;  %v8658_v52 = vpack.c.bf16 %v12796_v56, %v12783_v59  ;;  %v13110_v20 = vand.u32 4294901760, %v5191_v5 }
 0x535   : > { %v8656_v9 = vpack.c.bf16 %v5356_v28, %v5344_v61  ;;  %5282 = vmatmul.mubr.f32.gmra.mrb[10].mxu0 %v5281_v6  ;;  %5972 = vmatmul.mubr.f32.gmra.mrb[10].mxu1 %v5281_v6  ;;  %v6046_v19 = vand.u32 4294901760, %v6045_v11  ;;  %v8706_v6 = vpack.c.bf16 %v12844_v30, %v12824_v44  ;;  %v8660_v16 = vpack.c.bf16 %v12877_v26, %v12863_v0 }
 0x536   : > { %5287 = vmatprep.mubr.f32.mxu0 %v15014_v23  ;;  %v13114_v41 = vsub.f32 %v5188_v24, %v13105_v33  ;;  %5977 = vmatprep.mubr.f32.mxu1 %v15014_v23  ;;  %v13118_v61 = vsub.f32 %v5191_v5, %v13110_v20  ;;  %v8708_v53 = vpack.c.bf16 %v12915_v42, %v12886_v17  ;;  %v15015_v56 = vand.u32 4294901760, %v12915_v42 }
 0x537   : > { %8657 = vmatpush1.bf16.msra.mxu0 %v8656_v9  ;;  %v8704_v28 = vpack.c.bf16 %v6046_v19, %v6034_v39  ;;  %v8662_v35 = vpack.c.bf16 %v12931_v40, %v12920_v18  ;;  %v8710_v10 = vpack.c.bf16 %v12965_v31, %v12941_v14  ;;  %v8664_v11 = vpack.c.bf16 %v12981_v43, %v12970_v49 }
 0x538   : > { %8659 = vmatprep.subr.bf16.mxu0 %v8658_v52  ;;  %v13123_v50 = vand.u32 4294901760, %v13114_v41  ;;  %v13126_v9 = vand.u32 4294901760, %v13118_v61  ;;  %v8712_v24 = vpack.c.bf16 %v13032_v27, %v13017_v7  ;;  %v8722_v52 = vpack.c.bf16 %v6014_v34, %v6002_v60 }
 0x539   : > { %8705 = vmatpush1.bf16.msra.mxu1 %v8704_v28  ;;  %v8676_v59 = vpack.c.bf16 %v5330_v58, %v5318_v63  ;;  %v8724_v44 = vpack.c.bf16 %v15015_v56, %v6008_v2  ;;  %v15016_v30 = vand.u32 4294901760, %v12920_v18  ;;  %v15018_v60 = vand.u32 4294901760, %v12941_v14 }
 0x53a   : > { %8707 = vmatprep.subr.bf16.mxu1 %v8706_v6  ;;  %v5291_v19 = vsub.f32 %v13114_v41, %v13123_v50  ;;  %v5302_v39 = vsub.f32 %v13118_v61, %v13126_v9  ;;  %v15019_v0 = vand.u32 4294901760, %v12965_v31  ;;  %v15020_v17 = vand.u32 4294901760, %v12970_v49 }
 0x53b   : > { %v15021_v42 = vand.u32 4294901760, %v12981_v43 }
 0x53c   : > { %v5292_v4 = vand.u32 4294901760, %v5291_v19  ;;  %v5303_v5 = vand.u32 4294901760, %v5302_v39  ;;  %v8726_v26 = vpack.c.bf16 %v15019_v0, %v15018_v60 }
 0x53d   : > { %v8680_v18 = vpack.c.bf16 %v15021_v42, %v15020_v17 }
 0x53e   : > { %5293 = vmatmul.mubr.f32.gmra.mrb[12].mxu0 %v5292_v4  ;;  %5983 = vmatmul.mubr.f32.gmra.mrb[12].mxu1 %v5292_v4 }
 0x53f   : > { %5298 = vmatprep.mubr.f32.mxu0 %v15014_v23  ;;  %5988 = vmatprep.mubr.f32.mxu1 %v15014_v23 }
 0x542   : > { %5304 = vmatmul.mubr.f32.gmra.mrb[14].mxu0 %v5303_v5  ;;  %5994 = vmatmul.mubr.f32.gmra.mrb[14].mxu1 %v5303_v5 }
 0x543   : > { %5414 = vmatprep.mubr.f32.mxu0 %v15014_v23  ;;  %6104 = vmatprep.mubr.f32.mxu1 %v15014_v23 }
 0x546   : > { %5416 = vmatmul.mubr.f32.vlgmr.msra.gmra.mrb[8].mxu0 %v13019_v45  ;;  %6106 = vmatmul.mubr.f32.vlgmr.msra.gmra.mrb[8].mxu1 %v13019_v45 }
 0x547   : > { %8661 = vmatpush1.bf16.msra.mxu0 %v8660_v16  ;;  %8709 = vmatpush1.bf16.msra.mxu1 %v8708_v53 }
 0x548   : > { %8663 = vmatprep.subr.bf16.mxu0 %v8662_v35  ;;  %8711 = vmatprep.subr.bf16.mxu1 %v8710_v10 }
 0x549   : > { %5421 = vmatprep.mubr.f32.mxu0 %v15014_v23  ;;  %6111 = vmatprep.mubr.f32.mxu1 %v15014_v23 }
 0x54a   : > { %5423 = vmatmul.mubr.f32.gmra.mrb[10].mxu0 %v13056_v36  ;;  %6113 = vmatmul.mubr.f32.gmra.mrb[10].mxu1 %v13056_v36 }
 0x54b   : > { %8665 = vmatpush1.bf16.msra.mxu0 %v8664_v11  ;;  %8713 = vmatpush1.bf16.msra.mxu1 %v8712_v24 }
 0x54c   : > { %8667 = vmatprep.subr.bf16.mxu0 %v12774_v8  ;;  %8715 = vmatprep.subr.bf16.mxu1 %v12831_v47 }
 0x54d   : > { %5428 = vmatprep.mubr.f32.mxu0 %v15014_v23  ;;  %6118 = vmatprep.mubr.f32.mxu1 %v15014_v23 }
 0x54e   : > { %5430 = vmatmul.mubr.f32.gmra.mrb[12].mxu0 %v13105_v33  ;;  %6120 = vmatmul.mubr.f32.gmra.mrb[12].mxu1 %v13105_v33 }
 0x54f   : > { %5435 = vmatprep.mubr.f32.mxu0 %v15014_v23  ;;  %6125 = vmatprep.mubr.f32.mxu1 %v15014_v23 }
 0x552   : > { %5437 = vmatmul.mubr.f32.gmra.mrb[14].mxu0 %v13110_v20  ;;  %6127 = vmatmul.mubr.f32.gmra.mrb[14].mxu1 %v13110_v20 }
 0x553   : > { %5523 = vmatprep.mubr.f32.mxu0 %v15014_v23  ;;  %6213 = vmatprep.mubr.f32.mxu1 %v15014_v23 }
 0x556   : > { %5526 = vmatmul.mubr.f32.vlgmr.msra.gmra.mrb[8].mxu0 %v13022_v12  ;;  %6216 = vmatmul.mubr.f32.vlgmr.msra.gmra.mrb[8].mxu1 %v13022_v12  ;;  %v8674_v12 = vpack.c.bf16 %v5324_v57, %v5312_v51  ;;  %v15017_v51 = vand.u32 4294901760, %v12931_v40  ;;  %v15022_v40 = vand.u32 4294901760, %v13017_v7 }
 0x557   : > { %8669 = vmatpush1.bf16.msra.mxu0 %v12868_v15  ;;  %8717 = vmatpush1.bf16.msra.mxu1 %v12903_v3 }
 0x558   : > { %8671 = vmatprep.subr.bf16.mxu0 %v12929_v48  ;;  %8719 = vmatprep.subr.bf16.mxu1 %v12963_v25  ;;  %v8678_v57 = vpack.c.bf16 %v15017_v51, %v15016_v30  ;;  %v8728_v14 = vpack.c.bf16 %v6044_v55, %v15022_v40 }
 0x559   : > { %5531 = vmatprep.mubr.f32.mxu0 %v15014_v23  ;;  %6221 = vmatprep.mubr.f32.mxu1 %v15014_v23 }
 0x55a   : > { %5534 = vmatmul.mubr.f32.gmra.mrb[10].mxu0 %v13067_v1  ;;  %6224 = vmatmul.mubr.f32.gmra.mrb[10].mxu1 %v13067_v1 }
 0x55b   : > { %8673 = vmatpush1.bf16.msra.mxu0 %v12979_v29  ;;  %8721 = vmatpush1.bf16.msra.mxu1 %v13030_v32 }
 0x55c   : > { %8675 = vmatprep.subr.bf16.mxu0 %v8674_v12  ;;  %8723 = vmatprep.subr.bf16.mxu1 %v8722_v52 }
 0x55d   : > { %5539 = vmatprep.mubr.f32.mxu0 %v15014_v23  ;;  %6229 = vmatprep.mubr.f32.mxu1 %v15014_v23 }
 0x55e   : > { %5542 = vmatmul.mubr.f32.gmra.mrb[12].mxu0 %v13114_v41  ;;  %6232 = vmatmul.mubr.f32.gmra.mrb[12].mxu1 %v13114_v41 }
 0x55f   : > { %5547 = vmatprep.mubr.f32.mxu0 %v15014_v23  ;;  %6237 = vmatprep.mubr.f32.mxu1 %v15014_v23 }
 0x562   : > { %5550 = vmatmul.mubr.f32.gmra.mrb[14].mxu0 %v13118_v61  ;;  %6240 = vmatmul.mubr.f32.gmra.mrb[14].mxu1 %v13118_v61 }
 0x563   : > { %5628 = vmatprep.mubr.f32.mxu0 %v15014_v23  ;;  %6318 = vmatprep.mubr.f32.mxu1 %v15014_v23 }
 0x566   : > { %5632 = vmatmul.mubr.f32.vlgmr.msra.gmra.mrb[8].mxu0 %v13035_v13  ;;  %6322 = vmatmul.mubr.f32.vlgmr.msra.gmra.mrb[8].mxu1 %v13035_v13 }
 0x567   : > { %8677 = vmatpush1.bf16.msra.mxu0 %v8676_v59  ;;  %8725 = vmatpush1.bf16.msra.mxu1 %v8724_v44 }
 0x568   : > { %8679 = vmatprep.subr.bf16.mxu0 %v8678_v57  ;;  %8727 = vmatprep.subr.bf16.mxu1 %v8726_v26 }
 0x569   : > { %5637 = vmatprep.mubr.f32.mxu0 %v15014_v23  ;;  %6327 = vmatprep.mubr.f32.mxu1 %v15014_v23 }
 0x56a   : > { %5641 = vmatmul.mubr.f32.gmra.mrb[10].mxu0 %v13079_v62  ;;  %6331 = vmatmul.mubr.f32.gmra.mrb[10].mxu1 %v13079_v62 }
 0x56b   : > { %8681 = vmatpush1.bf16.msra.mxu0 %v8680_v18  ;;  %8729 = vmatpush1.bf16.msra.mxu1 %v8728_v14 }
 0x56c   : > { %8683 = vmatprep.subr.bf16.mxu0 %v12774_v8  ;;  %8731 = vmatprep.subr.bf16.mxu1 %v12831_v47  ;;  %v5164_v8 = vpop.permute.xlu0 %5163 }
 0x56d   : > { %5646 = vmatprep.mubr.f32.mxu0 %v15014_v23  ;;  %6336 = vmatprep.mubr.f32.mxu1 %v15014_v23 }
 0x56e   : > { %5650 = vmatmul.mubr.f32.gmra.mrb[12].mxu0 %v13123_v50  ;;  %6340 = vmatmul.mubr.f32.gmra.mrb[12].mxu1 %v13123_v50 }
 0x56f   : > { %5655 = vmatprep.mubr.f32.mxu0 %v15014_v23  ;;  %6345 = vmatprep.mubr.f32.mxu1 %v15014_v23 }
 0x572   : > { %5659 = vmatmul.mubr.f32.gmra.mrb[14].mxu0 %v13126_v9  ;;  %6349 = vmatmul.mubr.f32.gmra.mrb[14].mxu1 %v13126_v9 }
 0x573   : > { %5753 = vmatprep.mubr.f32.mxu0 %v15014_v23  ;;  %6443 = vmatprep.mubr.f32.mxu1 %v15014_v23 }
 0x576   : > { %5755 = vmatmul.mubr.f32.vlgmr.msra.gmra.mrb[8].mxu0 %v13019_v45  ;;  %6445 = vmatmul.mubr.f32.vlgmr.msra.gmra.mrb[8].mxu1 %v13019_v45 }
 0x577   : > { %8685 = vmatpush1.bf16.msra.mxu0 %v12868_v15  ;;  %8733 = vmatpush1.bf16.msra.mxu1 %v12903_v3 }
 0x578   : > { %8687 = vmatprep.subr.bf16.mxu0 %v12929_v48  ;;  %8735 = vmatprep.subr.bf16.mxu1 %v12963_v25 }
 0x579   : > { %5760 = vmatprep.mubr.f32.mxu0 %v15014_v23  ;;  %6450 = vmatprep.mubr.f32.mxu1 %v15014_v23 }
 0x57a   : > { %5762 = vmatmul.mubr.f32.gmra.mrb[10].mxu0 %v13056_v36  ;;  %6452 = vmatmul.mubr.f32.gmra.mrb[10].mxu1 %v13056_v36 }
 0x57b   : > { %8689 = vmatpush1.bf16.msra.mxu0 %v12979_v29  ;;  %8737 = vmatpush1.bf16.msra.mxu1 %v13030_v32 }
 0x57c   : > { %5767 = vmatprep.mubr.f32.mxu0 %v15014_v23  ;;  %6457 = vmatprep.mubr.f32.mxu1 %v15014_v23 }
 0x57e   : > { %5769 = vmatmul.mubr.f32.gmra.mrb[12].mxu0 %v13105_v33  ;;  %6459 = vmatmul.mubr.f32.gmra.mrb[12].mxu1 %v13105_v33 }
 0x57f   : > { %5774 = vmatprep.mubr.f32.mxu0 %v15014_v23  ;;  %6464 = vmatprep.mubr.f32.mxu1 %v15014_v23 }
 0x582   : > { %5776 = vmatmul.mubr.f32.gmra.mrb[14].mxu0 %v13110_v20  ;;  %6466 = vmatmul.mubr.f32.gmra.mrb[14].mxu1 %v13110_v20 }
 0x583   : > { %5854 = vmatprep.mubr.f32.mxu0 %v15014_v23  ;;  %6544 = vmatprep.mubr.f32.mxu1 %v15014_v23 }
 0x586   : > { %5856 = vmatmul.mubr.f32.vlgmr.msra.gmra.mrb[8].mxu0 %v13019_v45  ;;  %6546 = vmatmul.mubr.f32.vlgmr.msra.gmra.mrb[8].mxu1 %v13019_v45 }
 0x587   : > { %5861 = vmatprep.mubr.f32.mxu0 %v15014_v23  ;;  %6551 = vmatprep.mubr.f32.mxu1 %v15014_v23 }
 0x58a   : > { %5863 = vmatmul.mubr.f32.gmra.mrb[10].mxu0 %v13056_v36  ;;  %6553 = vmatmul.mubr.f32.gmra.mrb[10].mxu1 %v13056_v36 }
 0x58b   : > { %5868 = vmatprep.mubr.f32.mxu0 %v15014_v23  ;;  %6558 = vmatprep.mubr.f32.mxu1 %v15014_v23 }
 0x58e   : > { %5870 = vmatmul.mubr.f32.gmra.mrb[12].mxu0 %v13105_v33  ;;  %6560 = vmatmul.mubr.f32.gmra.mrb[12].mxu1 %v13105_v33 }
 0x58f   : > { %5875 = vmatprep.mubr.f32.mxu0 %v15014_v23  ;;  %6565 = vmatprep.mubr.f32.mxu1 %v15014_v23 }
 0x592   : > { %5877 = vmatmul.mubr.f32.gmra.mrb[14].mxu0 %v13110_v20  ;;  %6567 = vmatmul.mubr.f32.gmra.mrb[14].mxu1 %v13110_v20 }
 0x659   : > { %v5857_v47 = vpop.f32.mrb[8].mxu0  ;;  %v6547_v15 = vpop.f32.mrb[8].mxu1 }
 0x65a   : > { %v13274_v3 = vadd.f32 %v5857_v47, %v5164_v8  ;;  %v13276_v48 = vadd.f32 %v6547_v15, %v5164_v8  ;;  %v5859_v25 = vpop.f32.mrb[9].mxu0  ;;  %v6549_v31 = vpop.f32.mrb[9].mxu1 }
 0x65b   : > { %v13278_v49 = vadd.f32 %v5859_v25, %v5164_v8  ;;  %v13295_v20 = vadd.f32 %v6549_v31, %v5164_v8 }
 0x65c   : > { %v6573_v29 = vand.u32 2147483647, %v13274_v3  ;;  %v6576_v43 = vand.u32 2139095040, %v13274_v3  ;;  %v6781_v34 = vand.u32 2147483647, %v13276_v48  ;;  %v6784_v7 = vand.u32 2139095040, %v13276_v48 }
 0x65d   : > { %v13284_v45 = vpop.f32.mrb[10].mxu0  ;;  %v13286_v63 = vpop.f32.mrb[10].mxu1  ;;  %v6680_v13 = vand.u32 2139095040, %v13278_v49  ;;  %v6677_v61 = vand.u32 2147483647, %v13278_v49  ;;  %v6888_v10 = vand.u32 2139095040, %v13295_v20 }
 0x65e   : > { %v6577_v58 = vshrl.u32 %v6576_v43, 23  ;;  %v6580_v2 = vand.u32 8388607, %v6573_v29  ;;  %v6785_v32 = vshrl.u32 %v6784_v7, 23  ;;  %v6788_v27 = vand.u32 8388607, %v6781_v34 }
 0x65f   : > { %v13293_v36 = vpop.f32.mrb[11].mxu0  ;;  %v6681_v23 = vshrl.u32 %v6680_v13, 23  ;;  %v13298_v50 = vpop.f32.mrb[11].mxu1  ;;  %v13306_v53 = vand.u32 8388607, %v6677_v61  ;;  %vm6575_vm9 = vcmp.lt.s32.totalorder %v13274_v3, 0 }
 0x660   : > { %v8476_v33 = vadd.s32 4294967169, %v6577_v58  ;;  %v8484_v1 = vadd.s32 4294967169, %v6785_v32  ;;  %v6581_v62 = vor.u32 8388608, %v6580_v2  ;;  %v6789_v41 = vor.u32 8388608, %v6788_v27 }
 0x661   : > { %v8480_v6 = vadd.s32 4294967169, %v6681_v23  ;;  %vm13398_vm15 = vcmp.le.f32.partialorder %v6573_v29, 0.7853982 }
 0x662   : > { %v6583_v55 = vadd.s32 1, %v8476_v33  ;;  %v6791_v28 = vadd.s32 1, %v8484_v1  ;;  %v13300_v4 = vshll.u32 %v6581_v62, 8  ;;  %v13302_v16 = vshll.u32 %v6789_v41, 8 }
 0x663   : > { %v13308_v35 = vadd.s32 1, %v8480_v6 }
 0x664   : > { %vm6584_vm1 = vcmp.gt.s32.totalorder %v6583_v55, 0  ;;  %vm6792_vm4 = vcmp.gt.s32.totalorder %v6791_v28, 0 }
 0x665   : > { %v6585_v9 = vsel %vm6584_vm1, %v6583_v55, 0  ;;  %v6793_v5 = vsel %vm6792_vm4, %v6791_v28, 0  ;;  %vm6688_vm13 = vcmp.gt.s32.totalorder %v13308_v35, 0 }
 0x666   : > { %v6586_v19 = vshrl.u32 %v6585_v9, 5  ;;  %v6587_v39 = vand.u32 31, %v6585_v9  ;;  %v13312_v12 = vshrl.u32 %v6793_v5, 5  ;;  %v6795_v52 = vand.u32 31, %v6793_v5 }
 0x668   : > { %v6588_v11 = vsub.s32 32, %v6587_v39  ;;  %v6590_v24 = vshll.u32 %v14783_v54, %v6587_v39  ;;  %v6593_v59 = vshll.u32 %v14787_v46, %v6587_v39  ;;  %v6596_v56 = vshll.u32 %v14788_v37, %v6587_v39 }
 0x669   : > { %v6599_v44 = vshll.u32 %v14789_v38, %v6587_v39  ;;  %v6602_v30 = vshll.u32 %v14790_v21, %v6587_v39  ;;  %vm6605_vm8 = vcmp.lt.s32.totalorder %v6586_v19, 1  ;;  %vm6606_vm5 = vcmp.lt.s32.totalorder %v6586_v19, 2 }
 0x66a   : > { %v6591_v51 = vshrl.u32 %v14787_v46, %v6588_v11  ;;  %v6594_v57 = vshrl.u32 %v14788_v37, %v6588_v11  ;;  %v6597_v60 = vshrl.u32 %v14789_v38, %v6588_v11  ;;  %v6589_v0 = vshrl.u32 %v14783_v54, %v6588_v11 }
 0x66b   : > { %v6600_v26 = vshrl.u32 %v14790_v21, %v6588_v11  ;;  %v6603_v17 = vshrl.u32 %v14791_v22, %v6588_v11  ;;  %v6796_v14 = vsub.s32 32, %v6795_v52  ;;  %vm6607_vm6 = vcmp.lt.s32.totalorder %v6586_v19, 3 }
 0x66c   : > { %v6592_v42 = vor.u32 %v6591_v51, %v6590_v24  ;;  %v6595_v18 = vor.u32 %v6594_v57, %v6593_v59  ;;  %v6598_v40 = vor.u32 %v6597_v60, %v6596_v56  ;;  %vm6608_vm12 = vcmp.lt.s32.totalorder %v6586_v19, 4 }
 0x66d   : > { %v6601_v8 = vor.u32 %v6600_v26, %v6599_v44  ;;  %v6604_v47 = vor.u32 %v6603_v17, %v6602_v30  ;;  %v6798_v32 = vshll.u32 %v14783_v54, %v6795_v52  ;;  %v6799_v33 = vshrl.u32 %v14787_v46, %v6796_v14 }
 0x66e   : > { %v6609_v15 = vsel %vm6605_vm8, %v6589_v0, %v6592_v42  ;;  %v6610_v25 = vsel %vm6608_vm12, %v6598_v40, 2102212464  ;;  %v6613_v31 = vsel %vm6605_vm8, %v6592_v42, %v6595_v18  ;;  %v6617_v43 = vsel %vm6605_vm8, %v6595_v18, %v6598_v40 }
 0x66f   : > { %v6611_v7 = vsel %vm6607_vm6, %v6595_v18, %v6610_v25  ;;  %v6614_v58 = vsel %vm6608_vm12, %v6601_v8, 920167782  ;;  %v6618_v2 = vsel %vm6608_vm12, %v6604_v47, 1326507024  ;;  %v6801_v1 = vshll.u32 %v14787_v46, %v6795_v52 }
 0x670   : > { %v6615_v27 = vsel %vm6607_vm6, %v6598_v40, %v6614_v58  ;;  %v6619_v13 = vsel %vm6607_vm6, %v6601_v8, %v6618_v2  ;;  %v6612_v23 = vsel %vm6606_vm5, %v6609_v15, %v6611_v7  ;;  %v6802_v41 = vshrl.u32 %v14788_v37, %v6796_v14 }
 0x671   : > { %v6616_v62 = vsel %vm6606_vm5, %v6613_v31, %v6615_v27  ;;  %v6620_v55 = vsel %vm6606_vm5, %v6617_v43, %v6619_v13  ;;  %v6800_v5 = vor.u32 %v6799_v33, %v6798_v32  ;;  %v6804_v24 = vshll.u32 %v14788_v37, %v6795_v52 }
 0x672   : > { %v13336_v28 = vmul.u32.u64.low %v13300_v4, %v6620_v55  ;;  %v13337_v6 = vmul.u32.u64.high %v13300_v4, %v6620_v55, %v13336_v28  ;;  %v13340_v9 = vmul.u32.u64.low %v13300_v4, %v6616_v62  ;;  %v13341_v39 = vmul.u32.u64.high %v13300_v4, %v6616_v62, %v13340_v9 }
 0x673   : > { %v6803_v11 = vor.u32 %v6802_v41, %v6801_v1  ;;  %v6805_v59 = vshrl.u32 %v14789_v38, %v6796_v14  ;;  %v6797_v56 = vshrl.u32 %v14783_v54, %v6796_v14  ;;  %v6807_v19 = vshll.u32 %v14789_v38, %v6795_v52 }
 0x674   : > { %v6808_v44 = vshrl.u32 %v14790_v21, %v6796_v14  ;;  %v6811_v30 = vshrl.u32 %v14791_v22, %v6796_v14  ;;  %v6628_v51 = vmul.u32 %v13300_v4, %v6612_v23  ;;  %v6810_v60 = vshll.u32 %v14790_v21, %v6795_v52 }
 0x675   : > { %v6806_v57 = vor.u32 %v6805_v59, %v6804_v24  ;;  %vm6813_vm0 = vcmp.lt.s32.totalorder %v13312_v12, 1  ;;  %vm6630_vm7 = vc.u32 %v13337_v6, %v13340_v9  ;;  %v6631_v0 = vadd.s32 1, %v13341_v39 }
 0x676   : > { %v6809_v26 = vor.u32 %v6808_v44, %v6807_v19  ;;  %vm6814_vm14 = vcmp.lt.s32.totalorder %v13312_v12, 2  ;;  %v6812_v17 = vor.u32 %v6811_v30, %v6810_v60  ;;  %vm6815_vm10 = vcmp.lt.s32.totalorder %v13312_v12, 3 }
 0x677   : > { %vm6816_vm2 = vcmp.lt.s32.totalorder %v13312_v12, 4  ;;  %v6821_v42 = vsel %vm6813_vm0, %v6800_v5, %v6803_v11  ;;  %v6632_v4 = vsel %vm6630_vm7, %v6631_v0, %v13341_v39  ;;  %v6825_v52 = vsel %vm6813_vm0, %v6803_v11, %v6806_v57 }
 0x678   : > { %v6818_v18 = vsel %vm6816_vm2, %v6806_v57, 2102212464  ;;  %v6822_v40 = vsel %vm6816_vm2, %v6809_v26, 920167782  ;;  %v6633_v14 = vadd.s32 %v6632_v4, %v6628_v51  ;;  %v6817_v8 = vsel %vm6813_vm0, %v6797_v56, %v6800_v5 }
 0x679   : > { %v6823_v47 = vsel %vm6815_vm10, %v6806_v57, %v6822_v40  ;;  %v6826_v15 = vsel %vm6816_vm2, %v6812_v17, 1326507024  ;;  %v6819_v25 = vsel %vm6815_vm10, %v6803_v11, %v6818_v18  ;;  %v6689_v7 = vsel %vm6688_vm13, %v13308_v35, 0  ;;  %v13381_v11 = vpop.f32.mrb[12].mxu0 }
 0x67a   : > { %v6824_v31 = vsel %vm6814_vm14, %v6821_v42, %v6823_v47  ;;  %v6827_v43 = vsel %vm6815_vm10, %v6809_v26, %v6826_v15  ;;  %v6634_v58 = vadd.s32 536870912, %v6633_v14  ;;  %v6885_v1 = vand.u32 2147483647, %v13295_v20 }
 0x67b   : > { %v6828_v2 = vsel %vm6814_vm14, %v6825_v52, %v6827_v43  ;;  %v13366_v32 = vmul.u32.u64.low %v13302_v16, %v6824_v31  ;;  %v13367_v27 = vmul.u32.u64.high %v13302_v16, %v6824_v31, %v13366_v32  ;;  %v6820_v62 = vsel %vm6814_vm14, %v6817_v8, %v6819_v25 }
 0x67c   : > { %v13371_v13 = vmul.u32.u64.low %v13302_v16, %v6828_v2  ;;  %v13372_v33 = vmul.u32.u64.high %v13302_v16, %v6828_v2, %v13371_v13  ;;  %v6635_v23 = vshrl.u32 %v6634_v58, 30  ;;  %v6685_v35 = vor.u32 8388608, %v13306_v53 }
 0x67d   : > { %v6691_v55 = vand.u32 31, %v6689_v7  ;;  %v6839_v28 = vadd.s32 1, %v13367_v27  ;;  %v6889_v5 = vshrl.u32 %v6888_v10, 23  ;;  %v6836_v24 = vmul.u32 %v13302_v16, %v6820_v62 }
 0x67e   : > { %v6636_v41 = vshll.u32 %v6635_v23, 30  ;;  %vm6838_vm3 = vc.u32 %v13372_v33, %v13366_v32  ;;  %v13388_v12 = vand.u32 8388607, %v6885_v1  ;;  %v13394_v56 = vshll.u32 %v6685_v35, 8 }
 0x67f   : > { %v6692_v39 = vsub.s32 32, %v6691_v55  ;;  %v6840_v59 = vsel %vm6838_vm3, %v6839_v28, %v13367_v27  ;;  %v6629_v16 = vadd.s32 %v13340_v9, %v13337_v6  ;;  %v13403_v44 = vshrl.u32 %v6689_v7, 5 }
 0x680   : > { %v13391_v53 = vsub.s32 %v6633_v14, %v6636_v41  ;;  %v6841_v19 = vadd.s32 %v6840_v59, %v6836_v24  ;;  %v8488_v0 = vadd.s32 4294967169, %v6889_v5  ;;  %v6659_v26 = vsub.s32 4, %v6635_v23 }
 0x681   : > { %v6695_v30 = vshrl.u32 %v14787_v46, %v6692_v39  ;;  %v6698_v57 = vshrl.u32 %v14788_v37, %v6692_v39  ;;  %v6701_v60 = vshrl.u32 %v14789_v38, %v6692_v39  ;;  %v6694_v29 = vshll.u32 %v14783_v54, %v6691_v55 }
 0x682   : > { %v6639_v51 = vsub.s32 0, %v13391_v53  ;;  %v6842_v17 = vadd.s32 536870912, %v6841_v19  ;;  %v6893_v42 = vor.u32 8388608, %v13388_v12  ;;  %v6697_v9 = vshll.u32 %v14787_v46, %v6691_v55 }
 0x683   : > { %v6700_v4 = vshll.u32 %v14788_v37, %v6691_v55  ;;  %v6704_v18 = vshrl.u32 %v14790_v21, %v6692_v39  ;;  %v6696_v52 = vor.u32 %v6695_v30, %v6694_v29  ;;  %v6703_v14 = vshll.u32 %v14789_v38, %v6691_v55 }
 0x684   : > { %v8477_v6 = vmin.u32 %v6639_v51, %v13391_v53  ;;  %v6843_v40 = vshrl.u32 %v6842_v17, 30  ;;  %v6707_v8 = vshrl.u32 %v14791_v22, %v6692_v39  ;;  %v6699_v15 = vor.u32 %v6698_v57, %v6697_v9 }
 0x685   : > { %v6702_v25 = vor.u32 %v6701_v60, %v6700_v4  ;;  %v6706_v31 = vshll.u32 %v14790_v21, %v6691_v55  ;;  %v6660_v43 = vsel %vm6575_vm9, %v6659_v26, %v6635_v23  ;;  %v6705_v58 = vor.u32 %v6704_v18, %v6703_v14 }
 0x686   : > { %v6641_v47 = vclz %v8477_v6  ;;  %v6844_v7 = vshll.u32 %v6843_v40, 30  ;;  %vm6709_vm11 = vcmp.lt.s32.totalorder %v13403_v44, 1  ;;  %vm6710_vm1 = vcmp.lt.s32.totalorder %v13403_v44, 2 }
 0x687   : > { %v6708_v27 = vor.u32 %v6707_v8, %v6706_v31  ;;  %vm6712_vm4 = vcmp.lt.s32.totalorder %v13403_v44, 4  ;;  %vm6783_vm8 = vcmp.lt.s32.totalorder %v13276_v48, 0  ;;  %v6693_v62 = vshrl.u32 %v14783_v54, %v6692_v39 }
 0x688   : > { %v8478_v2 = vadd.s32 4294967294, %v6641_v47  ;;  %v13424_v13 = vsub.s32 %v6841_v19, %v6844_v7  ;;  %vm6711_vm5 = vcmp.lt.s32.totalorder %v13403_v44, 3  ;;  %v6718_v23 = vsel %vm6712_vm4, %v6705_v58, 920167782  ;;  %v13461_v47 = vpop.f32.mrb[12].mxu1 }
 0x689   : > { %v6662_v35 = vsel %vm13398_vm15, 0, %v6660_v43  ;;  %v6717_v55 = vsel %vm6709_vm11, %v6696_v52, %v6699_v15  ;;  %v6719_v41 = vsel %vm6711_vm5, %v6702_v25, %v6718_v23  ;;  %v6867_v24 = vsub.s32 4, %v6843_v40 }
 0x68a   : > { %vm8479_vm6 = vcmp.lt.s32.totalorder %v8478_v2, 0  ;;  %v6847_v5 = vsub.s32 0, %v13424_v13  ;;  %v6721_v39 = vsel %vm6709_vm11, %v6699_v15, %v6702_v25  ;;  %vm13441_vm12 = vcmp.le.f32.partialorder %v6781_v34, 0.7853982 }
 0x68b   : > { %v6644_v28 = vsel %vm8479_vm6, 0, %v8478_v2  ;;  %v6714_v51 = vsel %vm6712_vm4, %v6702_v25, 2102212464  ;;  %v6722_v57 = vsel %vm6712_vm4, %v6708_v27, 1326507024  ;;  %v6720_v17 = vsel %vm6710_vm1, %v6717_v55, %v6719_v41 }
 0x68c   : > { %v6645_v59 = vsub.s32 32, %v6644_v28  ;;  %v6649_v19 = vsub.s32 4294967266, %v6644_v28  ;;  %v6646_v60 = vshll.u32 %v13391_v53, %v6644_v28  ;;  %v8485_v26 = vmin.u32 %v6847_v5, %v13424_v13 }
 0x68d   : > { %v6723_v29 = vsel %vm6711_vm5, %v6705_v58, %v6722_v57  ;;  %v6895_v4 = vadd.s32 1, %v8488_v0  ;;  %v6666_v18 = vadd.s32 3, %v6662_v35  ;;  %v6713_v8 = vsel %vm6709_vm11, %v6693_v62, %v6696_v52 }
 0x68e   : > { %v6647_v34 = vshrl.u32 %v6629_v16, %v6645_v59  ;;  %v6650_v6 = vadd.s32 127, %v6649_v19  ;;  %v6724_v9 = vsel %vm6710_vm1, %v6721_v39, %v6723_v29  ;;  %v6849_v14 = vclz %v8485_v26 }
 0x68f   : > { %v6715_v53 = vsel %vm6711_vm5, %v6699_v15, %v6714_v51  ;;  %v13464_v43 = vmul.u32.u64.low %v13394_v56, %v6724_v9  ;;  %v13465_v16 = vmul.u32.u64.high %v13394_v56, %v6724_v9, %v13464_v43  ;;  %vm6896_vm13 = vcmp.gt.s32.totalorder %v6895_v4, 0 }
 0x690   : > { %v6648_v25 = vor.u32 %v6647_v34, %v6646_v60  ;;  %v6651_v31 = vshll.u32 %v6650_v6, 23  ;;  %v8486_v7 = vadd.s32 4294967294, %v6849_v14  ;;  %v6837_v52 = vadd.s32 %v13366_v32, %v13372_v33 }
 0x691   : > { %v13468_v58 = vmul.u32.u64.low %v13394_v56, %v6720_v17  ;;  %v13469_v0 = vmul.u32.u64.high %v13394_v56, %v6720_v17, %v13468_v58  ;;  %v6868_v15 = vsel %vm6783_vm8, %v6867_v24, %v6843_v40  ;;  %v6897_v27 = vsel %vm6896_vm13, %v6895_v4, 0 }
 0x692   : > { %v6652_v2 = vor.u32 4788187, %v6651_v31  ;;  %v13476_v62 = vand.u32 3, %v6666_v18  ;;  %vm8487_vm0 = vcmp.lt.s32.totalorder %v8486_v7, 0  ;;  %v6716_v23 = vsel %vm6710_vm1, %v6713_v8, %v6715_v53 }
 0x693   : > { %v6899_v35 = vand.u32 31, %v6897_v27  ;;  %v6655_v41 = vcvt.s32.f32 %v6648_v25  ;;  %v6852_v28 = vsel %vm8487_vm0, 0, %v8486_v7  ;;  %vm6734_vm7 = vc.u32 %v13465_v16, %v13468_v58 }
 0x694   : > { %v6653_v55 = vand.u32 2147483647, %v6652_v2  ;;  %v6853_v5 = vsub.s32 32, %v6852_v28  ;;  %v6857_v39 = vsub.s32 4294967266, %v6852_v28  ;;  %v6870_v32 = vsel %vm13441_vm12, 0, %v6868_v15 }
 0x695   : > { %v6735_v33 = vadd.s32 1, %v13469_v0  ;;  %v6732_v24 = vmul.u32 %v13394_v56, %v6716_v23  ;;  %v13486_v59 = vshrl.u32 %v6897_v27, 5  ;;  %v6900_v44 = vsub.s32 32, %v6899_v35 }
 0x696   : > { %v6656_v40 = vmul.f32 %v6655_v41, %v6653_v55  ;;  %v6854_v19 = vshll.u32 %v13424_v13, %v6852_v28  ;;  %v6855_v51 = vshrl.u32 %v6837_v52, %v6853_v5  ;;  %v6858_v57 = vadd.s32 127, %v6857_v39 }
 0x697   : > { %v6736_v60 = vsel %vm6734_vm7, %v6735_v33, %v13469_v0  ;;  %v6902_v29 = vshll.u32 %v14783_v54, %v6899_v35  ;;  %v6903_v34 = vshrl.u32 %v14787_v46, %v6900_v44  ;;  %v6905_v4 = vshll.u32 %v14787_v46, %v6899_v35 }
 0x698   : > { %v6657_v26 = vxor.u32 2147483648, %v6656_v40  ;;  %v6737_v17 = vadd.s32 %v6736_v60, %v6732_v24  ;;  %v6856_v6 = vor.u32 %v6855_v51, %v6854_v19  ;;  %v6859_v9 = vshll.u32 %v6858_v57, 23 }
 0x699   : > { %v6906_v56 = vshrl.u32 %v14788_v37, %v6900_v44  ;;  %v6908_v14 = vshll.u32 %v14788_v37, %v6899_v35  ;;  %v6909_v8 = vshrl.u32 %v14789_v38, %v6900_v44  ;;  %v6904_v31 = vor.u32 %v6903_v34, %v6902_v29 }
 0x69a   : > { %v6658_v18 = vsel %vm6575_vm9, %v6657_v26, %v6656_v40  ;;  %v6738_v13 = vadd.s32 536870912, %v6737_v17  ;;  %v6860_v25 = vor.u32 4788187, %v6859_v9  ;;  %v6911_v43 = vshll.u32 %v14789_v38, %v6899_v35 }
 0x69b   : > { %v6661_v53 = vsel %vm13398_vm15, %v13274_v3, %v6658_v18  ;;  %v6863_v7 = vcvt.s32.f32 %v6856_v6  ;;  %v6912_v2 = vshrl.u32 %v14790_v21, %v6900_v44  ;;  %v6907_v15 = vor.u32 %v6906_v56, %v6905_v4  ;;  %v13552_v18 = vpop.permute.xlu1 %5168 }
 0x69c   : > { %9307 = vcosq.f32 %v6661_v53  ;;  %v13502_v0 = vshrl.u32 %v6738_v13, 30  ;;  %v6861_v52 = vand.u32 2147483647, %v6860_v25  ;;  %v6915_v27 = vshrl.u32 %v14791_v22, %v6900_v44 }
 0x69d   : > { %9309 = vsinq.f32 %v6661_v53  ;;  %v6913_v55 = vor.u32 %v6912_v2, %v6911_v43  ;;  %v6910_v41 = vor.u32 %v6909_v8, %v6908_v14  ;;  %v6914_v28 = vshll.u32 %v14790_v21, %v6899_v35 }
 0x69e   : > { %v6740_v23 = vshll.u32 %v13502_v0, 30  ;;  %v6864_v10 = vmul.f32 %v6863_v7, %v6861_v52  ;;  %v6874_v5 = vadd.s32 3, %v6870_v32  ;;  %vm6917_vm14 = vcmp.lt.s32.totalorder %v13486_v59, 1 }
 0x69f   : > { %v13513_v33 = vshll.u32 %v6893_v42, 8  ;;  %vm6669_vm10 = vcmp.eq.s32.totalorder %v13476_v62, 0  ;;  %v6916_v24 = vor.u32 %v6915_v27, %v6914_v28  ;;  %vm6920_vm2 = vcmp.lt.s32.totalorder %v13486_v59, 4 }
 0x6a0   : > { %v13508_v39 = vsub.s32 %v6737_v17, %v6740_v23  ;;  %v6865_v40 = vxor.u32 2147483648, %v6864_v10  ;;  %v6925_v19 = vsel %vm6917_vm14, %v6904_v31, %v6907_v15  ;;  %vm6668_vm3 = vcmp.lt.s32.totalorder %v13476_v62, 2 }
 0x6a1   : > { %v6901_v32 = vshrl.u32 %v14783_v54, %v6900_v44  ;;  %vm6919_vm9 = vcmp.lt.s32.totalorder %v13486_v59, 3  ;;  %v6926_v12 = vsel %vm6920_vm2, %v6913_v55, 920167782  ;;  %vm6665_vm15 = vweird.f32 %v13274_v3 }
 0x6a2   : > { %v6743_v35 = vsub.s32 0, %v13508_v39  ;;  %v6866_v42 = vsel %vm6783_vm8, %v6865_v40, %v6864_v10  ;;  %vm6679_vm11 = vcmp.lt.s32.totalorder %v13278_v49, 0  ;;  %vm6918_vm1 = vcmp.lt.s32.totalorder %v13486_v59, 2 }
 0x6a3   : > { %v6922_v51 = vsel %vm6920_vm2, %v6910_v41, 2102212464  ;;  %v6927_v44 = vsel %vm6919_vm9, %v6910_v41, %v6926_v12  ;;  %v6869_v57 = vsel %vm13441_vm12, %v13276_v48, %v6866_v42  ;;  %v6929_v17 = vsel %vm6917_vm14, %v6907_v15, %v6910_v41  ;;  %v13599_v42 = vpop.f32.mrb[13].mxu0 }
 0x6a4   : > { %v8481_v60 = vmin.u32 %v6743_v35, %v13508_v39  ;;  %v6928_v26 = vsel %vm6918_vm1, %v6925_v19, %v6927_v44  ;;  %9311 = vcosq.f32 %v6869_v57  ;;  %v6930_v29 = vsel %vm6920_vm2, %v6916_v24, 1326507024 }
 0x6a5   : > { %v13546_v34 = vmul.u32.u64.low %v13513_v33, %v6928_v26  ;;  %v13547_v6 = vmul.u32.u64.high %v13513_v33, %v6928_v26, %v13546_v34  ;;  %vm6672_vm4 = vcmp.eq.s32.totalorder %v13476_v62, 2  ;;  %9313 = vsinq.f32 %v6869_v57 }
 0x6a6   : > { %v9308_v9 = vpop.eup %9307  ;;  %v6745_v30 = vclz %v8481_v60  ;;  %v6763_v4 = vsub.s32 4, %v13502_v0  ;;  %v6921_v14 = vsel %vm6917_vm14, %v6901_v32, %v6904_v31  ;;  %v6923_v8 = vsel %vm6919_vm9, %v6907_v15, %v6922_v51 }
 0x6a7   : > { %v9310_v56 = vpop.eup %9309  ;;  %v6673_v13 = vxor.u32 2147483648, %v9308_v9  ;;  %v6931_v53 = vsel %vm6919_vm9, %v6913_v55, %v6930_v29  ;;  %v13566_v2 = vadd.f32 %v13284_v45, %v13552_v18  ;;  %v6875_v27 = vand.u32 3, %v6874_v5 }
 0x6a8   : > { %v6670_v25 = vxor.u32 2147483648, %v9310_v56  ;;  %v8482_v43 = vadd.s32 4294967294, %v6745_v30  ;;  %v6932_v7 = vsel %vm6918_vm1, %v6929_v17, %v6931_v53  ;;  %v6924_v55 = vsel %vm6918_vm1, %v6921_v14, %v6923_v8 }
 0x6a9   : > { %v6674_v52 = vsel %vm6672_vm4, %v6673_v13, %v9310_v56  ;;  %v13571_v31 = vmul.u32.u64.low %v13513_v33, %v6932_v7  ;;  %v13572_v23 = vmul.u32.u64.high %v13513_v33, %v6932_v7, %v13571_v31  ;;  %v6943_v10 = vadd.s32 1, %v13547_v6 }
 0x6aa   : > { %v6671_v15 = vsel %vm6669_vm10, %v9308_v9, %v6670_v25  ;;  %vm8483_vm8 = vcmp.lt.s32.totalorder %v8482_v43, 0  ;;  %v6733_v41 = vadd.s32 %v13468_v58, %v13465_v16  ;;  %v6992_v5 = vand.u32 2139095040, %v13566_v2 }
 0x6ab   : > { %v6675_v45 = vsel %vm6668_vm3, %v6671_v15, %v6674_v52  ;;  %v6748_v28 = vsel %vm8483_vm8, 0, %v8482_v43  ;;  %vm6873_vm5 = vweird.f32 %v13276_v48  ;;  %v6764_v59 = vsel %vm6679_vm11, %v6763_v4, %v13502_v0 }
 0x6ac   : > { %v6676_v40 = vsel %vm6665_vm15, nan, %v6675_v45  ;;  %v6749_v24 = vsub.s32 32, %v6748_v28  ;;  %v6753_v19 = vsub.s32 4294967266, %v6748_v28  ;;  %v6940_v16 = vmul.u32 %v13513_v33, %v6924_v55 }
 0x6ad   : > { %8237 = vst [vmem:[%s13590_s5] sm:$0xff] %v6676_v40  ;;  %vm6942_vm6 = vc.u32 %v13572_v23, %v13546_v34  ;;  %v6989_v3 = vand.u32 2147483647, %v13566_v2  ;;  %v6993_v58 = vshrl.u32 %v6992_v5, 23  ;;  %v6750_v62 = vshll.u32 %v13508_v39, %v6748_v28 }
 0x6ae   : > { %v6751_v35 = vshrl.u32 %v6733_v41, %v6749_v24  ;;  %v6754_v32 = vadd.s32 127, %v6753_v19  ;;  %v6944_v12 = vsel %vm6942_vm6, %v6943_v10, %v13547_v6  ;;  %v9312_v0 = vpop.eup %9311  ;;  %vm6880_vm12 = vcmp.eq.s32.totalorder %v6875_v27, 2 }
 0x6af   : > { %vm13603_vm13 = vcmp.le.f32.partialorder %v6677_v61, 0.7853982  ;;  %v6945_v51 = vadd.s32 %v6944_v12, %v6940_v16  ;;  %v8492_v44 = vadd.s32 4294967169, %v6993_v58  ;;  %v9314_v57 = vpop.eup %9313  ;;  %v6881_v60 = vxor.u32 2147483648, %v9312_v0 }
 0x6b0   : > { %v6752_v26 = vor.u32 %v6751_v35, %v6750_v62  ;;  %v6755_v39 = vshll.u32 %v6754_v32, 23  ;;  %v6766_v17 = vsel %vm13603_vm13, 0, %v6764_v59  ;;  %v6878_v29 = vxor.u32 2147483648, %v9314_v57 }
 0x6b1   : > { %v6946_v6 = vadd.s32 536870912, %v6945_v51  ;;  %v6996_v9 = vand.u32 8388607, %v6989_v3  ;;  %v6999_v30 = vadd.s32 1, %v8492_v44  ;;  %vm6876_vm0 = vcmp.lt.s32.totalorder %v6875_v27, 2 }
 0x6b2   : > { %vm6877_vm7 = vcmp.eq.s32.totalorder %v6875_v27, 0  ;;  %v6882_v61 = vsel %vm6880_vm12, %v6881_v60, %v9314_v57  ;;  %v6756_v4 = vor.u32 4788187, %v6755_v39  ;;  %v6770_v13 = vadd.s32 3, %v6766_v17 }
 0x6b3   : > { %v6879_v56 = vsel %vm6877_vm7, %v9312_v0, %v6878_v29  ;;  %v13611_v14 = vshrl.u32 %v6946_v6, 30  ;;  %vm7000_vm14 = vcmp.gt.s32.totalorder %v6999_v30, 0  ;;  %v6759_v25 = vcvt.s32.f32 %v6752_v26 }
 0x6b4   : > { %v6883_v8 = vsel %vm6876_vm0, %v6879_v56, %v6882_v61  ;;  %v6757_v53 = vand.u32 2147483647, %v6756_v4  ;;  %v7001_v43 = vsel %vm7000_vm14, %v6999_v30, 0  ;;  %v6997_v31 = vor.u32 8388608, %v6996_v9  ;;  %v13666_v4 = vpop.f32.mrb[13].mxu1 }
 0x6b5   : > { %v6884_v7 = vsel %vm6873_vm5, nan, %v6883_v8  ;;  %v6948_v52 = vshll.u32 %v13611_v14, 30  ;;  %v7003_v27 = vand.u32 31, %v7001_v43  ;;  %v13617_v55 = vand.u32 3, %v6770_v13 }
 0x6b6   : > { %8239 = vst [vmem:[%s13590_s5 + $0x10] sm:$0xff] %v6884_v7  ;;  %v6760_v15 = vmul.f32 %v6759_v25, %v6757_v53  ;;  %v6941_v41 = vadd.s32 %v13546_v34, %v13572_v23  ;;  %v13625_v5 = vadd.f32 %v13286_v63, %v13552_v18  ;;  %v13628_v40 = vshrl.u32 %v7001_v43, 5 }
 0x6b7   : > { %v13619_v10 = vsub.s32 %v6945_v51, %v6948_v52  ;;  %v7004_v28 = vsub.s32 32, %v7003_v27  ;;  %v13630_v24 = vshll.u32 %v6997_v31, 8  ;;  %v13634_v19 = vadd.f32 %v13293_v36, %v13552_v18 }
 0x6b8   : > { %v6761_v45 = vxor.u32 2147483648, %v6760_v15  ;;  %v7006_v34 = vshll.u32 %v14783_v54, %v7003_v27  ;;  %v7009_v62 = vshll.u32 %v14787_v46, %v7003_v27  ;;  %v6971_v35 = vsub.s32 4, %v13611_v14 }
 0x6b9   : > { %v6951_v48 = vsub.s32 0, %v13619_v10  ;;  %v7007_v23 = vshrl.u32 %v14787_v46, %v7004_v28  ;;  %v7010_v63 = vshrl.u32 %v14788_v37, %v7004_v28  ;;  %v7013_v36 = vshrl.u32 %v14789_v38, %v7004_v28 }
 0x6ba   : > { %v6762_v59 = vsel %vm6679_vm11, %v6761_v45, %v6760_v15  ;;  %v7012_v32 = vshll.u32 %v14788_v37, %v7003_v27  ;;  %v7200_v12 = vand.u32 2139095040, %v13625_v5  ;;  %v7015_v33 = vshll.u32 %v14789_v38, %v7003_v27 }
 0x6bb   : > { %v6765_v16 = vsel %vm13603_vm13, %v13278_v49, %v6762_v59  ;;  %v8489_v58 = vmin.u32 %v6951_v48, %v13619_v10  ;;  %v7008_v51 = vor.u32 %v7007_v23, %v7006_v34  ;;  %v7011_v44 = vor.u32 %v7010_v63, %v7009_v62 }
 0x6bc   : > { %9315 = vcosq.f32 %v6765_v16  ;;  %v7014_v57 = vor.u32 %v7013_v36, %v7012_v32  ;;  %v7016_v60 = vshrl.u32 %v14790_v21, %v7004_v28  ;;  %vm7021_vm10 = vcmp.lt.s32.totalorder %v13628_v40, 1 }
 0x6bd   : > { %9317 = vsinq.f32 %v6765_v16  ;;  %v6953_v0 = vclz %v8489_v58  ;;  %v7018_v39 = vshll.u32 %v14790_v21, %v7003_v27  ;;  %v7019_v17 = vshrl.u32 %v14791_v22, %v7004_v28 }
 0x6be   : > { %vm7022_vm2 = vcmp.lt.s32.totalorder %v13628_v40, 2  ;;  %vm6776_vm3 = vcmp.eq.s32.totalorder %v13617_v55, 2  ;;  %v7005_v29 = vshrl.u32 %v14783_v54, %v7004_v28  ;;  %v7017_v6 = vor.u32 %v7016_v60, %v7015_v33 }
 0x6bf   : > { %v8490_v26 = vadd.s32 4294967294, %v6953_v0  ;;  %vm7023_vm9 = vcmp.lt.s32.totalorder %v13628_v40, 3  ;;  %vm7024_vm15 = vcmp.lt.s32.totalorder %v13628_v40, 4  ;;  %vm6773_vm11 = vcmp.eq.s32.totalorder %v13617_v55, 0 }
 0x6c0   : > { %vm6887_vm1 = vcmp.lt.s32.totalorder %v13295_v20, 0  ;;  %v7020_v9 = vor.u32 %v7019_v17, %v7018_v39  ;;  %v7026_v30 = vsel %vm7024_vm15, %v7014_v57, 2102212464  ;;  %v7029_v61 = vsel %vm7021_vm10, %v7008_v51, %v7011_v44 }
 0x6c1   : > { %vm8491_vm4 = vcmp.lt.s32.totalorder %v8490_v26, 0  ;;  %vm6772_vm8 = vcmp.lt.s32.totalorder %v13617_v55, 2  ;;  %v7025_v13 = vsel %vm7021_vm10, %v7005_v29, %v7008_v51  ;;  %v7030_v8 = vsel %vm7024_vm15, %v7017_v6, 920167782 }
 0x6c2   : > { %v6956_v56 = vsel %vm8491_vm4, 0, %v8490_v26  ;;  %v7201_v53 = vshrl.u32 %v7200_v12, 23  ;;  %vm6769_vm5 = vweird.f32 %v13278_v49  ;;  %v7031_v7 = vsel %vm7023_vm9, %v7014_v57, %v7030_v8 }
 0x6c3   : > { %v6957_v25 = vsub.s32 32, %v6956_v56  ;;  %v6961_v43 = vsub.s32 4294967266, %v6956_v56  ;;  %v7033_v52 = vsel %vm7021_vm10, %v7011_v44, %v7014_v57  ;;  %vm13680_vm6 = vcmp.le.f32.partialorder %v6885_v1, 0.7853982 }
 0x6c4   : > { %v7027_v15 = vsel %vm7023_vm9, %v7011_v44, %v7026_v30  ;;  %v7032_v27 = vsel %vm7022_vm2, %v7029_v61, %v7031_v7  ;;  %v7034_v45 = vsel %vm7024_vm15, %v7020_v9, 1326507024  ;;  %v8500_v28 = vadd.s32 4294967169, %v7201_v53 }
 0x6c5   : > { %v6958_v48 = vshll.u32 %v13619_v10, %v6956_v56  ;;  %v6959_v59 = vshrl.u32 %v6941_v41, %v6957_v25  ;;  %v6962_v34 = vadd.s32 127, %v6961_v43  ;;  %v7035_v1 = vsel %vm7023_vm9, %v7017_v6, %v7034_v45 }
 0x6c6   : > { %v9316_v23 = vpop.eup %9315  ;;  %v7036_v63 = vsel %vm7022_vm2, %v7033_v52, %v7035_v1  ;;  %v13696_v16 = vmul.u32.u64.low %v13630_v24, %v7032_v27  ;;  %v13697_v58 = vmul.u32.u64.high %v13630_v24, %v7032_v27, %v13696_v16  ;;  %v7207_v62 = vadd.s32 1, %v8500_v28 }
 0x6c7   : > { %v9318_v36 = vpop.eup %9317  ;;  %v6777_v32 = vxor.u32 2147483648, %v9316_v23  ;;  %v6960_v12 = vor.u32 %v6959_v59, %v6958_v48  ;;  %v6963_v0 = vshll.u32 %v6962_v34, 23  ;;  %v7197_v10 = vand.u32 2147483647, %v13625_v5 }
 0x6c8   : > { %v6774_v41 = vxor.u32 2147483648, %v9318_v36  ;;  %v13702_v51 = vmul.u32.u64.low %v13630_v24, %v7036_v63  ;;  %v13703_v44 = vmul.u32.u64.high %v13630_v24, %v7036_v63, %v13702_v51  ;;  %vm7208_vm12 = vcmp.gt.s32.totalorder %v7207_v62, 0 }
 0x6c9   : > { %v6778_v57 = vsel %vm6776_vm3, %v6777_v32, %v9318_v36  ;;  %v6964_v33 = vor.u32 4788187, %v6963_v0  ;;  %v7028_v60 = vsel %vm7022_vm2, %v7025_v13, %v7027_v15  ;;  %v7209_v26 = vsel %vm7208_vm12, %v7207_v62, 0 }
 0x6ca   : > { %v6775_v39 = vsel %vm6773_vm11, %v9316_v23, %v6774_v41  ;;  %v6972_v17 = vsel %vm6887_vm1, %v6971_v35, %v13611_v14  ;;  %v7047_v29 = vadd.s32 1, %v13697_v58  ;;  %v7211_v6 = vand.u32 31, %v7209_v26 }
 0x6cb   : > { %v6779_v9 = vsel %vm6772_vm8, %v6775_v39, %v6778_v57  ;;  %v6965_v30 = vand.u32 2147483647, %v6964_v33  ;;  %v6967_v61 = vcvt.s32.f32 %v6960_v12  ;;  %v7204_v40 = vand.u32 8388607, %v7197_v10 }
 0x6cc   : > { %v6780_v56 = vsel %vm6769_vm5, nan, %v6779_v9  ;;  %v7044_v13 = vmul.u32 %v13630_v24, %v7028_v60  ;;  %vm7046_vm13 = vc.u32 %v13703_v44, %v13696_v16  ;;  %v7212_v14 = vsub.s32 32, %v7211_v6 }
 0x6cd   : > { %8238 = vst [vmem:[%s13590_s5 + $0x8] sm:$0xff] %v6780_v56  ;;  %v6968_v35 = vmul.f32 %v6967_v61, %v6965_v30  ;;  %v6974_v55 = vsel %vm13680_vm6, 0, %v6972_v17  ;;  %v7048_v8 = vsel %vm7046_vm13, %v7047_v29, %v13697_v58  ;;  %v7210_v53 = vshrl.u32 %v7209_v26, 5 }
 0x6ce   : > { %v7049_v25 = vadd.s32 %v7048_v8, %v7044_v13  ;;  %v7214_v43 = vshll.u32 %v14783_v54, %v7211_v6  ;;  %v7215_v49 = vshrl.u32 %v14787_v46, %v7212_v14  ;;  %v7218_v7 = vshrl.u32 %v14788_v37, %v7212_v14 }
 0x6cf   : > { %v6969_v24 = vxor.u32 2147483648, %v6968_v35  ;;  %v7217_v52 = vshll.u32 %v14787_v46, %v7211_v6  ;;  %v7220_v15 = vshll.u32 %v14788_v37, %v7211_v6  ;;  %v7221_v27 = vshrl.u32 %v14789_v38, %v7212_v14 }
 0x6d0   : > { %v7050_v45 = vadd.s32 536870912, %v7049_v25  ;;  %v7216_v28 = vor.u32 %v7215_v49, %v7214_v43  ;;  %v7223_v48 = vshll.u32 %v14789_v38, %v7211_v6  ;;  %v7224_v59 = vshrl.u32 %v14790_v21, %v7212_v14 }
 0x6d1   : > { %v6970_v34 = vsel %vm6887_vm1, %v6969_v24, %v6968_v35  ;;  %v7219_v1 = vor.u32 %v7218_v7, %v7217_v52  ;;  %v7222_v23 = vor.u32 %v7221_v27, %v7220_v15  ;;  %v7227_v63 = vshrl.u32 %v14791_v22, %v7212_v14 }
 0x6d2   : > { %v6973_v58 = vsel %vm13680_vm6, %v13295_v20, %v6970_v34  ;;  %v7051_v62 = vshrl.u32 %v7050_v45, 30  ;;  %v7225_v36 = vor.u32 %v7224_v59, %v7223_v48  ;;  %v7226_v32 = vshll.u32 %v14790_v21, %v7211_v6 }
 0x6d3   : > { %9319 = vcosq.f32 %v6973_v58  ;;  %v6978_v12 = vadd.s32 3, %v6974_v55  ;;  %v7205_v0 = vor.u32 8388608, %v7204_v40  ;;  %vm7229_vm0 = vcmp.lt.s32.totalorder %v7210_v53, 1 }
 0x6d4   : > { %9321 = vsinq.f32 %v6973_v58  ;;  %v7052_v41 = vshll.u32 %v7051_v62, 30  ;;  %v7228_v51 = vor.u32 %v7227_v63, %v7226_v32  ;;  %vm7232_vm7 = vcmp.lt.s32.totalorder %v7210_v53, 4 }
 0x6d5   : > { %v7213_v57 = vshrl.u32 %v14783_v54, %v7212_v14  ;;  %vm7231_vm14 = vcmp.lt.s32.totalorder %v7210_v53, 3  ;;  %v7237_v33 = vsel %vm7229_vm0, %v7216_v28, %v7219_v1  ;;  %v7238_v31 = vsel %vm7232_vm7, %v7225_v36, 920167782 }
 0x6d6   : > { %v13748_v60 = vsub.s32 %v7049_v25, %v7052_v41  ;;  %vm7230_vm10 = vcmp.lt.s32.totalorder %v7210_v53, 2  ;;  %v7234_v26 = vsel %vm7232_vm7, %v7222_v23, 2102212464  ;;  %v7239_v39 = vsel %vm7231_vm14, %v7222_v23, %v7238_v31 }
 0x6d7   : > { %v7075_v17 = vsub.s32 4, %v7051_v62  ;;  %v7240_v29 = vsel %vm7230_vm10, %v7237_v33, %v7239_v39  ;;  %v7241_v6 = vsel %vm7229_vm0, %v7219_v1, %v7222_v23  ;;  %v7245_v9 = vshll.u32 %v7205_v0, 8 }
 0x6d8   : > { %v6979_v30 = vand.u32 3, %v6978_v12  ;;  %v7055_v61 = vsub.s32 0, %v13748_v60  ;;  %v7233_v40 = vsel %vm7229_vm0, %v7213_v57, %v7216_v28  ;;  %v7242_v56 = vsel %vm7232_vm7, %v7228_v51, 1326507024 }
 0x6d9   : > { %v7235_v13 = vsel %vm7231_vm14, %v7219_v1, %v7234_v26  ;;  %v7243_v14 = vsel %vm7231_vm14, %v7225_v36, %v7242_v56  ;;  %v13759_v35 = vmul.u32.u64.low %v7245_v9, %v7240_v29  ;;  %v13760_v55 = vmul.u32.u64.high %v7245_v9, %v7240_v29, %v13759_v35 }
 0x6da   : > { %vm6977_vm2 = vweird.f32 %v13295_v20  ;;  %vm6991_vm3 = vcmp.lt.s32.totalorder %v13566_v2, 0  ;;  %v8493_v8 = vmin.u32 %v7055_v61, %v13748_v60  ;;  %v7244_v25 = vsel %vm7230_vm10, %v7241_v6, %v7243_v14  ;;  %v13793_v6 = vpop.f32.mrb[14].mxu0 }
 0x6db   : > { %v7076_v43 = vsel %vm6991_vm3, %v7075_v17, %v7051_v62  ;;  %v13768_v49 = vmul.u32.u64.low %v7245_v9, %v7244_v25  ;;  %v13769_v7 = vmul.u32.u64.high %v7245_v9, %v7244_v25, %v13768_v49  ;;  %v7096_v24 = vand.u32 2139095040, %v13634_v19 }
 0x6dc   : > { %vm13774_vm9 = vcmp.le.f32.partialorder %v6989_v3, 0.7853982  ;;  %v7057_v15 = vclz %v8493_v8  ;;  %v7236_v27 = vsel %vm7230_vm10, %v7233_v40, %v7235_v13  ;;  %v7093_v45 = vand.u32 2147483647, %v13634_v19 }
 0x6dd   : > { %v9320_v28 = vpop.eup %9319  ;;  %vm6980_vm15 = vcmp.lt.s32.totalorder %v6979_v30, 2  ;;  %vm6981_vm11 = vcmp.eq.s32.totalorder %v6979_v30, 0  ;;  %v7255_v48 = vadd.s32 1, %v13760_v55  ;;  %v7097_v59 = vshrl.u32 %v7096_v24, 23 }
 0x6de   : > { %v9322_v34 = vpop.eup %9321  ;;  %vm6984_vm1 = vcmp.eq.s32.totalorder %v6979_v30, 2  ;;  %v6985_v1 = vxor.u32 2147483648, %v9320_v28  ;;  %v8494_v23 = vadd.s32 4294967294, %v7057_v15  ;;  %v7078_v3 = vsel %vm13774_vm9, 0, %v7076_v43 }
 0x6df   : > { %v6982_v63 = vxor.u32 2147483648, %v9322_v34  ;;  %v7252_v58 = vmul.u32 %v7245_v9, %v7236_v27  ;;  %vm7254_vm4 = vc.u32 %v13769_v7, %v13759_v35  ;;  %v8496_v53 = vadd.s32 4294967169, %v7097_v59 }
 0x6e0   : > { %v6986_v62 = vsel %vm6984_vm1, %v6985_v1, %v9322_v34  ;;  %vm8495_vm8 = vcmp.lt.s32.totalorder %v8494_v23, 0  ;;  %v7256_v36 = vsel %vm7254_vm4, %v7255_v48, %v13760_v55  ;;  %v7100_v32 = vand.u32 8388607, %v7093_v45  ;;  %v13797_v55 = vpop.permute.xlu0 %5173 }
 0x6e1   : > { %v6983_v12 = vsel %vm6981_vm11, %v9320_v28, %v6982_v63  ;;  %v7060_v0 = vsel %vm8495_vm8, 0, %v8494_v23  ;;  %v7257_v41 = vadd.s32 %v7256_v36, %v7252_v58  ;;  %v7103_v51 = vadd.s32 1, %v8496_v53 }
 0x6e2   : > { %v6987_v57 = vsel %vm6980_vm15, %v6983_v12, %v6986_v62  ;;  %v7045_v33 = vadd.s32 %v13696_v16, %v13703_v44  ;;  %v7061_v31 = vsub.s32 32, %v7060_v0  ;;  %v7065_v26 = vsub.s32 4294967266, %v7060_v0 }
 0x6e3   : > { %v6988_v39 = vsel %vm6977_vm2, nan, %v6987_v57  ;;  %v7082_v17 = vadd.s32 3, %v7078_v3  ;;  %v7258_v29 = vadd.s32 536870912, %v7257_v41  ;;  %vm7104_vm5 = vcmp.gt.s32.totalorder %v7103_v51, 0 }
 0x6e4   : > { %8240 = vst [vmem:[%s13590_s5 + $0x18] sm:$0xff] %v6988_v39  ;;  %v7062_v9 = vshll.u32 %v13748_v60, %v7060_v0  ;;  %v7063_v61 = vshrl.u32 %v7045_v33, %v7061_v31  ;;  %v7066_v40 = vadd.s32 127, %v7065_v26  ;;  %v7105_v30 = vsel %vm7104_vm5, %v7103_v51, 0 }
 0x6e5   : > { %v7259_v56 = vshrl.u32 %v7258_v29, 30  ;;  %v7101_v13 = vor.u32 8388608, %v7100_v32  ;;  %v7107_v14 = vand.u32 31, %v7105_v30  ;;  %v13799_v20 = vand.u32 3, %v7082_v17 }
 0x6e6   : > { %v7064_v16 = vor.u32 %v7063_v61, %v7062_v9  ;;  %v7067_v44 = vshll.u32 %v7066_v40, 23  ;;  %vm7199_vm6 = vcmp.lt.s32.totalorder %v13625_v5, 0  ;;  %v7253_v49 = vadd.s32 %v13759_v35, %v13769_v7 }
 0x6e7   : > { %v7260_v8 = vshll.u32 %v7259_v56, 30  ;;  %v7108_v25 = vsub.s32 32, %v7107_v14  ;;  %v13805_v60 = vadd.f32 %v13298_v50, %v13552_v18  ;;  %v13809_v24 = vadd.f32 %v13381_v11, %v13797_v55 }
 0x6e8   : > { %v7068_v43 = vor.u32 4788187, %v7067_v44  ;;  %v7106_v27 = vshrl.u32 %v7105_v30, 5  ;;  %v13814_v48 = vshll.u32 %v7101_v13, 8  ;;  %v7071_v34 = vcvt.s32.f32 %v7064_v16 }
 0x6e9   : > { %v13811_v15 = vsub.s32 %v7257_v41, %v7260_v8  ;;  %v7111_v28 = vshrl.u32 %v14787_v46, %v7108_v25  ;;  %v7114_v1 = vshrl.u32 %v14788_v37, %v7108_v25  ;;  %v7117_v35 = vshrl.u32 %v14789_v38, %v7108_v25 }
 0x6ea   : > { %v7069_v59 = vand.u32 2147483647, %v7068_v43  ;;  %v7283_v18 = vsub.s32 4, %v7259_v56  ;;  %v7110_v7 = vshll.u32 %v14783_v54, %v7107_v14  ;;  %v7113_v11 = vshll.u32 %v14787_v46, %v7107_v14 }
 0x6eb   : > { %v7263_v50 = vsub.s32 0, %v13811_v15  ;;  %v7116_v3 = vshll.u32 %v14788_v37, %v7107_v14  ;;  %v7119_v63 = vshll.u32 %v14789_v38, %v7107_v14  ;;  %v7120_v58 = vshrl.u32 %v14790_v21, %v7108_v25 }
 0x6ec   : > { %v7072_v23 = vmul.f32 %v7071_v34, %v7069_v59  ;;  %v7112_v62 = vor.u32 %v7111_v28, %v7110_v7  ;;  %v7115_v36 = vor.u32 %v7114_v1, %v7113_v11  ;;  %v7123_v32 = vshrl.u32 %v14791_v22, %v7108_v25 }
 0x6ed   : > { %v8501_v53 = vmin.u32 %v7263_v50, %v13811_v15  ;;  %v7118_v0 = vor.u32 %v7117_v35, %v7116_v3  ;;  %v7121_v41 = vor.u32 %v7120_v58, %v7119_v63  ;;  %v7122_v51 = vshll.u32 %v14790_v21, %v7107_v14  ;;  %v13839_v14 = vpop.f32.mrb[14].mxu1 }
 0x6ee   : > { %v7073_v12 = vxor.u32 2147483648, %v7072_v23  ;;  %v7284_v33 = vsel %vm7199_vm6, %v7283_v18, %v7259_v56  ;;  %v7109_v31 = vshrl.u32 %v14783_v54, %v7108_v25  ;;  %v7304_v26 = vand.u32 2139095040, %v13805_v60 }
 0x6ef   : > { %v7265_v57 = vclz %v8501_v53  ;;  %v7124_v17 = vor.u32 %v7123_v32, %v7122_v51  ;;  %vm7125_vm12 = vcmp.lt.s32.totalorder %v7106_v27, 1  ;;  %vm7126_vm13 = vcmp.lt.s32.totalorder %v7106_v27, 2 }
 0x6f0   : > { %v7074_v39 = vsel %vm6991_vm3, %v7073_v12, %v7072_v23  ;;  %vm7127_vm0 = vcmp.lt.s32.totalorder %v7106_v27, 3  ;;  %vm7128_vm7 = vcmp.lt.s32.totalorder %v7106_v27, 4  ;;  %v7133_v40 = vsel %vm7125_vm12, %v7112_v62, %v7115_v36 }
 0x6f1   : > { %v7077_v29 = vsel %vm13774_vm9, %v13566_v2, %v7074_v39  ;;  %v8502_v9 = vadd.s32 4294967294, %v7265_v57  ;;  %v7130_v61 = vsel %vm7128_vm7, %v7118_v0, 2102212464  ;;  %v7134_v30 = vsel %vm7128_vm7, %v7121_v41, 920167782 }
 0x6f2   : > { %9323 = vcosq.f32 %v7077_v29  ;;  %v7129_v56 = vsel %vm7125_vm12, %v7109_v31, %v7112_v62  ;;  %v7135_v13 = vsel %vm7127_vm0, %v7118_v0, %v7134_v30  ;;  %v7137_v44 = vsel %vm7125_vm12, %v7115_v36, %v7118_v0 }
 0x6f3   : > { %9325 = vsinq.f32 %v7077_v29  ;;  %vm8503_vm14 = vcmp.lt.s32.totalorder %v8502_v9, 0  ;;  %v7136_v52 = vsel %vm7126_vm13, %v7133_v40, %v7135_v13  ;;  %v7138_v8 = vsel %vm7128_vm7, %v7124_v17, 1326507024 }
 0x6f4   : > { %v7268_v16 = vsel %vm8503_vm14, 0, %v8502_v9  ;;  %v7131_v28 = vsel %vm7127_vm0, %v7115_v36, %v7130_v61  ;;  %v7139_v59 = vsel %vm7127_vm0, %v7121_v41, %v7138_v8  ;;  %vm13858_vm10 = vcmp.le.f32.partialorder %v7197_v10, 0.7853982 }
 0x6f5   : > { %v7269_v25 = vsub.s32 32, %v7268_v16  ;;  %v7273_v43 = vsub.s32 4294967266, %v7268_v16  ;;  %v7270_v34 = vshll.u32 %v13811_v15, %v7268_v16  ;;  %v7140_v1 = vsel %vm7126_vm13, %v7137_v44, %v7139_v59 }
 0x6f6   : > { %v13848_v35 = vmul.u32.u64.low %v13814_v48, %v7136_v52  ;;  %v13849_v50 = vmul.u32.u64.high %v13814_v48, %v7136_v52, %v13848_v35  ;;  %v13853_v11 = vmul.u32.u64.low %v13814_v48, %v7140_v1  ;;  %v13854_v23 = vmul.u32.u64.high %v13814_v48, %v7140_v1, %v13853_v11 }
 0x6f7   : > { %v7271_v18 = vshrl.u32 %v7253_v49, %v7269_v25  ;;  %v7274_v7 = vadd.s32 127, %v7273_v43  ;;  %v7132_v15 = vsel %vm7126_vm13, %v7129_v56, %v7131_v28  ;;  %v7305_v63 = vshrl.u32 %v7304_v26, 23 }
 0x6f8   : > { %v7286_v62 = vsel %vm13858_vm10, 0, %v7284_v33  ;;  %v7151_v49 = vadd.s32 1, %v13849_v50  ;;  %v7301_v36 = vand.u32 2147483647, %v13805_v60  ;;  %v7408_v12 = vand.u32 2139095040, %v13809_v24 }
 0x6f9   : > { %v7272_v58 = vor.u32 %v7271_v18, %v7270_v34  ;;  %v7275_v53 = vshll.u32 %v7274_v7, 23  ;;  %v8504_v32 = vadd.s32 4294967169, %v7305_v63  ;;  %vm7085_vm2 = vcmp.eq.s32.totalorder %v13799_v20, 0 }
 0x6fa   : > { %v7148_v0 = vmul.u32 %v13814_v48, %v7132_v15  ;;  %vm7150_vm3 = vc.u32 %v13854_v23, %v13848_v35  ;;  %vm7088_vm9 = vcmp.eq.s32.totalorder %v13799_v20, 2  ;;  %v7290_v41 = vadd.s32 3, %v7286_v62 }
 0x6fb   : > { %v7276_v10 = vor.u32 4788187, %v7275_v53  ;;  %v7152_v51 = vsel %vm7150_vm3, %v7151_v49, %v13849_v50  ;;  %v7311_v57 = vadd.s32 1, %v8504_v32  ;;  %v7279_v39 = vcvt.s32.f32 %v7272_v58 }
 0x6fc   : > { %v9324_v27 = vpop.eup %9323  ;;  %v7153_v17 = vadd.s32 %v7152_v51, %v7148_v0  ;;  %v7308_v9 = vand.u32 8388607, %v7301_v36  ;;  %v7409_v48 = vshrl.u32 %v7408_v12, 23  ;;  %vm7081_vm11 = vweird.f32 %v13566_v2 }
 0x6fd   : > { %v9326_v33 = vpop.eup %9325  ;;  %v7089_v31 = vxor.u32 2147483648, %v9324_v27  ;;  %v7277_v26 = vand.u32 2147483647, %v7276_v10  ;;  %vm7312_vm15 = vcmp.gt.s32.totalorder %v7311_v57, 0  ;;  %vm7084_vm1 = vcmp.lt.s32.totalorder %v13799_v20, 2 }
 0x6fe   : > { %v7086_v29 = vxor.u32 2147483648, %v9326_v33  ;;  %v7154_v30 = vadd.s32 536870912, %v7153_v17  ;;  %v7313_v56 = vsel %vm7312_vm15, %v7311_v57, 0  ;;  %v13880_v8 = vand.u32 3, %v7290_v41 }
 0x6ff   : > { %v7090_v61 = vsel %vm7088_vm9, %v7089_v31, %v9326_v33  ;;  %v7280_v40 = vmul.f32 %v7279_v39, %v7277_v26  ;;  %v7315_v16 = vand.u32 31, %v7313_v56  ;;  %v7309_v28 = vor.u32 8388608, %v7308_v9 }
 0x700   : > { %v7087_v13 = vsel %vm7085_vm2, %v9324_v27, %v7086_v29  ;;  %v13882_v25 = vshrl.u32 %v7154_v30, 30  ;;  %v7405_v34 = vand.u32 2147483647, %v13809_v24  ;;  %v8508_v50 = vadd.s32 4294967169, %v7409_v48 }
 0x701   : > { %v7091_v52 = vsel %vm7084_vm1, %v7087_v13, %v7090_v61  ;;  %v7281_v44 = vxor.u32 2147483648, %v7280_v40  ;;  %v7316_v59 = vsub.s32 32, %v7315_v16  ;;  %v7318_v20 = vshll.u32 %v14783_v54, %v7315_v16 }
 0x702   : > { %v7092_v43 = vsel %vm7081_vm11, nan, %v7091_v52  ;;  %v7156_v1 = vshll.u32 %v13882_v25, 30  ;;  %v7321_v11 = vshll.u32 %v14787_v46, %v7315_v16  ;;  %v7324_v58 = vshll.u32 %v14788_v37, %v7315_v16 }
 0x703   : > { %8241 = vst [vmem:[%s13590_s5 + $0x20] sm:$0xff] %v7092_v43  ;;  %v7282_v2 = vsel %vm7199_vm6, %v7281_v44, %v7280_v40  ;;  %v7319_v7 = vshrl.u32 %v14787_v46, %v7316_v59  ;;  %v7322_v15 = vshrl.u32 %v14788_v37, %v7316_v59  ;;  %v7325_v53 = vshrl.u32 %v14789_v38, %v7316_v59 }
 0x704   : > { %v7285_v18 = vsel %vm13858_vm10, %v13625_v5, %v7282_v2  ;;  %v13896_v63 = vsub.s32 %v7153_v17, %v7156_v1  ;;  %v7149_v62 = vadd.s32 %v13848_v35, %v13854_v23  ;;  %v7314_v49 = vshrl.u32 %v7313_v56, 5 }
 0x705   : > { %9327 = vcosq.f32 %v7285_v18  ;;  %v13902_v3 = vshll.u32 %v7309_v28, 8  ;;  %v7320_v12 = vor.u32 %v7319_v7, %v7318_v20  ;;  %v7323_v10 = vor.u32 %v7322_v15, %v7321_v11  ;;  %v13932_v15 = vpop.f32.mrb[15].mxu0 }
 0x706   : > { %9329 = vsinq.f32 %v7285_v18  ;;  %v7159_v32 = vsub.s32 0, %v13896_v63  ;;  %v7326_v0 = vor.u32 %v7325_v53, %v7324_v58  ;;  %v7327_v27 = vshll.u32 %v14789_v38, %v7315_v16 }
 0x707   : > { %v7328_v41 = vshrl.u32 %v14790_v21, %v7316_v59  ;;  %v7330_v51 = vshll.u32 %v14790_v21, %v7315_v16  ;;  %v7331_v57 = vshrl.u32 %v14791_v22, %v7316_v59  ;;  %vm7296_vm4 = vcmp.eq.s32.totalorder %v13880_v8, 2 }
 0x708   : > { %v8497_v35 = vmin.u32 %v7159_v32, %v13896_v63  ;;  %v7179_v23 = vsub.s32 4, %v13882_v25  ;;  %v13914_v33 = vand.u32 8388607, %v7405_v34  ;;  %v7415_v31 = vadd.s32 1, %v8508_v50 }
 0x709   : > { %vm7293_vm8 = vcmp.eq.s32.totalorder %v13880_v8, 0  ;;  %v7317_v26 = vshrl.u32 %v14783_v54, %v7316_v59  ;;  %v7329_v39 = vor.u32 %v7328_v41, %v7327_v27  ;;  %v7332_v17 = vor.u32 %v7331_v57, %v7330_v51 }
 0x70a   : > { %vm7333_vm5 = vcmp.lt.s32.totalorder %v7314_v49, 1  ;;  %vm7292_vm6 = vcmp.lt.s32.totalorder %v13880_v8, 2  ;;  %vm7095_vm12 = vcmp.lt.s32.totalorder %v13634_v19, 0  ;;  %v7161_v29 = vclz %v8497_v35 }
 0x70b   : > { %vm7334_vm13 = vcmp.lt.s32.totalorder %v7314_v49, 2  ;;  %vm7335_vm0 = vcmp.lt.s32.totalorder %v7314_v49, 3  ;;  %vm7336_vm7 = vcmp.lt.s32.totalorder %v7314_v49, 4  ;;  %vm7289_vm14 = vweird.f32 %v13625_v5 }
 0x70c   : > { %v7338_v9 = vsel %vm7336_vm7, %v7326_v0, 2102212464  ;;  %v7341_v48 = vsel %vm7333_vm5, %v7320_v12, %v7323_v10  ;;  %v7342_v61 = vsel %vm7336_vm7, %v7329_v39, 920167782  ;;  %v7345_v40 = vsel %vm7333_vm5, %v7323_v10, %v7326_v0 }
 0x70d   : > { %v8498_v30 = vadd.s32 4294967294, %v7161_v29  ;;  %v7337_v56 = vsel %vm7333_vm5, %v7317_v26, %v7320_v12  ;;  %v7343_v13 = vsel %vm7335_vm0, %v7326_v0, %v7342_v61  ;;  %v7346_v16 = vsel %vm7336_vm7, %v7332_v17, 1326507024 }
 0x70e   : > { %v7339_v52 = vsel %vm7335_vm0, %v7323_v10, %v7338_v9  ;;  %v7344_v44 = vsel %vm7334_vm13, %v7341_v48, %v7343_v13  ;;  %v7347_v43 = vsel %vm7335_vm0, %v7329_v39, %v7346_v16  ;;  %vm7416_vm10 = vcmp.gt.s32.totalorder %v7415_v31, 0 }
 0x70f   : > { %v9328_v28 = vpop.eup %9327  ;;  %vm8499_vm2 = vcmp.lt.s32.totalorder %v8498_v30, 0  ;;  %v7348_v59 = vsel %vm7334_vm13, %v7345_v40, %v7347_v43  ;;  %v13924_v2 = vmul.u32.u64.low %v13902_v3, %v7344_v44  ;;  %v13925_v1 = vmul.u32.u64.high %v13902_v3, %v7344_v44, %v13924_v2 }
 0x710   : > { %v9330_v20 = vpop.eup %9329  ;;  %v7297_v50 = vxor.u32 2147483648, %v9328_v28  ;;  %v7164_v18 = vsel %vm8499_vm2, 0, %v8498_v30  ;;  %v13929_v7 = vmul.u32.u64.low %v13902_v3, %v7348_v59  ;;  %v13930_v11 = vmul.u32.u64.high %v13902_v3, %v7348_v59, %v13929_v7 }
 0x711   : > { %v7294_v58 = vxor.u32 2147483648, %v9330_v20  ;;  %v7165_v53 = vsub.s32 32, %v7164_v18  ;;  %v7169_v32 = vsub.s32 4294967266, %v7164_v18  ;;  %v7340_v12 = vsel %vm7334_vm13, %v7337_v56, %v7339_v52 }
 0x712   : > { %v7298_v10 = vsel %vm7296_vm4, %v7297_v50, %v9330_v20  ;;  %v7166_v0 = vshll.u32 %v13896_v63, %v7164_v18  ;;  %v7413_v27 = vor.u32 8388608, %v13914_v33  ;;  %v7417_v41 = vsel %vm7416_vm10, %v7415_v31, 0 }
 0x713   : > { %v7295_v51 = vsel %vm7293_vm8, %v9328_v28, %v7294_v58  ;;  %v7167_v57 = vshrl.u32 %v7149_v62, %v7165_v53  ;;  %v7170_v35 = vadd.s32 127, %v7169_v32  ;;  %v7359_v26 = vadd.s32 1, %v13925_v1 }
 0x714   : > { %v7299_v49 = vsel %vm7292_vm6, %v7295_v51, %v7298_v10  ;;  %v7180_v39 = vsel %vm7095_vm12, %v7179_v23, %v13882_v25  ;;  %v7356_v63 = vmul.u32 %v13902_v3, %v7340_v12  ;;  %vm7358_vm3 = vc.u32 %v13930_v11, %v13924_v2 }
 0x715   : > { %v7300_v33 = vsel %vm7289_vm14, nan, %v7299_v49  ;;  %v7168_v31 = vor.u32 %v7167_v57, %v7166_v0  ;;  %v7171_v62 = vshll.u32 %v7170_v35, 23  ;;  %v7360_v17 = vsel %vm7358_vm3, %v7359_v26, %v13925_v1 }
 0x716   : > { %8243 = vst [vmem:[%s13590_s5 + $0x30] sm:$0xff] %v7300_v33  ;;  %vm13957_vm9 = vcmp.le.f32.partialorder %v7093_v45, 0.7853982  ;;  %v7361_v25 = vadd.s32 %v7360_v17, %v7356_v63  ;;  %v7419_v23 = vand.u32 31, %v7417_v41  ;;  %v13963_v9 = vshll.u32 %v7413_v27, 8 }
 0x717   : > { %v7172_v3 = vor.u32 4788187, %v7171_v62  ;;  %v7182_v29 = vsel %vm13957_vm9, 0, %v7180_v39  ;;  %v7175_v5 = vcvt.s32.f32 %v7168_v31  ;;  %v13965_v61 = vshrl.u32 %v7417_v41, 5 }
 0x718   : > { %v7362_v48 = vadd.s32 536870912, %v7361_v25  ;;  %v7420_v40 = vsub.s32 32, %v7419_v23  ;;  %v7422_v56 = vshll.u32 %v14783_v54, %v7419_v23  ;;  %v7425_v45 = vshll.u32 %v14787_v46, %v7419_v23 }
 0x719   : > { %v7173_v30 = vand.u32 2147483647, %v7172_v3  ;;  %v7428_v13 = vshll.u32 %v14788_v37, %v7419_v23  ;;  %v7431_v43 = vshll.u32 %v14789_v38, %v7419_v23  ;;  %v7186_v50 = vadd.s32 3, %v7182_v29 }
 0x71a   : > { %v7363_v16 = vshrl.u32 %v7362_v48, 30  ;;  %v7423_v52 = vshrl.u32 %v14787_v46, %v7420_v40  ;;  %v7426_v44 = vshrl.u32 %v14788_v37, %v7420_v40  ;;  %v7429_v59 = vshrl.u32 %v14789_v38, %v7420_v40 }
 0x71b   : > { %v7176_v28 = vmul.f32 %v7175_v5, %v7173_v30  ;;  %v7432_v1 = vshrl.u32 %v14790_v21, %v7420_v40  ;;  %v7435_v20 = vshrl.u32 %v14791_v22, %v7420_v40  ;;  %v7434_v10 = vshll.u32 %v14790_v21, %v7419_v23  ;;  %v14014_v5 = vpop.f32.mrb[15].mxu1 }
 0x71c   : > { %v7364_v18 = vshll.u32 %v7363_v16, 30  ;;  %v7424_v7 = vor.u32 %v7423_v52, %v7422_v56  ;;  %v7427_v58 = vor.u32 %v7426_v44, %v7425_v45  ;;  %v7430_v32 = vor.u32 %v7429_v59, %v7428_v13 }
 0x71d   : > { %v7177_v53 = vxor.u32 2147483648, %v7176_v28  ;;  %v7433_v12 = vor.u32 %v7432_v1, %v7431_v43  ;;  %vm7437_vm15 = vcmp.lt.s32.totalorder %v13965_v61, 1  ;;  %vm7440_vm11 = vcmp.lt.s32.totalorder %v13965_v61, 4 }
 0x71e   : > { %v13977_v0 = vsub.s32 %v7361_v25, %v7364_v18  ;;  %v13983_v27 = vadd.f32 %v13461_v47, %v13797_v55  ;;  %v7436_v51 = vor.u32 %v7435_v20, %v7434_v10  ;;  %v7445_v57 = vsel %vm7437_vm15, %v7424_v7, %v7427_v58 }
 0x71f   : > { %v7178_v41 = vsel %vm7095_vm12, %v7177_v53, %v7176_v28  ;;  %v7446_v35 = vsel %vm7440_vm11, %v7433_v12, 920167782  ;;  %vm7438_vm1 = vcmp.lt.s32.totalorder %v13965_v61, 2  ;;  %vm7439_vm4 = vcmp.lt.s32.totalorder %v13965_v61, 3 }
 0x720   : > { %v7181_v26 = vsel %vm13957_vm9, %v13634_v19, %v7178_v41  ;;  %v7367_v49 = vsub.s32 0, %v13977_v0  ;;  %v7387_v47 = vsub.s32 4, %v7363_v16  ;;  %v7421_v39 = vshrl.u32 %v14783_v54, %v7420_v40 }
 0x721   : > { %9331 = vcosq.f32 %v7181_v26  ;;  %v7447_v63 = vsel %vm7439_vm4, %v7430_v32, %v7446_v35  ;;  %v7442_v31 = vsel %vm7440_vm11, %v7430_v32, 2102212464  ;;  %v7449_v17 = vsel %vm7437_vm15, %v7427_v58, %v7430_v32 }
 0x722   : > { %9333 = vsinq.f32 %v7181_v26  ;;  %v8505_v33 = vmin.u32 %v7367_v49, %v13977_v0  ;;  %v7448_v62 = vsel %vm7438_vm1, %v7445_v57, %v7447_v63  ;;  %v7450_v8 = vsel %vm7440_vm11, %v7436_v51, 1326507024 }
 0x723   : > { %v14010_v25 = vmul.u32.u64.low %v13963_v9, %v7448_v62  ;;  %v14011_v23 = vmul.u32.u64.high %v13963_v9, %v7448_v62, %v14010_v25  ;;  %v7187_v3 = vand.u32 3, %v7186_v50  ;;  %v7441_v48 = vsel %vm7437_vm15, %v7421_v39, %v7424_v7 }
 0x724   : > { %v7369_v29 = vclz %v8505_v33  ;;  %v7443_v40 = vsel %vm7439_vm4, %v7427_v58, %v7442_v31  ;;  %v7451_v30 = vsel %vm7439_vm4, %v7433_v12, %v7450_v8  ;;  %v7616_v56 = vand.u32 2139095040, %v13983_v27 }
 0x725   : > { %vm14025_vm8 = vcmp.le.f32.partialorder %v7301_v36, 0.7853982  ;;  %vm7303_vm5 = vcmp.lt.s32.totalorder %v13805_v60, 0  ;;  %v7452_v52 = vsel %vm7438_vm1, %v7449_v17, %v7451_v30  ;;  %v7613_v59 = vand.u32 2147483647, %v13983_v27 }
 0x726   : > { %v8506_v13 = vadd.s32 4294967294, %v7369_v29  ;;  %v7388_v44 = vsel %vm7303_vm5, %v7387_v47, %v7363_v16  ;;  %v14035_v43 = vmul.u32.u64.low %v13963_v9, %v7452_v52  ;;  %v14036_v28 = vmul.u32.u64.high %v13963_v9, %v7452_v52, %v14035_v43 }
 0x727   : > { %vm7185_vm6 = vweird.f32 %v13634_v19  ;;  %v7444_v36 = vsel %vm7438_vm1, %v7441_v48, %v7443_v40  ;;  %v7463_v1 = vadd.s32 1, %v14011_v23  ;;  %v7617_v20 = vshrl.u32 %v7616_v56, 23 }
 0x728   : > { %vm8507_vm12 = vcmp.lt.s32.totalorder %v8506_v13, 0  ;;  %vm7188_vm13 = vcmp.lt.s32.totalorder %v7187_v3, 2  ;;  %vm7192_vm0 = vcmp.eq.s32.totalorder %v7187_v3, 2  ;;  %v7357_v16 = vadd.s32 %v13924_v2, %v13930_v11 }
 0x729   : > { %v7372_v50 = vsel %vm8507_vm12, 0, %v8506_v13  ;;  %v7390_v58 = vsel %vm14025_vm8, 0, %v7388_v44  ;;  %v8516_v53 = vadd.s32 4294967169, %v7617_v20  ;;  %v7460_v61 = vmul.u32 %v13963_v9, %v7444_v36 }
 0x72a   : > { %v7373_v18 = vsub.s32 32, %v7372_v50  ;;  %v7377_v7 = vsub.s32 4294967266, %v7372_v50  ;;  %v7374_v12 = vshll.u32 %v13977_v0, %v7372_v50  ;;  %vm7462_vm7 = vc.u32 %v14036_v28, %v14010_v25 }
 0x72b   : > { %v9332_v32 = vpop.eup %9331  ;;  %v7620_v10 = vand.u32 8388607, %v7613_v59  ;;  %v7464_v57 = vsel %vm7462_vm7, %v7463_v1, %v14011_v23  ;;  %v7623_v49 = vadd.s32 1, %v8516_v53  ;;  %v14056_v0 = vadd.f32 %v13599_v42, %v13797_v55 }
 0x72c   : > { %v9334_v41 = vpop.eup %9333  ;;  %v7193_v2 = vxor.u32 2147483648, %v9332_v32  ;;  %v7375_v11 = vshrl.u32 %v7357_v16, %v7373_v18  ;;  %v7378_v51 = vadd.s32 127, %v7377_v7  ;;  %v7465_v26 = vadd.s32 %v7464_v57, %v7460_v61 }
 0x72d   : > { %v7190_v35 = vxor.u32 2147483648, %v9334_v41  ;;  %vm7189_vm14 = vcmp.eq.s32.totalorder %v7187_v3, 0  ;;  %v7394_v33 = vadd.s32 3, %v7390_v58  ;;  %vm7624_vm10 = vcmp.gt.s32.totalorder %v7623_v49, 0 }
 0x72e   : > { %v7194_v9 = vsel %vm7192_vm0, %v7193_v2, %v9334_v41  ;;  %v7376_v47 = vor.u32 %v7375_v11, %v7374_v12  ;;  %v7379_v39 = vshll.u32 %v7378_v51, 23  ;;  %v7466_v31 = vadd.s32 536870912, %v7465_v26 }
 0x72f   : > { %v7191_v63 = vsel %vm7189_vm14, %v9332_v32, %v7190_v35  ;;  %v7621_v8 = vor.u32 8388608, %v7620_v10  ;;  %v7625_v23 = vsel %vm7624_vm10, %v7623_v49, 0  ;;  %v7512_v40 = vand.u32 2139095040, %v14056_v0 }
 0x730   : > { %v7195_v62 = vsel %vm7188_vm13, %v7191_v63, %v7194_v9  ;;  %v7380_v17 = vor.u32 4788187, %v7379_v39  ;;  %v7467_v42 = vshrl.u32 %v7466_v31, 30  ;;  %v7627_v48 = vand.u32 31, %v7625_v23 }
 0x731   : > { %v7196_v29 = vsel %vm7185_vm6, nan, %v7195_v62  ;;  %v7383_v56 = vcvt.s32.f32 %v7376_v47  ;;  %vm7407_vm2 = vcmp.lt.s32.totalorder %v13809_v24, 0  ;;  %v14065_v13 = vand.u32 3, %v7394_v33 }
 0x732   : > { %8242 = vst [vmem:[%s13590_s5 + $0x28] sm:$0xff] %v7196_v29  ;;  %v7381_v30 = vand.u32 2147483647, %v7380_v17  ;;  %vm14069_vm3 = vcmp.le.f32.partialorder %v7405_v34, 0.7853982  ;;  %v7468_v52 = vshll.u32 %v7467_v42, 30  ;;  %v7461_v36 = vadd.s32 %v14010_v25, %v14036_v28 }
 0x733   : > { %v7628_v19 = vsub.s32 32, %v7627_v48  ;;  %v7509_v44 = vand.u32 2147483647, %v14056_v0  ;;  %v7491_v1 = vsub.s32 4, %v7467_v42  ;;  %v14076_v20 = vshll.u32 %v7621_v8, 8 }
 0x734   : > { %v7384_v43 = vmul.f32 %v7383_v56, %v7381_v30  ;;  %v14078_v16 = vsub.s32 %v7465_v26, %v7468_v52  ;;  %v14080_v50 = vshrl.u32 %v7625_v23, 5  ;;  %v7513_v18 = vshrl.u32 %v7512_v40, 23 }
 0x735   : > { %v7631_v34 = vshrl.u32 %v14787_v46, %v7628_v19  ;;  %v7630_v58 = vshll.u32 %v14783_v54, %v7627_v48  ;;  %v7634_v53 = vshrl.u32 %v14788_v37, %v7628_v19  ;;  %v7637_v32 = vshrl.u32 %v14789_v38, %v7628_v19 }
 0x736   : > { %v7385_v7 = vxor.u32 2147483648, %v7384_v43  ;;  %v7471_v12 = vsub.s32 0, %v14078_v16  ;;  %v7633_v25 = vshll.u32 %v14787_v46, %v7627_v48  ;;  %v7636_v28 = vshll.u32 %v14788_v37, %v7627_v48 }
 0x737   : > { %v7640_v61 = vshrl.u32 %v14790_v21, %v7628_v19  ;;  %v7492_v41 = vsel %vm7407_vm2, %v7491_v1, %v7467_v42  ;;  %v7632_v2 = vor.u32 %v7631_v34, %v7630_v58  ;;  %v7639_v11 = vshll.u32 %v14789_v38, %v7627_v48 }
 0x738   : > { %v7386_v10 = vsel %vm7303_vm5, %v7385_v7, %v7384_v43  ;;  %v8509_v57 = vmin.u32 %v7471_v12, %v14078_v16  ;;  %v7635_v35 = vor.u32 %v7634_v53, %v7633_v25  ;;  %v7638_v26 = vor.u32 %v7637_v32, %v7636_v28 }
 0x739   : > { %v7389_v51 = vsel %vm14025_vm8, %v13805_v60, %v7386_v10  ;;  %v7641_v49 = vor.u32 %v7640_v61, %v7639_v11  ;;  %v7642_v9 = vshll.u32 %v14790_v21, %v7627_v48  ;;  %v7643_v47 = vshrl.u32 %v14791_v22, %v7628_v19 }
 0x73a   : > { %9335 = vcosq.f32 %v7389_v51  ;;  %v7473_v39 = vclz %v8509_v57  ;;  %v8512_v63 = vadd.s32 4294967169, %v7513_v18  ;;  %v14103_v33 = vand.u32 8388607, %v7509_v44 }
 0x73b   : > { %9337 = vsinq.f32 %v7389_v51  ;;  %v7494_v45 = vsel %vm14069_vm3, 0, %v7492_v41  ;;  %v7629_v31 = vshrl.u32 %v14783_v54, %v7628_v19  ;;  %v7644_v62 = vor.u32 %v7643_v47, %v7642_v9 }
 0x73c   : > { %vm7645_vm9 = vcmp.lt.s32.totalorder %v14080_v50, 1  ;;  %v8510_v17 = vadd.s32 4294967294, %v7473_v39  ;;  %vm7647_vm15 = vcmp.lt.s32.totalorder %v14080_v50, 3  ;;  %vm7648_vm11 = vcmp.lt.s32.totalorder %v14080_v50, 4 }
 0x73d   : > { %v7653_v8 = vsel %vm7645_vm9, %v7632_v2, %v7635_v35  ;;  %v7650_v23 = vsel %vm7648_vm11, %v7638_v26, 2102212464  ;;  %v7654_v29 = vsel %vm7648_vm11, %v7641_v49, 920167782  ;;  %v7657_v42 = vsel %vm7645_vm9, %v7635_v35, %v7638_v26 }
 0x73e   : > { %v7658_v48 = vsel %vm7648_vm11, %v7644_v62, 1326507024  ;;  %vm8511_vm1 = vcmp.lt.s32.totalorder %v8510_v17, 0  ;;  %vm7646_vm4 = vcmp.lt.s32.totalorder %v14080_v50, 2  ;;  %v7655_v40 = vsel %vm7647_vm15, %v7638_v26, %v7654_v29 }
 0x73f   : > { %v7659_v30 = vsel %vm7647_vm15, %v7641_v49, %v7658_v48  ;;  %vm7396_vm8 = vcmp.lt.s32.totalorder %v14065_v13, 2  ;;  %v7476_v56 = vsel %vm8511_vm1, 0, %v8510_v17  ;;  %v7649_v52 = vsel %vm7645_vm9, %v7629_v31, %v7632_v2 }
 0x740   : > { %v7656_v19 = vsel %vm7646_vm4, %v7653_v8, %v7655_v40  ;;  %v7660_v43 = vsel %vm7646_vm4, %v7657_v42, %v7659_v30  ;;  %vm7393_vm5 = vweird.f32 %v13805_v60  ;;  %v7477_v1 = vsub.s32 32, %v7476_v56 }
 0x741   : > { %v7481_v34 = vsub.s32 4294967266, %v7476_v56  ;;  %v7651_v18 = vsel %vm7647_vm15, %v7635_v35, %v7650_v23  ;;  %v7519_v7 = vadd.s32 1, %v8512_v63  ;;  %v7478_v25 = vshll.u32 %v14078_v16, %v7476_v56 }
 0x742   : > { %v14125_v58 = vmul.u32.u64.low %v14076_v20, %v7660_v43  ;;  %v14126_v53 = vmul.u32.u64.high %v14076_v20, %v7660_v43, %v14125_v58  ;;  %v14129_v32 = vmul.u32.u64.low %v14076_v20, %v7656_v19  ;;  %v14130_v12 = vmul.u32.u64.high %v14076_v20, %v7656_v19, %v14129_v32 }
 0x743   : > { %v7479_v28 = vshrl.u32 %v7461_v36, %v7477_v1  ;;  %v7482_v61 = vadd.s32 127, %v7481_v34  ;;  %vm7520_vm6 = vcmp.gt.s32.totalorder %v7519_v7, 0  ;;  %vm7397_vm12 = vcmp.eq.s32.totalorder %v14065_v13, 0 }
 0x744   : > { %v9336_v10 = vpop.eup %9335  ;;  %vm7400_vm13 = vcmp.eq.s32.totalorder %v14065_v13, 2  ;;  %v7652_v41 = vsel %vm7646_vm4, %v7649_v52, %v7651_v18  ;;  %v7521_v2 = vsel %vm7520_vm6, %v7519_v7, 0  ;;  %v7517_v26 = vor.u32 8388608, %v14103_v33 }
 0x745   : > { %v9338_v11 = vpop.eup %9337  ;;  %v7401_v51 = vxor.u32 2147483648, %v9336_v10  ;;  %v7480_v57 = vor.u32 %v7479_v28, %v7478_v25  ;;  %v7483_v35 = vshll.u32 %v7482_v61, 23  ;;  %v7498_v16 = vadd.s32 3, %v7494_v45 }
 0x746   : > { %v7398_v49 = vxor.u32 2147483648, %v9338_v11  ;;  %vm7670_vm0 = vc.u32 %v14126_v53, %v14129_v32  ;;  %v7671_v36 = vadd.s32 1, %v14130_v12  ;;  %v7668_v50 = vmul.u32 %v14076_v20, %v7652_v41 }
 0x747   : > { %v7402_v9 = vsel %vm7400_vm13, %v7401_v51, %v9338_v11  ;;  %v7484_v47 = vor.u32 4788187, %v7483_v35  ;;  %v7523_v39 = vand.u32 31, %v7521_v2  ;;  %v7487_v31 = vcvt.s32.f32 %v7480_v57 }
 0x748   : > { %v7399_v63 = vsel %vm7397_vm12, %v9336_v10, %v7398_v49  ;;  %v7672_v62 = vsel %vm7670_vm0, %v7671_v36, %v14130_v12  ;;  %v14148_v33 = vadd.f32 %v13666_v4, %v13797_v55  ;;  %v14154_v29 = vand.u32 3, %v7498_v16 }
 0x749   : > { %v7403_v45 = vsel %vm7396_vm8, %v7399_v63, %v7402_v9  ;;  %v7485_v17 = vand.u32 2147483647, %v7484_v47  ;;  %v7673_v8 = vadd.s32 %v7672_v62, %v7668_v50  ;;  %v7524_v23 = vsub.s32 32, %v7523_v39 }
 0x74a   : > { %v7404_v20 = vsel %vm7393_vm5, nan, %v7403_v45  ;;  %v7522_v42 = vshrl.u32 %v7521_v2, 5  ;;  %v7526_v48 = vshll.u32 %v14783_v54, %v7523_v39  ;;  %v7529_v55 = vshll.u32 %v14787_v46, %v7523_v39 }
 0x74b   : > { %8244 = vst [vmem:[%s13590_s5 + $0x38] sm:$0xff] %v7404_v20  ;;  %v7488_v40 = vmul.f32 %v7487_v31, %v7485_v17  ;;  %v7674_v30 = vadd.s32 536870912, %v7673_v8  ;;  %v7527_v4 = vshrl.u32 %v14787_v46, %v7524_v23  ;;  %v7530_v13 = vshrl.u32 %v14788_v37, %v7524_v23 }
 0x74c   : > { %v7532_v56 = vshll.u32 %v14788_v37, %v7523_v39  ;;  %v7533_v52 = vshrl.u32 %v14789_v38, %v7524_v23  ;;  %v7536_v60 = vshrl.u32 %v14790_v21, %v7524_v23  ;;  %v7535_v34 = vshll.u32 %v14789_v38, %v7523_v39 }
 0x74d   : > { %v7489_v19 = vxor.u32 2147483648, %v7488_v40  ;;  %v7675_v43 = vshrl.u32 %v7674_v30, 30  ;;  %v7528_v1 = vor.u32 %v7527_v4, %v7526_v48  ;;  %v7531_v18 = vor.u32 %v7530_v13, %v7529_v55 }
 0x74e   : > { %v7534_v7 = vor.u32 %v7533_v52, %v7532_v56  ;;  %v7538_v58 = vshll.u32 %v14790_v21, %v7523_v39  ;;  %v7539_v12 = vshrl.u32 %v14791_v22, %v7524_v23  ;;  %v7537_v61 = vor.u32 %v7536_v60, %v7535_v34 }
 0x74f   : > { %v7490_v25 = vsel %vm7407_vm2, %v7489_v19, %v7488_v40  ;;  %v7676_v28 = vshll.u32 %v7675_v43, 30  ;;  %v14169_v10 = vshll.u32 %v7517_v26, 8  ;;  %vm7541_vm7 = vcmp.lt.s32.totalorder %v7522_v42, 1  ;;  %v14193_v40 = vpop.permute.xlu1 %5178 }
 0x750   : > { %v7493_v41 = vsel %vm14069_vm3, %v13809_v24, %v7490_v25  ;;  %v7540_v2 = vor.u32 %v7539_v12, %v7538_v58  ;;  %v7720_v11 = vand.u32 2139095040, %v14148_v33  ;;  %vm7542_vm14 = vcmp.lt.s32.totalorder %v7522_v42, 2 }
 0x751   : > { %9339 = vcosq.f32 %v7493_v41  ;;  %v14175_v51 = vsub.s32 %v7673_v8, %v7676_v28  ;;  %vm7544_vm10 = vcmp.lt.s32.totalorder %v7522_v42, 4  ;;  %v7525_v57 = vshrl.u32 %v14783_v54, %v7524_v23 }
 0x752   : > { %9341 = vsinq.f32 %v7493_v41  ;;  %v7546_v35 = vsel %vm7544_vm10, %v7534_v7, 2102212464  ;;  %v7549_v26 = vsel %vm7541_vm7, %v7528_v1, %v7531_v18  ;;  %v7699_v16 = vsub.s32 4, %v7675_v43 }
 0x753   : > { %v7679_v49 = vsub.s32 0, %v14175_v51  ;;  %vm7543_vm2 = vcmp.lt.s32.totalorder %v7522_v42, 3  ;;  %v7550_v3 = vsel %vm7544_vm10, %v7537_v61, 920167782  ;;  %v7545_v36 = vsel %vm7541_vm7, %v7525_v57, %v7528_v1 }
 0x754   : > { %v7551_v9 = vsel %vm7543_vm2, %v7534_v7, %v7550_v3  ;;  %v7553_v47 = vsel %vm7541_vm7, %v7531_v18, %v7534_v7  ;;  %v7554_v50 = vsel %vm7544_vm10, %v7540_v2, 1326507024  ;;  %v7547_v63 = vsel %vm7543_vm2, %v7531_v18, %v7546_v35 }
 0x755   : > { %v8517_v39 = vmin.u32 %v7679_v49, %v14175_v51  ;;  %v7552_v31 = vsel %vm7542_vm14, %v7549_v26, %v7551_v9  ;;  %v7555_v62 = vsel %vm7543_vm2, %v7537_v61, %v7554_v50  ;;  %vm7615_vm3 = vcmp.lt.s32.totalorder %v13983_v27, 0 }
 0x756   : > { %v7556_v45 = vsel %vm7542_vm14, %v7553_v47, %v7555_v62  ;;  %v14187_v17 = vmul.u32.u64.low %v14169_v10, %v7552_v31  ;;  %v14188_v8 = vmul.u32.u64.high %v14169_v10, %v7552_v31, %v14187_v17  ;;  %v7700_v20 = vsel %vm7615_vm3, %v7699_v16, %v7675_v43 }
 0x757   : > { %v7681_v23 = vclz %v8517_v39  ;;  %v7717_v48 = vand.u32 2147483647, %v14148_v33  ;;  %v7548_v30 = vsel %vm7542_vm14, %v7545_v36, %v7547_v63  ;;  %v7721_v13 = vshrl.u32 %v7720_v11, 23 }
 0x758   : > { %v14197_v4 = vmul.u32.u64.low %v14169_v10, %v7556_v45  ;;  %v14198_v55 = vmul.u32.u64.high %v14169_v10, %v7556_v45, %v14197_v4  ;;  %vm7500_vm9 = vcmp.lt.s32.totalorder %v14154_v29, 2  ;;  %vm14203_vm15 = vcmp.le.f32.partialorder %v7613_v59, 0.7853982 }
 0x759   : > { %v8518_v52 = vadd.s32 4294967294, %v7681_v23  ;;  %v14209_v60 = vadd.f32 %v13793_v6, %v14193_v40  ;;  %vm7501_vm11 = vcmp.eq.s32.totalorder %v14154_v29, 0  ;;  %vm7504_vm1 = vcmp.eq.s32.totalorder %v14154_v29, 2 }
 0x75a   : > { %v7567_v42 = vadd.s32 1, %v14188_v8  ;;  %v8520_v19 = vadd.s32 4294967169, %v7721_v13  ;;  %v7669_v1 = vadd.s32 %v14129_v32, %v14126_v53  ;;  %v7702_v59 = vsel %vm14203_vm15, 0, %v7700_v20 }
 0x75b   : > { %v9340_v43 = vpop.eup %9339  ;;  %vm8519_vm4 = vcmp.lt.s32.totalorder %v8518_v52, 0  ;;  %v7564_v34 = vmul.u32 %v14169_v10, %v7548_v30  ;;  %vm7566_vm8 = vc.u32 %v14198_v55, %v14187_v17  ;;  %v7724_v58 = vand.u32 8388607, %v7717_v48 }
 0x75c   : > { %v9342_v18 = vpop.eup %9341  ;;  %v7505_v6 = vxor.u32 2147483648, %v9340_v43  ;;  %v7684_v7 = vsel %vm8519_vm4, 0, %v8518_v52  ;;  %v7824_v61 = vand.u32 2139095040, %v14209_v60  ;;  %v7568_v10 = vsel %vm7566_vm8, %v7567_v42, %v14188_v8 }
 0x75d   : > { %v7502_v12 = vxor.u32 2147483648, %v9342_v18  ;;  %v7685_v25 = vsub.s32 32, %v7684_v7  ;;  %v7689_v28 = vsub.s32 4294967266, %v7684_v7  ;;  %v7686_v32 = vshll.u32 %v14175_v51, %v7684_v7 }
 0x75e   : > { %v7506_v53 = vsel %vm7504_vm1, %v7505_v6, %v9342_v18  ;;  %v7727_v41 = vadd.s32 1, %v8520_v19  ;;  %v7569_v35 = vadd.s32 %v7568_v10, %v7564_v34  ;;  %vm7497_vm5 = vweird.f32 %v13809_v24 }
 0x75f   : > { %v7503_v2 = vsel %vm7501_vm11, %v9340_v43, %v7502_v12  ;;  %v7687_v11 = vshrl.u32 %v7669_v1, %v7685_v25  ;;  %v7690_v57 = vadd.s32 127, %v7689_v28  ;;  %v7706_v51 = vadd.s32 3, %v7702_v59 }
 0x760   : > { %v7507_v26 = vsel %vm7500_vm9, %v7503_v2, %v7506_v53  ;;  %vm7728_vm6 = vcmp.gt.s32.totalorder %v7727_v41, 0  ;;  %v7570_v36 = vadd.s32 536870912, %v7569_v35  ;;  %v7725_v39 = vor.u32 8388608, %v7724_v58 }
 0x761   : > { %v7508_v49 = vsel %vm7497_vm5, nan, %v7507_v26  ;;  %v7688_v16 = vor.u32 %v7687_v11, %v7686_v32  ;;  %v7691_v3 = vshll.u32 %v7690_v57, 23  ;;  %v7729_v9 = vsel %vm7728_vm6, %v7727_v41, 0 }
 0x762   : > { %8245 = vst [vmem:[%s13590_s5 + $0x40] sm:$0xff] %v7508_v49  ;;  %v7571_v50 = vshrl.u32 %v7570_v36, 30  ;;  %v7825_v63 = vshrl.u32 %v7824_v61, 23  ;;  %v7731_v31 = vand.u32 31, %v7729_v9  ;;  %v14233_v24 = vand.u32 3, %v7706_v51 }
 0x763   : > { %v7692_v47 = vor.u32 4788187, %v7691_v3  ;;  %v7695_v45 = vcvt.s32.f32 %v7688_v16  ;;  %v7565_v29 = vadd.s32 %v14187_v17, %v14198_v55  ;;  %v7821_v20 = vand.u32 2147483647, %v14209_v60 }
 0x764   : > { %v7572_v8 = vshll.u32 %v7571_v50, 30  ;;  %v7732_v23 = vsub.s32 32, %v7731_v31  ;;  %v14239_v13 = vshll.u32 %v7725_v39, 8  ;;  %v8524_v52 = vadd.s32 4294967169, %v7825_v63 }
 0x765   : > { %v7693_v62 = vand.u32 2147483647, %v7692_v47  ;;  %v7730_v42 = vshrl.u32 %v7729_v9, 5  ;;  %v7734_v19 = vshll.u32 %v14783_v54, %v7731_v31  ;;  %vm7511_vm12 = vcmp.lt.s32.totalorder %v14056_v0, 0 }
 0x766   : > { %v14237_v4 = vsub.s32 %v7569_v35, %v7572_v8  ;;  %v7735_v43 = vshrl.u32 %v14787_v46, %v7732_v23  ;;  %v7738_v1 = vshrl.u32 %v14788_v37, %v7732_v23  ;;  %v7737_v55 = vshll.u32 %v14787_v46, %v7731_v31 }
 0x767   : > { %v7696_v30 = vmul.f32 %v7695_v45, %v7693_v62  ;;  %v7741_v34 = vshrl.u32 %v14789_v38, %v7732_v23  ;;  %v7740_v6 = vshll.u32 %v14788_v37, %v7731_v31  ;;  %v7743_v7 = vshll.u32 %v14789_v38, %v7731_v31 }
 0x768   : > { %v7575_v17 = vsub.s32 0, %v14237_v4  ;;  %v7736_v18 = vor.u32 %v7735_v43, %v7734_v19  ;;  %v7744_v58 = vshrl.u32 %v14790_v21, %v7732_v23  ;;  %v7739_v28 = vor.u32 %v7738_v1, %v7737_v55 }
 0x769   : > { %v7697_v59 = vxor.u32 2147483648, %v7696_v30  ;;  %v7746_v61 = vshll.u32 %v14790_v21, %v7731_v31  ;;  %v7742_v32 = vor.u32 %v7741_v34, %v7740_v6  ;;  %v7747_v41 = vshrl.u32 %v14791_v22, %v7732_v23 }
 0x76a   : > { %v8513_v25 = vmin.u32 %v7575_v17, %v14237_v4  ;;  %v7745_v10 = vor.u32 %v7744_v58, %v7743_v7  ;;  %v7595_v11 = vsub.s32 4, %v7571_v50  ;;  %v7831_v57 = vadd.s32 1, %v8524_v52 }
 0x76b   : > { %v7698_v12 = vsel %vm7615_vm3, %v7697_v59, %v7696_v30  ;;  %v7733_v35 = vshrl.u32 %v14783_v54, %v7732_v23  ;;  %v7748_v26 = vor.u32 %v7747_v41, %v7746_v61  ;;  %vm7749_vm13 = vcmp.lt.s32.totalorder %v7730_v42, 1 }
 0x76c   : > { %v7701_v53 = vsel %vm14203_vm15, %v13983_v27, %v7698_v12  ;;  %v7577_v2 = vclz %v8513_v25  ;;  %vm14262_vm0 = vcmp.le.f32.partialorder %v7509_v44, 0.7853982  ;;  %vm7751_vm7 = vcmp.lt.s32.totalorder %v7730_v42, 3 }
 0x76d   : > { %9343 = vcosq.f32 %v7701_v53  ;;  %vm7752_vm14 = vcmp.lt.s32.totalorder %v7730_v42, 4  ;;  %v7757_v16 = vsel %vm7749_vm13, %v7736_v18, %v7739_v28  ;;  %v7761_v51 = vsel %vm7749_vm13, %v7739_v28, %v7742_v32 }
 0x76e   : > { %9345 = vsinq.f32 %v7701_v53  ;;  %v8514_v56 = vadd.s32 4294967294, %v7577_v2  ;;  %v7754_v3 = vsel %vm7752_vm14, %v7742_v32, 2102212464  ;;  %v7758_v36 = vsel %vm7752_vm14, %v7745_v10, 920167782 }
 0x76f   : > { %v7762_v9 = vsel %vm7752_vm14, %v7748_v26, 1326507024  ;;  %vm7750_vm2 = vcmp.lt.s32.totalorder %v7730_v42, 2  ;;  %v7759_v47 = vsel %vm7751_vm7, %v7742_v32, %v7758_v36  ;;  %v7596_v63 = vsel %vm7511_vm12, %v7595_v11, %v7571_v50 }
 0x770   : > { %vm8515_vm10 = vcmp.lt.s32.totalorder %v8514_v56, 0  ;;  %v7763_v39 = vsel %vm7751_vm7, %v7745_v10, %v7762_v9  ;;  %v7760_v31 = vsel %vm7750_vm2, %v7757_v16, %v7759_v47  ;;  %vm7708_vm3 = vcmp.lt.s32.totalorder %v14233_v24, 2 }
 0x771   : > { %v7580_v44 = vsel %vm8515_vm10, 0, %v8514_v56  ;;  %v7764_v62 = vsel %vm7750_vm2, %v7761_v51, %v7763_v39  ;;  %v7753_v23 = vsel %vm7749_vm13, %v7733_v35, %v7736_v18  ;;  %v7755_v30 = vsel %vm7751_vm7, %v7739_v28, %v7754_v3 }
 0x772   : > { %v7581_v45 = vsub.s32 32, %v7580_v44  ;;  %v7585_v8 = vsub.s32 4294967266, %v7580_v44  ;;  %vm7705_vm9 = vweird.f32 %v13983_v27  ;;  %v7582_v1 = vshll.u32 %v14237_v4, %v7580_v44 }
 0x773   : > { %v14279_v52 = vmul.u32.u64.low %v14239_v13, %v7764_v62  ;;  %v14280_v19 = vmul.u32.u64.high %v14239_v13, %v7764_v62, %v14279_v52  ;;  %v14283_v50 = vmul.u32.u64.low %v14239_v13, %v7760_v31  ;;  %v14284_v43 = vmul.u32.u64.high %v14239_v13, %v7760_v31, %v14283_v50 }
 0x774   : > { %v7583_v59 = vshrl.u32 %v7565_v29, %v7581_v45  ;;  %v7586_v17 = vadd.s32 127, %v7585_v8  ;;  %vm7832_vm15 = vcmp.gt.s32.totalorder %v7831_v57, 0  ;;  %vm7709_vm11 = vcmp.eq.s32.totalorder %v14233_v24, 0 }
 0x775   : > { %v7756_v55 = vsel %vm7750_vm2, %v7753_v23, %v7755_v30  ;;  %v7828_v34 = vand.u32 8388607, %v7821_v20  ;;  %v7833_v18 = vsel %vm7832_vm15, %v7831_v57, 0  ;;  %vm7712_vm1 = vcmp.eq.s32.totalorder %v14233_v24, 2 }
 0x776   : > { %v7584_v7 = vor.u32 %v7583_v59, %v7582_v1  ;;  %v7587_v58 = vshll.u32 %v7586_v17, 23  ;;  %v7835_v12 = vand.u32 31, %v7833_v18  ;;  %v7598_v29 = vsel %vm14262_vm0, 0, %v7596_v63 }
 0x777   : > { %v9344_v6 = vpop.eup %9343  ;;  %vm7774_vm4 = vc.u32 %v14280_v19, %v14283_v50  ;;  %v7775_v4 = vadd.s32 1, %v14284_v43  ;;  %v7772_v53 = vmul.u32 %v14239_v13, %v7756_v55  ;;  %v7829_v2 = vor.u32 8388608, %v7828_v34 }
 0x778   : > { %v9346_v25 = vpop.eup %9345  ;;  %v7713_v28 = vxor.u32 2147483648, %v9344_v6  ;;  %v7588_v61 = vor.u32 4788187, %v7587_v58  ;;  %v7836_v32 = vsub.s32 32, %v7835_v12  ;;  %v14302_v11 = vadd.f32 %v13839_v14, %v14193_v40 }
 0x779   : > { %v7710_v42 = vxor.u32 2147483648, %v9346_v25  ;;  %v7776_v41 = vsel %vm7774_vm4, %v7775_v4, %v14284_v43  ;;  %v7591_v26 = vcvt.s32.f32 %v7584_v7  ;;  %v7602_v13 = vadd.s32 3, %v7598_v29 }
 0x77a   : > { %v7714_v10 = vsel %vm7712_vm1, %v7713_v28, %v9346_v25  ;;  %v7589_v35 = vand.u32 2147483647, %v7588_v61  ;;  %v7777_v56 = vadd.s32 %v7776_v41, %v7772_v53  ;;  %v7839_v3 = vshrl.u32 %v14787_v46, %v7836_v32 }
 0x77b   : > { %v7711_v57 = vsel %vm7709_vm11, %v9344_v6, %v7710_v42  ;;  %v7842_v36 = vshrl.u32 %v14788_v37, %v7836_v32  ;;  %v7834_v47 = vshrl.u32 %v7833_v18, 5  ;;  %v7838_v39 = vshll.u32 %v14783_v54, %v7835_v12 }
 0x77c   : > { %v7715_v16 = vsel %vm7708_vm3, %v7711_v57, %v7714_v10  ;;  %v7592_v9 = vmul.f32 %v7591_v26, %v7589_v35  ;;  %v7778_v14 = vadd.s32 536870912, %v7777_v56  ;;  %v7841_v44 = vshll.u32 %v14787_v46, %v7835_v12 }
 0x77d   : > { %v7716_v51 = vsel %vm7705_vm9, nan, %v7715_v16  ;;  %v7845_v63 = vshrl.u32 %v14789_v38, %v7836_v32  ;;  %v7848_v24 = vshrl.u32 %v14790_v21, %v7836_v32  ;;  %v7844_v45 = vshll.u32 %v14788_v37, %v7835_v12 }
 0x77e   : > { %8247 = vst [vmem:[%s13590_s5 + $0x50] sm:$0xff] %v7716_v51  ;;  %v7593_v31 = vxor.u32 2147483648, %v7592_v9  ;;  %v7779_v62 = vshrl.u32 %v7778_v14, 30  ;;  %v7847_v8 = vshll.u32 %v14789_v38, %v7835_v12  ;;  %v7840_v27 = vor.u32 %v7839_v3, %v7838_v39 }
 0x77f   : > { %v7843_v23 = vor.u32 %v7842_v36, %v7841_v44  ;;  %v7850_v30 = vshll.u32 %v14790_v21, %v7835_v12  ;;  %v7851_v52 = vshrl.u32 %v14791_v22, %v7836_v32  ;;  %v14323_v1 = vand.u32 3, %v7602_v13 }
 0x780   : > { %v7594_v43 = vsel %vm7511_vm12, %v7593_v31, %v7592_v9  ;;  %v7780_v59 = vshll.u32 %v7779_v62, 30  ;;  %v7849_v17 = vor.u32 %v7848_v24, %v7847_v8  ;;  %v7846_v34 = vor.u32 %v7845_v63, %v7844_v45 }
 0x781   : > { %v7597_v55 = vsel %vm14262_vm0, %v14056_v0, %v7594_v43  ;;  %v7852_v18 = vor.u32 %v7851_v52, %v7850_v30  ;;  %v14328_v6 = vshll.u32 %v7829_v2, 8  ;;  %vm7853_vm8 = vcmp.lt.s32.totalorder %v7834_v47, 1 }
 0x782   : > { %9347 = vcosq.f32 %v7597_v55  ;;  %v14330_v7 = vsub.s32 %v7777_v56, %v7780_v59  ;;  %v8032_v58 = vand.u32 2139095040, %v14302_v11  ;;  %v7837_v12 = vshrl.u32 %v14783_v54, %v7836_v32 }
 0x783   : > { %9349 = vsinq.f32 %v7597_v55  ;;  %vm7856_vm5 = vcmp.lt.s32.totalorder %v7834_v47, 4  ;;  %v7861_v25 = vsel %vm7853_vm8, %v7840_v27, %v7843_v23  ;;  %vm7854_vm6 = vcmp.lt.s32.totalorder %v7834_v47, 2 }
 0x784   : > { %v7783_v28 = vsub.s32 0, %v14330_v7  ;;  %vm7855_vm12 = vcmp.lt.s32.totalorder %v7834_v47, 3  ;;  %v7862_v49 = vsel %vm7856_vm5, %v7849_v17, 920167782  ;;  %v7858_v29 = vsel %vm7856_vm5, %v7846_v34, 2102212464 }
 0x785   : > { %v7863_v4 = vsel %vm7855_vm12, %v7846_v34, %v7862_v49  ;;  %v7865_v42 = vsel %vm7853_vm8, %v7843_v23, %v7846_v34  ;;  %v7866_v61 = vsel %vm7856_vm5, %v7852_v18, 1326507024  ;;  %v7803_v10 = vsub.s32 4, %v7779_v62 }
 0x786   : > { %v8521_v53 = vmin.u32 %v7783_v28, %v14330_v7  ;;  %v7864_v41 = vsel %vm7854_vm6, %v7861_v25, %v7863_v4  ;;  %v7867_v32 = vsel %vm7855_vm12, %v7849_v17, %v7866_v61  ;;  %v8033_v26 = vshrl.u32 %v8032_v58, 23 }
 0x787   : > { %v7868_v2 = vsel %vm7854_vm6, %v7865_v42, %v7867_v32  ;;  %v14343_v57 = vmul.u32.u64.low %v14328_v6, %v7864_v41  ;;  %v14344_v35 = vmul.u32.u64.high %v14328_v6, %v7864_v41, %v14343_v57  ;;  %vm7719_vm13 = vcmp.lt.s32.totalorder %v14148_v33, 0 }
 0x788   : > { %v7785_v56 = vclz %v8521_v53  ;;  %v7857_v16 = vsel %vm7853_vm8, %v7837_v12, %v7840_v27  ;;  %v7859_v13 = vsel %vm7855_vm12, %v7843_v23, %v7858_v29  ;;  %vm7601_vm0 = vweird.f32 %v14056_v0 }
 0x789   : > { %vm14353_vm7 = vcmp.le.f32.partialorder %v7717_v48, 0.7853982  ;;  %v14358_v36 = vmul.u32.u64.low %v14328_v6, %v7868_v2  ;;  %v14359_v51 = vmul.u32.u64.high %v14328_v6, %v7868_v2, %v14358_v36  ;;  %v8532_v9 = vadd.s32 4294967169, %v8033_v26 }
 0x78a   : > { %v8522_v14 = vadd.s32 4294967294, %v7785_v56  ;;  %v7804_v39 = vsel %vm7719_vm13, %v7803_v10, %v7779_v62  ;;  %v8029_v44 = vand.u32 2147483647, %v14302_v11  ;;  %v14366_v63 = vadd.f32 %v13932_v15, %v14193_v40 }
 0x78b   : > { %vm7604_vm14 = vcmp.lt.s32.totalorder %v14323_v1, 2  ;;  %v7860_v48 = vsel %vm7854_vm6, %v7857_v16, %v7859_v13  ;;  %v7879_v24 = vadd.s32 1, %v14344_v35  ;;  %v8039_v31 = vadd.s32 1, %v8532_v9 }
 0x78c   : > { %v9348_v45 = vpop.eup %9347  ;;  %vm7605_vm10 = vcmp.eq.s32.totalorder %v14323_v1, 0  ;;  %vm7608_vm2 = vcmp.eq.s32.totalorder %v14323_v1, 2  ;;  %v7773_v62 = vadd.s32 %v14283_v50, %v14280_v19  ;;  %vm8523_vm3 = vcmp.lt.s32.totalorder %v8522_v14, 0 }
 0x78d   : > { %v9350_v8 = vpop.eup %9349  ;;  %v7609_v27 = vxor.u32 2147483648, %v9348_v45  ;;  %v7788_v15 = vsel %vm8523_vm3, 0, %v8522_v14  ;;  %v7806_v23 = vsel %vm14353_vm7, 0, %v7804_v39  ;;  %vm7878_vm9 = vc.u32 %v14359_v51, %v14343_v57 }
 0x78e   : > { %v7606_v47 = vxor.u32 2147483648, %v9350_v8  ;;  %v7789_v30 = vsub.s32 32, %v7788_v15  ;;  %v7793_v52 = vsub.s32 4294967266, %v7788_v15  ;;  %v7876_v43 = vmul.u32 %v14328_v6, %v7860_v48 }
 0x78f   : > { %v7610_v59 = vsel %vm7608_vm2, %v7609_v27, %v9350_v8  ;;  %v7790_v17 = vshll.u32 %v14330_v7, %v7788_v15  ;;  %v7880_v19 = vsel %vm7878_vm9, %v7879_v24, %v14344_v35  ;;  %vm8040_vm15 = vcmp.gt.s32.totalorder %v8039_v31, 0 }
 0x790   : > { %v7607_v50 = vsel %vm7605_vm10, %v9348_v45, %v7606_v47  ;;  %v7791_v55 = vshrl.u32 %v7773_v62, %v7789_v30  ;;  %v7794_v34 = vadd.s32 127, %v7793_v52  ;;  %v7881_v18 = vadd.s32 %v7880_v19, %v7876_v43 }
 0x791   : > { %v7611_v58 = vsel %vm7604_vm14, %v7607_v50, %v7610_v59  ;;  %v7810_v12 = vadd.s32 3, %v7806_v23  ;;  %v8036_v6 = vand.u32 8388607, %v8029_v44  ;;  %v8041_v25 = vsel %vm8040_vm15, %v8039_v31, 0 }
 0x792   : > { %v7612_v7 = vsel %vm7601_vm0, nan, %v7611_v58  ;;  %v7792_v28 = vor.u32 %v7791_v55, %v7790_v17  ;;  %v7795_v49 = vshll.u32 %v7794_v34, 23  ;;  %v7882_v29 = vadd.s32 536870912, %v7881_v18 }
 0x793   : > { %8246 = vst [vmem:[%s13590_s5 + $0x48] sm:$0xff] %v7612_v7  ;;  %v8043_v4 = vand.u32 31, %v8041_v25  ;;  %v14395_v1 = vadd.f32 %v14014_v5, %v14193_v40  ;;  %v14397_v53 = vand.u32 3, %v7810_v12  ;;  %v7925_v41 = vand.u32 2147483647, %v14366_v63 }
 0x794   : > { %v7796_v42 = vor.u32 4788187, %v7795_v49  ;;  %v14391_v61 = vshrl.u32 %v7882_v29, 30  ;;  %v7928_v0 = vand.u32 2139095040, %v14366_v63  ;;  %v7799_v2 = vcvt.s32.f32 %v7792_v28 }
 0x795   : > { %v8044_v10 = vsub.s32 32, %v8043_v4  ;;  %v8037_v26 = vor.u32 8388608, %v8036_v6  ;;  %v7877_v56 = vadd.s32 %v14343_v57, %v14359_v51  ;;  %v8046_v9 = vshll.u32 %v14783_v54, %v8043_v4 }
 0x796   : > { %v7797_v32 = vand.u32 2147483647, %v7796_v42  ;;  %v7884_v35 = vshll.u32 %v14391_v61, 30  ;;  %v8042_v39 = vshrl.u32 %v8041_v25, 5  ;;  %v8049_v48 = vshll.u32 %v14787_v46, %v8043_v4 }
 0x797   : > { %v8047_v16 = vshrl.u32 %v14787_v46, %v8044_v10  ;;  %v8050_v5 = vshrl.u32 %v14788_v37, %v8044_v10  ;;  %v8053_v40 = vshrl.u32 %v14789_v38, %v8044_v10  ;;  %v8056_v14 = vshrl.u32 %v14790_v21, %v8044_v10 }
 0x798   : > { %v7800_v13 = vmul.f32 %v7799_v2, %v7797_v32  ;;  %v14407_v36 = vsub.s32 %v7881_v18, %v7884_v35  ;;  %v8052_v24 = vshll.u32 %v14788_v37, %v8043_v4  ;;  %v7929_v31 = vshrl.u32 %v7928_v0, 23 }
 0x799   : > { %v8048_v45 = vor.u32 %v8047_v16, %v8046_v9  ;;  %v8055_v62 = vshll.u32 %v14789_v38, %v8043_v4  ;;  %v8051_v8 = vor.u32 %v8050_v5, %v8049_v48  ;;  %v8058_v15 = vshll.u32 %v14790_v21, %v8043_v4 }
 0x79a   : > { %v7801_v57 = vxor.u32 2147483648, %v7800_v13  ;;  %v7887_v51 = vsub.s32 0, %v14407_v36  ;;  %v8054_v27 = vor.u32 %v8053_v40, %v8052_v24  ;;  %v8059_v23 = vshrl.u32 %v14791_v22, %v8044_v10 }
 0x79b   : > { %v8057_v52 = vor.u32 %v8056_v14, %v8055_v62  ;;  %v14420_v43 = vshll.u32 %v8037_v26, 8  ;;  %v8045_v17 = vshrl.u32 %v14783_v54, %v8044_v10  ;;  %v8528_v50 = vadd.s32 4294967169, %v7929_v31 }
 0x79c   : > { %v7802_v47 = vsel %vm7719_vm13, %v7801_v57, %v7800_v13  ;;  %v8525_v30 = vmin.u32 %v7887_v51, %v14407_v36  ;;  %v8060_v19 = vor.u32 %v8059_v23, %v8058_v15  ;;  %vm8061_vm11 = vcmp.lt.s32.totalorder %v8042_v39, 1 }
 0x79d   : > { %v7805_v59 = vsel %vm14353_vm7, %v14148_v33, %v7802_v47  ;;  %vm8064_vm1 = vcmp.lt.s32.totalorder %v8042_v39, 4  ;;  %vm7823_vm4 = vcmp.lt.s32.totalorder %v14209_v60, 0  ;;  %vm8062_vm8 = vcmp.lt.s32.totalorder %v8042_v39, 2 }
 0x79e   : > { %9351 = vcosq.f32 %v7805_v59  ;;  %v7889_v55 = vclz %v8525_v30  ;;  %v8066_v34 = vsel %vm8064_vm1, %v8054_v27, 2102212464  ;;  %v8069_v18 = vsel %vm8061_vm11, %v8048_v45, %v8051_v8 }
 0x79f   : > { %9353 = vsinq.f32 %v7805_v59  ;;  %vm8063_vm5 = vcmp.lt.s32.totalorder %v8042_v39, 3  ;;  %v8070_v12 = vsel %vm8064_vm1, %v8057_v52, 920167782  ;;  %v8073_v6 = vsel %vm8061_vm11, %v8051_v8, %v8054_v27 }
 0x7a0   : > { %v8526_v58 = vadd.s32 4294967294, %v7889_v55  ;;  %v8065_v3 = vsel %vm8061_vm11, %v8045_v17, %v8048_v45  ;;  %v8071_v25 = vsel %vm8063_vm5, %v8054_v27, %v8070_v12  ;;  %v8074_v7 = vsel %vm8064_vm1, %v8060_v19, 1326507024 }
 0x7a1   : > { %v7935_v28 = vadd.s32 1, %v8528_v50  ;;  %v8067_v49 = vsel %vm8063_vm5, %v8051_v8, %v8066_v34  ;;  %v8072_v29 = vsel %vm8062_vm8, %v8069_v18, %v8071_v25  ;;  %v8075_v4 = vsel %vm8063_vm5, %v8057_v52, %v8074_v7 }
 0x7a2   : > { %vm8527_vm6 = vcmp.lt.s32.totalorder %v8526_v58, 0  ;;  %v8076_v10 = vsel %vm8062_vm8, %v8073_v6, %v8075_v4  ;;  %v14430_v0 = vmul.u32.u64.low %v14420_v43, %v8072_v29  ;;  %v14431_v32 = vmul.u32.u64.high %v14420_v43, %v8072_v29, %v14430_v0 }
 0x7a3   : > { %v7892_v42 = vsel %vm8527_vm6, 0, %v8526_v58  ;;  %v7907_v26 = vsub.s32 4, %v14391_v61  ;;  %vm7936_vm12 = vcmp.gt.s32.totalorder %v7935_v28, 0  ;;  %vm7809_vm13 = vweird.f32 %v14148_v33 }
 0x7a4   : > { %v7893_v2 = vsub.s32 32, %v7892_v42  ;;  %v7897_v35 = vsub.s32 4294967266, %v7892_v42  ;;  %v8068_v16 = vsel %vm8062_vm8, %v8065_v3, %v8067_v49  ;;  %v7937_v13 = vsel %vm7936_vm12, %v7935_v28, 0 }
 0x7a5   : > { %v14438_v5 = vmul.u32.u64.low %v14420_v43, %v8076_v10  ;;  %v14439_v40 = vmul.u32.u64.high %v14420_v43, %v8076_v10, %v14438_v5  ;;  %v7894_v9 = vshll.u32 %v14407_v36, %v7892_v42  ;;  %v7939_v24 = vand.u32 31, %v7937_v13 }
 0x7a6   : > { %v7895_v14 = vshrl.u32 %v7877_v56, %v7893_v2  ;;  %v7898_v48 = vadd.s32 127, %v7897_v35  ;;  %vm7812_vm0 = vcmp.lt.s32.totalorder %v14397_v53, 2  ;;  %vm14445_vm7 = vcmp.le.f32.partialorder %v7821_v20, 0.7853982 }
 0x7a7   : > { %v8087_v39 = vadd.s32 1, %v14431_v32  ;;  %v7932_v57 = vand.u32 8388607, %v7925_v41  ;;  %vm7813_vm14 = vcmp.eq.s32.totalorder %v14397_v53, 0  ;;  %v7908_v45 = vsel %vm7823_vm4, %v7907_v26, %v14391_v61 }
 0x7a8   : > { %v9352_v51 = vpop.eup %9351  ;;  %v7896_v36 = vor.u32 %v7895_v14, %v7894_v9  ;;  %v7899_v56 = vshll.u32 %v7898_v48, 23  ;;  %v8084_v20 = vmul.u32 %v14420_v43, %v8068_v16  ;;  %vm8086_vm10 = vc.u32 %v14439_v40, %v14430_v0 }
 0x7a9   : > { %v9354_v62 = vpop.eup %9353  ;;  %v7817_v8 = vxor.u32 2147483648, %v9352_v51  ;;  %v7940_v27 = vsub.s32 32, %v7939_v24  ;;  %vm7816_vm2 = vcmp.eq.s32.totalorder %v14397_v53, 2  ;;  %v8088_v47 = vsel %vm8086_vm10, %v8087_v39, %v14431_v32 }
 0x7aa   : > { %v7814_v15 = vxor.u32 2147483648, %v9354_v62  ;;  %v7900_v23 = vor.u32 4788187, %v7899_v56  ;;  %v7910_v52 = vsel %vm14445_vm7, 0, %v7908_v45  ;;  %v8089_v61 = vadd.s32 %v8088_v47, %v8084_v20 }
 0x7ab   : > { %v7818_v30 = vsel %vm7816_vm2, %v7817_v8, %v9354_v62  ;;  %v7933_v59 = vor.u32 8388608, %v7932_v57  ;;  %v7903_v19 = vcvt.s32.f32 %v7896_v36  ;;  %v7938_v50 = vshrl.u32 %v7937_v13, 5 }
 0x7ac   : > { %v7815_v43 = vsel %vm7813_vm14, %v9352_v51, %v7814_v15  ;;  %v7901_v17 = vand.u32 2147483647, %v7900_v23  ;;  %v8090_v34 = vadd.s32 536870912, %v8089_v61  ;;  %v7943_v18 = vshrl.u32 %v14787_v46, %v7940_v27 }
 0x7ad   : > { %v7819_v55 = vsel %vm7812_vm0, %v7815_v43, %v7818_v30  ;;  %v7946_v58 = vshrl.u32 %v14788_v37, %v7940_v27  ;;  %v7942_v3 = vshll.u32 %v14783_v54, %v7939_v24  ;;  %v7949_v25 = vshrl.u32 %v14789_v38, %v7940_v27 }
 0x7ae   : > { %v7820_v12 = vsel %vm7809_vm13, nan, %v7819_v55  ;;  %v7904_v6 = vmul.f32 %v7903_v19, %v7901_v17  ;;  %v14474_v7 = vshrl.u32 %v8090_v34, 30  ;;  %v7945_v28 = vshll.u32 %v14787_v46, %v7939_v24 }
 0x7af   : > { %8248 = vst [vmem:[%s13590_s5 + $0x58] sm:$0xff] %v7820_v12  ;;  %v7948_v53 = vshll.u32 %v14788_v37, %v7939_v24  ;;  %v7952_v49 = vshrl.u32 %v14790_v21, %v7940_v27  ;;  %v7951_v4 = vshll.u32 %v14789_v38, %v7939_v24  ;;  %v7954_v33 = vshll.u32 %v14790_v21, %v7939_v24 }
 0x7b0   : > { %v7905_v29 = vxor.u32 2147483648, %v7904_v6  ;;  %v7955_v42 = vshrl.u32 %v14791_v22, %v7940_v27  ;;  %v8092_v10 = vshll.u32 %v14474_v7, 30  ;;  %v7944_v32 = vor.u32 %v7943_v18, %v7942_v3 }
 0x7b1   : > { %v7947_v2 = vor.u32 %v7946_v58, %v7945_v28  ;;  %v14483_v35 = vshll.u32 %v7933_v59, 8  ;;  %v7950_v16 = vor.u32 %v7949_v25, %v7948_v53  ;;  %v7953_v5 = vor.u32 %v7952_v49, %v7951_v4 }
 0x7b2   : > { %v7906_v26 = vsel %vm7823_vm4, %v7905_v29, %v7904_v6  ;;  %v7956_v13 = vor.u32 %v7955_v42, %v7954_v33  ;;  %v7914_v14 = vadd.s32 3, %v7910_v52  ;;  %v8093_v48 = vsub.s32 %v8089_v61, %v8092_v10 }
 0x7b3   : > { %v7909_v9 = vsel %vm14445_vm7, %v14209_v60, %v7906_v26  ;;  %v8136_v24 = vand.u32 2139095040, %v14395_v1  ;;  %v7941_v39 = vshrl.u32 %v14783_v54, %v7940_v27  ;;  %vm7957_vm3 = vcmp.lt.s32.totalorder %v7938_v50, 1 }
 0x7b4   : > { %9355 = vcosq.f32 %v7909_v9  ;;  %vm7959_vm9 = vcmp.lt.s32.totalorder %v7938_v50, 3  ;;  %v8095_v57 = vsub.s32 0, %v8093_v48  ;;  %vm7960_vm15 = vcmp.lt.s32.totalorder %v7938_v50, 4 }
 0x7b5   : > { %9357 = vsinq.f32 %v7909_v9  ;;  %v7965_v51 = vsel %vm7957_vm3, %v7944_v32, %v7947_v2  ;;  %v7962_v36 = vsel %vm7960_vm15, %v7950_v16, 2102212464  ;;  %v7966_v56 = vsel %vm7960_vm15, %v7953_v5, 920167782 }
 0x7b6   : > { %v7969_v45 = vsel %vm7957_vm3, %v7947_v2, %v7950_v16  ;;  %v7970_v31 = vsel %vm7960_vm15, %v7956_v13, 1326507024  ;;  %v8533_v62 = vmin.u32 %v8095_v57, %v8093_v48  ;;  %vm7958_vm11 = vcmp.lt.s32.totalorder %v7938_v50, 2 }
 0x7b7   : > { %v7967_v8 = vsel %vm7959_vm9, %v7950_v16, %v7966_v56  ;;  %v7971_v20 = vsel %vm7959_vm9, %v7953_v5, %v7970_v31  ;;  %v7915_v15 = vand.u32 3, %v7914_v14  ;;  %v8137_v47 = vshrl.u32 %v8136_v24, 23 }
 0x7b8   : > { %v7968_v27 = vsel %vm7958_vm11, %v7965_v51, %v7967_v8  ;;  %v7972_v23 = vsel %vm7958_vm11, %v7969_v45, %v7971_v20  ;;  %v8097_v30 = vclz %v8533_v62  ;;  %v7961_v52 = vsel %vm7957_vm3, %v7941_v39, %v7944_v32 }
 0x7b9   : > { %v7963_v61 = vsel %vm7959_vm9, %v7947_v2, %v7962_v36  ;;  %v14501_v59 = vmul.u32.u64.low %v14483_v35, %v7972_v23  ;;  %v14502_v43 = vmul.u32.u64.high %v14483_v35, %v7972_v23, %v14501_v59  ;;  %v8536_v34 = vadd.s32 4294967169, %v8137_v47 }
 0x7ba   : > { %v14505_v17 = vmul.u32.u64.low %v14483_v35, %v7968_v27  ;;  %v14506_v19 = vmul.u32.u64.high %v14483_v35, %v7968_v27, %v14505_v17  ;;  %v8534_v55 = vadd.s32 4294967294, %v8097_v30  ;;  %vm7913_vm1 = vweird.f32 %v14209_v60 }
 0x7bb   : > { %vm7917_vm4 = vcmp.eq.s32.totalorder %v7915_v15, 0  ;;  %v7964_v18 = vsel %vm7958_vm11, %v7961_v52, %v7963_v61  ;;  %vm7920_vm8 = vcmp.eq.s32.totalorder %v7915_v15, 2  ;;  %v8085_v58 = vadd.s32 %v14430_v0, %v14439_v40 }
 0x7bc   : > { %vm8535_vm5 = vcmp.lt.s32.totalorder %v8534_v55, 0  ;;  %v8143_v12 = vadd.s32 1, %v8536_v34  ;;  %v8115_v25 = vsub.s32 4, %v14474_v7  ;;  %vm7982_vm6 = vc.u32 %v14502_v43, %v14505_v17 }
 0x7bd   : > { %v8100_v3 = vsel %vm8535_vm5, 0, %v8534_v55  ;;  %v7983_v28 = vadd.s32 1, %v14506_v19  ;;  %v7980_v4 = vmul.u32 %v14483_v35, %v7964_v18  ;;  %vm7916_vm13 = vcmp.lt.s32.totalorder %v7915_v15, 2 }
 0x7be   : > { %v9356_v6 = vpop.eup %9355  ;;  %v8101_v29 = vsub.s32 32, %v8100_v3  ;;  %v8105_v50 = vsub.s32 4294967266, %v8100_v3  ;;  %v8102_v42 = vshll.u32 %v8093_v48, %v8100_v3  ;;  %vm8144_vm12 = vcmp.gt.s32.totalorder %v8143_v12, 0 }
 0x7bf   : > { %v9358_v53 = vpop.eup %9357  ;;  %v7921_v49 = vxor.u32 2147483648, %v9356_v6  ;;  %v7984_v0 = vsel %vm7982_vm6, %v7983_v28, %v14506_v19  ;;  %v8133_v16 = vand.u32 2147483647, %v14395_v1  ;;  %v8145_v5 = vsel %vm8144_vm12, %v8143_v12, 0 }
 0x7c0   : > { %v7918_v33 = vxor.u32 2147483648, %v9358_v53  ;;  %v8103_v10 = vshrl.u32 %v8085_v58, %v8101_v29  ;;  %v8106_v32 = vadd.s32 127, %v8105_v50  ;;  %v7985_v2 = vadd.s32 %v7984_v0, %v7980_v4 }
 0x7c1   : > { %v7922_v40 = vsel %vm7920_vm8, %v7921_v49, %v9358_v53  ;;  %vm8031_vm0 = vcmp.lt.s32.totalorder %v14302_v11, 0  ;;  %v8147_v24 = vand.u32 31, %v8145_v5  ;;  %v8140_v36 = vand.u32 8388607, %v8133_v16 }
 0x7c2   : > { %v7919_v26 = vsel %vm7917_vm4, %v9356_v6, %v7918_v33  ;;  %v8104_v9 = vor.u32 %v8103_v10, %v8102_v42  ;;  %v8107_v35 = vshll.u32 %v8106_v32, 23  ;;  %v7986_v14 = vadd.s32 536870912, %v7985_v2 }
 0x7c3   : > { %v7923_v13 = vsel %vm7916_vm13, %v7919_v26, %v7922_v40  ;;  %v8116_v57 = vsel %vm8031_vm0, %v8115_v25, %v14474_v7  ;;  %v8148_v56 = vsub.s32 32, %v8147_v24  ;;  %vm14535_vm7 = vcmp.le.f32.partialorder %v8029_v44, 0.7853982 }
 0x7c4   : > { %v7924_v48 = vsel %vm7913_vm1, nan, %v7923_v13  ;;  %v8108_v39 = vor.u32 4788187, %v8107_v35  ;;  %v14529_v51 = vshrl.u32 %v7986_v14, 30  ;;  %v8111_v31 = vcvt.s32.f32 %v8104_v9 }
 0x7c5   : > { %8249 = vst [vmem:[%s13590_s5 + $0x60] sm:$0xff] %v7924_v48  ;;  %v8118_v8 = vsel %vm14535_vm7, 0, %v8116_v57  ;;  %v8151_v7 = vshrl.u32 %v14787_v46, %v8148_v56  ;;  %v8154_v20 = vshrl.u32 %v14788_v37, %v8148_v56  ;;  %v8157_v15 = vshrl.u32 %v14789_v38, %v8148_v56 }
 0x7c6   : > { %v8109_v45 = vand.u32 2147483647, %v8108_v39  ;;  %v7988_v62 = vshll.u32 %v14529_v51, 30  ;;  %v8150_v44 = vshll.u32 %v14783_v54, %v8147_v24  ;;  %v8160_v47 = vshrl.u32 %v14790_v21, %v8148_v56 }
 0x7c7   : > { %v8141_v30 = vor.u32 8388608, %v8140_v36  ;;  %v8146_v52 = vshrl.u32 %v8145_v5, 5  ;;  %v8153_v61 = vshll.u32 %v14787_v46, %v8147_v24  ;;  %v8156_v59 = vshll.u32 %v14788_v37, %v8147_v24 }
 0x7c8   : > { %v8112_v27 = vmul.f32 %v8111_v31, %v8109_v45  ;;  %v7989_v23 = vsub.s32 %v7985_v2, %v7988_v62  ;;  %v8152_v34 = vor.u32 %v8151_v7, %v8150_v44  ;;  %v8159_v18 = vshll.u32 %v14789_v38, %v8147_v24 }
 0x7c9   : > { %v8155_v58 = vor.u32 %v8154_v20, %v8153_v61  ;;  %v8158_v12 = vor.u32 %v8157_v15, %v8156_v59  ;;  %v8162_v6 = vshll.u32 %v14790_v21, %v8147_v24  ;;  %v8163_v3 = vshrl.u32 %v14791_v22, %v8148_v56 }
 0x7ca   : > { %v8113_v19 = vxor.u32 2147483648, %v8112_v27  ;;  %v7991_v55 = vsub.s32 0, %v7989_v23  ;;  %v8161_v53 = vor.u32 %v8160_v47, %v8159_v18  ;;  %v8122_v37 = vadd.s32 3, %v8118_v8 }
 0x7cb   : > { %v8164_v49 = vor.u32 %v8163_v3, %v8162_v6  ;;  %v8181_v29 = vshll.u32 %v8141_v30, 8  ;;  %vm8165_vm14 = vcmp.lt.s32.totalorder %v8146_v52, 1  ;;  %vm8168_vm10 = vcmp.lt.s32.totalorder %v8146_v52, 4 }
 0x7cc   : > { %v8114_v25 = vsel %vm8031_vm0, %v8113_v19, %v8112_v27  ;;  %v8529_v28 = vmin.u32 %v7991_v55, %v7989_v23  ;;  %v8149_v21 = vshrl.u32 %v14783_v54, %v8148_v56  ;;  %v8170_v22 = vsel %vm8168_vm10, %v8158_v12, 2102212464 }
 0x7cd   : > { %v8117_v46 = vsel %vm14535_vm7, %v14302_v11, %v8114_v25  ;;  %v8173_v50 = vsel %vm8165_vm14, %v8152_v34, %v8155_v58  ;;  %vm8167_vm2 = vcmp.lt.s32.totalorder %v8146_v52, 3  ;;  %v8174_v33 = vsel %vm8168_vm10, %v8161_v53, 920167782 }
 0x7ce   : > { %9359 = vcosq.f32 %v8117_v46  ;;  %v7993_v38 = vclz %v8529_v28  ;;  %v8177_v42 = vsel %vm8165_vm14, %v8155_v58, %v8158_v12  ;;  %vm8166_vm3 = vcmp.lt.s32.totalorder %v8146_v52, 2 }
 0x7cf   : > { %9361 = vsinq.f32 %v8117_v46  ;;  %v8169_v0 = vsel %vm8165_vm14, %v8149_v21, %v8152_v34  ;;  %v8175_v40 = vsel %vm8167_vm2, %v8158_v12, %v8174_v33  ;;  %v8178_v10 = vsel %vm8168_vm10, %v8164_v49, 1326507024 }
 0x7d0   : > { %v8530_v4 = vadd.s32 4294967294, %v7993_v38  ;;  %v8171_v32 = vsel %vm8167_vm2, %v8155_v58, %v8170_v22  ;;  %v8176_v2 = vsel %vm8166_vm3, %v8173_v50, %v8175_v40  ;;  %v8179_v26 = vsel %vm8167_vm2, %v8161_v53, %v8178_v10 }
 0x7d1   : > { %v8180_v13 = vsel %vm8166_vm3, %v8177_v42, %v8179_v26  ;;  %v14560_v9 = vmul.u32.u64.low %v8181_v29, %v8176_v2  ;;  %v14561_v54 = vmul.u32.u64.high %v8181_v29, %v8176_v2, %v14560_v9  ;;  %v7981_v35 = vadd.s32 %v14505_v17, %v14502_v43 }
 0x7d2   : > { %vm8531_vm9 = vcmp.lt.s32.totalorder %v8530_v4, 0  ;;  %v8123_v24 = vand.u32 3, %v8122_v37  ;;  %v14565_v39 = vmul.u32.u64.low %v8181_v29, %v8180_v13  ;;  %v14566_v57 = vmul.u32.u64.high %v8181_v29, %v8180_v13, %v14565_v39 }
 0x7d3   : > { %v7996_v5 = vsel %vm8531_vm9, 0, %v8530_v4  ;;  %v8172_v45 = vsel %vm8166_vm3, %v8169_v0, %v8171_v32  ;;  %v8191_v31 = vadd.s32 1, %v14561_v54  ;;  %vm8121_vm8 = vweird.f32 %v14302_v11 }
 0x7d4   : > { %v7997_v14 = vsub.s32 32, %v7996_v5  ;;  %v8001_v48 = vsub.s32 4294967266, %v7996_v5  ;;  %v7998_v36 = vshll.u32 %v7989_v23, %v7996_v5  ;;  %v8188_v27 = vmul.u32 %v8181_v29, %v8172_v45 }
 0x7d5   : > { %vm8190_vm15 = vc.u32 %v14566_v57, %v14560_v9  ;;  %vm8128_vm11 = vcmp.eq.s32.totalorder %v8123_v24, 2  ;;  %vm8125_vm1 = vcmp.eq.s32.totalorder %v8123_v24, 0  ;;  %vm8124_vm4 = vcmp.lt.s32.totalorder %v8123_v24, 2 }
 0x7d6   : > { %v7999_v56 = vshrl.u32 %v7981_v35, %v7997_v14  ;;  %v8002_v60 = vadd.s32 127, %v8001_v48  ;;  %v8192_v23 = vsel %vm8190_vm15, %v8191_v31, %v14561_v54  ;;  %v8011_v18 = vsub.s32 4, %v14529_v51 }
 0x7d7   : > { %v8193_v47 = vadd.s32 %v8192_v23, %v8188_v27  ;;  %vm7927_vm5 = vcmp.lt.s32.totalorder %v14366_v63, 0  ;;  %vm7926_vm6 = vcmp.le.f32.partialorder %v7925_v41, 0.7853982  ;;  %v8189_v33 = vadd.s32 %v14560_v9, %v14566_v57 }
 0x7d8   : > { %v9360_v62 = vpop.eup %9359  ;;  %v8000_v8 = vor.u32 %v7999_v56, %v7998_v36  ;;  %v8003_v7 = vshll.u32 %v8002_v60, 23  ;;  %v8012_v25 = vsel %vm7927_vm5, %v8011_v18, %v14529_v51  ;;  %vm8017_vm14 = vweird.f32 %v14366_v63 }
 0x7d9   : > { %v9362_v20 = vpop.eup %9361  ;;  %v8129_v15 = vxor.u32 2147483648, %v9360_v62  ;;  %v8194_v19 = vadd.s32 536870912, %v8193_v47  ;;  %v8014_v53 = vsel %vm7926_vm6, 0, %v8012_v25  ;;  %vm8135_vm10 = vcmp.lt.s32.totalorder %v14395_v1, 0 }
 0x7da   : > { %v8126_v43 = vxor.u32 2147483648, %v9362_v20  ;;  %v8004_v17 = vor.u32 4788187, %v8003_v7  ;;  %v8007_v61 = vcvt.s32.f32 %v8000_v8  ;;  %v8018_v49 = vadd.s32 3, %v8014_v53 }
 0x7db   : > { %v8130_v44 = vsel %vm8128_vm11, %v8129_v15, %v9362_v20  ;;  %v8195_v58 = vshrl.u32 %v8194_v19, 30  ;;  %vm8134_vm2 = vcmp.le.f32.partialorder %v8133_v16, 0.7853982  ;;  %vm8225_vm11 = vweird.f32 %v14395_v1 }
 0x7dc   : > { %v8127_v30 = vsel %vm8125_vm1, %v9360_v62, %v8126_v43  ;;  %v8005_v52 = vand.u32 2147483647, %v8004_v17  ;;  %v8019_v21 = vand.u32 3, %v8018_v49 }
 0x7dd   : > { %v8131_v59 = vsel %vm8124_vm4, %v8127_v30, %v8130_v44  ;;  %v8196_v6 = vshll.u32 %v8195_v58, 30  ;;  %v8219_v39 = vsub.s32 4, %v8195_v58 }
 0x7de   : > { %v8132_v55 = vsel %vm8121_vm8, nan, %v8131_v59  ;;  %v8008_v34 = vmul.f32 %v8007_v61, %v8005_v52  ;;  %vm8021_vm13 = vcmp.eq.s32.totalorder %v8019_v21, 0  ;;  %vm8024_vm0 = vcmp.eq.s32.totalorder %v8019_v21, 2 }
 0x7df   : > { %8251 = vst [vmem:[%s13590_s5 + $0x70] sm:$0xff] %v8132_v55  ;;  %v8197_v28 = vsub.s32 %v8193_v47, %v8196_v6  ;;  %vm8020_vm7 = vcmp.lt.s32.totalorder %v8019_v21, 2 }
 0x7e0   : > { %v8009_v12 = vxor.u32 2147483648, %v8008_v34 }
 0x7e1   : > { %v8199_v46 = vsub.s32 0, %v8197_v28 }
 0x7e2   : > { %v8010_v3 = vsel %vm7927_vm5, %v8009_v12, %v8008_v34 }
 0x7e3   : > { %v8013_v11 = vsel %vm7926_vm6, %v14366_v63, %v8010_v3  ;;  %v8537_v37 = vmin.u32 %v8199_v46, %v8197_v28  ;;  %v8220_v63 = vsel %vm8135_vm10, %v8219_v39, %v8195_v58 }
 0x7e4   : > { %9363 = vcosq.f32 %v8013_v11  ;;  %v8222_v60 = vsel %vm8134_vm2, 0, %v8220_v63 }
 0x7e5   : > { %9365 = vsinq.f32 %v8013_v11  ;;  %v8201_v29 = vclz %v8537_v37  ;;  %v8226_v45 = vadd.s32 3, %v8222_v60 }
 0x7e7   : > { %v8538_v38 = vadd.s32 4294967294, %v8201_v29  ;;  %v8227_v31 = vand.u32 3, %v8226_v45 }
 0x7e9   : > { %vm8539_vm12 = vcmp.lt.s32.totalorder %v8538_v38, 0  ;;  %vm8232_vm3 = vcmp.eq.s32.totalorder %v8227_v31, 2  ;;  %vm8229_vm9 = vcmp.eq.s32.totalorder %v8227_v31, 0  ;;  %vm8228_vm15 = vcmp.lt.s32.totalorder %v8227_v31, 2 }
 0x7ea   : > { %v8204_v50 = vsel %vm8539_vm12, 0, %v8538_v38 }
 0x7eb   : > { %v8205_v51 = vsub.s32 32, %v8204_v50  ;;  %v8209_v42 = vsub.s32 4294967266, %v8204_v50  ;;  %v8206_v10 = vshll.u32 %v8197_v28, %v8204_v50 }
 0x7ed   : > { %v8207_v32 = vshrl.u32 %v8189_v33, %v8205_v51  ;;  %v8210_v2 = vadd.s32 127, %v8209_v42 }
 0x7ee   : > { %v9364_v22 = vpop.eup %9363 }
 0x7ef   : > { %v9366_v4 = vpop.eup %9365  ;;  %v8025_v41 = vxor.u32 2147483648, %v9364_v22  ;;  %v8208_v13 = vor.u32 %v8207_v32, %v8206_v10  ;;  %v8211_v54 = vshll.u32 %v8210_v2, 23 }
 0x7f0   : > { %v8022_v0 = vxor.u32 2147483648, %v9366_v4 }
 0x7f1   : > { %v8026_v40 = vsel %vm8024_vm0, %v8025_v41, %v9366_v4  ;;  %v8212_v9 = vor.u32 4788187, %v8211_v54  ;;  %v8215_v48 = vcvt.s32.f32 %v8208_v13 }
 0x7f2   : > { %v8023_v26 = vsel %vm8021_vm13, %v9364_v22, %v8022_v0 }
 0x7f3   : > { %v8027_v5 = vsel %vm8020_vm7, %v8023_v26, %v8026_v40  ;;  %v8213_v14 = vand.u32 2147483647, %v8212_v9 }
 0x7f4   : > { %v8028_v35 = vsel %vm8017_vm14, nan, %v8027_v5 }
 0x7f5   : > { %8250 = vst [vmem:[%s13590_s5 + $0x68] sm:$0xff] %v8028_v35  ;;  %v8216_v24 = vmul.f32 %v8215_v48, %v8213_v14 }
 0x7f7   : > { %v8217_v57 = vxor.u32 2147483648, %v8216_v24 }
 0x7f9   : > { %v8218_v36 = vsel %vm8135_vm10, %v8217_v57, %v8216_v24 }
 0x7fa   : > { %v8221_v56 = vsel %vm8134_vm2, %v14395_v1, %v8218_v36 }
 0x7fb   : > { %9367 = vcosq.f32 %v8221_v56 }
 0x7fc   : > { %9369 = vsinq.f32 %v8221_v56 }
 0x805   : > { %v9368_v62 = vpop.eup %9367 }
 0x806   : > { %v9370_v8 = vpop.eup %9369  ;;  %v8233_v7 = vxor.u32 2147483648, %v9368_v62 }
 0x807   : > { %v8230_v20 = vxor.u32 2147483648, %v9370_v8 }
 0x808   : > { %v8234_v16 = vsel %vm8232_vm3, %v8233_v7, %v9370_v8 }
 0x809   : > { %v8231_v15 = vsel %vm8229_vm9, %v9368_v62, %v8230_v20 }
 0x80a   : > { %v8235_v27 = vsel %vm8228_vm15, %v8231_v15, %v8234_v16 }
 0x80b   : > { %v8236_v43 = vsel %vm8225_vm11, nan, %v8235_v27 }
 0x80c   : > { %8252 = vst [vmem:[%s13590_s5 + $0x78] sm:$0xff] %v8236_v43 }
 0x80d   : > { %9384 = shalt.err (!%p9381_p3)
}
 0x80e   : > { %s9385_s20 = scalar_lea.hbm %s14592_s10, 2048  ;;  %s9389_s27 = scalar_lea.hbm %s14645_s4, 8192 }
 0x80f   : > { %p9386_p4 = scmp.ne.s32.totalorder %s14592_s10, %s9385_s20  ;;  %p9390_p9 = scmp.lt.u32.totalorder %s14592_s10, %s14645_s4 }
 0x810   : > { %p9391_p10 = scmp.lt.u32.totalorder %s9389_s27, %s9385_s20  ;;  %p9393_p12 = scmp.lt.u32.totalorder %s9385_s20, %s14592_s10 }
 0x811   : > { %p9387_p7 = pnand %p9386_p4, %p9511_p5 }
 0x812   : > { %p9392_p11 = por %p9391_p10, %p9390_p9 }
 0x813   : > { %p9388_p8 = pneg %p9387_p7 }
 0x814   : > { %p9394_p13 = por %p9393_p12, %p9392_p11 }
 0x816   : > { %p9395_p0 = pnand %p9394_p13, %p9388_p8 }
 0x818   : > { %9398 = shalt.err (!%p9395_p0)
}
 0x819   : > { %s9445_s30 = smov 512   ;;  %s9446_s5 = smov 2048  }
 0x81a   : > { %s9447_s6 = smov 32  }
 0x81b   : > { %9122 = dma.vmem_to_hbm [thread:$0]  (%p9511_p5), %s14594_s7, 2048, %s14592_s10, %s14600_s19, %s9445_s30, %s9446_s5, %s9447_s6  }
 0x81c PF: > { %p9128_p1 = scmp.ge.s32.totalorder %s9433_s18, 2  ;;  %s8282_s8 = sand.u32 1, %s9421_s15  }
 0x81d   : > { %s8283_s9 = scalar_lea.sflag [#allocation3], %s8282_s8 }
 0x81e   : > { %p9125_p2 = pnand %p9128_p1, %p9515_p6 }
 0x820   : > { %9416 = dma.done.wait (!%p9125_p2), %s8283_s9, 2048  }
 0x821   : > { %9418 = vsyncadd (!%p9125_p2), %s8283_s9, 4294965248  ;;  %p14_p3 = scmp.ge.s32.totalorder %s9498_s21, 6   ;;  %s15051_s15 = smov %s9425_s16 }
 0x822   : > { %s15052_s16 = smov %s9429_s17  ;;  %s15053_s17 = smov %s9509_s24 }
 0x823   : > { %s15054_s18 = smov %s9498_s21  ;;  %16 = sbr.rel (!%p14_p3) target bundleno = 3 (0x3), region = 74 }
 0x82a   :  { %8288 = vsyncpa [#allocation3], 1 }
 0x82b   :  { %8290 = vsyncpa [#allocation3 + $0x1], 1 }

</bundles_post_ra>
